<compile_context>
chip_gen: v7x
topology: tpu7x:2x2x1
jax: 0.10.0
libtpu: 0.0.40
codegen_flags: <defaults>
</compile_context>

<pallas_src>
import jax
import jax.numpy as jnp
from jax.experimental import pallas as pl
from jax.experimental.pallas import tpu as pltpu


# --------------------------------------------------------------------------
# Pallas kernels
# --------------------------------------------------------------------------

def _make_conv_bn_act_kernel(mode):
    """Fused:  out = act(BN( W @ patches + b )),  laid out (C_out, N*Ho*Wo).

    BN statistics are taken over axis=1 (the N*Ho*Wo lane axis), i.e. per
    output channel, matching BatchNorm2d in training mode."""
    def kernel(w_ref, p_ref, b_ref, g_ref, bt_ref, o_ref):
        w = w_ref[...].astype(jnp.bfloat16)           # (Cout, k*k*Cin)
        pats = p_ref[...].astype(jnp.bfloat16)        # (k*k*Cin, N*Ho*Wo)
        y = jnp.dot(w, pats, preferred_element_type=jnp.float32) + b_ref[...]
        mean = jnp.mean(y, axis=1, keepdims=True)
        var = jnp.mean(jnp.square(y - mean), axis=1, keepdims=True)   # biased, as PyTorch
        y = (y - mean) * jax.lax.rsqrt(var + 1e-5) * g_ref[...] + bt_ref[...]
        if mode == "lrelu":
            y = jnp.where(y >= 0, y, 0.01 * y)
        o_ref[...] = y
    return kernel


def _middle_kernel(hflat_ref, w1_ref, b1_ref,
                   wmu_ref, bmu_ref, gmu_ref, betamu_ref,
                   wlv_ref, blv_ref, glv_ref, betalv_ref,
                   eps_ref,
                   w2_ref, b2_ref, g2_ref, beta2_ref,
                   mu_ref, logvar_ref, hdec_ref):
    """Fused FC middle:  fc1 -> (fc_mu+bn_mu, fc_logvar+bn_logvar+log-softplus)
    -> reparameterize -> fc2+bn_fc2+leaky_relu."""
    def bn_cols(y, g, b):
        # BatchNorm1d training mode: stats over the batch axis (rows).
        mean = jnp.mean(y, axis=0, keepdims=True)
        var = jnp.mean(jnp.square(y - mean), axis=0, keepdims=True)
        return (y - mean) * jax.lax.rsqrt(var + 1e-5) * g + b

    hflat = hflat_ref[...].astype(jnp.bfloat16)                      # (N, flat)
    h = jnp.dot(hflat, w1_ref[...].astype(jnp.bfloat16),
                preferred_element_type=jnp.float32) + b1_ref[...]    # (N, hdim), no BN/act
    hb = h.astype(jnp.bfloat16)

    mu = bn_cols(
        jnp.dot(hb, wmu_ref[...].astype(jnp.bfloat16),
                preferred_element_type=jnp.float32) + bmu_ref[...],
        gmu_ref[...], betamu_ref[...])

    lv = bn_cols(
        jnp.dot(hb, wlv_ref[...].astype(jnp.bfloat16),
                preferred_element_type=jnp.float32) + blv_ref[...],
        glv_ref[...], betalv_ref[...])
    logvar = jnp.log(jnp.logaddexp(lv, 0.0))                         # log(softplus(.))

    z = mu + jnp.exp(0.5 * logvar) * eps_ref[...]                    # reparameterize

    hdec = jnp.dot(z.astype(jnp.bfloat16), w2_ref[...].astype(jnp.bfloat16),
                   preferred_element_type=jnp.float32) + b2_ref[...]
    hdec = bn_cols(hdec, g2_ref[...], beta2_ref[...])
    hdec = jnp.where(hdec >= 0, hdec, 0.01 * hdec)

    mu_ref[...] = mu
    logvar_ref[...] = logvar
    hdec_ref[...] = hdec


# --------------------------------------------------------------------------
# pallas_call glue (single VMEM-resident block per layer)
# --------------------------------------------------------------------------

def _full_spec(shape):
    # One grid step, block = full array (exempt from the (8,128) divisibility rule).
    return pl.BlockSpec(shape, lambda i: (0, 0))


def _fused_call(kernel, args, out_shapes):
    single = not isinstance(out_shapes, (tuple, list))
    outs = (out_shapes,) if single else tuple(out_shapes)
    res = pl.pallas_call(
        kernel,
        out_shape=outs,
        grid=(1,),
        in_specs=[_full_spec(a.shape) for a in args],
        out_specs=tuple(_full_spec(o.shape) for o in outs),
        compiler_params=pltpu.CompilerParams(dimension_semantics=("arbitrary",)),
    )(*args)
    return res[0] if single else res


# --------------------------------------------------------------------------
# Conv / transposed-conv lowering (channel-major im2col glue in XLA, fused
# GEMM+BN+act in Pallas)
# --------------------------------------------------------------------------

def _im2col_cnhw(x_cnhw, k, stride, pad):
    """Channel-major patches: returns (k*k*C, N*Ho*Wo) with the big spatial
    extent last (lane-dense for the GEMM output)."""
    c, n, h, w = x_cnhw.shape
    xp = jnp.pad(x_cnhw, ((0, 0), (0, 0), (pad, pad), (pad, pad)))
    ho = (h + 2 * pad - k) // stride + 1
    wo = (w + 2 * pad - k) // stride + 1
    taps = []
    for di in range(k):
        for dj in range(k):
            taps.append(xp[:, :, di:di + stride * ho:stride,
                           dj:dj + stride * wo:stride])        # (C, N, Ho, Wo)
    pat = jnp.stack(taps, axis=0)                               # (k*k, C, N, Ho, Wo)
    return pat.reshape(k * k * c, n * ho * wo), (n, ho, wo)


def conv2d_bn_act(x_cnhw, w_oihw, bias, gamma, beta, *, stride, pad, mode):
    """PyTorch Conv2d (+ BN2d + optional leaky ReLU) on (C, N, H, W) activations.
    Weight layout (Cout, Cin, kH, kW). Returns (Cout, N, Ho, Wo)."""
    cout, cin, k, _ = w_oihw.shape
    patches, (n, ho, wo) = _im2col_cnhw(x_cnhw, k, stride, pad)
    w2d = w_oihw.transpose(0, 2, 3, 1).reshape(cout, k * k * cin)  # rows: (di,dj,ci)
    out = _fused_call(
        _make_conv_bn_act_kernel(mode),
        [w2d, patches, bias.reshape(cout, 1),
         gamma.reshape(cout, 1), beta.reshape(cout, 1)],
        jax.ShapeDtypeStruct((cout, n * ho * wo), jnp.float32))
    return out.reshape(cout, n, ho, wo)


def deconv2d_bn_act(x_cnhw, w_iohw, bias, gamma, beta, *, stride, pad, out_pad, mode):
    """PyTorch ConvTranspose2d (+ BN2d + optional leaky ReLU).  Weight layout
    (Cin, Cout, kH, kW).  Lowered as: zero-dilate by `stride`, pad by (k-1-pad)
    (+out_pad bottom/right), then a stride-1 conv with the flipped kernel."""
    cin, cout, k, _ = w_iohw.shape
    c, n, h, w = x_cnhw.shape
    if stride > 1:
        hd, wd = (h - 1) * stride + 1, (w - 1) * stride + 1
        xd = jnp.zeros((c, n, hd, wd), x_cnhw.dtype)
        xd = xd.at[:, :, ::stride, ::stride].set(x_cnhw)
    else:
        xd = x_cnhw
    pb = k - 1 - pad
    xd = jnp.pad(xd, ((0, 0), (0, 0), (pb, pb + out_pad), (pb, pb + out_pad)))
    w_eq = jnp.flip(w_iohw, axis=(2, 3)).transpose(1, 0, 2, 3)  # (Cout, Cin, k, k)
    return conv2d_bn_act(xd, w_eq, bias, gamma, beta, stride=1, pad=0, mode=mode)


def vae_middle(p, hflat, eps):
    """fc1 -> mu/logvar heads -> reparameterize -> fc2+bn+lrelu, one pallas_call."""
    n, flat = hflat.shape
    r = lambda a: a.reshape(1, -1)
    ld = p["fc_mu_w"].shape[0]
    args = [hflat,
            p["fc1_w"].T, r(p["fc1_b"]),
            p["fc_mu_w"].T, r(p["fc_mu_b"]), r(p["bn_mu_g"]), r(p["bn_mu_b"]),
            p["fc_logvar_w"].T, r(p["fc_logvar_b"]),
            r(p["bn_logvar_g"]), r(p["bn_logvar_b"]),
            eps,
            p["fc2_w"].T, r(p["fc2_b"]), r(p["bn_fc2_g"]), r(p["bn_fc2_b"])]
    out_shapes = (jax.ShapeDtypeStruct((n, ld), jnp.float32),
                  jax.ShapeDtypeStruct((n, ld), jnp.float32),
                  jax.ShapeDtypeStruct((n, flat), jnp.float32))
    return _fused_call(_middle_kernel, args, out_shapes)


# --------------------------------------------------------------------------
# Parameters (deterministic synthetic init; shapes follow ConVAE.__init__)
# --------------------------------------------------------------------------

def init_params(key, n_filters=8, hdim=32, latent_dim=4, k=3):
    f = n_filters
    flat = 7 * 7 * 4 * f
    keys = jax.random.split(key, 20)

    def w(i, shape, fan_in):
        return (jax.random.normal(keys[i], shape, jnp.float32)
                / jnp.sqrt(jnp.float32(fan_in)))

    def b(i, shape):
        return 0.01 * jax.random.normal(keys[i], shape, jnp.float32)

    p = {
        # encoder convs (Conv2d weight: (Cout, Cin, k, k))
        "conv1_w": w(0, (f, 1, k, k), 1 * k * k),      "conv1_b": b(10, (f,)),
        "conv2_w": w(1, (2 * f, f, k, k), f * k * k),  "conv2_b": b(11, (2 * f,)),
        "conv3_w": w(2, (4 * f, 2 * f, k, k), 2 * f * k * k),
        "conv3_b": b(12, (4 * f,)),
        # fc layers (Linear weight: (out, in))
        "fc1_w": w(3, (hdim, flat), flat),             "fc1_b": b(13, (hdim,)),
        "fc_mu_w": w(4, (latent_dim, hdim), hdim),     "fc_mu_b": b(14, (latent_dim,)),
        "fc_logvar_w": w(5, (latent_dim, hdim), hdim), "fc_logvar_b": b(15, (latent_dim,)),
        "fc2_w": w(6, (flat, latent_dim), latent_dim), "fc2_b": b(16, (flat,)),
        # decoder deconvs (ConvTranspose2d weight: (Cin, Cout, k, k))
        "deconv1_w": w(7, (4 * f, 2 * f, k, k), 4 * f * k * k),
        "deconv1_b": b(17, (2 * f,)),
        "deconv2_w": w(8, (2 * f, f, k, k), 2 * f * k * k),
        "deconv2_b": b(18, (f,)),
        "deconv3_w": w(9, (f, 1, k, k), f * k * k),
        "deconv3_b": b(19, (1,)),
    }
    # BatchNorm params (PyTorch init: gamma=1, beta=0). bn_fc1 exists in the
    # reference __init__ but is never used in encode(); kept for parity.
    for name, c in [("bn_conv1", f), ("bn_conv2", 2 * f), ("bn_conv3", 4 * f),
                    ("bn_fc1", hdim), ("bn_mu", latent_dim),
                    ("bn_logvar", latent_dim), ("bn_fc2", flat),
                    ("bn_deconv1", 2 * f), ("bn_deconv2", f), ("bn_deconv3", 1)]:
        p[name + "_g"] = jnp.ones((c,), jnp.float32)
        p[name + "_b"] = jnp.zeros((c,), jnp.float32)
    return p


# --------------------------------------------------------------------------
# ConVAE forward
# --------------------------------------------------------------------------

def convae_forward(p, x_nchw, eps_key):
    n = x_nchw.shape[0]
    f = p["conv1_w"].shape[0]
    latent_dim = p["fc_mu_w"].shape[0]

    # ---- encode (channel-major (C, N, H, W) activations, lane = spatial) ----
    x = x_nchw.reshape(n, 1, 28, 28).transpose(1, 0, 2, 3)           # (1, N, 28, 28)
    h = conv2d_bn_act(x, p["conv1_w"], p["conv1_b"],
                      p["bn_conv1_g"], p["bn_conv1_b"],
                      stride=1, pad=1, mode="lrelu")                 # (F, N, 28, 28)
    h = conv2d_bn_act(h, p["conv2_w"], p["conv2_b"],
                      p["bn_conv2_g"], p["bn_conv2_b"],
                      stride=2, pad=1, mode="lrelu")                 # (2F, N, 14, 14)
    h = conv2d_bn_act(h, p["conv3_w"], p["conv3_b"],
                      p["bn_conv3_g"], p["bn_conv3_b"],
                      stride=2, pad=1, mode="lrelu")                 # (4F, N, 7, 7)

    # flatten in PyTorch NCHW order (C, H, W) so fc1's feature ordering matches
    hflat = h.transpose(1, 0, 2, 3).reshape(n, -1)                   # (N, 7*7*4F)

    # ---- fc1 / mu / logvar / reparameterize / fc2+bn+lrelu (single kernel) ----
    eps = jax.random.normal(eps_key, (n, latent_dim), dtype=jnp.float32)
    mu, logvar, hdec = vae_middle(p, hflat, eps)                     # (N,ld),(N,ld),(N,flat)

    # ---- decode ----
    hd = hdec.reshape(n, 4 * f, 7, 7).transpose(1, 0, 2, 3)          # (4F, N, 7, 7)
    hd = deconv2d_bn_act(hd, p["deconv1_w"], p["deconv1_b"],
                         p["bn_deconv1_g"], p["bn_deconv1_b"],
                         stride=2, pad=1, out_pad=1, mode="lrelu")   # (2F, N, 14, 14)
    hd = deconv2d_bn_act(hd, p["deconv2_w"], p["deconv2_b"],
                         p["bn_deconv2_g"], p["bn_deconv2_b"],
                         stride=2, pad=1, out_pad=1, mode="lrelu")   # (F, N, 28, 28)
    hd = deconv2d_bn_act(hd, p["deconv3_w"], p["deconv3_b"],
                         p["bn_deconv3_g"], p["bn_deconv3_b"],
                         stride=1, pad=1, out_pad=0, mode="none")    # (1, N, 28, 28)

    recon = hd.transpose(1, 0, 2, 3)                                 # (N, 1, 28, 28)
    return recon, mu, logvar


# --------------------------------------------------------------------------

if __name__ == "__main__":
    key = jax.random.PRNGKey(0)
    pkey, xkey, ekey = jax.random.split(key, 3)

    # small config consistent with the module: n_filters=8, hdim=32, latent_dim=4
    params = init_params(pkey, n_filters=8, hdim=32, latent_dim=4)
    x = jax.random.normal(xkey, (2, 1, 28, 28), dtype=jnp.float32)

    recon, mu, logvar = jax.jit(convae_forward)(params, x, ekey)
    jax.block_until_ready((recon, mu, logvar))

    assert recon.shape == (2, 1, 28, 28), recon.shape
    assert mu.shape == (2, 4), mu.shape
    assert logvar.shape == (2, 4), logvar.shape
    assert bool(jnp.all(jnp.isfinite(recon)))
    assert bool(jnp.all(jnp.isfinite(mu)))
    assert bool(jnp.all(jnp.isfinite(logvar)))
    print("KERNEL_OK")
</pallas_src>

<mosaic_0001>
module attributes {stable_mosaic.version = 11 : i64} {
  func.func @kernel(%arg0: i32, %arg1: memref<8x9xf32, #tpu.memory_space<vmem>>, %arg2: memref<9x1568xf32, #tpu.memory_space<vmem>>, %arg3: memref<8x1xf32, #tpu.memory_space<vmem>>, %arg4: memref<8x1xf32, #tpu.memory_space<vmem>>, %arg5: memref<8x1xf32, #tpu.memory_space<vmem>>, %arg6: memref<8x1568xf32, #tpu.memory_space<vmem>>) attributes {dimension_semantics = [#tpu.dimension_semantics<arbitrary>], iteration_bounds = array<i64: 1>, scalar_prefetch = 0 : i64, scratch_operands = 0 : i64, tpu.core_type = #tpu.core_type<tc>, window_params = [{pipeline_mode = #tpu.pipeline_mode<synchronous>, transform_indices = @transform_0, window_bounds = array<i64: 8, 9>}, {pipeline_mode = #tpu.pipeline_mode<synchronous>, transform_indices = @transform_1, window_bounds = array<i64: 9, 1568>}, {pipeline_mode = #tpu.pipeline_mode<synchronous>, transform_indices = @transform_2, window_bounds = array<i64: 8, 1>}, {pipeline_mode = #tpu.pipeline_mode<synchronous>, transform_indices = @transform_3, window_bounds = array<i64: 8, 1>}, {pipeline_mode = #tpu.pipeline_mode<synchronous>, transform_indices = @transform_4, window_bounds = array<i64: 8, 1>}, {pipeline_mode = #tpu.pipeline_mode<synchronous>, transform_indices = @transform_5, window_bounds = array<i64: 8, 1568>}]} {
    %c0 = arith.constant 0 : index
    %c0_0 = arith.constant 0 : index
    %0 = vector.load %arg1[%c0, %c0_0] : memref<8x9xf32, #tpu.memory_space<vmem>>, vector<8x9xf32>
    %1 = arith.truncf %0 : vector<8x9xf32> to vector<8x9xbf16>
    %c0_1 = arith.constant 0 : index
    %c0_2 = arith.constant 0 : index
    %2 = vector.load %arg2[%c0_1, %c0_2] : memref<9x1568xf32, #tpu.memory_space<vmem>>, vector<9x1568xf32>
    %3 = arith.truncf %2 : vector<9x1568xf32> to vector<9x1568xbf16>
    %cst = arith.constant dense<0.000000e+00> : vector<8x1568xf32>
    %4 = tpu.matmul %1, %3, %cst {dimension_numbers = #tpu.dot_dimension_numbers<[1], [0], [0], [1], [0, 0, 1, 1], [], []>} : vector<8x9xbf16>, vector<9x1568xbf16>, vector<8x1568xf32> -> vector<8x1568xf32>
    %c0_3 = arith.constant 0 : index
    %c0_4 = arith.constant 0 : index
    %5 = vector.load %arg3[%c0_3, %c0_4] : memref<8x1xf32, #tpu.memory_space<vmem>>, vector<8x1xf32>
    %6 = vector.broadcast %5 : vector<8x1xf32> to vector<8x1568xf32>
    %7 = arith.addf %4, %6 : vector<8x1568xf32>
    %cst_5 = arith.constant dense<0.000000e+00> : vector<8xf32>
    %8 = vector.multi_reduction <add>, %7, %cst_5 [1] : vector<8x1568xf32> to vector<8xf32>
    %9 = vector.shape_cast %8 : vector<8xf32> to vector<8x1xf32>
    %cst_6 = arith.constant 1.568000e+03 : f32
    %10 = vector.broadcast %cst_6 : f32 to vector<8x1xf32>
    %11 = arith.divf %9, %10 : vector<8x1xf32>
    %12 = vector.broadcast %11 : vector<8x1xf32> to vector<8x1568xf32>
    %13 = arith.subf %7, %12 : vector<8x1568xf32>
    %14 = arith.mulf %13, %13 : vector<8x1568xf32>
    %cst_7 = arith.constant dense<0.000000e+00> : vector<8xf32>
    %15 = vector.multi_reduction <add>, %14, %cst_7 [1] : vector<8x1568xf32> to vector<8xf32>
    %16 = vector.shape_cast %15 : vector<8xf32> to vector<8x1xf32>
    %cst_8 = arith.constant 1.568000e+03 : f32
    %17 = vector.broadcast %cst_8 : f32 to vector<8x1xf32>
    %18 = arith.divf %16, %17 : vector<8x1xf32>
    %19 = vector.broadcast %11 : vector<8x1xf32> to vector<8x1568xf32>
    %20 = arith.subf %7, %19 : vector<8x1568xf32>
    %cst_9 = arith.constant 9.99999974E-6 : f32
    %21 = vector.broadcast %cst_9 : f32 to vector<8x1xf32>
    %22 = arith.addf %18, %21 : vector<8x1xf32>
    %23 = math.rsqrt %22 : vector<8x1xf32>
    %24 = vector.broadcast %23 : vector<8x1xf32> to vector<8x1568xf32>
    %25 = arith.mulf %20, %24 : vector<8x1568xf32>
    %c0_10 = arith.constant 0 : index
    %c0_11 = arith.constant 0 : index
    %26 = vector.load %arg4[%c0_10, %c0_11] : memref<8x1xf32, #tpu.memory_space<vmem>>, vector<8x1xf32>
    %27 = vector.broadcast %26 : vector<8x1xf32> to vector<8x1568xf32>
    %28 = arith.mulf %25, %27 : vector<8x1568xf32>
    %c0_12 = arith.constant 0 : index
    %c0_13 = arith.constant 0 : index
    %29 = vector.load %arg5[%c0_12, %c0_13] : memref<8x1xf32, #tpu.memory_space<vmem>>, vector<8x1xf32>
    %30 = vector.broadcast %29 : vector<8x1xf32> to vector<8x1568xf32>
    %31 = arith.addf %28, %30 : vector<8x1568xf32>
    %cst_14 = arith.constant 0.000000e+00 : f32
    %32 = vector.broadcast %cst_14 : f32 to vector<8x1568xf32>
    %33 = arith.cmpf oge, %31, %32 : vector<8x1568xf32>
    %cst_15 = arith.constant 0.00999999977 : f32
    %34 = vector.broadcast %cst_15 : f32 to vector<8x1568xf32>
    %35 = arith.mulf %34, %31 : vector<8x1568xf32>
    %36 = arith.select %33, %31, %35 : vector<8x1568xi1>, vector<8x1568xf32>
    %c0_16 = arith.constant 0 : index
    %c0_17 = arith.constant 0 : index
    %37 = vector.load %arg6[%c0_16, %c0_17] : memref<8x1568xf32, #tpu.memory_space<vmem>>, vector<8x1568xf32>
    tpu.vector_store %arg6[%c0_16, %c0_17], %36 {strides = array<i32>} : memref<8x1568xf32, #tpu.memory_space<vmem>>, vector<8x1568xf32>,
    return
  }
  func.func @transform_0(%arg0: i32) -> (i32, i32) {
    %c0_i32 = arith.constant 0 : i32
    %c0_i32_0 = arith.constant 0 : i32
    %c0_i32_1 = arith.constant 0 : i32
    return %c0_i32, %c0_i32_0 : i32, i32
  }
  func.func @transform_1(%arg0: i32) -> (i32, i32) {
    %c0_i32 = arith.constant 0 : i32
    %c0_i32_0 = arith.constant 0 : i32
    %c0_i32_1 = arith.constant 0 : i32
    return %c0_i32, %c0_i32_0 : i32, i32
  }
  func.func @transform_2(%arg0: i32) -> (i32, i32) {
    %c0_i32 = arith.constant 0 : i32
    %c0_i32_0 = arith.constant 0 : i32
    %c0_i32_1 = arith.constant 0 : i32
    return %c0_i32, %c0_i32_0 : i32, i32
  }
  func.func @transform_3(%arg0: i32) -> (i32, i32) {
    %c0_i32 = arith.constant 0 : i32
    %c0_i32_0 = arith.constant 0 : i32
    %c0_i32_1 = arith.constant 0 : i32
    return %c0_i32, %c0_i32_0 : i32, i32
  }
  func.func @transform_4(%arg0: i32) -> (i32, i32) {
    %c0_i32 = arith.constant 0 : i32
    %c0_i32_0 = arith.constant 0 : i32
    %c0_i32_1 = arith.constant 0 : i32
    return %c0_i32, %c0_i32_0 : i32, i32
  }
  func.func @transform_5(%arg0: i32) -> (i32, i32) {
    %c0_i32 = arith.constant 0 : i32
    %c0_i32_0 = arith.constant 0 : i32
    %c0_i32_1 = arith.constant 0 : i32
    return %c0_i32, %c0_i32_0 : i32, i32
  }
}

module attributes {stable_mosaic.version = 11 : i64} {
  func.func @kernel(%arg0: i32, %arg1: memref<16x72xf32, #tpu.memory_space<vmem>>, %arg2: memref<72x392xf32, #tpu.memory_space<vmem>>, %arg3: memref<16x1xf32, #tpu.memory_space<vmem>>, %arg4: memref<16x1xf32, #tpu.memory_space<vmem>>, %arg5: memref<16x1xf32, #tpu.memory_space<vmem>>, %arg6: memref<16x392xf32, #tpu.memory_space<vmem>>) attributes {dimension_semantics = [#tpu.dimension_semantics<arbitrary>], iteration_bounds = array<i64: 1>, scalar_prefetch = 0 : i64, scratch_operands = 0 : i64, tpu.core_type = #tpu.core_type<tc>, window_params = [{pipeline_mode = #tpu.pipeline_mode<synchronous>, transform_indices = @transform_0, window_bounds = array<i64: 16, 72>}, {pipeline_mode = #tpu.pipeline_mode<synchronous>, transform_indices = @transform_1, window_bounds = array<i64: 72, 392>}, {pipeline_mode = #tpu.pipeline_mode<synchronous>, transform_indices = @transform_2, window_bounds = array<i64: 16, 1>}, {pipeline_mode = #tpu.pipeline_mode<synchronous>, transform_indices = @transform_3, window_bounds = array<i64: 16, 1>}, {pipeline_mode = #tpu.pipeline_mode<synchronous>, transform_indices = @transform_4, window_bounds = array<i64: 16, 1>}, {pipeline_mode = #tpu.pipeline_mode<synchronous>, transform_indices = @transform_5, window_bounds = array<i64: 16, 392>}]} {
    %c0 = arith.constant 0 : index
    %c0_0 = arith.constant 0 : index
    %0 = vector.load %arg1[%c0, %c0_0] : memref<16x72xf32, #tpu.memory_space<vmem>>, vector<16x72xf32>
    %1 = arith.truncf %0 : vector<16x72xf32> to vector<16x72xbf16>
    %c0_1 = arith.constant 0 : index
    %c0_2 = arith.constant 0 : index
    %2 = vector.load %arg2[%c0_1, %c0_2] : memref<72x392xf32, #tpu.memory_space<vmem>>, vector<72x392xf32>
    %3 = arith.truncf %2 : vector<72x392xf32> to vector<72x392xbf16>
    %cst = arith.constant dense<0.000000e+00> : vector<16x392xf32>
    %4 = tpu.matmul %1, %3, %cst {dimension_numbers = #tpu.dot_dimension_numbers<[1], [0], [0], [1], [0, 0, 1, 1], [], []>} : vector<16x72xbf16>, vector<72x392xbf16>, vector<16x392xf32> -> vector<16x392xf32>
    %c0_3 = arith.constant 0 : index
    %c0_4 = arith.constant 0 : index
    %5 = vector.load %arg3[%c0_3, %c0_4] : memref<16x1xf32, #tpu.memory_space<vmem>>, vector<16x1xf32>
    %6 = vector.broadcast %5 : vector<16x1xf32> to vector<16x392xf32>
    %7 = arith.addf %4, %6 : vector<16x392xf32>
    %cst_5 = arith.constant dense<0.000000e+00> : vector<16xf32>
    %8 = vector.multi_reduction <add>, %7, %cst_5 [1] : vector<16x392xf32> to vector<16xf32>
    %9 = vector.shape_cast %8 : vector<16xf32> to vector<16x1xf32>
    %cst_6 = arith.constant 3.920000e+02 : f32
    %10 = vector.broadcast %cst_6 : f32 to vector<16x1xf32>
    %11 = arith.divf %9, %10 : vector<16x1xf32>
    %12 = vector.broadcast %11 : vector<16x1xf32> to vector<16x392xf32>
    %13 = arith.subf %7, %12 : vector<16x392xf32>
    %14 = arith.mulf %13, %13 : vector<16x392xf32>
    %cst_7 = arith.constant dense<0.000000e+00> : vector<16xf32>
    %15 = vector.multi_reduction <add>, %14, %cst_7 [1] : vector<16x392xf32> to vector<16xf32>
    %16 = vector.shape_cast %15 : vector<16xf32> to vector<16x1xf32>
    %cst_8 = arith.constant 3.920000e+02 : f32
    %17 = vector.broadcast %cst_8 : f32 to vector<16x1xf32>
    %18 = arith.divf %16, %17 : vector<16x1xf32>
    %19 = vector.broadcast %11 : vector<16x1xf32> to vector<16x392xf32>
    %20 = arith.subf %7, %19 : vector<16x392xf32>
    %cst_9 = arith.constant 9.99999974E-6 : f32
    %21 = vector.broadcast %cst_9 : f32 to vector<16x1xf32>
    %22 = arith.addf %18, %21 : vector<16x1xf32>
    %23 = math.rsqrt %22 : vector<16x1xf32>
    %24 = vector.broadcast %23 : vector<16x1xf32> to vector<16x392xf32>
    %25 = arith.mulf %20, %24 : vector<16x392xf32>
    %c0_10 = arith.constant 0 : index
    %c0_11 = arith.constant 0 : index
    %26 = vector.load %arg4[%c0_10, %c0_11] : memref<16x1xf32, #tpu.memory_space<vmem>>, vector<16x1xf32>
    %27 = vector.broadcast %26 : vector<16x1xf32> to vector<16x392xf32>
    %28 = arith.mulf %25, %27 : vector<16x392xf32>
    %c0_12 = arith.constant 0 : index
    %c0_13 = arith.constant 0 : index
    %29 = vector.load %arg5[%c0_12, %c0_13] : memref<16x1xf32, #tpu.memory_space<vmem>>, vector<16x1xf32>
    %30 = vector.broadcast %29 : vector<16x1xf32> to vector<16x392xf32>
    %31 = arith.addf %28, %30 : vector<16x392xf32>
    %cst_14 = arith.constant 0.000000e+00 : f32
    %32 = vector.broadcast %cst_14 : f32 to vector<16x392xf32>
    %33 = arith.cmpf oge, %31, %32 : vector<16x392xf32>
    %cst_15 = arith.constant 0.00999999977 : f32
    %34 = vector.broadcast %cst_15 : f32 to vector<16x392xf32>
    %35 = arith.mulf %34, %31 : vector<16x392xf32>
    %36 = arith.select %33, %31, %35 : vector<16x392xi1>, vector<16x392xf32>
    %c0_16 = arith.constant 0 : index
    %c0_17 = arith.constant 0 : index
    %37 = vector.load %arg6[%c0_16, %c0_17] : memref<16x392xf32, #tpu.memory_space<vmem>>, vector<16x392xf32>
    tpu.vector_store %arg6[%c0_16, %c0_17], %36 {strides = array<i32>} : memref<16x392xf32, #tpu.memory_space<vmem>>, vector<16x392xf32>,
    return
  }
  func.func @transform_0(%arg0: i32) -> (i32, i32) {
    %c0_i32 = arith.constant 0 : i32
    %c0_i32_0 = arith.constant 0 : i32
    %c0_i32_1 = arith.constant 0 : i32
    return %c0_i32, %c0_i32_0 : i32, i32
  }
  func.func @transform_1(%arg0: i32) -> (i32, i32) {
    %c0_i32 = arith.constant 0 : i32
    %c0_i32_0 = arith.constant 0 : i32
    %c0_i32_1 = arith.constant 0 : i32
    return %c0_i32, %c0_i32_0 : i32, i32
  }
  func.func @transform_2(%arg0: i32) -> (i32, i32) {
    %c0_i32 = arith.constant 0 : i32
    %c0_i32_0 = arith.constant 0 : i32
    %c0_i32_1 = arith.constant 0 : i32
    return %c0_i32, %c0_i32_0 : i32, i32
  }
  func.func @transform_3(%arg0: i32) -> (i32, i32) {
    %c0_i32 = arith.constant 0 : i32
    %c0_i32_0 = arith.constant 0 : i32
    %c0_i32_1 = arith.constant 0 : i32
    return %c0_i32, %c0_i32_0 : i32, i32
  }
  func.func @transform_4(%arg0: i32) -> (i32, i32) {
    %c0_i32 = arith.constant 0 : i32
    %c0_i32_0 = arith.constant 0 : i32
    %c0_i32_1 = arith.constant 0 : i32
    return %c0_i32, %c0_i32_0 : i32, i32
  }
  func.func @transform_5(%arg0: i32) -> (i32, i32) {
    %c0_i32 = arith.constant 0 : i32
    %c0_i32_0 = arith.constant 0 : i32
    %c0_i32_1 = arith.constant 0 : i32
    return %c0_i32, %c0_i32_0 : i32, i32
  }
}

module attributes {stable_mosaic.version = 11 : i64} {
  func.func @kernel(%arg0: i32, %arg1: memref<32x144xf32, #tpu.memory_space<vmem>>, %arg2: memref<144x98xf32, #tpu.memory_space<vmem>>, %arg3: memref<32x1xf32, #tpu.memory_space<vmem>>, %arg4: memref<32x1xf32, #tpu.memory_space<vmem>>, %arg5: memref<32x1xf32, #tpu.memory_space<vmem>>, %arg6: memref<32x98xf32, #tpu.memory_space<vmem>>) attributes {dimension_semantics = [#tpu.dimension_semantics<arbitrary>], iteration_bounds = array<i64: 1>, scalar_prefetch = 0 : i64, scratch_operands = 0 : i64, tpu.core_type = #tpu.core_type<tc>, window_params = [{pipeline_mode = #tpu.pipeline_mode<synchronous>, transform_indices = @transform_0, window_bounds = array<i64: 32, 144>}, {pipeline_mode = #tpu.pipeline_mode<synchronous>, transform_indices = @transform_1, window_bounds = array<i64: 144, 98>}, {pipeline_mode = #tpu.pipeline_mode<synchronous>, transform_indices = @transform_2, window_bounds = array<i64: 32, 1>}, {pipeline_mode = #tpu.pipeline_mode<synchronous>, transform_indices = @transform_3, window_bounds = array<i64: 32, 1>}, {pipeline_mode = #tpu.pipeline_mode<synchronous>, transform_indices = @transform_4, window_bounds = array<i64: 32, 1>}, {pipeline_mode = #tpu.pipeline_mode<synchronous>, transform_indices = @transform_5, window_bounds = array<i64: 32, 98>}]} {
    %c0 = arith.constant 0 : index
    %c0_0 = arith.constant 0 : index
    %0 = vector.load %arg1[%c0, %c0_0] : memref<32x144xf32, #tpu.memory_space<vmem>>, vector<32x144xf32>
    %1 = arith.truncf %0 : vector<32x144xf32> to vector<32x144xbf16>
    %c0_1 = arith.constant 0 : index
    %c0_2 = arith.constant 0 : index
    %2 = vector.load %arg2[%c0_1, %c0_2] : memref<144x98xf32, #tpu.memory_space<vmem>>, vector<144x98xf32>
    %3 = arith.truncf %2 : vector<144x98xf32> to vector<144x98xbf16>
    %cst = arith.constant dense<0.000000e+00> : vector<32x98xf32>
    %4 = tpu.matmul %1, %3, %cst {dimension_numbers = #tpu.dot_dimension_numbers<[1], [0], [0], [1], [0, 0, 1, 1], [], []>} : vector<32x144xbf16>, vector<144x98xbf16>, vector<32x98xf32> -> vector<32x98xf32>
    %c0_3 = arith.constant 0 : index
    %c0_4 = arith.constant 0 : index
    %5 = vector.load %arg3[%c0_3, %c0_4] : memref<32x1xf32, #tpu.memory_space<vmem>>, vector<32x1xf32>
    %6 = vector.broadcast %5 : vector<32x1xf32> to vector<32x98xf32>
    %7 = arith.addf %4, %6 : vector<32x98xf32>
    %cst_5 = arith.constant dense<0.000000e+00> : vector<32xf32>
    %8 = vector.multi_reduction <add>, %7, %cst_5 [1] : vector<32x98xf32> to vector<32xf32>
    %9 = vector.shape_cast %8 : vector<32xf32> to vector<32x1xf32>
    %cst_6 = arith.constant 9.800000e+01 : f32
    %10 = vector.broadcast %cst_6 : f32 to vector<32x1xf32>
    %11 = arith.divf %9, %10 : vector<32x1xf32>
    %12 = vector.broadcast %11 : vector<32x1xf32> to vector<32x98xf32>
    %13 = arith.subf %7, %12 : vector<32x98xf32>
    %14 = arith.mulf %13, %13 : vector<32x98xf32>
    %cst_7 = arith.constant dense<0.000000e+00> : vector<32xf32>
    %15 = vector.multi_reduction <add>, %14, %cst_7 [1] : vector<32x98xf32> to vector<32xf32>
    %16 = vector.shape_cast %15 : vector<32xf32> to vector<32x1xf32>
    %cst_8 = arith.constant 9.800000e+01 : f32
    %17 = vector.broadcast %cst_8 : f32 to vector<32x1xf32>
    %18 = arith.divf %16, %17 : vector<32x1xf32>
    %19 = vector.broadcast %11 : vector<32x1xf32> to vector<32x98xf32>
    %20 = arith.subf %7, %19 : vector<32x98xf32>
    %cst_9 = arith.constant 9.99999974E-6 : f32
    %21 = vector.broadcast %cst_9 : f32 to vector<32x1xf32>
    %22 = arith.addf %18, %21 : vector<32x1xf32>
    %23 = math.rsqrt %22 : vector<32x1xf32>
    %24 = vector.broadcast %23 : vector<32x1xf32> to vector<32x98xf32>
    %25 = arith.mulf %20, %24 : vector<32x98xf32>
    %c0_10 = arith.constant 0 : index
    %c0_11 = arith.constant 0 : index
    %26 = vector.load %arg4[%c0_10, %c0_11] : memref<32x1xf32, #tpu.memory_space<vmem>>, vector<32x1xf32>
    %27 = vector.broadcast %26 : vector<32x1xf32> to vector<32x98xf32>
    %28 = arith.mulf %25, %27 : vector<32x98xf32>
    %c0_12 = arith.constant 0 : index
    %c0_13 = arith.constant 0 : index
    %29 = vector.load %arg5[%c0_12, %c0_13] : memref<32x1xf32, #tpu.memory_space<vmem>>, vector<32x1xf32>
    %30 = vector.broadcast %29 : vector<32x1xf32> to vector<32x98xf32>
    %31 = arith.addf %28, %30 : vector<32x98xf32>
    %cst_14 = arith.constant 0.000000e+00 : f32
    %32 = vector.broadcast %cst_14 : f32 to vector<32x98xf32>
    %33 = arith.cmpf oge, %31, %32 : vector<32x98xf32>
    %cst_15 = arith.constant 0.00999999977 : f32
    %34 = vector.broadcast %cst_15 : f32 to vector<32x98xf32>
    %35 = arith.mulf %34, %31 : vector<32x98xf32>
    %36 = arith.select %33, %31, %35 : vector<32x98xi1>, vector<32x98xf32>
    %c0_16 = arith.constant 0 : index
    %c0_17 = arith.constant 0 : index
    %37 = vector.load %arg6[%c0_16, %c0_17] : memref<32x98xf32, #tpu.memory_space<vmem>>, vector<32x98xf32>
    tpu.vector_store %arg6[%c0_16, %c0_17], %36 {strides = array<i32>} : memref<32x98xf32, #tpu.memory_space<vmem>>, vector<32x98xf32>,
    return
  }
  func.func @transform_0(%arg0: i32) -> (i32, i32) {
    %c0_i32 = arith.constant 0 : i32
    %c0_i32_0 = arith.constant 0 : i32
    %c0_i32_1 = arith.constant 0 : i32
    return %c0_i32, %c0_i32_0 : i32, i32
  }
  func.func @transform_1(%arg0: i32) -> (i32, i32) {
    %c0_i32 = arith.constant 0 : i32
    %c0_i32_0 = arith.constant 0 : i32
    %c0_i32_1 = arith.constant 0 : i32
    return %c0_i32, %c0_i32_0 : i32, i32
  }
  func.func @transform_2(%arg0: i32) -> (i32, i32) {
    %c0_i32 = arith.constant 0 : i32
    %c0_i32_0 = arith.constant 0 : i32
    %c0_i32_1 = arith.constant 0 : i32
    return %c0_i32, %c0_i32_0 : i32, i32
  }
  func.func @transform_3(%arg0: i32) -> (i32, i32) {
    %c0_i32 = arith.constant 0 : i32
    %c0_i32_0 = arith.constant 0 : i32
    %c0_i32_1 = arith.constant 0 : i32
    return %c0_i32, %c0_i32_0 : i32, i32
  }
  func.func @transform_4(%arg0: i32) -> (i32, i32) {
    %c0_i32 = arith.constant 0 : i32
    %c0_i32_0 = arith.constant 0 : i32
    %c0_i32_1 = arith.constant 0 : i32
    return %c0_i32, %c0_i32_0 : i32, i32
  }
  func.func @transform_5(%arg0: i32) -> (i32, i32) {
    %c0_i32 = arith.constant 0 : i32
    %c0_i32_0 = arith.constant 0 : i32
    %c0_i32_1 = arith.constant 0 : i32
    return %c0_i32, %c0_i32_0 : i32, i32
  }
}

module attributes {stable_mosaic.version = 11 : i64} {
  func.func @_middle_kernel(%arg0: i32, %arg1: memref<2x1568xf32, #tpu.memory_space<vmem>>, %arg2: memref<1568x32xf32, #tpu.memory_space<vmem>>, %arg3: memref<1x32xf32, #tpu.memory_space<vmem>>, %arg4: memref<32x4xf32, #tpu.memory_space<vmem>>, %arg5: memref<1x4xf32, #tpu.memory_space<vmem>>, %arg6: memref<1x4xf32, #tpu.memory_space<vmem>>, %arg7: memref<1x4xf32, #tpu.memory_space<vmem>>, %arg8: memref<32x4xf32, #tpu.memory_space<vmem>>, %arg9: memref<1x4xf32, #tpu.memory_space<vmem>>, %arg10: memref<1x4xf32, #tpu.memory_space<vmem>>, %arg11: memref<1x4xf32, #tpu.memory_space<vmem>>, %arg12: memref<2x4xf32, #tpu.memory_space<vmem>>, %arg13: memref<4x1568xf32, #tpu.memory_space<vmem>>, %arg14: memref<1x1568xf32, #tpu.memory_space<vmem>>, %arg15: memref<1x1568xf32, #tpu.memory_space<vmem>>, %arg16: memref<1x1568xf32, #tpu.memory_space<vmem>>, %arg17: memref<2x4xf32, #tpu.memory_space<vmem>>, %arg18: memref<2x4xf32, #tpu.memory_space<vmem>>, %arg19: memref<2x1568xf32, #tpu.memory_space<vmem>>) attributes {dimension_semantics = [#tpu.dimension_semantics<arbitrary>], iteration_bounds = array<i64: 1>, scalar_prefetch = 0 : i64, scratch_operands = 0 : i64, tpu.core_type = #tpu.core_type<tc>, window_params = [{pipeline_mode = #tpu.pipeline_mode<synchronous>, transform_indices = @transform_0, window_bounds = array<i64: 2, 1568>}, {pipeline_mode = #tpu.pipeline_mode<synchronous>, transform_indices = @transform_1, window_bounds = array<i64: 1568, 32>}, {pipeline_mode = #tpu.pipeline_mode<synchronous>, transform_indices = @transform_2, window_bounds = array<i64: 1, 32>}, {pipeline_mode = #tpu.pipeline_mode<synchronous>, transform_indices = @transform_3, window_bounds = array<i64: 32, 4>}, {pipeline_mode = #tpu.pipeline_mode<synchronous>, transform_indices = @transform_4, window_bounds = array<i64: 1, 4>}, {pipeline_mode = #tpu.pipeline_mode<synchronous>, transform_indices = @transform_5, window_bounds = array<i64: 1, 4>}, {pipeline_mode = #tpu.pipeline_mode<synchronous>, transform_indices = @transform_6, window_bounds = array<i64: 1, 4>}, {pipeline_mode = #tpu.pipeline_mode<synchronous>, transform_indices = @transform_7, window_bounds = array<i64: 32, 4>}, {pipeline_mode = #tpu.pipeline_mode<synchronous>, transform_indices = @transform_8, window_bounds = array<i64: 1, 4>}, {pipeline_mode = #tpu.pipeline_mode<synchronous>, transform_indices = @transform_9, window_bounds = array<i64: 1, 4>}, {pipeline_mode = #tpu.pipeline_mode<synchronous>, transform_indices = @transform_10, window_bounds = array<i64: 1, 4>}, {pipeline_mode = #tpu.pipeline_mode<synchronous>, transform_indices = @transform_11, window_bounds = array<i64: 2, 4>}, {pipeline_mode = #tpu.pipeline_mode<synchronous>, transform_indices = @transform_12, window_bounds = array<i64: 4, 1568>}, {pipeline_mode = #tpu.pipeline_mode<synchronous>, transform_indices = @transform_13, window_bounds = array<i64: 1, 1568>}, {pipeline_mode = #tpu.pipeline_mode<synchronous>, transform_indices = @transform_14, window_bounds = array<i64: 1, 1568>}, {pipeline_mode = #tpu.pipeline_mode<synchronous>, transform_indices = @transform_15, window_bounds = array<i64: 1, 1568>}, {pipeline_mode = #tpu.pipeline_mode<synchronous>, transform_indices = @transform_16, window_bounds = array<i64: 2, 4>}, {pipeline_mode = #tpu.pipeline_mode<synchronous>, transform_indices = @transform_17, window_bounds = array<i64: 2, 4>}, {pipeline_mode = #tpu.pipeline_mode<synchronous>, transform_indices = @transform_18, window_bounds = array<i64: 2, 1568>}]} {
    %c0 = arith.constant 0 : index
    %c0_0 = arith.constant 0 : index
    %0 = vector.load %arg1[%c0, %c0_0] : memref<2x1568xf32, #tpu.memory_space<vmem>>, vector<2x1568xf32>
    %1 = arith.truncf %0 : vector<2x1568xf32> to vector<2x1568xbf16>
    %c0_1 = arith.constant 0 : index
    %c0_2 = arith.constant 0 : index
    %2 = vector.load %arg2[%c0_1, %c0_2] : memref<1568x32xf32, #tpu.memory_space<vmem>>, vector<1568x32xf32>
    %3 = arith.truncf %2 : vector<1568x32xf32> to vector<1568x32xbf16>
    %cst = arith.constant dense<0.000000e+00> : vector<2x32xf32>
    %4 = tpu.matmul %1, %3, %cst {dimension_numbers = #tpu.dot_dimension_numbers<[1], [0], [0], [1], [0, 0, 1, 1], [], []>} : vector<2x1568xbf16>, vector<1568x32xbf16>, vector<2x32xf32> -> vector<2x32xf32>
    %c0_3 = arith.constant 0 : index
    %c0_4 = arith.constant 0 : index
    %5 = vector.load %arg3[%c0_3, %c0_4] : memref<1x32xf32, #tpu.memory_space<vmem>>, vector<1x32xf32>
    %6 = vector.broadcast %5 : vector<1x32xf32> to vector<2x32xf32>
    %7 = arith.addf %4, %6 : vector<2x32xf32>
    %8 = arith.truncf %7 : vector<2x32xf32> to vector<2x32xbf16>
    %c0_5 = arith.constant 0 : index
    %c0_6 = arith.constant 0 : index
    %9 = vector.load %arg4[%c0_5, %c0_6] : memref<32x4xf32, #tpu.memory_space<vmem>>, vector<32x4xf32>
    %10 = arith.truncf %9 : vector<32x4xf32> to vector<32x4xbf16>
    %cst_7 = arith.constant dense<0.000000e+00> : vector<2x4xf32>
    %11 = tpu.matmul %8, %10, %cst_7 {dimension_numbers = #tpu.dot_dimension_numbers<[1], [0], [0], [1], [0, 0, 1, 1], [], []>} : vector<2x32xbf16>, vector<32x4xbf16>, vector<2x4xf32> -> vector<2x4xf32>
    %c0_8 = arith.constant 0 : index
    %c0_9 = arith.constant 0 : index
    %12 = vector.load %arg5[%c0_8, %c0_9] : memref<1x4xf32, #tpu.memory_space<vmem>>, vector<1x4xf32>
    %13 = vector.broadcast %12 : vector<1x4xf32> to vector<2x4xf32>
    %14 = arith.addf %11, %13 : vector<2x4xf32>
    %c0_10 = arith.constant 0 : index
    %c0_11 = arith.constant 0 : index
    %15 = vector.load %arg6[%c0_10, %c0_11] : memref<1x4xf32, #tpu.memory_space<vmem>>, vector<1x4xf32>
    %c0_12 = arith.constant 0 : index
    %c0_13 = arith.constant 0 : index
    %16 = vector.load %arg7[%c0_12, %c0_13] : memref<1x4xf32, #tpu.memory_space<vmem>>, vector<1x4xf32>
    %cst_14 = arith.constant dense<0.000000e+00> : vector<4xf32>
    %17 = vector.multi_reduction <add>, %14, %cst_14 [0] : vector<2x4xf32> to vector<4xf32>
    %18 = vector.shape_cast %17 : vector<4xf32> to vector<1x4xf32>
    %cst_15 = arith.constant 2.000000e+00 : f32
    %19 = vector.broadcast %cst_15 : f32 to vector<1x4xf32>
    %20 = arith.divf %18, %19 : vector<1x4xf32>
    %21 = vector.broadcast %20 : vector<1x4xf32> to vector<2x4xf32>
    %22 = arith.subf %14, %21 : vector<2x4xf32>
    %23 = arith.mulf %22, %22 : vector<2x4xf32>
    %cst_16 = arith.constant dense<0.000000e+00> : vector<4xf32>
    %24 = vector.multi_reduction <add>, %23, %cst_16 [0] : vector<2x4xf32> to vector<4xf32>
    %25 = vector.shape_cast %24 : vector<4xf32> to vector<1x4xf32>
    %cst_17 = arith.constant 2.000000e+00 : f32
    %26 = vector.broadcast %cst_17 : f32 to vector<1x4xf32>
    %27 = arith.divf %25, %26 : vector<1x4xf32>
    %28 = vector.broadcast %20 : vector<1x4xf32> to vector<2x4xf32>
    %29 = arith.subf %14, %28 : vector<2x4xf32>
    %cst_18 = arith.constant 9.99999974E-6 : f32
    %30 = vector.broadcast %cst_18 : f32 to vector<1x4xf32>
    %31 = arith.addf %27, %30 : vector<1x4xf32>
    %32 = math.rsqrt %31 : vector<1x4xf32>
    %33 = vector.broadcast %32 : vector<1x4xf32> to vector<2x4xf32>
    %34 = arith.mulf %29, %33 : vector<2x4xf32>
    %35 = vector.broadcast %15 : vector<1x4xf32> to vector<2x4xf32>
    %36 = arith.mulf %34, %35 : vector<2x4xf32>
    %37 = vector.broadcast %16 : vector<1x4xf32> to vector<2x4xf32>
    %38 = arith.addf %36, %37 : vector<2x4xf32>
    %c0_19 = arith.constant 0 : index
    %c0_20 = arith.constant 0 : index
    %39 = vector.load %arg8[%c0_19, %c0_20] : memref<32x4xf32, #tpu.memory_space<vmem>>, vector<32x4xf32>
    %40 = arith.truncf %39 : vector<32x4xf32> to vector<32x4xbf16>
    %cst_21 = arith.constant dense<0.000000e+00> : vector<2x4xf32>
    %41 = tpu.matmul %8, %40, %cst_21 {dimension_numbers = #tpu.dot_dimension_numbers<[1], [0], [0], [1], [0, 0, 1, 1], [], []>} : vector<2x32xbf16>, vector<32x4xbf16>, vector<2x4xf32> -> vector<2x4xf32>
    %c0_22 = arith.constant 0 : index
    %c0_23 = arith.constant 0 : index
    %42 = vector.load %arg9[%c0_22, %c0_23] : memref<1x4xf32, #tpu.memory_space<vmem>>, vector<1x4xf32>
    %43 = vector.broadcast %42 : vector<1x4xf32> to vector<2x4xf32>
    %44 = arith.addf %41, %43 : vector<2x4xf32>
    %c0_24 = arith.constant 0 : index
    %c0_25 = arith.constant 0 : index
    %45 = vector.load %arg10[%c0_24, %c0_25] : memref<1x4xf32, #tpu.memory_space<vmem>>, vector<1x4xf32>
    %c0_26 = arith.constant 0 : index
    %c0_27 = arith.constant 0 : index
    %46 = vector.load %arg11[%c0_26, %c0_27] : memref<1x4xf32, #tpu.memory_space<vmem>>, vector<1x4xf32>
    %cst_28 = arith.constant dense<0.000000e+00> : vector<4xf32>
    %47 = vector.multi_reduction <add>, %44, %cst_28 [0] : vector<2x4xf32> to vector<4xf32>
    %48 = vector.shape_cast %47 : vector<4xf32> to vector<1x4xf32>
    %cst_29 = arith.constant 2.000000e+00 : f32
    %49 = vector.broadcast %cst_29 : f32 to vector<1x4xf32>
    %50 = arith.divf %48, %49 : vector<1x4xf32>
    %51 = vector.broadcast %50 : vector<1x4xf32> to vector<2x4xf32>
    %52 = arith.subf %44, %51 : vector<2x4xf32>
    %53 = arith.mulf %52, %52 : vector<2x4xf32>
    %cst_30 = arith.constant dense<0.000000e+00> : vector<4xf32>
    %54 = vector.multi_reduction <add>, %53, %cst_30 [0] : vector<2x4xf32> to vector<4xf32>
    %55 = vector.shape_cast %54 : vector<4xf32> to vector<1x4xf32>
    %cst_31 = arith.constant 2.000000e+00 : f32
    %56 = vector.broadcast %cst_31 : f32 to vector<1x4xf32>
    %57 = arith.divf %55, %56 : vector<1x4xf32>
    %58 = vector.broadcast %50 : vector<1x4xf32> to vector<2x4xf32>
    %59 = arith.subf %44, %58 : vector<2x4xf32>
    %cst_32 = arith.constant 9.99999974E-6 : f32
    %60 = vector.broadcast %cst_32 : f32 to vector<1x4xf32>
    %61 = arith.addf %57, %60 : vector<1x4xf32>
    %62 = math.rsqrt %61 : vector<1x4xf32>
    %63 = vector.broadcast %62 : vector<1x4xf32> to vector<2x4xf32>
    %64 = arith.mulf %59, %63 : vector<2x4xf32>
    %65 = vector.broadcast %45 : vector<1x4xf32> to vector<2x4xf32>
    %66 = arith.mulf %64, %65 : vector<2x4xf32>
    %67 = vector.broadcast %46 : vector<1x4xf32> to vector<2x4xf32>
    %68 = arith.addf %66, %67 : vector<2x4xf32>
    %cst_33 = arith.constant 0.000000e+00 : f32
    %69 = vector.broadcast %cst_33 : f32 to vector<2x4xf32>
    %70 = arith.maximumf %68, %69 : vector<2x4xf32>
    %71 = vector.broadcast %cst_33 : f32 to vector<2x4xf32>
    %72 = arith.subf %68, %71 : vector<2x4xf32>
    %73 = arith.cmpf one, %72, %72 : vector<2x4xf32>
    %74 = vector.broadcast %cst_33 : f32 to vector<2x4xf32>
    %75 = arith.addf %68, %74 : vector<2x4xf32>
    %76 = math.absf %72 : vector<2x4xf32>
    %cst_34 = arith.constant 0.000000e+00 : f32
    %77 = vector.broadcast %cst_34 : f32 to vector<2x4xf32>
    %78 = arith.subf %77, %76 : vector<2x4xf32>
    %79 = math.exp %78 : vector<2x4xf32>
    %80 = math.log1p %79 : vector<2x4xf32>
    %81 = arith.addf %70, %80 : vector<2x4xf32>
    %82 = arith.select %73, %75, %81 : vector<2x4xi1>, vector<2x4xf32>
    %83 = math.log %82 : vector<2x4xf32>
    %cst_35 = arith.constant 5.000000e-01 : f32
    %84 = vector.broadcast %cst_35 : f32 to vector<2x4xf32>
    %85 = arith.mulf %84, %83 : vector<2x4xf32>
    %86 = math.exp %85 : vector<2x4xf32>
    %c0_36 = arith.constant 0 : index
    %c0_37 = arith.constant 0 : index
    %87 = vector.load %arg12[%c0_36, %c0_37] : memref<2x4xf32, #tpu.memory_space<vmem>>, vector<2x4xf32>
    %88 = arith.mulf %86, %87 : vector<2x4xf32>
    %89 = arith.addf %38, %88 : vector<2x4xf32>
    %90 = arith.truncf %89 : vector<2x4xf32> to vector<2x4xbf16>
    %c0_38 = arith.constant 0 : index
    %c0_39 = arith.constant 0 : index
    %91 = vector.load %arg13[%c0_38, %c0_39] : memref<4x1568xf32, #tpu.memory_space<vmem>>, vector<4x1568xf32>
    %92 = arith.truncf %91 : vector<4x1568xf32> to vector<4x1568xbf16>
    %cst_40 = arith.constant dense<0.000000e+00> : vector<2x1568xf32>
    %93 = tpu.matmul %90, %92, %cst_40 {dimension_numbers = #tpu.dot_dimension_numbers<[1], [0], [0], [1], [0, 0, 1, 1], [], []>} : vector<2x4xbf16>, vector<4x1568xbf16>, vector<2x1568xf32> -> vector<2x1568xf32>
    %c0_41 = arith.constant 0 : index
    %c0_42 = arith.constant 0 : index
    %94 = vector.load %arg14[%c0_41, %c0_42] : memref<1x1568xf32, #tpu.memory_space<vmem>>, vector<1x1568xf32>
    %95 = vector.broadcast %94 : vector<1x1568xf32> to vector<2x1568xf32>
    %96 = arith.addf %93, %95 : vector<2x1568xf32>
    %c0_43 = arith.constant 0 : index
    %c0_44 = arith.constant 0 : index
    %97 = vector.load %arg15[%c0_43, %c0_44] : memref<1x1568xf32, #tpu.memory_space<vmem>>, vector<1x1568xf32>
    %c0_45 = arith.constant 0 : index
    %c0_46 = arith.constant 0 : index
    %98 = vector.load %arg16[%c0_45, %c0_46] : memref<1x1568xf32, #tpu.memory_space<vmem>>, vector<1x1568xf32>
    %cst_47 = arith.constant dense<0.000000e+00> : vector<1568xf32>
    %99 = vector.multi_reduction <add>, %96, %cst_47 [0] : vector<2x1568xf32> to vector<1568xf32>
    %100 = vector.shape_cast %99 : vector<1568xf32> to vector<1x1568xf32>
    %cst_48 = arith.constant 2.000000e+00 : f32
    %101 = vector.broadcast %cst_48 : f32 to vector<1x1568xf32>
    %102 = arith.divf %100, %101 : vector<1x1568xf32>
    %103 = vector.broadcast %102 : vector<1x1568xf32> to vector<2x1568xf32>
    %104 = arith.subf %96, %103 : vector<2x1568xf32>
    %105 = arith.mulf %104, %104 : vector<2x1568xf32>
    %cst_49 = arith.constant dense<0.000000e+00> : vector<1568xf32>
    %106 = vector.multi_reduction <add>, %105, %cst_49 [0] : vector<2x1568xf32> to vector<1568xf32>
    %107 = vector.shape_cast %106 : vector<1568xf32> to vector<1x1568xf32>
    %cst_50 = arith.constant 2.000000e+00 : f32
    %108 = vector.broadcast %cst_50 : f32 to vector<1x1568xf32>
    %109 = arith.divf %107, %108 : vector<1x1568xf32>
    %110 = vector.broadcast %102 : vector<1x1568xf32> to vector<2x1568xf32>
    %111 = arith.subf %96, %110 : vector<2x1568xf32>
    %cst_51 = arith.constant 9.99999974E-6 : f32
    %112 = vector.broadcast %cst_51 : f32 to vector<1x1568xf32>
    %113 = arith.addf %109, %112 : vector<1x1568xf32>
    %114 = math.rsqrt %113 : vector<1x1568xf32>
    %115 = vector.broadcast %114 : vector<1x1568xf32> to vector<2x1568xf32>
    %116 = arith.mulf %111, %115 : vector<2x1568xf32>
    %117 = vector.broadcast %97 : vector<1x1568xf32> to vector<2x1568xf32>
    %118 = arith.mulf %116, %117 : vector<2x1568xf32>
    %119 = vector.broadcast %98 : vector<1x1568xf32> to vector<2x1568xf32>
    %120 = arith.addf %118, %119 : vector<2x1568xf32>
    %cst_52 = arith.constant 0.000000e+00 : f32
    %121 = vector.broadcast %cst_52 : f32 to vector<2x1568xf32>
    %122 = arith.cmpf oge, %120, %121 : vector<2x1568xf32>
    %cst_53 = arith.constant 0.00999999977 : f32
    %123 = vector.broadcast %cst_53 : f32 to vector<2x1568xf32>
    %124 = arith.mulf %123, %120 : vector<2x1568xf32>
    %125 = arith.select %122, %120, %124 : vector<2x1568xi1>, vector<2x1568xf32>
    %c0_54 = arith.constant 0 : index
    %c0_55 = arith.constant 0 : index
    %126 = vector.load %arg17[%c0_54, %c0_55] : memref<2x4xf32, #tpu.memory_space<vmem>>, vector<2x4xf32>
    tpu.vector_store %arg17[%c0_54, %c0_55], %38 {strides = array<i32>} : memref<2x4xf32, #tpu.memory_space<vmem>>, vector<2x4xf32>,
    %c0_56 = arith.constant 0 : index
    %c0_57 = arith.constant 0 : index
    %127 = vector.load %arg18[%c0_56, %c0_57] : memref<2x4xf32, #tpu.memory_space<vmem>>, vector<2x4xf32>
    tpu.vector_store %arg18[%c0_56, %c0_57], %83 {strides = array<i32>} : memref<2x4xf32, #tpu.memory_space<vmem>>, vector<2x4xf32>,
    %c0_58 = arith.constant 0 : index
    %c0_59 = arith.constant 0 : index
    %128 = vector.load %arg19[%c0_58, %c0_59] : memref<2x1568xf32, #tpu.memory_space<vmem>>, vector<2x1568xf32>
    tpu.vector_store %arg19[%c0_58, %c0_59], %125 {strides = array<i32>} : memref<2x1568xf32, #tpu.memory_space<vmem>>, vector<2x1568xf32>,
    return
  }
  func.func @transform_0(%arg0: i32) -> (i32, i32) {
    %c0_i32 = arith.constant 0 : i32
    %c0_i32_0 = arith.constant 0 : i32
    %c0_i32_1 = arith.constant 0 : i32
    return %c0_i32, %c0_i32_0 : i32, i32
  }
  func.func @transform_1(%arg0: i32) -> (i32, i32) {
    %c0_i32 = arith.constant 0 : i32
    %c0_i32_0 = arith.constant 0 : i32
    %c0_i32_1 = arith.constant 0 : i32
    return %c0_i32, %c0_i32_0 : i32, i32
  }
  func.func @transform_2(%arg0: i32) -> (i32, i32) {
    %c0_i32 = arith.constant 0 : i32
    %c0_i32_0 = arith.constant 0 : i32
    %c0_i32_1 = arith.constant 0 : i32
    return %c0_i32, %c0_i32_0 : i32, i32
  }
  func.func @transform_3(%arg0: i32) -> (i32, i32) {
    %c0_i32 = arith.constant 0 : i32
    %c0_i32_0 = arith.constant 0 : i32
    %c0_i32_1 = arith.constant 0 : i32
    return %c0_i32, %c0_i32_0 : i32, i32
  }
  func.func @transform_4(%arg0: i32) -> (i32, i32) {
    %c0_i32 = arith.constant 0 : i32
    %c0_i32_0 = arith.constant 0 : i32
    %c0_i32_1 = arith.constant 0 : i32
    return %c0_i32, %c0_i32_0 : i32, i32
  }
  func.func @transform_5(%arg0: i32) -> (i32, i32) {
    %c0_i32 = arith.constant 0 : i32
    %c0_i32_0 = arith.constant 0 : i32
    %c0_i32_1 = arith.constant 0 : i32
    return %c0_i32, %c0_i32_0 : i32, i32
  }
  func.func @transform_6(%arg0: i32) -> (i32, i32) {
    %c0_i32 = arith.constant 0 : i32
    %c0_i32_0 = arith.constant 0 : i32
    %c0_i32_1 = arith.constant 0 : i32
    return %c0_i32, %c0_i32_0 : i32, i32
  }
  func.func @transform_7(%arg0: i32) -> (i32, i32) {
    %c0_i32 = arith.constant 0 : i32
    %c0_i32_0 = arith.constant 0 : i32
    %c0_i32_1 = arith.constant 0 : i32
    return %c0_i32, %c0_i32_0 : i32, i32
  }
  func.func @transform_8(%arg0: i32) -> (i32, i32) {
    %c0_i32 = arith.constant 0 : i32
    %c0_i32_0 = arith.constant 0 : i32
    %c0_i32_1 = arith.constant 0 : i32
    return %c0_i32, %c0_i32_0 : i32, i32
  }
  func.func @transform_9(%arg0: i32) -> (i32, i32) {
    %c0_i32 = arith.constant 0 : i32
    %c0_i32_0 = arith.constant 0 : i32
    %c0_i32_1 = arith.constant 0 : i32
    return %c0_i32, %c0_i32_0 : i32, i32
  }
  func.func @transform_10(%arg0: i32) -> (i32, i32) {
    %c0_i32 = arith.constant 0 : i32
    %c0_i32_0 = arith.constant 0 : i32
    %c0_i32_1 = arith.constant 0 : i32
    return %c0_i32, %c0_i32_0 : i32, i32
  }
  func.func @transform_11(%arg0: i32) -> (i32, i32) {
    %c0_i32 = arith.constant 0 : i32
    %c0_i32_0 = arith.constant 0 : i32
    %c0_i32_1 = arith.constant 0 : i32
    return %c0_i32, %c0_i32_0 : i32, i32
  }
  func.func @transform_12(%arg0: i32) -> (i32, i32) {
    %c0_i32 = arith.constant 0 : i32
    %c0_i32_0 = arith.constant 0 : i32
    %c0_i32_1 = arith.constant 0 : i32
    return %c0_i32, %c0_i32_0 : i32, i32
  }
  func.func @transform_13(%arg0: i32) -> (i32, i32) {
    %c0_i32 = arith.constant 0 : i32
    %c0_i32_0 = arith.constant 0 : i32
    %c0_i32_1 = arith.constant 0 : i32
    return %c0_i32, %c0_i32_0 : i32, i32
  }
  func.func @transform_14(%arg0: i32) -> (i32, i32) {
    %c0_i32 = arith.constant 0 : i32
    %c0_i32_0 = arith.constant 0 : i32
    %c0_i32_1 = arith.constant 0 : i32
    return %c0_i32, %c0_i32_0 : i32, i32
  }
  func.func @transform_15(%arg0: i32) -> (i32, i32) {
    %c0_i32 = arith.constant 0 : i32
    %c0_i32_0 = arith.constant 0 : i32
    %c0_i32_1 = arith.constant 0 : i32
    return %c0_i32, %c0_i32_0 : i32, i32
  }
  func.func @transform_16(%arg0: i32) -> (i32, i32) {
    %c0_i32 = arith.constant 0 : i32
    %c0_i32_0 = arith.constant 0 : i32
    %c0_i32_1 = arith.constant 0 : i32
    return %c0_i32, %c0_i32_0 : i32, i32
  }
  func.func @transform_17(%arg0: i32) -> (i32, i32) {
    %c0_i32 = arith.constant 0 : i32
    %c0_i32_0 = arith.constant 0 : i32
    %c0_i32_1 = arith.constant 0 : i32
    return %c0_i32, %c0_i32_0 : i32, i32
  }
  func.func @transform_18(%arg0: i32) -> (i32, i32) {
    %c0_i32 = arith.constant 0 : i32
    %c0_i32_0 = arith.constant 0 : i32
    %c0_i32_1 = arith.constant 0 : i32
    return %c0_i32, %c0_i32_0 : i32, i32
  }
}

module attributes {stable_mosaic.version = 11 : i64} {
  func.func @kernel(%arg0: i32, %arg1: memref<16x288xf32, #tpu.memory_space<vmem>>, %arg2: memref<288x392xf32, #tpu.memory_space<vmem>>, %arg3: memref<16x1xf32, #tpu.memory_space<vmem>>, %arg4: memref<16x1xf32, #tpu.memory_space<vmem>>, %arg5: memref<16x1xf32, #tpu.memory_space<vmem>>, %arg6: memref<16x392xf32, #tpu.memory_space<vmem>>) attributes {dimension_semantics = [#tpu.dimension_semantics<arbitrary>], iteration_bounds = array<i64: 1>, scalar_prefetch = 0 : i64, scratch_operands = 0 : i64, tpu.core_type = #tpu.core_type<tc>, window_params = [{pipeline_mode = #tpu.pipeline_mode<synchronous>, transform_indices = @transform_0, window_bounds = array<i64: 16, 288>}, {pipeline_mode = #tpu.pipeline_mode<synchronous>, transform_indices = @transform_1, window_bounds = array<i64: 288, 392>}, {pipeline_mode = #tpu.pipeline_mode<synchronous>, transform_indices = @transform_2, window_bounds = array<i64: 16, 1>}, {pipeline_mode = #tpu.pipeline_mode<synchronous>, transform_indices = @transform_3, window_bounds = array<i64: 16, 1>}, {pipeline_mode = #tpu.pipeline_mode<synchronous>, transform_indices = @transform_4, window_bounds = array<i64: 16, 1>}, {pipeline_mode = #tpu.pipeline_mode<synchronous>, transform_indices = @transform_5, window_bounds = array<i64: 16, 392>}]} {
    %c0 = arith.constant 0 : index
    %c0_0 = arith.constant 0 : index
    %0 = vector.load %arg1[%c0, %c0_0] : memref<16x288xf32, #tpu.memory_space<vmem>>, vector<16x288xf32>
    %1 = arith.truncf %0 : vector<16x288xf32> to vector<16x288xbf16>
    %c0_1 = arith.constant 0 : index
    %c0_2 = arith.constant 0 : index
    %2 = vector.load %arg2[%c0_1, %c0_2] : memref<288x392xf32, #tpu.memory_space<vmem>>, vector<288x392xf32>
    %3 = arith.truncf %2 : vector<288x392xf32> to vector<288x392xbf16>
    %cst = arith.constant dense<0.000000e+00> : vector<16x392xf32>
    %4 = tpu.matmul %1, %3, %cst {dimension_numbers = #tpu.dot_dimension_numbers<[1], [0], [0], [1], [0, 0, 1, 1], [], []>} : vector<16x288xbf16>, vector<288x392xbf16>, vector<16x392xf32> -> vector<16x392xf32>
    %c0_3 = arith.constant 0 : index
    %c0_4 = arith.constant 0 : index
    %5 = vector.load %arg3[%c0_3, %c0_4] : memref<16x1xf32, #tpu.memory_space<vmem>>, vector<16x1xf32>
    %6 = vector.broadcast %5 : vector<16x1xf32> to vector<16x392xf32>
    %7 = arith.addf %4, %6 : vector<16x392xf32>
    %cst_5 = arith.constant dense<0.000000e+00> : vector<16xf32>
    %8 = vector.multi_reduction <add>, %7, %cst_5 [1] : vector<16x392xf32> to vector<16xf32>
    %9 = vector.shape_cast %8 : vector<16xf32> to vector<16x1xf32>
    %cst_6 = arith.constant 3.920000e+02 : f32
    %10 = vector.broadcast %cst_6 : f32 to vector<16x1xf32>
    %11 = arith.divf %9, %10 : vector<16x1xf32>
    %12 = vector.broadcast %11 : vector<16x1xf32> to vector<16x392xf32>
    %13 = arith.subf %7, %12 : vector<16x392xf32>
    %14 = arith.mulf %13, %13 : vector<16x392xf32>
    %cst_7 = arith.constant dense<0.000000e+00> : vector<16xf32>
    %15 = vector.multi_reduction <add>, %14, %cst_7 [1] : vector<16x392xf32> to vector<16xf32>
    %16 = vector.shape_cast %15 : vector<16xf32> to vector<16x1xf32>
    %cst_8 = arith.constant 3.920000e+02 : f32
    %17 = vector.broadcast %cst_8 : f32 to vector<16x1xf32>
    %18 = arith.divf %16, %17 : vector<16x1xf32>
    %19 = vector.broadcast %11 : vector<16x1xf32> to vector<16x392xf32>
    %20 = arith.subf %7, %19 : vector<16x392xf32>
    %cst_9 = arith.constant 9.99999974E-6 : f32
    %21 = vector.broadcast %cst_9 : f32 to vector<16x1xf32>
    %22 = arith.addf %18, %21 : vector<16x1xf32>
    %23 = math.rsqrt %22 : vector<16x1xf32>
    %24 = vector.broadcast %23 : vector<16x1xf32> to vector<16x392xf32>
    %25 = arith.mulf %20, %24 : vector<16x392xf32>
    %c0_10 = arith.constant 0 : index
    %c0_11 = arith.constant 0 : index
    %26 = vector.load %arg4[%c0_10, %c0_11] : memref<16x1xf32, #tpu.memory_space<vmem>>, vector<16x1xf32>
    %27 = vector.broadcast %26 : vector<16x1xf32> to vector<16x392xf32>
    %28 = arith.mulf %25, %27 : vector<16x392xf32>
    %c0_12 = arith.constant 0 : index
    %c0_13 = arith.constant 0 : index
    %29 = vector.load %arg5[%c0_12, %c0_13] : memref<16x1xf32, #tpu.memory_space<vmem>>, vector<16x1xf32>
    %30 = vector.broadcast %29 : vector<16x1xf32> to vector<16x392xf32>
    %31 = arith.addf %28, %30 : vector<16x392xf32>
    %cst_14 = arith.constant 0.000000e+00 : f32
    %32 = vector.broadcast %cst_14 : f32 to vector<16x392xf32>
    %33 = arith.cmpf oge, %31, %32 : vector<16x392xf32>
    %cst_15 = arith.constant 0.00999999977 : f32
    %34 = vector.broadcast %cst_15 : f32 to vector<16x392xf32>
    %35 = arith.mulf %34, %31 : vector<16x392xf32>
    %36 = arith.select %33, %31, %35 : vector<16x392xi1>, vector<16x392xf32>
    %c0_16 = arith.constant 0 : index
    %c0_17 = arith.constant 0 : index
    %37 = vector.load %arg6[%c0_16, %c0_17] : memref<16x392xf32, #tpu.memory_space<vmem>>, vector<16x392xf32>
    tpu.vector_store %arg6[%c0_16, %c0_17], %36 {strides = array<i32>} : memref<16x392xf32, #tpu.memory_space<vmem>>, vector<16x392xf32>,
    return
  }
  func.func @transform_0(%arg0: i32) -> (i32, i32) {
    %c0_i32 = arith.constant 0 : i32
    %c0_i32_0 = arith.constant 0 : i32
    %c0_i32_1 = arith.constant 0 : i32
    return %c0_i32, %c0_i32_0 : i32, i32
  }
  func.func @transform_1(%arg0: i32) -> (i32, i32) {
    %c0_i32 = arith.constant 0 : i32
    %c0_i32_0 = arith.constant 0 : i32
    %c0_i32_1 = arith.constant 0 : i32
    return %c0_i32, %c0_i32_0 : i32, i32
  }
  func.func @transform_2(%arg0: i32) -> (i32, i32) {
    %c0_i32 = arith.constant 0 : i32
    %c0_i32_0 = arith.constant 0 : i32
    %c0_i32_1 = arith.constant 0 : i32
    return %c0_i32, %c0_i32_0 : i32, i32
  }
  func.func @transform_3(%arg0: i32) -> (i32, i32) {
    %c0_i32 = arith.constant 0 : i32
    %c0_i32_0 = arith.constant 0 : i32
    %c0_i32_1 = arith.constant 0 : i32
    return %c0_i32, %c0_i32_0 : i32, i32
  }
  func.func @transform_4(%arg0: i32) -> (i32, i32) {
    %c0_i32 = arith.constant 0 : i32
    %c0_i32_0 = arith.constant 0 : i32
    %c0_i32_1 = arith.constant 0 : i32
    return %c0_i32, %c0_i32_0 : i32, i32
  }
  func.func @transform_5(%arg0: i32) -> (i32, i32) {
    %c0_i32 = arith.constant 0 : i32
    %c0_i32_0 = arith.constant 0 : i32
    %c0_i32_1 = arith.constant 0 : i32
    return %c0_i32, %c0_i32_0 : i32, i32
  }
}

module attributes {stable_mosaic.version = 11 : i64} {
  func.func @kernel(%arg0: i32, %arg1: memref<8x144xf32, #tpu.memory_space<vmem>>, %arg2: memref<144x1568xf32, #tpu.memory_space<vmem>>, %arg3: memref<8x1xf32, #tpu.memory_space<vmem>>, %arg4: memref<8x1xf32, #tpu.memory_space<vmem>>, %arg5: memref<8x1xf32, #tpu.memory_space<vmem>>, %arg6: memref<8x1568xf32, #tpu.memory_space<vmem>>) attributes {dimension_semantics = [#tpu.dimension_semantics<arbitrary>], iteration_bounds = array<i64: 1>, scalar_prefetch = 0 : i64, scratch_operands = 0 : i64, tpu.core_type = #tpu.core_type<tc>, window_params = [{pipeline_mode = #tpu.pipeline_mode<synchronous>, transform_indices = @transform_0, window_bounds = array<i64: 8, 144>}, {pipeline_mode = #tpu.pipeline_mode<synchronous>, transform_indices = @transform_1, window_bounds = array<i64: 144, 1568>}, {pipeline_mode = #tpu.pipeline_mode<synchronous>, transform_indices = @transform_2, window_bounds = array<i64: 8, 1>}, {pipeline_mode = #tpu.pipeline_mode<synchronous>, transform_indices = @transform_3, window_bounds = array<i64: 8, 1>}, {pipeline_mode = #tpu.pipeline_mode<synchronous>, transform_indices = @transform_4, window_bounds = array<i64: 8, 1>}, {pipeline_mode = #tpu.pipeline_mode<synchronous>, transform_indices = @transform_5, window_bounds = array<i64: 8, 1568>}]} {
    %c0 = arith.constant 0 : index
    %c0_0 = arith.constant 0 : index
    %0 = vector.load %arg1[%c0, %c0_0] : memref<8x144xf32, #tpu.memory_space<vmem>>, vector<8x144xf32>
    %1 = arith.truncf %0 : vector<8x144xf32> to vector<8x144xbf16>
    %c0_1 = arith.constant 0 : index
    %c0_2 = arith.constant 0 : index
    %2 = vector.load %arg2[%c0_1, %c0_2] : memref<144x1568xf32, #tpu.memory_space<vmem>>, vector<144x1568xf32>
    %3 = arith.truncf %2 : vector<144x1568xf32> to vector<144x1568xbf16>
    %cst = arith.constant dense<0.000000e+00> : vector<8x1568xf32>
    %4 = tpu.matmul %1, %3, %cst {dimension_numbers = #tpu.dot_dimension_numbers<[1], [0], [0], [1], [0, 0, 1, 1], [], []>} : vector<8x144xbf16>, vector<144x1568xbf16>, vector<8x1568xf32> -> vector<8x1568xf32>
    %c0_3 = arith.constant 0 : index
    %c0_4 = arith.constant 0 : index
    %5 = vector.load %arg3[%c0_3, %c0_4] : memref<8x1xf32, #tpu.memory_space<vmem>>, vector<8x1xf32>
    %6 = vector.broadcast %5 : vector<8x1xf32> to vector<8x1568xf32>
    %7 = arith.addf %4, %6 : vector<8x1568xf32>
    %cst_5 = arith.constant dense<0.000000e+00> : vector<8xf32>
    %8 = vector.multi_reduction <add>, %7, %cst_5 [1] : vector<8x1568xf32> to vector<8xf32>
    %9 = vector.shape_cast %8 : vector<8xf32> to vector<8x1xf32>
    %cst_6 = arith.constant 1.568000e+03 : f32
    %10 = vector.broadcast %cst_6 : f32 to vector<8x1xf32>
    %11 = arith.divf %9, %10 : vector<8x1xf32>
    %12 = vector.broadcast %11 : vector<8x1xf32> to vector<8x1568xf32>
    %13 = arith.subf %7, %12 : vector<8x1568xf32>
    %14 = arith.mulf %13, %13 : vector<8x1568xf32>
    %cst_7 = arith.constant dense<0.000000e+00> : vector<8xf32>
    %15 = vector.multi_reduction <add>, %14, %cst_7 [1] : vector<8x1568xf32> to vector<8xf32>
    %16 = vector.shape_cast %15 : vector<8xf32> to vector<8x1xf32>
    %cst_8 = arith.constant 1.568000e+03 : f32
    %17 = vector.broadcast %cst_8 : f32 to vector<8x1xf32>
    %18 = arith.divf %16, %17 : vector<8x1xf32>
    %19 = vector.broadcast %11 : vector<8x1xf32> to vector<8x1568xf32>
    %20 = arith.subf %7, %19 : vector<8x1568xf32>
    %cst_9 = arith.constant 9.99999974E-6 : f32
    %21 = vector.broadcast %cst_9 : f32 to vector<8x1xf32>
    %22 = arith.addf %18, %21 : vector<8x1xf32>
    %23 = math.rsqrt %22 : vector<8x1xf32>
    %24 = vector.broadcast %23 : vector<8x1xf32> to vector<8x1568xf32>
    %25 = arith.mulf %20, %24 : vector<8x1568xf32>
    %c0_10 = arith.constant 0 : index
    %c0_11 = arith.constant 0 : index
    %26 = vector.load %arg4[%c0_10, %c0_11] : memref<8x1xf32, #tpu.memory_space<vmem>>, vector<8x1xf32>
    %27 = vector.broadcast %26 : vector<8x1xf32> to vector<8x1568xf32>
    %28 = arith.mulf %25, %27 : vector<8x1568xf32>
    %c0_12 = arith.constant 0 : index
    %c0_13 = arith.constant 0 : index
    %29 = vector.load %arg5[%c0_12, %c0_13] : memref<8x1xf32, #tpu.memory_space<vmem>>, vector<8x1xf32>
    %30 = vector.broadcast %29 : vector<8x1xf32> to vector<8x1568xf32>
    %31 = arith.addf %28, %30 : vector<8x1568xf32>
    %cst_14 = arith.constant 0.000000e+00 : f32
    %32 = vector.broadcast %cst_14 : f32 to vector<8x1568xf32>
    %33 = arith.cmpf oge, %31, %32 : vector<8x1568xf32>
    %cst_15 = arith.constant 0.00999999977 : f32
    %34 = vector.broadcast %cst_15 : f32 to vector<8x1568xf32>
    %35 = arith.mulf %34, %31 : vector<8x1568xf32>
    %36 = arith.select %33, %31, %35 : vector<8x1568xi1>, vector<8x1568xf32>
    %c0_16 = arith.constant 0 : index
    %c0_17 = arith.constant 0 : index
    %37 = vector.load %arg6[%c0_16, %c0_17] : memref<8x1568xf32, #tpu.memory_space<vmem>>, vector<8x1568xf32>
    tpu.vector_store %arg6[%c0_16, %c0_17], %36 {strides = array<i32>} : memref<8x1568xf32, #tpu.memory_space<vmem>>, vector<8x1568xf32>,
    return
  }
  func.func @transform_0(%arg0: i32) -> (i32, i32) {
    %c0_i32 = arith.constant 0 : i32
    %c0_i32_0 = arith.constant 0 : i32
    %c0_i32_1 = arith.constant 0 : i32
    return %c0_i32, %c0_i32_0 : i32, i32
  }
  func.func @transform_1(%arg0: i32) -> (i32, i32) {
    %c0_i32 = arith.constant 0 : i32
    %c0_i32_0 = arith.constant 0 : i32
    %c0_i32_1 = arith.constant 0 : i32
    return %c0_i32, %c0_i32_0 : i32, i32
  }
  func.func @transform_2(%arg0: i32) -> (i32, i32) {
    %c0_i32 = arith.constant 0 : i32
    %c0_i32_0 = arith.constant 0 : i32
    %c0_i32_1 = arith.constant 0 : i32
    return %c0_i32, %c0_i32_0 : i32, i32
  }
  func.func @transform_3(%arg0: i32) -> (i32, i32) {
    %c0_i32 = arith.constant 0 : i32
    %c0_i32_0 = arith.constant 0 : i32
    %c0_i32_1 = arith.constant 0 : i32
    return %c0_i32, %c0_i32_0 : i32, i32
  }
  func.func @transform_4(%arg0: i32) -> (i32, i32) {
    %c0_i32 = arith.constant 0 : i32
    %c0_i32_0 = arith.constant 0 : i32
    %c0_i32_1 = arith.constant 0 : i32
    return %c0_i32, %c0_i32_0 : i32, i32
  }
  func.func @transform_5(%arg0: i32) -> (i32, i32) {
    %c0_i32 = arith.constant 0 : i32
    %c0_i32_0 = arith.constant 0 : i32
    %c0_i32_1 = arith.constant 0 : i32
    return %c0_i32, %c0_i32_0 : i32, i32
  }
}

module attributes {stable_mosaic.version = 11 : i64} {
  func.func @kernel(%arg0: i32, %arg1: memref<1x72xf32, #tpu.memory_space<vmem>>, %arg2: memref<72x1568xf32, #tpu.memory_space<vmem>>, %arg3: memref<1x1xf32, #tpu.memory_space<vmem>>, %arg4: memref<1x1xf32, #tpu.memory_space<vmem>>, %arg5: memref<1x1xf32, #tpu.memory_space<vmem>>, %arg6: memref<1x1568xf32, #tpu.memory_space<vmem>>) attributes {dimension_semantics = [#tpu.dimension_semantics<arbitrary>], iteration_bounds = array<i64: 1>, scalar_prefetch = 0 : i64, scratch_operands = 0 : i64, tpu.core_type = #tpu.core_type<tc>, window_params = [{pipeline_mode = #tpu.pipeline_mode<synchronous>, transform_indices = @transform_0, window_bounds = array<i64: 1, 72>}, {pipeline_mode = #tpu.pipeline_mode<synchronous>, transform_indices = @transform_1, window_bounds = array<i64: 72, 1568>}, {pipeline_mode = #tpu.pipeline_mode<synchronous>, transform_indices = @transform_2, window_bounds = array<i64: 1, 1>}, {pipeline_mode = #tpu.pipeline_mode<synchronous>, transform_indices = @transform_3, window_bounds = array<i64: 1, 1>}, {pipeline_mode = #tpu.pipeline_mode<synchronous>, transform_indices = @transform_4, window_bounds = array<i64: 1, 1>}, {pipeline_mode = #tpu.pipeline_mode<synchronous>, transform_indices = @transform_5, window_bounds = array<i64: 1, 1568>}]} {
    %c0 = arith.constant 0 : index
    %c0_0 = arith.constant 0 : index
    %0 = vector.load %arg1[%c0, %c0_0] : memref<1x72xf32, #tpu.memory_space<vmem>>, vector<1x72xf32>
    %1 = arith.truncf %0 : vector<1x72xf32> to vector<1x72xbf16>
    %c0_1 = arith.constant 0 : index
    %c0_2 = arith.constant 0 : index
    %2 = vector.load %arg2[%c0_1, %c0_2] : memref<72x1568xf32, #tpu.memory_space<vmem>>, vector<72x1568xf32>
    %3 = arith.truncf %2 : vector<72x1568xf32> to vector<72x1568xbf16>
    %cst = arith.constant dense<0.000000e+00> : vector<1x1568xf32>
    %4 = tpu.matmul %1, %3, %cst {dimension_numbers = #tpu.dot_dimension_numbers<[1], [0], [0], [1], [0, 0, 1, 1], [], []>} : vector<1x72xbf16>, vector<72x1568xbf16>, vector<1x1568xf32> -> vector<1x1568xf32>
    %c0_3 = arith.constant 0 : index
    %c0_4 = arith.constant 0 : index
    %5 = vector.load %arg3[%c0_3, %c0_4] : memref<1x1xf32, #tpu.memory_space<vmem>>, vector<1x1xf32>
    %6 = vector.broadcast %5 : vector<1x1xf32> to vector<1x1568xf32>
    %7 = arith.addf %4, %6 : vector<1x1568xf32>
    %cst_5 = arith.constant dense<0.000000e+00> : vector<1xf32>
    %8 = vector.multi_reduction <add>, %7, %cst_5 [1] : vector<1x1568xf32> to vector<1xf32>
    %9 = vector.shape_cast %8 : vector<1xf32> to vector<1x1xf32>
    %cst_6 = arith.constant 1.568000e+03 : f32
    %10 = vector.broadcast %cst_6 : f32 to vector<1x1xf32>
    %11 = arith.divf %9, %10 : vector<1x1xf32>
    %12 = vector.broadcast %11 : vector<1x1xf32> to vector<1x1568xf32>
    %13 = arith.subf %7, %12 : vector<1x1568xf32>
    %14 = arith.mulf %13, %13 : vector<1x1568xf32>
    %cst_7 = arith.constant dense<0.000000e+00> : vector<1xf32>
    %15 = vector.multi_reduction <add>, %14, %cst_7 [1] : vector<1x1568xf32> to vector<1xf32>
    %16 = vector.shape_cast %15 : vector<1xf32> to vector<1x1xf32>
    %cst_8 = arith.constant 1.568000e+03 : f32
    %17 = vector.broadcast %cst_8 : f32 to vector<1x1xf32>
    %18 = arith.divf %16, %17 : vector<1x1xf32>
    %19 = vector.broadcast %11 : vector<1x1xf32> to vector<1x1568xf32>
    %20 = arith.subf %7, %19 : vector<1x1568xf32>
    %cst_9 = arith.constant 9.99999974E-6 : f32
    %21 = vector.broadcast %cst_9 : f32 to vector<1x1xf32>
    %22 = arith.addf %18, %21 : vector<1x1xf32>
    %23 = math.rsqrt %22 : vector<1x1xf32>
    %24 = vector.broadcast %23 : vector<1x1xf32> to vector<1x1568xf32>
    %25 = arith.mulf %20, %24 : vector<1x1568xf32>
    %c0_10 = arith.constant 0 : index
    %c0_11 = arith.constant 0 : index
    %26 = vector.load %arg4[%c0_10, %c0_11] : memref<1x1xf32, #tpu.memory_space<vmem>>, vector<1x1xf32>
    %27 = vector.broadcast %26 : vector<1x1xf32> to vector<1x1568xf32>
    %28 = arith.mulf %25, %27 : vector<1x1568xf32>
    %c0_12 = arith.constant 0 : index
    %c0_13 = arith.constant 0 : index
    %29 = vector.load %arg5[%c0_12, %c0_13] : memref<1x1xf32, #tpu.memory_space<vmem>>, vector<1x1xf32>
    %30 = vector.broadcast %29 : vector<1x1xf32> to vector<1x1568xf32>
    %31 = arith.addf %28, %30 : vector<1x1568xf32>
    %c0_14 = arith.constant 0 : index
    %c0_15 = arith.constant 0 : index
    %32 = vector.load %arg6[%c0_14, %c0_15] : memref<1x1568xf32, #tpu.memory_space<vmem>>, vector<1x1568xf32>
    tpu.vector_store %arg6[%c0_14, %c0_15], %31 {strides = array<i32>} : memref<1x1568xf32, #tpu.memory_space<vmem>>, vector<1x1568xf32>,
    return
  }
  func.func @transform_0(%arg0: i32) -> (i32, i32) {
    %c0_i32 = arith.constant 0 : i32
    %c0_i32_0 = arith.constant 0 : i32
    %c0_i32_1 = arith.constant 0 : i32
    return %c0_i32, %c0_i32_0 : i32, i32
  }
  func.func @transform_1(%arg0: i32) -> (i32, i32) {
    %c0_i32 = arith.constant 0 : i32
    %c0_i32_0 = arith.constant 0 : i32
    %c0_i32_1 = arith.constant 0 : i32
    return %c0_i32, %c0_i32_0 : i32, i32
  }
  func.func @transform_2(%arg0: i32) -> (i32, i32) {
    %c0_i32 = arith.constant 0 : i32
    %c0_i32_0 = arith.constant 0 : i32
    %c0_i32_1 = arith.constant 0 : i32
    return %c0_i32, %c0_i32_0 : i32, i32
  }
  func.func @transform_3(%arg0: i32) -> (i32, i32) {
    %c0_i32 = arith.constant 0 : i32
    %c0_i32_0 = arith.constant 0 : i32
    %c0_i32_1 = arith.constant 0 : i32
    return %c0_i32, %c0_i32_0 : i32, i32
  }
  func.func @transform_4(%arg0: i32) -> (i32, i32) {
    %c0_i32 = arith.constant 0 : i32
    %c0_i32_0 = arith.constant 0 : i32
    %c0_i32_1 = arith.constant 0 : i32
    return %c0_i32, %c0_i32_0 : i32, i32
  }
  func.func @transform_5(%arg0: i32) -> (i32, i32) {
    %c0_i32 = arith.constant 0 : i32
    %c0_i32_0 = arith.constant 0 : i32
    %c0_i32_1 = arith.constant 0 : i32
    return %c0_i32, %c0_i32_0 : i32, i32
  }
}

</mosaic_0001>

<bundles_post_ra>
// kernel: convae_forward.7
= control target key start
LH: loop header
LB: loop body
LE: loop exit
PB: predicated region body
PF: predicated region fallthrough
CT: control target
= control target key end

     0   :  { %vm72_vm0 = vcmask 1043456   ;;  %vm73_vm1 = vcmask 1044480   ;;  %v593_v2 = vmov 65535   ;;  %v594_v5 = vmov 0   ;;  %s802_s1 = inlined_call_operand.vmem [shape: f32[9,1568], index: 1, kind: input, shape index: {}]   ;;  %s803_s0 = inlined_call_operand.vmem [shape: f32[8,9], index: 0, kind: input, shape index: {}]   ;;  %s804_s2 = inlined_call_operand.vmem [shape: f32[8,1], index: 2, kind: input, shape index: {}]   ;;  %s805_s3 = inlined_call_operand.vmem [shape: f32[8,1], index: 3, kind: input, shape index: {}]   ;;  %s806_s4 = inlined_call_operand.vmem [shape: f32[8,1], index: 4, kind: input, shape index: {}]   ;;  %s807_s5 = inlined_call_operand.vmem [shape: f32[8,1568], index: 5, kind: output, shape index: {}]  }
   0x1   :  { %v24_v0 = vld [vmem:[%s802_s1 + $0x8] sm:$0xff]  ;;  %v37_v1 = vld [vmem:[%s802_s1 + $0x70] sm:$0x1]  ;;  %v74_v3 = vsel %vm72_vm0, 4294967295, %v593_v2  ;;  %v26_v4 = vld [vmem:[%s802_s1 + $0x18] sm:$0xff]  ;;  %147 = vmatprep.mubr.bf16.mxu0 %v594_v5  ;;  %188 = vmatprep.mubr.bf16.mxu1 %v594_v5  ;;  %vm68_vm2 = vcmask 72704  }
   0x2   :  { %v50_v6 = vpack.c.bf16 %v37_v1, %v24_v0  ;;  %v638_v7 = vsel %vm73_vm1, %v74_v3, 0  ;;  %v39_v8 = vld [vmem:[%s802_s1 + $0x80] sm:$0x1]  ;;  %v36_v10 = vld [vmem:[%s802_s1 + $0x68] sm:$0x1]  ;;  %589 = vset.pattern.permute.xlu0 %v594_v5  ;;  %590 = vset.pattern.permute.xlu1 %v594_v5  ;;  %v25_v13 = vld [vmem:[%s802_s1 + $0x10] sm:$0xff] }
   0x3   :  { %v23_v9 = vld [vmem:[%s802_s1] sm:$0xff]  ;;  %v52_v11 = vpack.c.bf16 %v39_v8, %v26_v4  ;;  %v38_v14 = vld [vmem:[%s802_s1 + $0x78] sm:$0x1]  ;;  %v28_v18 = vld [vmem:[%s802_s1 + $0x28] sm:$0xff]  ;;  %v595_v58 = vmov 0.0   ;;  %vm596_vm3 = vmmov 0  }
   0x4   :  { %v49_v12 = vpack.c.bf16 %v36_v10, %v23_v9  ;;  %v21_v15 = vld [vmem:[%s803_s0] sm:$0xff]  ;;  %v80_v16 = vand.u32 %v638_v7, %v50_v6  ;;  %v51_v17 = vpack.c.bf16 %v38_v14, %v25_v13  ;;  %v41_v19 = vld [vmem:[%s802_s1 + $0x90] sm:$0x1]  ;;  %v40_v24 = vld [vmem:[%s802_s1 + $0x88] sm:$0x1]  ;;  %vm412_vm4 = vcmask 261120  }
   0x5   :  { %v27_v20 = vld [vmem:[%s802_s1 + $0x20] sm:$0xff]  ;;  %v86_v21 = vand.u32 %v638_v7, %v52_v11  ;;  %v54_v23 = vpack.c.bf16 %v41_v19, %v28_v18  ;;  %v30_v25 = vld [vmem:[%s802_s1 + $0x38] sm:$0xff]  ;;  %v22_v28 = vpack.c.bf16 %v21_v15, %v21_v15  ;;  %v29_v31 = vld [vmem:[%s802_s1 + $0x30] sm:$0xff] }
   0x6   :  { %v77_v22 = vand.u32 %v638_v7, %v49_v12  ;;  %v43_v26 = vld [vmem:[%s802_s1 + $0xa0] sm:$0x1]  ;;  %115 = vmatprep.subr.bf16.mxu0 %v80_v16  ;;  %v83_v27 = vand.u32 %v638_v7, %v51_v17  ;;  %v53_v29 = vpack.c.bf16 %v40_v24, %v27_v20  ;;  %v42_v32 = vld [vmem:[%s802_s1 + $0x98] sm:$0x1]  ;;  %v32_v33 = vld [vmem:[%s802_s1 + $0x48] sm:$0xff] }
   0x7   :  { %v56_v30 = vpack.c.bf16 %v43_v26, %v30_v25  ;;  %156 = vmatprep.subr.bf16.mxu1 %v86_v21  ;;  %v92_v34 = vand.u32 %v638_v7, %v54_v23  ;;  %v55_v35 = vpack.c.bf16 %v42_v32, %v29_v31  ;;  %v45_v36 = vld [vmem:[%s802_s1 + $0xb0] sm:$0x1]  ;;  %v31_v37 = vld [vmem:[%s802_s1 + $0x40] sm:$0xff]  ;;  %v44_v41 = vld [vmem:[%s802_s1 + $0xa8] sm:$0x1] }
   0x8   :  { %116 = vmatpush1.bf16.msra.mxu0 %v77_v22  ;;  %157 = vmatpush1.bf16.msra.mxu1 %v83_v27  ;;  %v89_v38 = vand.u32 %v638_v7, %v53_v29  ;;  %v58_v40 = vpack.c.bf16 %v45_v36, %v32_v33  ;;  %v34_v42 = vld [vmem:[%s802_s1 + $0x58] sm:$0xff]  ;;  %v47_v43 = vld [vmem:[%s802_s1 + $0xc0] sm:$0x1]  ;;  %v33_v46 = vld [vmem:[%s802_s1 + $0x50] sm:$0xff]  ;;  %v57_v49 = vpack.c.bf16 %v44_v41, %v31_v37 }
   0x9   :  { %v98_v39 = vand.u32 %v638_v7, %v56_v30  ;;  %197 = vmatprep.subr.bf16.mxu0 %v92_v34  ;;  %v95_v44 = vand.u32 %v638_v7, %v55_v35  ;;  %v60_v45 = vpack.c.bf16 %v47_v43, %v34_v42  ;;  %v46_v47 = vld [vmem:[%s802_s1 + $0xb8] sm:$0x1]  ;;  %v62_v51 = vld [vmem:[%s804_s2] sm:$0xff]  ;;  %v48_v56 = vld [vmem:[%s802_s1 + $0xc8] sm:$0x1] }
   0xa   :  { %v104_v48 = vand.u32 %v638_v7, %v58_v40  ;;  %v59_v52 = vpack.c.bf16 %v46_v47, %v33_v46  ;;  %65 = vperm.xlu0 %589, %v62_v51   ;;  %v101_v53 = vand.u32 %v638_v7, %v57_v49  ;;  %v35_v55 = vld [vmem:[%s802_s1 + $0x60] sm:$0xff] }
   0xb   :  { %570 = vmatmul.mubr.msk.bf16.vlgmr.msra.gmra.mrb[0].mxu0 %vm68_vm2, %v22_v28  ;;  %238 = vmatprep.subr.bf16.mxu1 %v98_v39  ;;  %v110_v50 = vand.u32 %v638_v7, %v60_v45  ;;  %v61_v57 = vpack.c.bf16 %v48_v56, %v35_v55  ;;  %v476_v60 = vld [vmem:[%s805_s3] sm:$0xff] }
   0xc   :  { %571 = vmatmul.mubr.msk.bf16.vlgmr.msra.gmra.mrb[0].mxu1 %vm68_vm2, %v22_v28  ;;  %198 = vmatpush1.bf16.msra.mxu0 %v89_v38  ;;  %v107_v54 = vand.u32 %v638_v7, %v59_v52 }
   0xd   :  { %239 = vmatpush1.bf16.msra.mxu1 %v95_v44  ;;  %229 = vmatprep.mubr.bf16.mxu0 %v594_v5  ;;  %v113_v59 = vand.u32 %v638_v7, %v61_v57 }
   0xe   :  { %270 = vmatprep.mubr.bf16.mxu1 %v594_v5  ;;  %279 = vmatprep.subr.bf16.mxu0 %v104_v48 }
   0xf   :  { %320 = vmatprep.subr.bf16.mxu1 %v110_v50  ;;  %479 = vperm.xlu1 %590, %v476_v60  }
  0x13   :  { %572 = vmatmul.mubr.msk.bf16.vlgmr.msra.gmra.mrb[4].mxu0 %vm68_vm2, %v22_v28 }
  0x14   :  { %573 = vmatmul.mubr.msk.bf16.vlgmr.msra.gmra.mrb[4].mxu1 %vm68_vm2, %v22_v28  ;;  %280 = vmatpush1.bf16.msra.mxu0 %v101_v53 }
  0x15   :  { %321 = vmatpush1.bf16.msra.mxu1 %v107_v54  ;;  %311 = vmatprep.mubr.bf16.mxu0 %v594_v5 }
  0x16   :  { %352 = vmatprep.mubr.bf16.mxu1 %v594_v5  ;;  %579 = vmatprep.subr.bf16.mxu0 %v595_v58 }
  0x1b   :  { %574 = vmatmul.mubr.msk.bf16.vlgmr.msra.gmra.mrb[8].mxu0 %vm68_vm2, %v22_v28 }
  0x1c   :  { %575 = vmatmul.mubr.msk.bf16.vlgmr.msra.gmra.mrb[8].mxu1 %vm68_vm2, %v22_v28  ;;  %580 = vmatpush3.bf16.msra.mxu0 %v113_v59 }
  0x1d   :  { %581 = vmatprep.mubr.msk.bf16.mxu0 %vm596_vm3, %v595_v58 }
  0x23   :  { %582 = vmatmul.mubr.msk.bf16.vlgmr.msra.gmra.mrb[12].mxu0 %vm68_vm2, %v22_v28 }
  0x89   :  { %v66_v61 = vpop.permute.xlu0 %65 }
  0xde   :  { %v149_v62 = vpop.f32.mrb[0].mxu0 }
  0xdf   :  { %v150_v63 = vadd.f32 %v149_v62, %v66_v61  ;;  %v151_v0 = vpop.f32.mrb[1].mxu0  ;;  %v190_v1 = vpop.f32.mrb[0].mxu1 }
  0xe0   :  { %v152_v2 = vadd.f32 %v151_v0, %v66_v61  ;;  %v153_v3 = vpop.f32.mrb[2].mxu0  ;;  %v191_v4 = vadd.f32 %v190_v1, %v66_v61  ;;  %v192_v5 = vpop.f32.mrb[1].mxu1 }
  0xe1   :  { %v154_v6 = vpop.f32.mrb[3].mxu0  ;;  %v194_v7 = vpop.f32.mrb[2].mxu1  ;;  %v193_v11 = vadd.f32 %v192_v5, %v66_v61 }
  0xe2   :  { %v401_v8 = vadd.f32 %v152_v2, %v150_v63  ;;  %v195_v9 = vpop.f32.mrb[3].mxu1 }
  0xe4   :  { %v402_v10 = vadd.f32 %v401_v8, %v191_v4 }
  0xe6   :  { %v403_v12 = vadd.f32 %v402_v10, %v193_v11  ;;  %v231_v13 = vpop.f32.mrb[4].mxu0 }
  0xe7   :  { %v232_v14 = vadd.f32 %v231_v13, %v66_v61  ;;  %v272_v15 = vpop.f32.mrb[4].mxu1  ;;  %v233_v16 = vpop.f32.mrb[5].mxu0 }
  0xe8   :  { %v234_v17 = vadd.f32 %v233_v16, %v66_v61  ;;  %v274_v18 = vpop.f32.mrb[5].mxu1  ;;  %v235_v19 = vpop.f32.mrb[6].mxu0  ;;  %v273_v24 = vadd.f32 %v272_v15, %v66_v61 }
  0xe9   :  { %v404_v20 = vadd.f32 %v403_v12, %v232_v14  ;;  %v236_v21 = vpop.f32.mrb[7].mxu0  ;;  %v276_v22 = vpop.f32.mrb[6].mxu1  ;;  %v275_v26 = vadd.f32 %v274_v18, %v66_v61 }
  0xea   :  { %v277_v23 = vpop.f32.mrb[7].mxu1 }
  0xeb   :  { %v405_v25 = vadd.f32 %v404_v20, %v234_v17 }
  0xed   :  { %v406_v27 = vadd.f32 %v405_v25, %v273_v24 }
  0xee   :  { %v313_v28 = vpop.f32.mrb[8].mxu0 }
  0xef   :  { %v407_v29 = vadd.f32 %v406_v27, %v275_v26  ;;  %v314_v30 = vadd.f32 %v313_v28, %v66_v61  ;;  %v354_v31 = vpop.f32.mrb[8].mxu1  ;;  %v315_v32 = vpop.f32.mrb[9].mxu0 }
  0xf0   :  { %v316_v33 = vadd.f32 %v315_v32, %v66_v61  ;;  %v356_v34 = vpop.f32.mrb[9].mxu1  ;;  %v317_v35 = vpop.f32.mrb[10].mxu0  ;;  %v355_v40 = vadd.f32 %v354_v31, %v66_v61 }
  0xf1   :  { %v408_v36 = vadd.f32 %v407_v29, %v314_v30  ;;  %v318_v37 = vpop.f32.mrb[11].mxu0  ;;  %v358_v38 = vpop.f32.mrb[10].mxu1  ;;  %v357_v42 = vadd.f32 %v356_v34, %v66_v61  ;;  %v495_v29 = vld [vmem:[%s806_s4] sm:$0xff] }
  0xf2   :  { %v359_v39 = vpop.f32.mrb[11].mxu1 }
  0xf3   :  { %v409_v41 = vadd.f32 %v408_v36, %v316_v33 }
  0xf5   :  { %v410_v43 = vadd.f32 %v409_v41, %v355_v40 }
  0xf6   :  { %v395_v44 = vpop.f32.mrb[12].mxu0 }
  0xf7   :  { %v411_v45 = vadd.f32 %v410_v43, %v357_v42  ;;  %v396_v46 = vadd.f32 %v395_v44, %v66_v61  ;;  %v583_v47 = vpop.f32.mrb[13].mxu0 }
  0xf8   :  { %v398_v48 = vpop.f32.mrb[14].mxu0 }
  0xf9   :  { %v584_v49 = vpop.f32.mrb[15].mxu0  ;;  %v413_v50 = vsel %vm412_vm4, %v396_v46, 0.0 }
  0xfa   :  { %v414_v51 = vadd.f32 %v413_v50, %v411_v45 }
  0xfc   :  { %415 = vadd.xlane.f32.xlu0 %v414_v51 }
 0x189   :  { %v416_v52 = vpop.xlane.xlu0 %415 }
 0x18a   :  { %v418_v53 = vmul.f32 0.0006377551, %v416_v52 }
 0x18c   :  { %v419_v54 = vsub.f32 %v150_v63, %v418_v53  ;;  %v420_v55 = vsub.f32 %v152_v2, %v418_v53  ;;  %v421_v56 = vsub.f32 %v191_v4, %v418_v53  ;;  %v422_v59 = vsub.f32 %v193_v11, %v418_v53 }
 0x18d   :  { %v423_v60 = vsub.f32 %v232_v14, %v418_v53  ;;  %v424_v1 = vsub.f32 %v234_v17, %v418_v53  ;;  %v425_v5 = vsub.f32 %v273_v24, %v418_v53  ;;  %v426_v8 = vsub.f32 %v275_v26, %v418_v53 }
 0x18e   :  { %v432_v57 = vmul.f32 %v419_v54, %v419_v54  ;;  %v433_v58 = vmul.f32 %v420_v55, %v420_v55  ;;  %v434_v62 = vmul.f32 %v421_v56, %v421_v56  ;;  %v435_v61 = vmul.f32 %v422_v59, %v422_v59 }
 0x18f   :  { %v436_v6 = vmul.f32 %v423_v60, %v423_v60  ;;  %v437_v9 = vmul.f32 %v424_v1, %v424_v1  ;;  %v427_v12 = vsub.f32 %v314_v30, %v418_v53  ;;  %v438_v13 = vmul.f32 %v425_v5, %v425_v5  ;;  %v480_v30 = vpop.permute.xlu1 %479 }
 0x190   :  { %v445_v0 = vadd.f32 %v433_v58, %v432_v57  ;;  %v428_v2 = vsub.f32 %v316_v33, %v418_v53  ;;  %v439_v4 = vmul.f32 %v426_v8, %v426_v8  ;;  %v429_v16 = vsub.f32 %v355_v40, %v418_v53 }
 0x191   :  { %v440_v11 = vmul.f32 %v427_v12, %v427_v12  ;;  %v431_v18 = vsub.f32 %v396_v46, %v418_v53  ;;  %v430_v19 = vsub.f32 %v357_v42, %v418_v53 }
 0x192   :  { %v446_v3 = vadd.f32 %v445_v0, %v434_v62  ;;  %v441_v17 = vmul.f32 %v428_v2, %v428_v2  ;;  %v442_v21 = vmul.f32 %v429_v16, %v429_v16 }
 0x193   :  { %v444_v23 = vmul.f32 %v431_v18, %v431_v18  ;;  %v443_v24 = vmul.f32 %v430_v19, %v430_v19 }
 0x194   :  { %v447_v7 = vadd.f32 %v446_v3, %v435_v61 }
 0x195   :  { %v456_v27 = vsel %vm412_vm4, %v444_v23, 0.0 }
 0x196   :  { %v448_v10 = vadd.f32 %v447_v7, %v436_v6 }
 0x198   :  { %v449_v63 = vadd.f32 %v448_v10, %v437_v9 }
 0x19a   :  { %v450_v15 = vadd.f32 %v449_v63, %v438_v13 }
 0x19c   :  { %v451_v14 = vadd.f32 %v450_v15, %v439_v4 }
 0x19e   :  { %v452_v20 = vadd.f32 %v451_v14, %v440_v11 }
 0x1a0   :  { %v453_v22 = vadd.f32 %v452_v20, %v441_v17 }
 0x1a2   :  { %v454_v25 = vadd.f32 %v453_v22, %v442_v21 }
 0x1a4   :  { %v455_v26 = vadd.f32 %v454_v25, %v443_v24 }
 0x1a6   :  { %v457_v28 = vadd.f32 %v456_v27, %v455_v26 }
 0x1a8   :  { %458 = vadd.xlane.f32.xlu1 %v457_v28 }
 0x1b9   :  { %498 = vperm.xlu1 %590, %v495_v29  }
 0x235   :  { %v459_v31 = vpop.xlane.xlu1 %458 }
 0x236   :  { %v460_v32 = vmul.f32 0.0006377551, %v459_v31 }
 0x238   :  { %v461_v33 = vadd.f32 1e-05, %v460_v32 }
 0x23a   :  { %591 = vrsqrt.f32 %v461_v33 }
 0x244   :  { %v592_v34 = vpop.eup %591 }
 0x245   :  { %v463_v35 = vmul.f32 %v592_v34, %v419_v54  ;;  %v464_v36 = vmul.f32 %v592_v34, %v420_v55  ;;  %v465_v37 = vmul.f32 %v592_v34, %v421_v56  ;;  %v466_v38 = vmul.f32 %v592_v34, %v422_v59  ;;  %v499_v59 = vpop.permute.xlu1 %498 }
 0x246   :  { %v467_v39 = vmul.f32 %v592_v34, %v423_v60  ;;  %v468_v40 = vmul.f32 %v592_v34, %v424_v1  ;;  %v469_v41 = vmul.f32 %v592_v34, %v425_v5  ;;  %v470_v42 = vmul.f32 %v592_v34, %v426_v8 }
 0x247   :  { %v471_v43 = vmul.f32 %v592_v34, %v427_v12  ;;  %v472_v44 = vmul.f32 %v592_v34, %v428_v2  ;;  %v473_v45 = vmul.f32 %v592_v34, %v429_v16  ;;  %v474_v46 = vmul.f32 %v592_v34, %v430_v19 }
 0x248   :  { %v475_v47 = vmul.f32 %v592_v34, %v431_v18  ;;  %v482_v48 = vmul.f32 %v480_v30, %v463_v35  ;;  %v483_v49 = vmul.f32 %v480_v30, %v464_v36  ;;  %v484_v50 = vmul.f32 %v480_v30, %v465_v37 }
 0x249   :  { %v485_v51 = vmul.f32 %v480_v30, %v466_v38  ;;  %v486_v52 = vmul.f32 %v480_v30, %v467_v39  ;;  %v487_v53 = vmul.f32 %v480_v30, %v468_v40  ;;  %v488_v57 = vmul.f32 %v480_v30, %v469_v41 }
 0x24a   :  { %v489_v54 = vmul.f32 %v480_v30, %v470_v42  ;;  %v490_v55 = vmul.f32 %v480_v30, %v471_v43  ;;  %v491_v56 = vmul.f32 %v480_v30, %v472_v44  ;;  %v492_v58 = vmul.f32 %v480_v30, %v473_v45 }
 0x24b   :  { %v493_v60 = vmul.f32 %v480_v30, %v474_v46  ;;  %v494_v62 = vmul.f32 %v480_v30, %v475_v47  ;;  %v501_v0 = vadd.f32 %v499_v59, %v482_v48  ;;  %v502_v1 = vadd.f32 %v499_v59, %v483_v49 }
 0x24c   :  { %v503_v61 = vadd.f32 %v499_v59, %v484_v50  ;;  %v504_v3 = vadd.f32 %v499_v59, %v485_v51  ;;  %v505_v5 = vadd.f32 %v499_v59, %v486_v52  ;;  %v506_v6 = vadd.f32 %v499_v59, %v487_v53 }
 0x24d   :  { %v507_v7 = vadd.f32 %v499_v59, %v488_v57  ;;  %v508_v8 = vadd.f32 %v499_v59, %v489_v54  ;;  %v509_v9 = vadd.f32 %v499_v59, %v490_v55  ;;  %v510_v10 = vadd.f32 %v499_v59, %v491_v56 }
 0x24e   :  { %v511_v12 = vadd.f32 %v499_v59, %v492_v58  ;;  %v512_v13 = vadd.f32 %v499_v59, %v493_v60  ;;  %v513_v63 = vadd.f32 %v499_v59, %v494_v62  ;;  %vm514_vm5 = vcmp.ge.f32.partialorder %v501_v0, 0.0 }
 0x24f   :  { %vm515_vm6 = vcmp.ge.f32.partialorder %v502_v1, 0.0  ;;  %vm516_vm7 = vcmp.ge.f32.partialorder %v503_v61, 0.0  ;;  %vm517_vm8 = vcmp.ge.f32.partialorder %v504_v3, 0.0  ;;  %vm518_vm9 = vcmp.ge.f32.partialorder %v505_v5, 0.0 }
 0x250   :  { %vm519_vm10 = vcmp.ge.f32.partialorder %v506_v6, 0.0  ;;  %vm520_vm11 = vcmp.ge.f32.partialorder %v507_v7, 0.0  ;;  %vm521_vm12 = vcmp.ge.f32.partialorder %v508_v8, 0.0  ;;  %vm522_vm13 = vcmp.ge.f32.partialorder %v509_v9, 0.0 }
 0x251   :  { %vm523_vm14 = vcmp.ge.f32.partialorder %v510_v10, 0.0  ;;  %vm524_vm15 = vcmp.ge.f32.partialorder %v511_v12, 0.0  ;;  %vm525_vm0 = vcmp.ge.f32.partialorder %v512_v13, 0.0  ;;  %vm526_vm1 = vcmp.ge.f32.partialorder %v513_v63, 0.0 }
 0x252   :  { %v527_v2 = vmul.f32 0.01, %v501_v0  ;;  %v528_v4 = vmul.f32 0.01, %v502_v1  ;;  %v529_v15 = vmul.f32 0.01, %v503_v61 }
 0x253   :  { %v530_v16 = vmul.f32 0.01, %v504_v3  ;;  %v531_v11 = vmul.f32 0.01, %v505_v5  ;;  %v532_v14 = vmul.f32 0.01, %v506_v6 }
 0x254   :  { %v533_v18 = vmul.f32 0.01, %v507_v7  ;;  %v534_v19 = vmul.f32 0.01, %v508_v8  ;;  %v535_v17 = vmul.f32 0.01, %v509_v9  ;;  %v540_v20 = vsel %vm514_vm5, %v501_v0, %v527_v2 }
 0x255   :  { %v536_v21 = vmul.f32 0.01, %v510_v10  ;;  %v537_v22 = vmul.f32 0.01, %v511_v12  ;;  %v538_v23 = vmul.f32 0.01, %v512_v13  ;;  %v541_v24 = vsel %vm515_vm6, %v502_v1, %v528_v4  ;;  %553 = vst [vmem:[%s807_s5] sm:$0xff] %v540_v20 }
 0x256   :  { %v539_v25 = vmul.f32 0.01, %v513_v63  ;;  %v542_v26 = vsel %vm516_vm7, %v503_v61, %v529_v15  ;;  %v543_v27 = vsel %vm517_vm8, %v504_v3, %v530_v16  ;;  %v544_v28 = vsel %vm518_vm9, %v505_v5, %v531_v11  ;;  %554 = vst [vmem:[%s807_s5 + $0x8] sm:$0xff] %v541_v24 }
 0x257   :  { %v545_v29 = vsel %vm519_vm10, %v506_v6, %v532_v14  ;;  %v546_v30 = vsel %vm520_vm11, %v507_v7, %v533_v18  ;;  %v547_v31 = vsel %vm521_vm12, %v508_v8, %v534_v19  ;;  %v548_v32 = vsel %vm522_vm13, %v509_v9, %v535_v17  ;;  %555 = vst [vmem:[%s807_s5 + $0x10] sm:$0xff] %v542_v26 }
 0x258   :  { %556 = vst [vmem:[%s807_s5 + $0x18] sm:$0xff] %v543_v27  ;;  %557 = vst [vmem:[%s807_s5 + $0x20] sm:$0xff] %v544_v28  ;;  %v549_v33 = vsel %vm523_vm14, %v510_v10, %v536_v21  ;;  %v550_v34 = vsel %vm524_vm15, %v511_v12, %v537_v22  ;;  %v551_v35 = vsel %vm525_vm0, %v512_v13, %v538_v23 }
 0x259   :  { %v552_v36 = vsel %vm526_vm1, %v513_v63, %v539_v25  ;;  %558 = vst [vmem:[%s807_s5 + $0x28] sm:$0xff] %v545_v29  ;;  %559 = vst [vmem:[%s807_s5 + $0x30] sm:$0xff] %v546_v30 }
 0x25a   :  { %560 = vst [vmem:[%s807_s5 + $0x38] sm:$0xff] %v547_v31  ;;  %561 = vst [vmem:[%s807_s5 + $0x40] sm:$0xff] %v548_v32 }
 0x25b   :  { %562 = vst [vmem:[%s807_s5 + $0x48] sm:$0xff] %v549_v33  ;;  %563 = vst [vmem:[%s807_s5 + $0x50] sm:$0xff] %v550_v34 }
 0x25c   :  { %564 = vst [vmem:[%s807_s5 + $0x58] sm:$0xff] %v551_v35  ;;  %565 = vst.msk [vmem:[%s807_s5 + $0x60] sm:$0xff] %vm412_vm4, %v552_v36 }

// kernel: convae_forward.8
= control target key start
LH: loop header
LB: loop body
LE: loop exit
PB: predicated region body
PF: predicated region fallthrough
CT: control target
= control target key end

     0   :  { %v340_v3 = vmov 0   ;;  %vm96_vm0 = vcmask 1043456   ;;  %vm92_vm1 = vcmask 588800   ;;  %vm197_vm2 = vcmask 64512   ;;  %s533_s1 = inlined_call_operand.vmem [shape: f32[72,392], index: 1, kind: input, shape index: {}]   ;;  %s534_s2 = inlined_call_operand.vmem [shape: f32[16,1], index: 2, kind: input, shape index: {}]   ;;  %s535_s0 = inlined_call_operand.vmem [shape: f32[16,72], index: 0, kind: input, shape index: {}]   ;;  %s536_s3 = inlined_call_operand.vmem [shape: f32[16,1], index: 3, kind: input, shape index: {}]   ;;  %s537_s4 = inlined_call_operand.vmem [shape: f32[16,1], index: 4, kind: input, shape index: {}]   ;;  %s538_s5 = inlined_call_operand.vmem [shape: f32[16,392], index: 5, kind: output, shape index: {}]  }
   0x1   :  { %v25_v0 = vld [vmem:[%s533_s1 + $0x8] sm:$0xff]  ;;  %v27_v2 = vld [vmem:[%s533_s1 + $0x18] sm:$0xff]  ;;  %141 = vmatprep.mubr.bf16.mxu0 %v340_v3  ;;  %184 = vmatprep.mubr.bf16.mxu1 %v340_v3  ;;  %v24_v6 = vld [vmem:[%s533_s1] sm:$0xff] }
   0x2   :  { %v29_v1 = vld [vmem:[%s533_s1 + $0x28] sm:$0xff]  ;;  %v31_v5 = vld [vmem:[%s533_s1 + $0x38] sm:$0xff]  ;;  %v28_v7 = vld [vmem:[%s533_s1 + $0x20] sm:$0xff]  ;;  %334 = vset.pattern.permute.xlu0 %v340_v3  ;;  %335 = vset.pattern.permute.xlu1 %v340_v3 }
   0x3   :  { %v61_v4 = vpack.c.bf16 %v29_v1, %v25_v0  ;;  %v63_v8 = vpack.c.bf16 %v31_v5, %v27_v2  ;;  %v60_v9 = vpack.c.bf16 %v28_v7, %v24_v6  ;;  %v26_v10 = vld [vmem:[%s533_s1 + $0x10] sm:$0xff]  ;;  %v33_v12 = vld [vmem:[%s533_s1 + $0x48] sm:$0xff]  ;;  %v35_v15 = vld [vmem:[%s533_s1 + $0x58] sm:$0xff] }
   0x4   :  { %v30_v11 = vld [vmem:[%s533_s1 + $0x30] sm:$0xff]  ;;  %v37_v14 = vld [vmem:[%s533_s1 + $0x68] sm:$0xff]  ;;  %v39_v16 = vld [vmem:[%s533_s1 + $0x78] sm:$0xff] }
   0x5   :  { %109 = vmatprep.subr.bf16.mxu0 %v61_v4  ;;  %v62_v13 = vpack.c.bf16 %v30_v11, %v26_v10  ;;  %152 = vmatprep.subr.bf16.mxu1 %v63_v8  ;;  %v65_v17 = vpack.c.bf16 %v37_v14, %v33_v12  ;;  %v67_v18 = vpack.c.bf16 %v39_v16, %v35_v15  ;;  %v32_v19 = vld [vmem:[%s533_s1 + $0x40] sm:$0xff]  ;;  %v34_v21 = vld [vmem:[%s533_s1 + $0x50] sm:$0xff]  ;;  %v41_v24 = vld [vmem:[%s533_s1 + $0x88] sm:$0xff] }
   0x6   :  { %110 = vmatpush1.bf16.msra.mxu0 %v60_v9  ;;  %v36_v20 = vld [vmem:[%s533_s1 + $0x60] sm:$0xff]  ;;  %v38_v23 = vld [vmem:[%s533_s1 + $0x70] sm:$0xff]  ;;  %v45_v25 = vld [vmem:[%s533_s1 + $0xa8] sm:$0xff] }
   0x7   :  { %153 = vmatpush1.bf16.msra.mxu1 %v62_v13  ;;  %v64_v22 = vpack.c.bf16 %v36_v20, %v32_v19  ;;  %111 = vmatprep.subr.bf16.mxu0 %v65_v17  ;;  %v66_v26 = vpack.c.bf16 %v38_v23, %v34_v21  ;;  %v69_v27 = vpack.c.bf16 %v45_v25, %v41_v24  ;;  %v43_v28 = vld [vmem:[%s533_s1 + $0x98] sm:$0xff]  ;;  %v40_v30 = vld [vmem:[%s533_s1 + $0x80] sm:$0xff]  ;;  %v42_v33 = vld [vmem:[%s533_s1 + $0x90] sm:$0xff] }
   0x8   :  { %154 = vmatprep.subr.bf16.mxu1 %v67_v18  ;;  %v47_v29 = vld [vmem:[%s533_s1 + $0xb8] sm:$0xff]  ;;  %v44_v32 = vld [vmem:[%s533_s1 + $0xa0] sm:$0xff]  ;;  %v46_v34 = vld [vmem:[%s533_s1 + $0xb0] sm:$0xff] }
   0x9   :  { %v71_v31 = vpack.c.bf16 %v47_v29, %v43_v28  ;;  %v68_v35 = vpack.c.bf16 %v44_v32, %v40_v30  ;;  %v49_v36 = vld [vmem:[%s533_s1 + $0xc8] sm:$0xff]  ;;  %v51_v38 = vld [vmem:[%s533_s1 + $0xd8] sm:$0xff]  ;;  %v70_v39 = vpack.c.bf16 %v46_v34, %v42_v33  ;;  %v48_v42 = vld [vmem:[%s533_s1 + $0xc0] sm:$0xff] }
   0xa   :  { %112 = vmatpush1.bf16.msra.mxu0 %v64_v22  ;;  %v53_v37 = vld [vmem:[%s533_s1 + $0xe8] sm:$0xff]  ;;  %v55_v41 = vld [vmem:[%s533_s1 + $0xf8] sm:$0xff]  ;;  %v52_v43 = vld [vmem:[%s533_s1 + $0xe0] sm:$0xff] }
   0xb   :  { %155 = vmatpush1.bf16.msra.mxu1 %v66_v26  ;;  %113 = vmatprep.subr.bf16.mxu0 %v69_v27  ;;  %v73_v40 = vpack.c.bf16 %v53_v37, %v49_v36  ;;  %v75_v44 = vpack.c.bf16 %v55_v41, %v51_v38  ;;  %v50_v45 = vld [vmem:[%s533_s1 + $0xd0] sm:$0xff]  ;;  %v57_v47 = vld [vmem:[%s533_s1 + $0x108] sm:$0xff]  ;;  %v59_v48 = vld [vmem:[%s533_s1 + $0x118] sm:$0xff]  ;;  %v72_v51 = vpack.c.bf16 %v52_v43, %v48_v42 }
   0xc   :  { %156 = vmatprep.subr.bf16.mxu1 %v71_v31  ;;  %v54_v46 = vld [vmem:[%s533_s1 + $0xf0] sm:$0xff]  ;;  %v56_v49 = vld [vmem:[%s533_s1 + $0x100] sm:$0xff]  ;;  %v77_v54 = vpack.c.bf16 %v57_v47, %v57_v47  ;;  %v79_v56 = vpack.c.bf16 %v59_v48, %v59_v48  ;;  %v81_v58 = vld [vmem:[%s534_s2 + $0x8] sm:$0xff] }
   0xd   :  { %v58_v50 = vld [vmem:[%s533_s1 + $0x110] sm:$0xff]  ;;  %v80_v52 = vld [vmem:[%s534_s2] sm:$0xff]  ;;  %v74_v53 = vpack.c.bf16 %v54_v46, %v50_v45  ;;  %v76_v55 = vpack.c.bf16 %v56_v49, %v56_v49  ;;  %v22_v60 = vld [vmem:[%s535_s0 + $0x8] sm:$0xff] }
   0xe   :  { %114 = vmatpush1.bf16.msra.mxu0 %v68_v35  ;;  %v78_v57 = vpack.c.bf16 %v58_v50, %v58_v50  ;;  %84 = vperm.xlu0 %334, %v80_v52   ;;  %v21_v59 = vld [vmem:[%s535_s0] sm:$0xff]  ;;  %v254_v27 = vld [vmem:[%s536_s3 + $0x8] sm:$0xff] }
   0xf   :  { %157 = vmatpush1.bf16.msra.mxu1 %v70_v39  ;;  %115 = vmatprep.subr.bf16.mxu0 %v73_v40  ;;  %v98_v61 = vsel %vm96_vm0, %v76_v55, 0  ;;  %v23_v63 = vpack.c.bf16 %v22_v60, %v21_v59  ;;  %v253_v26 = vld [vmem:[%s536_s3] sm:$0xff] }
  0x10   :  { %158 = vmatprep.subr.bf16.mxu1 %v75_v44  ;;  %v104_v62 = vsel %vm96_vm0, %v78_v57, 0  ;;  %v273_v28 = vld [vmem:[%s537_s4] sm:$0xff]  ;;  %v274_v57 = vld [vmem:[%s537_s4 + $0x8] sm:$0xff] }
  0x12   :  { %116 = vmatpush1.bf16.msra.mxu0 %v72_v51  ;;  %89 = vperm.xlu0 %334, %v81_v58  }
  0x13   :  { %159 = vmatpush1.bf16.msra.mxu1 %v74_v53  ;;  %329 = vmatprep.subr.msk.bf16.mxu0 %vm96_vm0, %v77_v54 }
  0x14   :  { %331 = vmatprep.subr.msk.bf16.mxu1 %vm96_vm0, %v79_v56 }
  0x16   :  { %118 = vmatpush1.bf16.msra.mxu0 %v98_v61 }
  0x17   :  { %161 = vmatpush1.bf16.msra.mxu1 %v104_v62 }
  0x19   :  { %330 = vmatmul.mubr.msk.bf16.vlgmr.msra.gmra.mrb[0].mxu0 %vm92_vm1, %v23_v63 }
  0x1a   :  { %332 = vmatmul.mubr.msk.bf16.vlgmr.msra.gmra.mrb[0].mxu1 %vm92_vm1, %v23_v63 }
  0x8d   :  { %v85_v0 = vpop.permute.xlu0 %84 }
  0x91   :  { %v90_v2 = vpop.permute.xlu0 %89 }
  0xec   :  { %v143_v1 = vpop.f32.mrb[0].mxu0 }
  0xed   :  { %v144_v3 = vadd.f32 %v143_v1, %v85_v0  ;;  %v186_v4 = vpop.f32.mrb[0].mxu1  ;;  %v145_v5 = vpop.f32.mrb[1].mxu0 }
  0xee   :  { %v146_v6 = vadd.f32 %v145_v5, %v85_v0  ;;  %v188_v7 = vpop.f32.mrb[1].mxu1  ;;  %v147_v8 = vpop.f32.mrb[2].mxu0  ;;  %v187_v13 = vadd.f32 %v186_v4, %v85_v0 }
  0xef   :  { %v189_v9 = vadd.f32 %v188_v7, %v85_v0  ;;  %v148_v10 = vadd.f32 %v147_v8, %v90_v2  ;;  %v190_v11 = vpop.f32.mrb[2].mxu1  ;;  %v149_v12 = vpop.f32.mrb[3].mxu0 }
  0xf0   :  { %v195_v14 = vadd.f32 %v146_v6, %v144_v3  ;;  %v150_v15 = vadd.f32 %v149_v12, %v90_v2  ;;  %v192_v16 = vpop.f32.mrb[3].mxu1  ;;  %v191_v17 = vadd.f32 %v190_v11, %v90_v2 }
  0xf1   :  { %v193_v20 = vadd.f32 %v192_v16, %v90_v2  ;;  %v198_v21 = vsel %vm197_vm2, %v189_v9, 0.0 }
  0xf2   :  { %v202_v18 = vadd.f32 %v150_v15, %v148_v10  ;;  %v196_v19 = vadd.f32 %v195_v14, %v187_v13 }
  0xf3   :  { %v204_v24 = vsel %vm197_vm2, %v193_v20, 0.0 }
  0xf4   :  { %v199_v22 = vadd.f32 %v198_v21, %v196_v19  ;;  %v203_v23 = vadd.f32 %v202_v18, %v191_v17 }
  0xf6   :  { %200 = vadd.xlane.f32.xlu1 %v199_v22  ;;  %v205_v25 = vadd.f32 %v204_v24, %v203_v23 }
  0xfa   :  { %206 = vadd.xlane.f32.xlu1 %v205_v25 }
 0x10b   :  { %257 = vperm.xlu1 %335, %v253_v26  }
 0x10f   :  { %262 = vperm.xlu1 %335, %v254_v27  }
 0x113   :  { %277 = vperm.xlu1 %335, %v273_v28  }
 0x183   :  { %v201_v29 = vpop.xlane.xlu1 %200 }
 0x184   :  { %v209_v30 = vmul.f32 0.0025510204, %v201_v29 }
 0x186   :  { %v211_v31 = vsub.f32 %v144_v3, %v209_v30  ;;  %v212_v32 = vsub.f32 %v146_v6, %v209_v30  ;;  %v213_v33 = vsub.f32 %v187_v13, %v209_v30  ;;  %v214_v34 = vsub.f32 %v189_v9, %v209_v30 }
 0x187   :  { %v207_v35 = vpop.xlane.xlu1 %206 }
 0x188   :  { %v210_v36 = vmul.f32 0.0025510204, %v207_v35  ;;  %v219_v37 = vmul.f32 %v211_v31, %v211_v31  ;;  %v220_v38 = vmul.f32 %v212_v32, %v212_v32  ;;  %v221_v39 = vmul.f32 %v213_v33, %v213_v33 }
 0x189   :  { %v222_v40 = vmul.f32 %v214_v34, %v214_v34 }
 0x18a   :  { %v215_v41 = vsub.f32 %v148_v10, %v210_v36  ;;  %v216_v42 = vsub.f32 %v150_v15, %v210_v36  ;;  %v227_v43 = vadd.f32 %v220_v38, %v219_v37  ;;  %v217_v44 = vsub.f32 %v191_v17, %v210_v36 }
 0x18b   :  { %v218_v45 = vsub.f32 %v193_v20, %v210_v36  ;;  %v229_v49 = vsel %vm197_vm2, %v222_v40, 0.0  ;;  %v258_v58 = vpop.permute.xlu1 %257 }
 0x18c   :  { %v228_v46 = vadd.f32 %v227_v43, %v221_v39  ;;  %v223_v47 = vmul.f32 %v215_v41, %v215_v41  ;;  %v224_v48 = vmul.f32 %v216_v42, %v216_v42  ;;  %v225_v52 = vmul.f32 %v217_v44, %v217_v44 }
 0x18d   :  { %v226_v50 = vmul.f32 %v218_v45, %v218_v45 }
 0x18e   :  { %v230_v51 = vadd.f32 %v229_v49, %v228_v46  ;;  %v233_v53 = vadd.f32 %v224_v48, %v223_v47 }
 0x18f   :  { %v235_v55 = vsel %vm197_vm2, %v226_v50, 0.0  ;;  %v263_v59 = vpop.permute.xlu1 %262 }
 0x190   :  { %231 = vadd.xlane.f32.xlu0 %v230_v51  ;;  %v234_v54 = vadd.f32 %v233_v53, %v225_v52 }
 0x192   :  { %v236_v56 = vadd.f32 %v235_v55, %v234_v54 }
 0x193   :  { %v278_v60 = vpop.permute.xlu1 %277 }
 0x194   :  { %237 = vadd.xlane.f32.xlu1 %v236_v56 }
 0x1a5   :  { %282 = vperm.xlu1 %335, %v274_v57  }
 0x21d   :  { %v232_v61 = vpop.xlane.xlu0 %231 }
 0x21e   :  { %v239_v62 = vmul.f32 0.0025510204, %v232_v61 }
 0x220   :  { %v241_v63 = vadd.f32 1e-05, %v239_v62 }
 0x221   :  { %v238_v0 = vpop.xlane.xlu1 %237 }
 0x222   :  { %336 = vrsqrt.f32 %v241_v63  ;;  %v240_v1 = vmul.f32 0.0025510204, %v238_v0 }
 0x224   :  { %v242_v2 = vadd.f32 1e-05, %v240_v1 }
 0x225   :  { %v283_v25 = vpop.permute.xlu1 %282 }
 0x226   :  { %338 = vrsqrt.f32 %v242_v2 }
 0x22c   :  { %v337_v3 = vpop.eup %336 }
 0x22d   :  { %v245_v4 = vmul.f32 %v337_v3, %v211_v31  ;;  %v246_v5 = vmul.f32 %v337_v3, %v212_v32  ;;  %v247_v6 = vmul.f32 %v337_v3, %v213_v33  ;;  %v248_v7 = vmul.f32 %v337_v3, %v214_v34 }
 0x22f   :  { %v265_v8 = vmul.f32 %v258_v58, %v245_v4  ;;  %v266_v9 = vmul.f32 %v258_v58, %v246_v5  ;;  %v267_v10 = vmul.f32 %v258_v58, %v247_v6  ;;  %v268_v11 = vmul.f32 %v258_v58, %v248_v7 }
 0x230   :  { %v339_v12 = vpop.eup %338 }
 0x231   :  { %v249_v13 = vmul.f32 %v339_v12, %v215_v41  ;;  %v250_v14 = vmul.f32 %v339_v12, %v216_v42  ;;  %v251_v15 = vmul.f32 %v339_v12, %v217_v44  ;;  %v252_v16 = vmul.f32 %v339_v12, %v218_v45 }
 0x232   :  { %v285_v17 = vadd.f32 %v278_v60, %v265_v8  ;;  %v286_v18 = vadd.f32 %v278_v60, %v266_v9  ;;  %v287_v19 = vadd.f32 %v278_v60, %v267_v10  ;;  %v288_v20 = vadd.f32 %v278_v60, %v268_v11 }
 0x233   :  { %v269_v21 = vmul.f32 %v263_v59, %v249_v13  ;;  %v270_v22 = vmul.f32 %v263_v59, %v250_v14  ;;  %v271_v23 = vmul.f32 %v263_v59, %v251_v15  ;;  %v272_v24 = vmul.f32 %v263_v59, %v252_v16 }
 0x234   :  { %vm293_vm3 = vcmp.ge.f32.partialorder %v285_v17, 0.0  ;;  %vm294_vm4 = vcmp.ge.f32.partialorder %v286_v18, 0.0  ;;  %vm295_vm5 = vcmp.ge.f32.partialorder %v287_v19, 0.0  ;;  %vm296_vm6 = vcmp.ge.f32.partialorder %v288_v20, 0.0 }
 0x235   :  { %v301_v26 = vmul.f32 0.01, %v285_v17  ;;  %v302_v27 = vmul.f32 0.01, %v286_v18  ;;  %v303_v28 = vmul.f32 0.01, %v287_v19  ;;  %v289_v29 = vadd.f32 %v283_v25, %v269_v21 }
 0x236   :  { %v304_v30 = vmul.f32 0.01, %v288_v20  ;;  %v290_v31 = vadd.f32 %v283_v25, %v270_v22  ;;  %v291_v32 = vadd.f32 %v283_v25, %v271_v23  ;;  %v292_v33 = vadd.f32 %v283_v25, %v272_v24 }
 0x237   :  { %v309_v34 = vsel %vm293_vm3, %v285_v17, %v301_v26  ;;  %v310_v35 = vsel %vm294_vm4, %v286_v18, %v302_v27  ;;  %v311_v36 = vsel %vm295_vm5, %v287_v19, %v303_v28  ;;  %vm297_vm7 = vcmp.ge.f32.partialorder %v289_v29, 0.0 }
 0x238   :  { %v312_v37 = vsel %vm296_vm6, %v288_v20, %v304_v30  ;;  %317 = vst [vmem:[%s538_s5] sm:$0xff] %v309_v34  ;;  %318 = vst [vmem:[%s538_s5 + $0x8] sm:$0xff] %v310_v35  ;;  %vm298_vm8 = vcmp.ge.f32.partialorder %v290_v31, 0.0  ;;  %vm299_vm9 = vcmp.ge.f32.partialorder %v291_v32, 0.0  ;;  %vm300_vm10 = vcmp.ge.f32.partialorder %v292_v33, 0.0 }
 0x239   :  { %319 = vst [vmem:[%s538_s5 + $0x10] sm:$0xff] %v311_v36  ;;  %320 = vst.msk [vmem:[%s538_s5 + $0x18] sm:$0xff] %vm197_vm2, %v312_v37  ;;  %v305_v38 = vmul.f32 0.01, %v289_v29  ;;  %v306_v39 = vmul.f32 0.01, %v290_v31 }
 0x23a   :  { %v307_v40 = vmul.f32 0.01, %v291_v32  ;;  %v308_v41 = vmul.f32 0.01, %v292_v33 }
 0x23b   :  { %v313_v42 = vsel %vm297_vm7, %v289_v29, %v305_v38  ;;  %v314_v43 = vsel %vm298_vm8, %v290_v31, %v306_v39 }
 0x23c   :  { %v315_v44 = vsel %vm299_vm9, %v291_v32, %v307_v40  ;;  %v316_v45 = vsel %vm300_vm10, %v292_v33, %v308_v41  ;;  %321 = vst [vmem:[%s538_s5 + $0x20] sm:$0xff] %v313_v42  ;;  %322 = vst [vmem:[%s538_s5 + $0x28] sm:$0xff] %v314_v43 }
 0x23d   :  { %323 = vst [vmem:[%s538_s5 + $0x30] sm:$0xff] %v315_v44  ;;  %324 = vst.msk [vmem:[%s538_s5 + $0x38] sm:$0xff] %vm197_vm2, %v316_v45 }

// kernel: convae_forward.9
= control target key start
LH: loop header
LB: loop body
LE: loop exit
PB: predicated region body
PF: predicated region fallthrough
CT: control target
= control target key end

     0   :  { %v301_v0 = vmov 0   ;;  %vm84_vm0 = vcmask 130048   ;;  %vm140_vm1 = vcmask 801792   ;;  %s492_s1 = inlined_call_operand.vmem [shape: f32[144,98], index: 1, kind: input, shape index: {}]   ;;  %s493_s0 = inlined_call_operand.vmem [shape: f32[32,144], index: 0, kind: input, shape index: {}]   ;;  %s494_s2 = inlined_call_operand.vmem [shape: f32[32,1], index: 2, kind: input, shape index: {}]   ;;  %s495_s3 = inlined_call_operand.vmem [shape: f32[32,1], index: 3, kind: input, shape index: {}]   ;;  %s496_s4 = inlined_call_operand.vmem [shape: f32[32,1], index: 4, kind: input, shape index: {}]   ;;  %s497_s5 = inlined_call_operand.vmem [shape: f32[32,98], index: 5, kind: output, shape index: {}]  }
   0x1   :  { %91 = vmatprep.subr.bf16.mxu0 %v301_v0  ;;  %272 = vmatprep.subr.bf16.mxu1 %v301_v0  ;;  %v33_v1 = vld [vmem:[%s492_s1] sm:$0xff]  ;;  %v34_v2 = vld [vmem:[%s492_s1 + $0x8] sm:$0xff]  ;;  %v35_v3 = vld [vmem:[%s492_s1 + $0x10] sm:$0xff] }
   0x2   :  { %v51_v4 = vpack.c.bf16 %v34_v2, %v33_v1  ;;  %v36_v5 = vld [vmem:[%s492_s1 + $0x18] sm:$0xff]  ;;  %291 = vset.pattern.permute.xlu0 %v301_v0  ;;  %292 = vset.pattern.permute.xlu1 %v301_v0  ;;  %v37_v7 = vld [vmem:[%s492_s1 + $0x20] sm:$0xff]  ;;  %v38_v8 = vld [vmem:[%s492_s1 + $0x28] sm:$0xff] }
   0x3   :  { %v52_v6 = vpack.c.bf16 %v36_v5, %v35_v3  ;;  %v22_v9 = vld [vmem:[%s493_s0 + $0x8] sm:$0xff]  ;;  %v24_v10 = vld [vmem:[%s493_s0 + $0x18] sm:$0xff]  ;;  %v53_v11 = vpack.c.bf16 %v38_v8, %v37_v7  ;;  %v39_v15 = vld [vmem:[%s492_s1 + $0x30] sm:$0xff] }
   0x4   :  { %92 = vmatpush1.bf16.msra.mxu0 %v51_v4  ;;  %281 = vmatpush1.bf16.msra.mxu1 %v51_v4  ;;  %v30_v12 = vpack.c.bf16 %v24_v10, %v22_v9  ;;  %v26_v13 = vld [vmem:[%s493_s0 + $0x28] sm:$0xff]  ;;  %v28_v14 = vld [vmem:[%s493_s0 + $0x38] sm:$0xff]  ;;  %v60_v18 = vld [vmem:[%s494_s2] sm:$0xff] }
   0x5   :  { %93 = vmatprep.subr.bf16.mxu0 %v301_v0  ;;  %273 = vmatprep.subr.bf16.mxu1 %v301_v0  ;;  %v40_v16 = vld [vmem:[%s492_s1 + $0x38] sm:$0xff]  ;;  %v32_v17 = vpack.c.bf16 %v28_v14, %v26_v13  ;;  %v62_v19 = vld [vmem:[%s494_s2 + $0x10] sm:$0xff]  ;;  %v61_v20 = vld [vmem:[%s494_s2 + $0x8] sm:$0xff] }
   0x6   :  { %270 = vmatprep.mubr.msk.bf16.mxu0 %vm84_vm0, %v30_v12  ;;  %66 = vperm.xlu0 %291, %v60_v18   ;;  %v54_v21 = vpack.c.bf16 %v40_v16, %v39_v15  ;;  %v63_v22 = vld [vmem:[%s494_s2 + $0x18] sm:$0xff]  ;;  %v41_v23 = vld [vmem:[%s492_s1 + $0x40] sm:$0xff]  ;;  %v42_v24 = vld [vmem:[%s492_s1 + $0x48] sm:$0xff] }
   0x7   :  { %271 = vmatprep.mubr.msk.bf16.mxu1 %vm84_vm0, %v32_v17  ;;  %76 = vperm.xlu1 %292, %v62_v19   ;;  %v55_v25 = vpack.c.bf16 %v42_v24, %v41_v23  ;;  %v43_v26 = vld [vmem:[%s492_s1 + $0x50] sm:$0xff]  ;;  %v44_v27 = vld [vmem:[%s492_s1 + $0x58] sm:$0xff]  ;;  %v45_v29 = vld [vmem:[%s492_s1 + $0x60] sm:$0xff] }
   0x8   :  { %94 = vmatpush1.bf16.msra.mxu0 %v52_v6  ;;  %282 = vmatpush1.bf16.msra.mxu1 %v52_v6  ;;  %v56_v28 = vpack.c.bf16 %v44_v27, %v43_v26  ;;  %v46_v30 = vld [vmem:[%s492_s1 + $0x68] sm:$0xff]  ;;  %v47_v32 = vld [vmem:[%s492_s1 + $0x70] sm:$0xff]  ;;  %v48_v33 = vld [vmem:[%s492_s1 + $0x78] sm:$0xff] }
   0x9   :  { %95 = vmatprep.subr.bf16.mxu0 %v301_v0  ;;  %274 = vmatprep.subr.bf16.mxu1 %v301_v0  ;;  %v57_v31 = vpack.c.bf16 %v46_v30, %v45_v29  ;;  %v58_v34 = vpack.c.bf16 %v48_v33, %v47_v32  ;;  %v49_v35 = vld [vmem:[%s492_s1 + $0x80] sm:$0xff]  ;;  %v50_v36 = vld [vmem:[%s492_s1 + $0x88] sm:$0xff]  ;;  %v23_v39 = vld [vmem:[%s493_s0 + $0x10] sm:$0xff] }
   0xa   :  { %71 = vperm.xlu0 %291, %v61_v20   ;;  %v21_v37 = vld [vmem:[%s493_s0] sm:$0xff]  ;;  %v59_v38 = vpack.c.bf16 %v50_v36, %v49_v35  ;;  %v27_v41 = vld [vmem:[%s493_s0 + $0x30] sm:$0xff]  ;;  %v197_v2 = vld [vmem:[%s495_s3 + $0x18] sm:$0xff] }
   0xb   :  { %81 = vperm.xlu1 %292, %v63_v22   ;;  %v25_v40 = vld [vmem:[%s493_s0 + $0x20] sm:$0xff]  ;;  %v29_v42 = vpack.c.bf16 %v23_v39, %v21_v37  ;;  %v196_v1 = vld [vmem:[%s495_s3 + $0x10] sm:$0xff]  ;;  %v195_v3 = vld [vmem:[%s495_s3 + $0x8] sm:$0xff] }
   0xc   :  { %96 = vmatpush1.bf16.msra.mxu0 %v53_v11  ;;  %283 = vmatpush1.bf16.msra.mxu1 %v53_v11  ;;  %v31_v43 = vpack.c.bf16 %v27_v41, %v25_v40  ;;  %v223_v4 = vld [vmem:[%s496_s4 + $0x8] sm:$0xff]  ;;  %v222_v5 = vld [vmem:[%s496_s4] sm:$0xff]  ;;  %v225_v26 = vld [vmem:[%s496_s4 + $0x18] sm:$0xff] }
   0xd   :  { %97 = vmatprep.subr.bf16.mxu0 %v301_v0  ;;  %275 = vmatprep.subr.bf16.mxu1 %v301_v0  ;;  %v224_v27 = vld [vmem:[%s496_s4 + $0x10] sm:$0xff] }
  0x10   :  { %98 = vmatpush1.bf16.msra.mxu0 %v54_v21  ;;  %284 = vmatpush1.bf16.msra.mxu1 %v54_v21 }
  0x11   :  { %99 = vmatprep.subr.bf16.mxu0 %v301_v0  ;;  %276 = vmatprep.subr.bf16.mxu1 %v301_v0 }
  0x14   :  { %100 = vmatpush1.bf16.msra.mxu0 %v55_v25  ;;  %285 = vmatpush1.bf16.msra.mxu1 %v55_v25 }
  0x15   :  { %101 = vmatprep.subr.bf16.mxu0 %v301_v0  ;;  %277 = vmatprep.subr.bf16.mxu1 %v301_v0 }
  0x18   :  { %102 = vmatpush1.bf16.msra.mxu0 %v56_v28  ;;  %286 = vmatpush1.bf16.msra.mxu1 %v56_v28 }
  0x19   :  { %103 = vmatprep.subr.bf16.mxu0 %v301_v0  ;;  %278 = vmatprep.subr.bf16.mxu1 %v301_v0 }
  0x1c   :  { %104 = vmatpush1.bf16.msra.mxu0 %v57_v31  ;;  %287 = vmatpush1.bf16.msra.mxu1 %v57_v31 }
  0x1d   :  { %105 = vmatprep.subr.bf16.mxu0 %v301_v0  ;;  %279 = vmatprep.subr.bf16.mxu1 %v301_v0 }
  0x20   :  { %106 = vmatpush1.bf16.msra.mxu0 %v58_v34  ;;  %288 = vmatpush1.bf16.msra.mxu1 %v58_v34 }
  0x21   :  { %107 = vmatprep.subr.bf16.mxu0 %v301_v0  ;;  %280 = vmatprep.subr.bf16.mxu1 %v301_v0  ;;  %v194_v0 = vld [vmem:[%s495_s3] sm:$0xff] }
  0x24   :  { %108 = vmatpush1.bf16.msra.mxu0 %v59_v38  ;;  %289 = vmatpush1.bf16.msra.mxu1 %v59_v38 }
  0x27   :  { %124 = vmatmul.mubr.bf16.vlgmr.msra.gmra.mrb[0].mxu0 %v29_v42  ;;  %132 = vmatmul.mubr.bf16.vlgmr.msra.gmra.mrb[0].mxu1 %v31_v43 }
  0x85   :  { %v67_v44 = vpop.permute.xlu0 %66 }
  0x86   :  { %v77_v45 = vpop.permute.xlu1 %76 }
  0x89   :  { %v72_v46 = vpop.permute.xlu0 %71 }
  0x8a   :  { %v82_v59 = vpop.permute.xlu1 %81 }
  0xfa   :  { %v125_v47 = vpop.f32.mrb[0].mxu0  ;;  %v133_v48 = vpop.f32.mrb[0].mxu1 }
  0xfb   :  { %v126_v49 = vadd.f32 %v125_v47, %v67_v44  ;;  %v127_v50 = vpop.f32.mrb[1].mxu0  ;;  %v134_v51 = vadd.f32 %v133_v48, %v77_v45  ;;  %v135_v52 = vpop.f32.mrb[1].mxu1 }
  0xfc   :  { %v128_v53 = vpop.f32.mrb[2].mxu0  ;;  %v136_v54 = vpop.f32.mrb[2].mxu1 }
  0xfd   :  { %v129_v55 = vadd.f32 %v128_v53, %v72_v46  ;;  %v130_v56 = vpop.f32.mrb[3].mxu0  ;;  %v138_v57 = vpop.f32.mrb[3].mxu1  ;;  %v141_v58 = vsel %vm140_vm1, %v126_v49, 0.0  ;;  %v147_v61 = vsel %vm140_vm1, %v134_v51, 0.0  ;;  %v137_v62 = vadd.f32 %v136_v54, %v82_v59 }
  0xfe   :  { %142 = vadd.xlane.f32.xlu0 %v141_v58 }
  0xff   :  { %v144_v60 = vsel %vm140_vm1, %v129_v55, 0.0  ;;  %v150_v63 = vsel %vm140_vm1, %v137_v62, 0.0 }
 0x100   :  { %145 = vadd.xlane.f32.xlu1 %v144_v60 }
 0x102   :  { %148 = vadd.xlane.f32.xlu0 %v147_v61 }
 0x106   :  { %151 = vadd.xlane.f32.xlu0 %v150_v63 }
 0x111   :  { %200 = vperm.xlu1 %292, %v194_v0  }
 0x115   :  { %210 = vperm.xlu1 %292, %v196_v1  }
 0x119   :  { %215 = vperm.xlu1 %292, %v197_v2  }
 0x11c   :  { %205 = vperm.xlu0 %291, %v195_v3  }
 0x11d   :  { %233 = vperm.xlu1 %292, %v223_v4  }
 0x120   :  { %228 = vperm.xlu0 %291, %v222_v5  }
 0x18b   :  { %v143_v6 = vpop.xlane.xlu0 %142 }
 0x18c   :  { %v154_v7 = vmul.f32 0.010204081, %v143_v6 }
 0x18d   :  { %v146_v8 = vpop.xlane.xlu1 %145 }
 0x18e   :  { %v158_v9 = vsub.f32 %v126_v49, %v154_v7  ;;  %v155_v10 = vmul.f32 0.010204081, %v146_v8 }
 0x18f   :  { %v149_v11 = vpop.xlane.xlu0 %148 }
 0x190   :  { %v159_v12 = vsub.f32 %v129_v55, %v155_v10  ;;  %v156_v13 = vmul.f32 0.010204081, %v149_v11  ;;  %v162_v14 = vmul.f32 %v158_v9, %v158_v9 }
 0x191   :  { %v201_v28 = vpop.permute.xlu1 %200 }
 0x192   :  { %v160_v15 = vsub.f32 %v134_v51, %v156_v13  ;;  %v166_v16 = vsel %vm140_vm1, %v162_v14, 0.0  ;;  %v163_v17 = vmul.f32 %v159_v12, %v159_v12 }
 0x193   :  { %167 = vadd.xlane.f32.xlu1 %v166_v16  ;;  %v152_v18 = vpop.xlane.xlu0 %151 }
 0x194   :  { %v157_v19 = vmul.f32 0.010204081, %v152_v18  ;;  %v169_v20 = vsel %vm140_vm1, %v163_v17, 0.0  ;;  %v164_v21 = vmul.f32 %v160_v15, %v160_v15 }
 0x195   :  { %170 = vadd.xlane.f32.xlu0 %v169_v20  ;;  %v211_v29 = vpop.permute.xlu1 %210 }
 0x196   :  { %v161_v22 = vsub.f32 %v137_v62, %v157_v19  ;;  %v172_v23 = vsel %vm140_vm1, %v164_v21, 0.0 }
 0x197   :  { %173 = vadd.xlane.f32.xlu1 %v172_v23 }
 0x198   :  { %v165_v24 = vmul.f32 %v161_v22, %v161_v22 }
 0x199   :  { %v216_v30 = vpop.permute.xlu1 %215 }
 0x19a   :  { %v175_v25 = vsel %vm140_vm1, %v165_v24, 0.0 }
 0x19b   :  { %176 = vadd.xlane.f32.xlu0 %v175_v25  ;;  %v206_v31 = vpop.permute.xlu0 %205 }
 0x19d   :  { %v234_v32 = vpop.permute.xlu1 %233 }
 0x19f   :  { %v229_v33 = vpop.permute.xlu0 %228 }
 0x1a8   :  { %243 = vperm.xlu1 %292, %v225_v26  }
 0x1b1   :  { %238 = vperm.xlu0 %291, %v224_v27  }
 0x220   :  { %v168_v34 = vpop.xlane.xlu1 %167 }
 0x221   :  { %v178_v35 = vmul.f32 0.010204081, %v168_v34 }
 0x222   :  { %v171_v36 = vpop.xlane.xlu0 %170 }
 0x223   :  { %v182_v37 = vadd.f32 1e-05, %v178_v35  ;;  %v179_v38 = vmul.f32 0.010204081, %v171_v36 }
 0x224   :  { %v174_v39 = vpop.xlane.xlu1 %173 }
 0x225   :  { %293 = vrsqrt.f32 %v182_v37  ;;  %v183_v40 = vadd.f32 1e-05, %v179_v38  ;;  %v180_v41 = vmul.f32 0.010204081, %v174_v39 }
 0x227   :  { %295 = vrsqrt.f32 %v183_v40  ;;  %v184_v42 = vadd.f32 1e-05, %v180_v41 }
 0x228   :  { %v177_v43 = vpop.xlane.xlu0 %176  ;;  %v244_v2 = vpop.permute.xlu1 %243 }
 0x229   :  { %297 = vrsqrt.f32 %v184_v42  ;;  %v181_v44 = vmul.f32 0.010204081, %v177_v43 }
 0x22b   :  { %v185_v45 = vadd.f32 1e-05, %v181_v44 }
 0x22d   :  { %299 = vrsqrt.f32 %v185_v45 }
 0x22f   :  { %v294_v46 = vpop.eup %293 }
 0x230   :  { %v190_v47 = vmul.f32 %v294_v46, %v158_v9  ;;  %v239_v62 = vpop.permute.xlu0 %238 }
 0x231   :  { %v296_v48 = vpop.eup %295 }
 0x232   :  { %v218_v49 = vmul.f32 %v201_v28, %v190_v47  ;;  %v191_v50 = vmul.f32 %v296_v48, %v159_v12 }
 0x233   :  { %v298_v51 = vpop.eup %297 }
 0x234   :  { %v246_v52 = vadd.f32 %v229_v33, %v218_v49  ;;  %v219_v53 = vmul.f32 %v206_v31, %v191_v50  ;;  %v192_v54 = vmul.f32 %v298_v51, %v160_v15 }
 0x236   :  { %v254_v55 = vmul.f32 0.01, %v246_v52  ;;  %v247_v56 = vadd.f32 %v234_v32, %v219_v53  ;;  %v220_v57 = vmul.f32 %v211_v29, %v192_v54  ;;  %vm250_vm2 = vcmp.ge.f32.partialorder %v246_v52, 0.0 }
 0x237   :  { %v300_v58 = vpop.eup %299 }
 0x238   :  { %v255_v59 = vmul.f32 0.01, %v247_v56  ;;  %v193_v60 = vmul.f32 %v300_v58, %v161_v22  ;;  %vm251_vm3 = vcmp.ge.f32.partialorder %v247_v56, 0.0  ;;  %v258_v61 = vsel %vm250_vm2, %v246_v52, %v254_v55 }
 0x239   :  { %262 = vst.msk [vmem:[%s497_s5] sm:$0xff] %vm140_vm1, %v258_v61  ;;  %v248_v63 = vadd.f32 %v239_v62, %v220_v57 }
 0x23a   :  { %v221_v0 = vmul.f32 %v216_v30, %v193_v60  ;;  %v259_v1 = vsel %vm251_vm3, %v247_v56, %v255_v59 }
 0x23b   :  { %263 = vst.msk [vmem:[%s497_s5 + $0x8] sm:$0xff] %vm140_vm1, %v259_v1  ;;  %vm252_vm4 = vcmp.ge.f32.partialorder %v248_v63, 0.0  ;;  %v256_v3 = vmul.f32 0.01, %v248_v63 }
 0x23c   :  { %v249_v4 = vadd.f32 %v244_v2, %v221_v0 }
 0x23d   :  { %v260_v5 = vsel %vm252_vm4, %v248_v63, %v256_v3 }
 0x23e   :  { %v257_v6 = vmul.f32 0.01, %v249_v4  ;;  %vm253_vm5 = vcmp.ge.f32.partialorder %v249_v4, 0.0  ;;  %264 = vst.msk [vmem:[%s497_s5 + $0x10] sm:$0xff] %vm140_vm1, %v260_v5 }
 0x240   :  { %v261_v7 = vsel %vm253_vm5, %v249_v4, %v257_v6 }
 0x241   :  { %265 = vst.msk [vmem:[%s497_s5 + $0x18] sm:$0xff] %vm140_vm1, %v261_v7 }

// kernel: convae_forward.10
= control target key start
LH: loop header
LB: loop body
LE: loop exit
PB: predicated region body
PF: predicated region fallthrough
CT: control target
= control target key end

     0   :  { %s3547_s0 = inlined_call_operand.vmem [shape: f32[2,1568], index: 0, kind: input, shape index: {}]   ;;  %s3548_s1 = inlined_call_operand.vmem [shape: f32[1568,32], index: 1, kind: input, shape index: {}]   ;;  %s3549_s2 = inlined_call_operand.vmem [shape: f32[1,32], index: 2, kind: input, shape index: {}]   ;;  %s3550_s3 = inlined_call_operand.vmem [shape: f32[32,4], index: 3, kind: input, shape index: {}]   ;;  %s3551_s4 = inlined_call_operand.vmem [shape: f32[1,4], index: 4, kind: input, shape index: {}]   ;;  %s3552_s5 = inlined_call_operand.vmem [shape: f32[1,4], index: 5, kind: input, shape index: {}]   ;;  %s3553_s6 = inlined_call_operand.vmem [shape: f32[1,4], index: 6, kind: input, shape index: {}]   ;;  %s3554_s7 = inlined_call_operand.vmem [shape: f32[32,4], index: 7, kind: input, shape index: {}]   ;;  %s3555_s8 = inlined_call_operand.vmem [shape: f32[1,4], index: 8, kind: input, shape index: {}]   ;;  %s3556_s9 = inlined_call_operand.vmem [shape: f32[1,4], index: 9, kind: input, shape index: {}]   ;;  %s3557_s10 = inlined_call_operand.vmem [shape: f32[1,4], index: 10, kind: input, shape index: {}]   ;;  %s3558_s11 = inlined_call_operand.vmem [shape: f32[2,4], index: 11, kind: input, shape index: {}]   ;;  %s3559_s12 = inlined_call_operand.vmem [shape: f32[4,1568], index: 12, kind: input, shape index: {}]   ;;  %s3560_s13 = inlined_call_operand.vmem [shape: f32[1,1568], index: 13, kind: input, shape index: {}]   ;;  %s3561_s14 = inlined_call_operand.vmem [shape: f32[1,1568], index: 14, kind: input, shape index: {}]   ;;  %s3562_s15 = inlined_call_operand.vmem [shape: f32[1,1568], index: 15, kind: input, shape index: {}]   ;;  %s3563_s16 = inlined_call_operand.hbm [shape: f32[2,4], index: 16, kind: output, shape index: {0}]   ;;  %s3564_s17 = inlined_call_operand.hbm [shape: f32[2,4], index: 17, kind: output, shape index: {1}]   ;;  %s3565_s18 = inlined_call_operand.vmem [shape: f32[2,1568], index: 18, kind: output, shape index: {2}]  }
   0x1   :  { %3568 = sst [smem:[#allocation8_spill]] %s3547_s0 }
   0x2   :  { %3569 = sst [smem:[#allocation9_spill]] %s3548_s1 }
   0x3   :  { %3570 = sst [smem:[#allocation10_spill]] %s3549_s2 }
   0x4   :  { %24 = vsyncpa [#allocation3], 0  ;;  %s3571_s29 = sld [smem:[#allocation9_spill]]  ;;  %v2274_v47 = vmov 1983009808   ;;  %v71_v49 = vlaneseq  ;;  %s3572_s27 = sld [smem:[#allocation8_spill]] }
   0x5   :  { %v69_v48 = vunpack.c.l.s4 %v2274_v47 }
   0x7   :  { %v70_v63 = vunpack.c.0.s8 %v69_v48 }
   0xa   :  { %v167_v0 = vld [vmem:[%s3571_s29 + $0x80] sm:$0xff]  ;;  %v168_v1 = vld [vmem:[%s3571_s29 + $0x88] sm:$0xff]  ;;  %v169_v11 = vld [vmem:[%s3571_s29 + $0x90] sm:$0xff] }
   0xb   :  { %v151_v2 = vld [vmem:[%s3571_s29] sm:$0xff]  ;;  %v355_v3 = vpack.c.bf16 %v168_v1, %v167_v0  ;;  %v152_v4 = vld [vmem:[%s3571_s29 + $0x8] sm:$0xff]  ;;  %v170_v13 = vld [vmem:[%s3571_s29 + $0x98] sm:$0xff]  ;;  %v2501_v0 = vshrl.u32 %v71_v49, 7 }
   0xc   :  { %v199_v5 = vld [vmem:[%s3571_s29 + $0x180] sm:$0xff]  ;;  %v200_v6 = vld [vmem:[%s3571_s29 + $0x188] sm:$0xff]  ;;  %v347_v7 = vpack.c.bf16 %v152_v4, %v151_v2  ;;  %v153_v14 = vld [vmem:[%s3571_s29 + $0x10] sm:$0xff]  ;;  %v356_v16 = vpack.c.bf16 %v170_v13, %v169_v11 }
   0xd   :  { %v371_v8 = vpack.c.bf16 %v200_v6, %v199_v5  ;;  %v183_v9 = vld [vmem:[%s3571_s29 + $0x100] sm:$0xff]  ;;  %v184_v10 = vld [vmem:[%s3571_s29 + $0x108] sm:$0xff]  ;;  %2000 = vmatprep.subr.bf16.mxu0 %v355_v3  ;;  %v154_v15 = vld [vmem:[%s3571_s29 + $0x18] sm:$0xff]  ;;  %v2528_v13 = vsub.s32 %v70_v63, %v2501_v0 }
   0xe   :  { %v363_v12 = vpack.c.bf16 %v184_v10, %v183_v9  ;;  %2001 = vmatpush3.bf16.msra.mxu0 %v347_v7  ;;  %v348_v17 = vpack.c.bf16 %v154_v15, %v153_v14  ;;  %v201_v18 = vld [vmem:[%s3571_s29 + $0x190] sm:$0xff]  ;;  %v202_v19 = vld [vmem:[%s3571_s29 + $0x198] sm:$0xff]  ;;  %v171_v23 = vld [vmem:[%s3571_s29 + $0xa0] sm:$0xff] }
   0xf   :  { %2022 = vmatprep.subr.bf16.mxu1 %v371_v8  ;;  %v185_v20 = vld [vmem:[%s3571_s29 + $0x110] sm:$0xff]  ;;  %v372_v21 = vpack.c.bf16 %v202_v19, %v201_v18  ;;  %v186_v22 = vld [vmem:[%s3571_s29 + $0x118] sm:$0xff]  ;;  %v172_v24 = vld [vmem:[%s3571_s29 + $0xa8] sm:$0xff]  ;;  %2002 = vmatprep.subr.bf16.mxu0 %v356_v16 }
  0x10   :  { %2023 = vmatpush3.bf16.msra.mxu1 %v363_v12  ;;  %v364_v25 = vpack.c.bf16 %v186_v22, %v185_v20  ;;  %v357_v26 = vpack.c.bf16 %v172_v24, %v171_v23  ;;  %v155_v27 = vld [vmem:[%s3571_s29 + $0x20] sm:$0xff]  ;;  %v156_v28 = vld [vmem:[%s3571_s29 + $0x28] sm:$0xff]  ;;  %v173_v35 = vld [vmem:[%s3571_s29 + $0xb0] sm:$0xff] }
  0x11   :  { %v203_v29 = vld [vmem:[%s3571_s29 + $0x1a0] sm:$0xff]  ;;  %2024 = vmatprep.subr.bf16.mxu1 %v372_v21  ;;  %v204_v30 = vld [vmem:[%s3571_s29 + $0x1a8] sm:$0xff]  ;;  %v349_v33 = vpack.c.bf16 %v156_v28, %v155_v27  ;;  %v174_v36 = vld [vmem:[%s3571_s29 + $0xb8] sm:$0xff] }
  0x12   :  { %v187_v31 = vld [vmem:[%s3571_s29 + $0x120] sm:$0xff]  ;;  %v188_v32 = vld [vmem:[%s3571_s29 + $0x128] sm:$0xff]  ;;  %2003 = vmatpush3.bf16.msra.mxu0 %v348_v17  ;;  %v373_v34 = vpack.c.bf16 %v204_v30, %v203_v29  ;;  %v157_v37 = vld [vmem:[%s3571_s29 + $0x30] sm:$0xff]  ;;  %v358_v39 = vpack.c.bf16 %v174_v36, %v173_v35 }
  0x13   :  { %2004 = vmatprep.subr.bf16.mxu0 %v357_v26  ;;  %v365_v38 = vpack.c.bf16 %v188_v32, %v187_v31  ;;  %v158_v40 = vld [vmem:[%s3571_s29 + $0x38] sm:$0xff]  ;;  %v205_v41 = vld [vmem:[%s3571_s29 + $0x1b0] sm:$0xff]  ;;  %v175_v46 = vld [vmem:[%s3571_s29 + $0xc0] sm:$0xff] }
  0x14   :  { %2025 = vmatpush3.bf16.msra.mxu1 %v364_v25  ;;  %v206_v42 = vld [vmem:[%s3571_s29 + $0x1b8] sm:$0xff]  ;;  %v189_v44 = vld [vmem:[%s3571_s29 + $0x130] sm:$0xff]  ;;  %v176_v50 = vld [vmem:[%s3571_s29 + $0xc8] sm:$0xff]  ;;  %v350_v51 = vpack.c.bf16 %v158_v40, %v157_v37 }
  0x15   :  { %2026 = vmatprep.subr.bf16.mxu1 %v373_v34  ;;  %v374_v43 = vpack.c.bf16 %v206_v42, %v205_v41  ;;  %v190_v45 = vld [vmem:[%s3571_s29 + $0x138] sm:$0xff]  ;;  %v207_v52 = vld [vmem:[%s3571_s29 + $0x1c0] sm:$0xff]  ;;  %v208_v53 = vld [vmem:[%s3571_s29 + $0x1c8] sm:$0xff]  ;;  %v359_v55 = vpack.c.bf16 %v176_v50, %v175_v46 }
  0x16   :  { %2005 = vmatpush3.bf16.msra.mxu0 %v349_v33  ;;  %v366_v54 = vpack.c.bf16 %v190_v45, %v189_v44  ;;  %v159_v56 = vld [vmem:[%s3571_s29 + $0x40] sm:$0xff]  ;;  %v160_v57 = vld [vmem:[%s3571_s29 + $0x48] sm:$0xff]  ;;  %v375_v59 = vpack.c.bf16 %v208_v53, %v207_v52  ;;  %v177_v61 = vld [vmem:[%s3571_s29 + $0xd0] sm:$0xff] }
  0x17   :  { %2006 = vmatprep.subr.bf16.mxu0 %v358_v39  ;;  %v191_v58 = vld [vmem:[%s3571_s29 + $0x140] sm:$0xff]  ;;  %v192_v60 = vld [vmem:[%s3571_s29 + $0x148] sm:$0xff]  ;;  %v178_v62 = vld [vmem:[%s3571_s29 + $0xd8] sm:$0xff]  ;;  %v351_v3 = vpack.c.bf16 %v160_v57, %v159_v56 }
  0x18   :  { %2027 = vmatpush3.bf16.msra.mxu1 %v365_v38  ;;  %v209_v1 = vld [vmem:[%s3571_s29 + $0x1d0] sm:$0xff]  ;;  %v210_v2 = vld [vmem:[%s3571_s29 + $0x1d8] sm:$0xff]  ;;  %v367_v4 = vpack.c.bf16 %v192_v60, %v191_v58  ;;  %v360_v5 = vpack.c.bf16 %v178_v62, %v177_v61  ;;  %v179_v11 = vld [vmem:[%s3571_s29 + $0xe0] sm:$0xff] }
  0x19   :  { %2028 = vmatprep.subr.bf16.mxu1 %v374_v43  ;;  %v161_v6 = vld [vmem:[%s3571_s29 + $0x50] sm:$0xff]  ;;  %v162_v7 = vld [vmem:[%s3571_s29 + $0x58] sm:$0xff]  ;;  %v376_v9 = vpack.c.bf16 %v210_v2, %v209_v1  ;;  %v180_v12 = vld [vmem:[%s3571_s29 + $0xe8] sm:$0xff] }
  0x1a   :  { %2007 = vmatpush3.bf16.msra.mxu0 %v350_v51  ;;  %v193_v8 = vld [vmem:[%s3571_s29 + $0x150] sm:$0xff]  ;;  %v194_v10 = vld [vmem:[%s3571_s29 + $0x158] sm:$0xff]  ;;  %v211_v14 = vld [vmem:[%s3571_s29 + $0x1e0] sm:$0xff]  ;;  %v352_v16 = vpack.c.bf16 %v162_v7, %v161_v6  ;;  %v361_v19 = vpack.c.bf16 %v180_v12, %v179_v11 }
  0x1b   :  { %2008 = vmatprep.subr.bf16.mxu0 %v359_v55  ;;  %v212_v15 = vld [vmem:[%s3571_s29 + $0x1e8] sm:$0xff]  ;;  %v163_v17 = vld [vmem:[%s3571_s29 + $0x60] sm:$0xff]  ;;  %v368_v18 = vpack.c.bf16 %v194_v10, %v193_v8  ;;  %v181_v25 = vld [vmem:[%s3571_s29 + $0xf0] sm:$0xff] }
  0x1c   :  { %2029 = vmatpush3.bf16.msra.mxu1 %v366_v54  ;;  %v164_v20 = vld [vmem:[%s3571_s29 + $0x68] sm:$0xff]  ;;  %v195_v21 = vld [vmem:[%s3571_s29 + $0x160] sm:$0xff]  ;;  %v377_v23 = vpack.c.bf16 %v212_v15, %v211_v14  ;;  %v182_v26 = vld [vmem:[%s3571_s29 + $0xf8] sm:$0xff] }
  0x1d   :  { %2030 = vmatprep.subr.bf16.mxu1 %v375_v59  ;;  %v59_v22 = vld [vmem:[%s3572_s27] sm:$0xff]  ;;  %v196_v24 = vld [vmem:[%s3571_s29 + $0x168] sm:$0xff]  ;;  %v213_v29 = vld [vmem:[%s3571_s29 + $0x1f0] sm:$0xff]  ;;  %v353_v31 = vpack.c.bf16 %v164_v20, %v163_v17  ;;  %v362_v35 = vpack.c.bf16 %v182_v26, %v181_v25 }
  0x1e   :  { %2009 = vmatpush3.bf16.msra.mxu0 %v351_v3  ;;  %v74_v27 = vrot.slane %v59_v22, %v2528_v13  ;;  %v67_v28 = vcombine.high %v59_v22, %v59_v22  ;;  %v214_v30 = vld [vmem:[%s3571_s29 + $0x1f8] sm:$0xff]  ;;  %v369_v34 = vpack.c.bf16 %v196_v24, %v195_v21  ;;  %v165_v36 = vld [vmem:[%s3571_s29 + $0x70] sm:$0xff]  ;;  %v231_v42 = vld [vmem:[%s3571_s29 + $0x280] sm:$0xff] }
  0x1f   :  { %2010 = vmatprep.subr.bf16.mxu0 %v360_v5  ;;  %v166_v37 = vld [vmem:[%s3571_s29 + $0x78] sm:$0xff]  ;;  %v197_v38 = vld [vmem:[%s3571_s29 + $0x170] sm:$0xff]  ;;  %v378_v39 = vpack.c.bf16 %v214_v30, %v213_v29  ;;  %v232_v43 = vld [vmem:[%s3571_s29 + $0x288] sm:$0xff] }
  0x20   :  { %2031 = vmatpush3.bf16.msra.mxu1 %v367_v4  ;;  %v82_v32 = vcombine.high %v74_v27, %v74_v27  ;;  %v81_v33 = vrot.slane %v67_v28, %v2528_v13  ;;  %v198_v40 = vld [vmem:[%s3571_s29 + $0x178] sm:$0xff]  ;;  %v263_v45 = vld [vmem:[%s3571_s29 + $0x380] sm:$0xff]  ;;  %v264_v46 = vld [vmem:[%s3571_s29 + $0x388] sm:$0xff]  ;;  %v354_v47 = vpack.c.bf16 %v166_v37, %v165_v36  ;;  %v387_v50 = vpack.c.bf16 %v232_v43, %v231_v42 }
  0x21   :  { %2032 = vmatprep.subr.bf16.mxu1 %v376_v9  ;;  %v370_v49 = vpack.c.bf16 %v198_v40, %v197_v38  ;;  %v215_v51 = vld [vmem:[%s3571_s29 + $0x200] sm:$0xff]  ;;  %v216_v52 = vld [vmem:[%s3571_s29 + $0x208] sm:$0xff]  ;;  %v403_v54 = vpack.c.bf16 %v264_v46, %v263_v45  ;;  %v233_v56 = vld [vmem:[%s3571_s29 + $0x290] sm:$0xff]  ;;  %v138_v58 = vpack.c.bf16 %v74_v27, %v74_v27 }
  0x22   :  { %2011 = vmatpush3.bf16.msra.mxu0 %v352_v16  ;;  %v139_v41 = vpack.c.bf16 %v82_v32, %v82_v32  ;;  %v83_v44 = vcombine.high %v81_v33, %v81_v33  ;;  %v247_v53 = vld [vmem:[%s3571_s29 + $0x300] sm:$0xff]  ;;  %v248_v55 = vld [vmem:[%s3571_s29 + $0x308] sm:$0xff]  ;;  %v234_v57 = vld [vmem:[%s3571_s29 + $0x298] sm:$0xff]  ;;  %v379_v61 = vpack.c.bf16 %v216_v52, %v215_v51  ;;  %v140_v62 = vpack.c.bf16 %v81_v33, %v81_v33 }
  0x23   :  { %2012 = vmatprep.subr.bf16.mxu0 %v361_v19  ;;  %v265_v59 = vld [vmem:[%s3571_s29 + $0x390] sm:$0xff]  ;;  %v266_v60 = vld [vmem:[%s3571_s29 + $0x398] sm:$0xff]  ;;  %v395_v63 = vpack.c.bf16 %v248_v55, %v247_v53  ;;  %v388_v1 = vpack.c.bf16 %v234_v57, %v233_v56  ;;  %v235_v7 = vld [vmem:[%s3571_s29 + $0x2a0] sm:$0xff] }
  0x24   :  { %2033 = vmatpush3.bf16.msra.mxu1 %v368_v18  ;;  %488 = vmatprep.mubr.bf16.mxu0 %v139_v41  ;;  %v141_v48 = vpack.c.bf16 %v83_v44, %v83_v44  ;;  %v217_v2 = vld [vmem:[%s3571_s29 + $0x210] sm:$0xff]  ;;  %v218_v3 = vld [vmem:[%s3571_s29 + $0x218] sm:$0xff]  ;;  %v404_v5 = vpack.c.bf16 %v266_v60, %v265_v59  ;;  %v236_v8 = vld [vmem:[%s3571_s29 + $0x2a8] sm:$0xff] }
  0x25   :  { %2034 = vmatprep.subr.bf16.mxu1 %v377_v23  ;;  %v249_v4 = vld [vmem:[%s3571_s29 + $0x310] sm:$0xff]  ;;  %v250_v6 = vld [vmem:[%s3571_s29 + $0x318] sm:$0xff]  ;;  %v267_v9 = vld [vmem:[%s3571_s29 + $0x3a0] sm:$0xff]  ;;  %v380_v11 = vpack.c.bf16 %v218_v3, %v217_v2  ;;  %v389_v14 = vpack.c.bf16 %v236_v8, %v235_v7 }
  0x26   :  { %2013 = vmatpush3.bf16.msra.mxu0 %v353_v31  ;;  %528 = vmatprep.mubr.bf16.mxu1 %v141_v48  ;;  %v268_v10 = vld [vmem:[%s3571_s29 + $0x3a8] sm:$0xff]  ;;  %v396_v12 = vpack.c.bf16 %v250_v6, %v249_v4  ;;  %v219_v15 = vld [vmem:[%s3571_s29 + $0x220] sm:$0xff]  ;;  %v237_v20 = vld [vmem:[%s3571_s29 + $0x2b0] sm:$0xff] }
  0x27   :  { %2014 = vmatprep.subr.bf16.mxu0 %v362_v35  ;;  %v220_v16 = vld [vmem:[%s3571_s29 + $0x228] sm:$0xff]  ;;  %v251_v17 = vld [vmem:[%s3571_s29 + $0x320] sm:$0xff]  ;;  %v405_v18 = vpack.c.bf16 %v268_v10, %v267_v9  ;;  %v238_v21 = vld [vmem:[%s3571_s29 + $0x2b8] sm:$0xff] }
  0x28   :  { %2035 = vmatpush3.bf16.msra.mxu1 %v369_v34  ;;  %v252_v19 = vld [vmem:[%s3571_s29 + $0x328] sm:$0xff]  ;;  %v269_v22 = vld [vmem:[%s3571_s29 + $0x3b0] sm:$0xff]  ;;  %v270_v23 = vld [vmem:[%s3571_s29 + $0x3b8] sm:$0xff]  ;;  %v381_v24 = vpack.c.bf16 %v220_v16, %v219_v15  ;;  %v390_v26 = vpack.c.bf16 %v238_v21, %v237_v20 }
  0x29   :  { %2036 = vmatprep.subr.bf16.mxu1 %v378_v39  ;;  %v397_v25 = vpack.c.bf16 %v252_v19, %v251_v17  ;;  %v221_v27 = vld [vmem:[%s3571_s29 + $0x230] sm:$0xff]  ;;  %v222_v28 = vld [vmem:[%s3571_s29 + $0x238] sm:$0xff]  ;;  %v406_v30 = vpack.c.bf16 %v270_v23, %v269_v22  ;;  %v239_v32 = vld [vmem:[%s3571_s29 + $0x2c0] sm:$0xff] }
  0x2a   :  { %2015 = vmatpush3.bf16.msra.mxu0 %v354_v47  ;;  %v253_v29 = vld [vmem:[%s3571_s29 + $0x330] sm:$0xff]  ;;  %v254_v31 = vld [vmem:[%s3571_s29 + $0x338] sm:$0xff]  ;;  %v240_v33 = vld [vmem:[%s3571_s29 + $0x2c8] sm:$0xff]  ;;  %v382_v37 = vpack.c.bf16 %v222_v28, %v221_v27 }
  0x2b   :  { %2044 = vmatprep.subr.bf16.mxu0 %v387_v50  ;;  %v271_v34 = vld [vmem:[%s3571_s29 + $0x3c0] sm:$0xff]  ;;  %v272_v35 = vld [vmem:[%s3571_s29 + $0x3c8] sm:$0xff]  ;;  %v398_v40 = vpack.c.bf16 %v254_v31, %v253_v29  ;;  %v391_v41 = vpack.c.bf16 %v240_v33, %v239_v32  ;;  %v241_v47 = vld [vmem:[%s3571_s29 + $0x2d0] sm:$0xff] }
  0x2c   :  { %2037 = vmatpush3.bf16.msra.mxu1 %v370_v49  ;;  %v60_v36 = vld [vmem:[%s3572_s27 + $0x8] sm:$0xff]  ;;  %v223_v42 = vld [vmem:[%s3571_s29 + $0x240] sm:$0xff]  ;;  %v407_v45 = vpack.c.bf16 %v272_v35, %v271_v34  ;;  %v242_v48 = vld [vmem:[%s3571_s29 + $0x2d8] sm:$0xff] }
  0x2d   :  { %2066 = vmatprep.subr.bf16.mxu1 %v403_v54  ;;  %489 = vmatmul.mubr.bf16.vlgmr.msra.gmra.mrb[0].mxu0 %v138_v58  ;;  %v2689_v38 = vrot.slane %v60_v36, %v2528_v13  ;;  %v84_v39 = vcombine.high %v60_v36, %v60_v36  ;;  %v224_v43 = vld [vmem:[%s3571_s29 + $0x248] sm:$0xff]  ;;  %v255_v44 = vld [vmem:[%s3571_s29 + $0x340] sm:$0xff]  ;;  %v273_v51 = vld [vmem:[%s3571_s29 + $0x3d0] sm:$0xff]  ;;  %v392_v57 = vpack.c.bf16 %v242_v48, %v241_v47 }
  0x2e   :  { %2045 = vmatpush3.bf16.msra.mxu0 %v379_v61  ;;  %v256_v46 = vld [vmem:[%s3571_s29 + $0x348] sm:$0xff]  ;;  %v274_v52 = vld [vmem:[%s3571_s29 + $0x3d8] sm:$0xff]  ;;  %v383_v53 = vpack.c.bf16 %v224_v43, %v223_v42  ;;  %v225_v58 = vld [vmem:[%s3571_s29 + $0x250] sm:$0xff] }
  0x2f   :  { %529 = vmatmul.mubr.bf16.vlgmr.msra.gmra.mrb[0].mxu1 %v140_v62  ;;  %2046 = vmatprep.subr.bf16.mxu0 %v388_v1  ;;  %v99_v49 = vcombine.high %v2689_v38, %v2689_v38  ;;  %v2712_v50 = vrot.slane %v84_v39, %v2528_v13  ;;  %v399_v56 = vpack.c.bf16 %v256_v46, %v255_v44  ;;  %v226_v59 = vld [vmem:[%s3571_s29 + $0x258] sm:$0xff]  ;;  %v257_v60 = vld [vmem:[%s3571_s29 + $0x350] sm:$0xff]  ;;  %v244_v1 = vld [vmem:[%s3571_s29 + $0x2e8] sm:$0xff] }
  0x30   :  { %2067 = vmatpush3.bf16.msra.mxu1 %v395_v63  ;;  %v408_v61 = vpack.c.bf16 %v274_v52, %v273_v51  ;;  %v258_v62 = vld [vmem:[%s3571_s29 + $0x358] sm:$0xff]  ;;  %v243_v63 = vld [vmem:[%s3571_s29 + $0x2e0] sm:$0xff]  ;;  %v276_v4 = vld [vmem:[%s3571_s29 + $0x3e8] sm:$0xff] }
  0x31   :  { %2068 = vmatprep.subr.bf16.mxu1 %v404_v5  ;;  %v143_v54 = vpack.c.bf16 %v99_v49, %v99_v49  ;;  %v100_v55 = vcombine.high %v2712_v50, %v2712_v50  ;;  %v275_v3 = vld [vmem:[%s3571_s29 + $0x3e0] sm:$0xff]  ;;  %v384_v5 = vpack.c.bf16 %v226_v59, %v225_v58  ;;  %v400_v6 = vpack.c.bf16 %v258_v62, %v257_v60  ;;  %v228_v9 = vld [vmem:[%s3571_s29 + $0x268] sm:$0xff]  ;;  %v246_v15 = vld [vmem:[%s3571_s29 + $0x2f8] sm:$0xff] }
  0x32   :  { %2047 = vmatpush3.bf16.msra.mxu0 %v380_v11  ;;  %v393_v7 = vpack.c.bf16 %v244_v1, %v243_v63  ;;  %v227_v8 = vld [vmem:[%s3571_s29 + $0x260] sm:$0xff]  ;;  %v409_v11 = vpack.c.bf16 %v276_v4, %v275_v3  ;;  %v277_v16 = vld [vmem:[%s3571_s29 + $0x3f0] sm:$0xff]  ;;  %v278_v17 = vld [vmem:[%s3571_s29 + $0x3f8] sm:$0xff] }
  0x33   :  { %2048 = vmatprep.subr.bf16.mxu0 %v389_v14  ;;  %568 = vmatprep.mubr.bf16.mxu0 %v143_v54  ;;  %v145_v2 = vpack.c.bf16 %v100_v55, %v100_v55  ;;  %v259_v10 = vld [vmem:[%s3571_s29 + $0x360] sm:$0xff]  ;;  %v245_v14 = vld [vmem:[%s3571_s29 + $0x2f0] sm:$0xff]  ;;  %v230_v22 = vld [vmem:[%s3571_s29 + $0x278] sm:$0xff] }
  0x34   :  { %2069 = vmatpush3.bf16.msra.mxu1 %v396_v12  ;;  %v260_v12 = vld [vmem:[%s3571_s29 + $0x368] sm:$0xff]  ;;  %v394_v20 = vpack.c.bf16 %v246_v15, %v245_v14  ;;  %v229_v21 = vld [vmem:[%s3571_s29 + $0x270] sm:$0xff]  ;;  %v327_v28 = vld [vmem:[%s3571_s29 + $0x580] sm:$0xff] }
  0x35   :  { %2070 = vmatprep.subr.bf16.mxu1 %v405_v18  ;;  %608 = vmatprep.mubr.bf16.mxu1 %v145_v2  ;;  %v385_v18 = vpack.c.bf16 %v228_v9, %v227_v8  ;;  %v401_v19 = vpack.c.bf16 %v260_v12, %v259_v10  ;;  %v261_v23 = vld [vmem:[%s3571_s29 + $0x370] sm:$0xff]  ;;  %v296_v27 = vld [vmem:[%s3571_s29 + $0x488] sm:$0xff]  ;;  %v279_v31 = vld [vmem:[%s3571_s29 + $0x400] sm:$0xff] }
  0x36   :  { %2049 = vmatpush3.bf16.msra.mxu0 %v381_v24  ;;  %v410_v24 = vpack.c.bf16 %v278_v17, %v277_v16  ;;  %v328_v29 = vld [vmem:[%s3571_s29 + $0x588] sm:$0xff]  ;;  %v311_v35 = vld [vmem:[%s3571_s29 + $0x500] sm:$0xff]  ;;  %v297_v39 = vld [vmem:[%s3571_s29 + $0x490] sm:$0xff] }
  0x37   :  { %2050 = vmatprep.subr.bf16.mxu0 %v390_v26  ;;  %v295_v26 = vld [vmem:[%s3571_s29 + $0x480] sm:$0xff]  ;;  %v280_v34 = vld [vmem:[%s3571_s29 + $0x408] sm:$0xff]  ;;  %v329_v42 = vld [vmem:[%s3571_s29 + $0x590] sm:$0xff] }
  0x38   :  { %2071 = vmatpush3.bf16.msra.mxu1 %v397_v25  ;;  %v262_v25 = vld [vmem:[%s3571_s29 + $0x378] sm:$0xff]  ;;  %v419_v33 = vpack.c.bf16 %v296_v27, %v295_v26  ;;  %v312_v36 = vld [vmem:[%s3571_s29 + $0x508] sm:$0xff]  ;;  %v411_v44 = vpack.c.bf16 %v280_v34, %v279_v31  ;;  %v281_v47 = vld [vmem:[%s3571_s29 + $0x410] sm:$0xff] }
  0x39   :  { %2072 = vmatprep.subr.bf16.mxu1 %v406_v30  ;;  %v386_v30 = vpack.c.bf16 %v230_v22, %v229_v21  ;;  %v402_v32 = vpack.c.bf16 %v262_v25, %v261_v23  ;;  %v330_v43 = vld [vmem:[%s3571_s29 + $0x598] sm:$0xff]  ;;  %v427_v46 = vpack.c.bf16 %v312_v36, %v311_v35  ;;  %v299_v55 = vld [vmem:[%s3571_s29 + $0x4a0] sm:$0xff]  ;;  %v332_v58 = vld [vmem:[%s3571_s29 + $0x5a8] sm:$0xff] }
  0x3a   :  { %2051 = vmatpush3.bf16.msra.mxu0 %v382_v37  ;;  %v435_v37 = vpack.c.bf16 %v328_v29, %v327_v28  ;;  %v282_v49 = vld [vmem:[%s3571_s29 + $0x418] sm:$0xff]  ;;  %v436_v54 = vpack.c.bf16 %v330_v43, %v329_v42 }
  0x3b   :  { %2052 = vmatprep.subr.bf16.mxu0 %v391_v41  ;;  %v142_v41 = vpack.c.bf16 %v2689_v38, %v2689_v38  ;;  %v61_v38 = vld [vmem:[%s3572_s27 + $0x10] sm:$0xff]  ;;  %v314_v51 = vld [vmem:[%s3571_s29 + $0x518] sm:$0xff] }
  0x3c   :  { %2073 = vmatpush3.bf16.msra.mxu1 %v398_v40  ;;  %v298_v40 = vld [vmem:[%s3571_s29 + $0x498] sm:$0xff]  ;;  %v2838_v52 = vrot.slane %v61_v38, %v2528_v13 }
  0x3d   :  { %2074 = vmatprep.subr.bf16.mxu1 %v407_v45  ;;  %v144_v45 = vpack.c.bf16 %v2712_v50, %v2712_v50  ;;  %v420_v48 = vpack.c.bf16 %v298_v40, %v297_v39  ;;  %v313_v50 = vld [vmem:[%s3571_s29 + $0x510] sm:$0xff] }
  0x3e   :  { %2053 = vmatpush3.bf16.msra.mxu0 %v383_v53  ;;  %v101_v53 = vcombine.high %v61_v38, %v61_v38  ;;  %v116_v59 = vcombine.high %v2838_v52, %v2838_v52 }
  0x3f   :  { %2054 = vmatprep.subr.bf16.mxu0 %v392_v57  ;;  %v331_v57 = vld [vmem:[%s3571_s29 + $0x5a0] sm:$0xff] }
  0x40   :  { %2075 = vmatpush3.bf16.msra.mxu1 %v399_v56  ;;  %v300_v56 = vld [vmem:[%s3571_s29 + $0x4a8] sm:$0xff]  ;;  %v2855_v60 = vrot.slane %v101_v53, %v2528_v13 }
  0x41   :  { %2076 = vmatprep.subr.bf16.mxu1 %v408_v61 }
  0x42   :  { %2055 = vmatpush3.bf16.msra.mxu0 %v384_v5 }
  0x43   :  { %2056 = vmatprep.subr.bf16.mxu0 %v393_v7 }
  0x44   :  { %2077 = vmatpush3.bf16.msra.mxu1 %v400_v6 }
  0x45   :  { %2078 = vmatprep.subr.bf16.mxu1 %v409_v11 }
  0x46   :  { %2057 = vmatpush3.bf16.msra.mxu0 %v385_v18 }
  0x47   :  { %2058 = vmatprep.subr.bf16.mxu0 %v394_v20 }
  0x48   :  { %2079 = vmatpush3.bf16.msra.mxu1 %v401_v19 }
  0x49   :  { %2080 = vmatprep.subr.bf16.mxu1 %v410_v24 }
  0x4a   :  { %2059 = vmatpush3.bf16.msra.mxu0 %v386_v30 }
  0x4b   :  { %2088 = vmatprep.subr.bf16.mxu0 %v419_v33 }
  0x4c   :  { %2081 = vmatpush3.bf16.msra.mxu1 %v402_v32 }
  0x4d   :  { %2110 = vmatprep.subr.bf16.mxu1 %v435_v37  ;;  %569 = vmatmul.mubr.bf16.vlgmr.msra.gmra.mrb[4].mxu0 %v142_v41 }
  0x4e   :  { %25 = vsyncpa [#allocation5], 0  ;;  %2089 = vmatpush3.bf16.msra.mxu0 %v411_v44  ;;  %v412_v61 = vpack.c.bf16 %v282_v49, %v281_v47  ;;  %v428_v62 = vpack.c.bf16 %v314_v51, %v313_v50  ;;  %v421_v63 = vpack.c.bf16 %v300_v56, %v299_v55  ;;  %v283_v1 = vld [vmem:[%s3571_s29 + $0x420] sm:$0xff]  ;;  %v284_v2 = vld [vmem:[%s3571_s29 + $0x428] sm:$0xff]  ;;  %v147_v4 = vpack.c.bf16 %v116_v59, %v116_v59  ;;  %s3573_s19 = sld [smem:[#allocation10_spill]] }
  0x4f   :  { %609 = vmatmul.mubr.bf16.vlgmr.msra.gmra.mrb[4].mxu1 %v144_v45  ;;  %2090 = vmatprep.subr.bf16.mxu0 %v420_v48  ;;  %v315_v3 = vld [vmem:[%s3571_s29 + $0x520] sm:$0xff]  ;;  %v117_v5 = vcombine.high %v2855_v60, %v2855_v60  ;;  %v437_v6 = vpack.c.bf16 %v332_v58, %v331_v57  ;;  %v316_v7 = vld [vmem:[%s3571_s29 + $0x528] sm:$0xff]  ;;  %v301_v8 = vld [vmem:[%s3571_s29 + $0x4b0] sm:$0xff]  ;;  %v413_v14 = vpack.c.bf16 %v284_v2, %v283_v1  ;;  %vm2276_vm0 = vmmov 0  }
  0x50   :  { %2111 = vmatpush3.bf16.msra.mxu1 %v427_v46  ;;  %v302_v9 = vld [vmem:[%s3571_s29 + $0x4b8] sm:$0xff]  ;;  %v333_v10 = vld [vmem:[%s3571_s29 + $0x5b0] sm:$0xff]  ;;  %648 = vmatprep.mubr.bf16.mxu0 %v147_v4  ;;  %v429_v15 = vpack.c.bf16 %v316_v7, %v315_v3  ;;  %v303_v22 = vld [vmem:[%s3571_s29 + $0x4c0] sm:$0xff]  ;;  %vm452_vm1 = vcmask 261120   ;;  %vm1060_vm2 = vcmask 1041408   ;;  %vm795_vm3 = vcmask 25600  }
  0x51   :  { %2112 = vmatprep.subr.bf16.mxu1 %v436_v54  ;;  %v334_v11 = vld [vmem:[%s3571_s29 + $0x5b8] sm:$0xff]  ;;  %v149_v12 = vpack.c.bf16 %v117_v5, %v117_v5  ;;  %v422_v16 = vpack.c.bf16 %v302_v9, %v301_v8  ;;  %v285_v17 = vld [vmem:[%s3571_s29 + $0x430] sm:$0xff]  ;;  %v304_v23 = vld [vmem:[%s3571_s29 + $0x4c8] sm:$0xff]  ;;  %vm1056_vm6 = vcmask 31744  }
  0x52   :  { %2091 = vmatpush3.bf16.msra.mxu0 %v412_v61  ;;  %v286_v18 = vld [vmem:[%s3571_s29 + $0x438] sm:$0xff]  ;;  %v317_v19 = vld [vmem:[%s3571_s29 + $0x530] sm:$0xff]  ;;  %v438_v20 = vpack.c.bf16 %v334_v11, %v333_v10  ;;  %v335_v24 = vld [vmem:[%s3571_s29 + $0x5c0] sm:$0xff]  ;;  %v423_v28 = vpack.c.bf16 %v304_v23, %v303_v22 }
  0x53   :  { %2092 = vmatprep.subr.bf16.mxu0 %v421_v63  ;;  %v318_v21 = vld [vmem:[%s3571_s29 + $0x538] sm:$0xff]  ;;  %688 = vmatprep.mubr.bf16.mxu1 %v149_v12  ;;  %v336_v25 = vld [vmem:[%s3571_s29 + $0x5c8] sm:$0xff]  ;;  %v414_v26 = vpack.c.bf16 %v286_v18, %v285_v17  ;;  %v287_v29 = vld [vmem:[%s3571_s29 + $0x440] sm:$0xff]  ;;  %v2275_v17 = vmov 0.0  }
  0x54   :  { %2113 = vmatpush3.bf16.msra.mxu1 %v428_v62  ;;  %v430_v27 = vpack.c.bf16 %v318_v21, %v317_v19  ;;  %v288_v30 = vld [vmem:[%s3571_s29 + $0x448] sm:$0xff]  ;;  %v319_v31 = vld [vmem:[%s3571_s29 + $0x540] sm:$0xff]  ;;  %v439_v32 = vpack.c.bf16 %v336_v25, %v335_v24  ;;  %v305_v34 = vld [vmem:[%s3571_s29 + $0x4d0] sm:$0xff] }
  0x55   :  { %2114 = vmatprep.subr.bf16.mxu1 %v437_v6  ;;  %v320_v33 = vld [vmem:[%s3571_s29 + $0x548] sm:$0xff]  ;;  %v306_v35 = vld [vmem:[%s3571_s29 + $0x4d8] sm:$0xff]  ;;  %v337_v36 = vld [vmem:[%s3571_s29 + $0x5d0] sm:$0xff]  ;;  %v415_v39 = vpack.c.bf16 %v288_v30, %v287_v29 }
  0x56   :  { %2093 = vmatpush3.bf16.msra.mxu0 %v413_v14  ;;  %v338_v37 = vld [vmem:[%s3571_s29 + $0x5d8] sm:$0xff]  ;;  %v431_v40 = vpack.c.bf16 %v320_v33, %v319_v31  ;;  %v424_v41 = vpack.c.bf16 %v306_v35, %v305_v34  ;;  %v289_v42 = vld [vmem:[%s3571_s29 + $0x450] sm:$0xff]  ;;  %v307_v47 = vld [vmem:[%s3571_s29 + $0x4e0] sm:$0xff]  ;;  %v146_v14 = vpack.c.bf16 %v2838_v52, %v2838_v52 }
  0x57   :  { %2094 = vmatprep.subr.bf16.mxu0 %v422_v16  ;;  %v290_v43 = vld [vmem:[%s3571_s29 + $0x458] sm:$0xff]  ;;  %v321_v44 = vld [vmem:[%s3571_s29 + $0x550] sm:$0xff]  ;;  %v440_v45 = vpack.c.bf16 %v338_v37, %v337_v36  ;;  %v308_v38 = vld [vmem:[%s3571_s29 + $0x4e8] sm:$0xff] }
  0x58   :  { %2115 = vmatpush3.bf16.msra.mxu1 %v429_v15  ;;  %v322_v46 = vld [vmem:[%s3571_s29 + $0x558] sm:$0xff]  ;;  %v339_v48 = vld [vmem:[%s3571_s29 + $0x5e0] sm:$0xff]  ;;  %v340_v49 = vld [vmem:[%s3571_s29 + $0x5e8] sm:$0xff]  ;;  %v416_v50 = vpack.c.bf16 %v290_v43, %v289_v42  ;;  %v425_v53 = vpack.c.bf16 %v308_v38, %v307_v47  ;;  %v148_v15 = vpack.c.bf16 %v2855_v60, %v2855_v60 }
  0x59   :  { %2116 = vmatprep.subr.bf16.mxu1 %v438_v20  ;;  %v432_v51 = vpack.c.bf16 %v322_v46, %v321_v44  ;;  %v291_v54 = vld [vmem:[%s3571_s29 + $0x460] sm:$0xff]  ;;  %v292_v55 = vld [vmem:[%s3571_s29 + $0x468] sm:$0xff]  ;;  %v441_v57 = vpack.c.bf16 %v340_v49, %v339_v48  ;;  %v309_v59 = vld [vmem:[%s3571_s29 + $0x4f0] sm:$0xff] }
  0x5a   :  { %2095 = vmatpush3.bf16.msra.mxu0 %v414_v26  ;;  %v323_v56 = vld [vmem:[%s3571_s29 + $0x560] sm:$0xff]  ;;  %v324_v58 = vld [vmem:[%s3571_s29 + $0x568] sm:$0xff]  ;;  %v310_v61 = vld [vmem:[%s3571_s29 + $0x4f8] sm:$0xff]  ;;  %v417_v1 = vpack.c.bf16 %v292_v55, %v291_v54 }
  0x5b   :  { %2096 = vmatprep.subr.bf16.mxu0 %v423_v28  ;;  %v341_v62 = vld [vmem:[%s3571_s29 + $0x5f0] sm:$0xff]  ;;  %v342_v63 = vld [vmem:[%s3571_s29 + $0x5f8] sm:$0xff]  ;;  %v433_v2 = vpack.c.bf16 %v324_v58, %v323_v56  ;;  %v426_v3 = vpack.c.bf16 %v310_v61, %v309_v59  ;;  %v343_v11 = vld [vmem:[%s3571_s29 + $0x600] sm:$0xff] }
  0x5c   :  { %2117 = vmatpush3.bf16.msra.mxu1 %v430_v27  ;;  %v293_v4 = vld [vmem:[%s3571_s29 + $0x470] sm:$0xff]  ;;  %v294_v5 = vld [vmem:[%s3571_s29 + $0x478] sm:$0xff]  ;;  %v442_v6 = vpack.c.bf16 %v342_v63, %v341_v62  ;;  %v344_v12 = vld [vmem:[%s3571_s29 + $0x608] sm:$0xff] }
  0x5d   :  { %2118 = vmatprep.subr.bf16.mxu1 %v439_v32  ;;  %v325_v7 = vld [vmem:[%s3571_s29 + $0x570] sm:$0xff]  ;;  %v326_v8 = vld [vmem:[%s3571_s29 + $0x578] sm:$0xff]  ;;  %v418_v9 = vpack.c.bf16 %v294_v5, %v293_v4  ;;  %v443_v16 = vpack.c.bf16 %v344_v12, %v343_v11  ;;  %v737_v21 = vld [vmem:[%s3550_s3] sm:$0xff] }
  0x5e   :  { %2097 = vmatpush3.bf16.msra.mxu0 %v415_v39  ;;  %v434_v10 = vpack.c.bf16 %v326_v8, %v325_v7  ;;  %v345_v18 = vld [vmem:[%s3571_s29 + $0x610] sm:$0xff]  ;;  %v346_v19 = vld [vmem:[%s3571_s29 + $0x618] sm:$0xff]  ;;  %v738_v22 = vld [vmem:[%s3550_s3 + $0x8] sm:$0xff] }
  0x5f   :  { %2098 = vmatprep.subr.bf16.mxu0 %v424_v41  ;;  %v444_v52 = vpack.c.bf16 %v346_v19, %v345_v18  ;;  %v1976_v60 = vld.sshfl [vmem:[%s3572_s27 + $0x18] sm:$0x3 pattern:$0x76325410]  ;;  %v832_v23 = vld [vmem:[%s3554_s7] sm:$0xff]  ;;  %v741_v24 = vpack.c.bf16 %v738_v22, %v737_v21  ;;  %v833_v25 = vld [vmem:[%s3554_s7 + $0x8] sm:$0xff] }
  0x60   :  { %2119 = vmatpush3.bf16.msra.mxu1 %v431_v40  ;;  %v150_v20 = vpack.c.bf16 %v1976_v60, %v1976_v60  ;;  %v836_v26 = vpack.c.bf16 %v833_v25, %v832_v23  ;;  %v739_v27 = vld [vmem:[%s3550_s3 + $0x10] sm:$0xff]  ;;  %v740_v28 = vld [vmem:[%s3550_s3 + $0x18] sm:$0xff]  ;;  %v1977_v34 = vld [vmem:[%s3573_s19] ss:$0 sm:$0xff]  ;;  %v2277_v21 = vmov 0  }
  0x61   :  { %2120 = vmatprep.subr.bf16.mxu1 %v440_v45  ;;  %v834_v29 = vld [vmem:[%s3554_s7 + $0x10] sm:$0xff]  ;;  %v742_v30 = vpack.c.bf16 %v740_v28, %v739_v27  ;;  %v835_v31 = vld [vmem:[%s3554_s7 + $0x18] sm:$0xff]  ;;  %v950_v18 = vld [vmem:[%s3559_s12 + $0x8] sm:$0xff] }
  0x62   :  { %2099 = vmatpush3.bf16.msra.mxu0 %v416_v50  ;;  %v837_v32 = vpack.c.bf16 %v835_v31, %v834_v29  ;;  %v963_v60 = vcombine.high %v950_v18, %v950_v18  ;;  %v1983_v27 = vld [vmem:[%s3555_s8] ss:$0 sm:$0xff]  ;;  %v3073_v28 = vld [vmem:[%s3559_s12 + $0x10] sm:$0xff]  ;;  %v3078_v29 = vld [vmem:[%s3559_s12 + $0x18] sm:$0xff] }
  0x63   :  { %2100 = vmatprep.subr.bf16.mxu0 %v425_v53  ;;  %v965_v31 = vcombine.high %v3078_v29, %v3078_v29 }
  0x64   :  { %2121 = vmatpush3.bf16.msra.mxu1 %v432_v51 }
  0x65   :  { %2122 = vmatprep.subr.bf16.mxu1 %v441_v57 }
  0x66   :  { %2101 = vmatpush3.bf16.msra.mxu0 %v417_v1 }
  0x67   :  { %2102 = vmatprep.subr.bf16.mxu0 %v426_v3 }
  0x68   :  { %2123 = vmatpush3.bf16.msra.mxu1 %v433_v2 }
  0x69   :  { %2124 = vmatprep.subr.bf16.mxu1 %v442_v6 }
  0x6a   :  { %2103 = vmatpush3.bf16.msra.mxu0 %v418_v9 }
  0x6b   :  { %2143 = vmatprep.subr.bf16.mxu0 %v2275_v17 }
  0x6c   :  { %2125 = vmatpush3.bf16.msra.mxu1 %v434_v10 }
  0x6d   :  { %2151 = vmatprep.subr.bf16.mxu1 %v2275_v17  ;;  %649 = vmatmul.mubr.bf16.vlgmr.msra.gmra.mrb[8].mxu0 %v146_v14 }
  0x6e   :  { %2144 = vmatpush3.bf16.msra.mxu0 %v443_v16  ;;  %2147 = vmatprep.mubr.msk.bf16.mxu0 %vm2276_vm0, %v2275_v17  ;;  %v949_v16 = vld [vmem:[%s3559_s12] sm:$0xff] }
  0x6f   :  { %689 = vmatmul.mubr.bf16.vlgmr.msra.gmra.mrb[8].mxu1 %v148_v15  ;;  %2145 = vmatprep.subr.bf16.mxu0 %v2275_v17  ;;  %v962_v19 = vcombine.high %v949_v16, %v949_v16 }
  0x70   :  { %2155 = vmatprep.mubr.msk.bf16.mxu1 %vm2276_vm0, %v2275_v17  ;;  %2152 = vmatpush3.bf16.msra.mxu1 %v741_v24  ;;  %v977_v24 = vpack.c.bf16 %v963_v60, %v963_v60 }
  0x71   :  { %2153 = vmatprep.subr.bf16.mxu1 %v2275_v17  ;;  %v975_v22 = vpack.c.bf16 %v962_v19, %v962_v19 }
  0x72   :  { %2146 = vmatpush3.bf16.msra.mxu0 %v444_v52  ;;  %v974_v52 = vpack.c.bf16 %v949_v16, %v949_v16 }
  0x73   :  { %2159 = vmatprep.subr.bf16.mxu0 %v2275_v17 }
  0x74   :  { %2154 = vmatpush3.bf16.msra.mxu1 %v742_v30  ;;  %v1062_v23 = vsel %vm1060_vm2, %v974_v52, 0  ;;  %v964_v30 = vcombine.high %v3073_v28, %v3073_v28 }
  0x75   :  { %2148 = vmatmul.mubr.msk.bf16.vlgmr.msra.gmra.mrb[12].mxu0 %vm452_vm1, %v150_v20  ;;  %v976_v20 = vpack.c.bf16 %v950_v18, %v950_v18  ;;  %1987 = vmatprep.subr.msk.bf16.mxu1 %vm1060_vm2, %v975_v22 }
  0x76   :  { %2163 = vmatprep.mubr.msk.bf16.mxu0 %vm2276_vm0, %v2275_v17  ;;  %2160 = vmatpush3.bf16.msra.mxu0 %v836_v26  ;;  %v1979_v26 = vld [vmem:[%s3551_s4] ss:$0 sm:$0xff]  ;;  %s2279_s4 = smov [#allocation4]  }
  0x77   :  { %2161 = vmatprep.subr.bf16.mxu0 %v2275_v17  ;;  %v1068_v25 = vsel %vm1060_vm2, %v976_v20, 0  ;;  %s1960_s8 = sshll.u32 %s2279_s4, 4  ;;  %s3205_s8 = int_to_ptr.vmem [resolvable:$true] %s1960_s8 }
  0x7a   :  { %2162 = vmatpush3.bf16.msra.mxu0 %v837_v32 }
  0x7b   :  { %1989 = vmatprep.subr.msk.bf16.mxu0 %vm1060_vm2, %v977_v24 }
 0x100   :  { %v2016_v33 = vpop.f32.mrb[0].mxu0 }
 0x101   :  { %v2017_v35 = vpop.f32.mrb[1].mxu0 }
 0x102   :  { %v2038_v36 = vpop.f32.mrb[0].mxu1  ;;  %v2018_v37 = vadd.f32 %v2017_v35, %v2016_v33  ;;  %v2019_v39 = vpop.f32.mrb[2].mxu0 }
 0x103   :  { %v2039_v40 = vpop.f32.mrb[1].mxu1  ;;  %v2020_v41 = vpop.f32.mrb[3].mxu0  ;;  %v979_v39 = vpack.c.bf16 %v964_v30, %v964_v30 }
 0x104   :  { %v2040_v42 = vadd.f32 %v2039_v40, %v2038_v36  ;;  %v2041_v43 = vpop.f32.mrb[2].mxu1  ;;  %v491_v44 = vadd.f32 %v2018_v37, %v1977_v34 }
 0x105   :  { %v2042_v45 = vpop.f32.mrb[3].mxu1 }
 0x106   :  { %v531_v46 = vadd.f32 %v2040_v42, %v491_v44  ;;  %v981_v42 = vpack.c.bf16 %v965_v31, %v965_v31 }
 0x120   :  { %v2060_v47 = vpop.f32.mrb[4].mxu0 }
 0x121   :  { %v2061_v38 = vpop.f32.mrb[5].mxu0 }
 0x122   :  { %v2082_v48 = vpop.f32.mrb[4].mxu1  ;;  %v2062_v49 = vadd.f32 %v2061_v38, %v2060_v47  ;;  %v2063_v50 = vpop.f32.mrb[6].mxu0 }
 0x123   :  { %v2083_v51 = vpop.f32.mrb[5].mxu1  ;;  %v2064_v53 = vpop.f32.mrb[7].mxu0 }
 0x124   :  { %v2084_v54 = vadd.f32 %v2083_v51, %v2082_v48  ;;  %v2085_v55 = vpop.f32.mrb[6].mxu1  ;;  %v571_v56 = vadd.f32 %v2062_v49, %v531_v46 }
 0x125   :  { %v2086_v57 = vpop.f32.mrb[7].mxu1 }
 0x126   :  { %v611_v58 = vadd.f32 %v2084_v54, %v571_v56 }
 0x140   :  { %v2104_v59 = vpop.f32.mrb[8].mxu0 }
 0x141   :  { %v2105_v61 = vpop.f32.mrb[9].mxu0 }
 0x142   :  { %v2126_v62 = vpop.f32.mrb[8].mxu1  ;;  %v2106_v63 = vadd.f32 %v2105_v61, %v2104_v59  ;;  %v2107_v1 = vpop.f32.mrb[10].mxu0 }
 0x143   :  { %v2127_v2 = vpop.f32.mrb[9].mxu1  ;;  %v2108_v4 = vpop.f32.mrb[11].mxu0 }
 0x144   :  { %v2128_v3 = vadd.f32 %v2127_v2, %v2126_v62  ;;  %v2129_v5 = vpop.f32.mrb[10].mxu1  ;;  %v651_v6 = vadd.f32 %v2106_v63, %v611_v58 }
 0x145   :  { %v2130_v7 = vpop.f32.mrb[11].mxu1 }
 0x146   :  { %v691_v8 = vadd.f32 %v2128_v3, %v651_v6 }
 0x148   :  { %v730_v9 = vpop.f32.mrb[12].mxu0 }
 0x149   :  { %v731_v10 = vadd.f32 %v730_v9, %v691_v8  ;;  %v2149_v11 = vpop.f32.mrb[13].mxu0 }
 0x14a   :  { %v733_v12 = vpop.f32.mrb[14].mxu0 }
 0x14b   :  { %v736_v14 = vpack.c.bf16 %v731_v10, %v731_v10  ;;  %v2150_v15 = vpop.f32.mrb[15].mxu0 }
 0x14d   :  { %2156 = vmatmul.mubr.msk.bf16.vlgmr.msra.gmra.mrb[12].mxu1 %vm452_vm1, %v736_v14  ;;  %2164 = vmatmul.mubr.msk.bf16.vlgmr.msra.gmra.mrb[16].mxu0 %vm452_vm1, %v736_v14 }
 0x14e   :  { %1132 = vmatprep.mubr.bf16.mxu1 %v2277_v21  ;;  %1173 = vmatprep.mubr.bf16.mxu0 %v2277_v21 }
 0x14f   :  { %1101 = vmatpush1.bf16.msra.mxu1 %v1062_v23  ;;  %1142 = vmatpush1.bf16.msra.mxu0 %v1068_v25  ;;  %v1981_v23 = vld [vmem:[%s3552_s5] ss:$0 sm:$0xff] }
 0x150   :  { %1991 = vmatprep.subr.msk.bf16.mxu1 %vm1060_vm2, %v979_v39  ;;  %1993 = vmatprep.subr.msk.bf16.mxu0 %vm1060_vm2, %v981_v42 }
 0x220   :  { %v787_v32 = vpop.f32.mrb[12].mxu1  ;;  %v879_v33 = vpop.f32.mrb[16].mxu0 }
 0x221   :  { %v788_v34 = vadd.f32 %v1979_v26, %v787_v32  ;;  %v880_v35 = vadd.f32 %v1983_v27, %v879_v33  ;;  %v2157_v36 = vpop.f32.mrb[13].mxu1  ;;  %v2165_v37 = vpop.f32.mrb[17].mxu0  ;;  %v1985_v26 = vld [vmem:[%s3556_s9] ss:$0 sm:$0xff] }
 0x222   :  { %v790_v40 = vpop.f32.mrb[14].mxu1  ;;  %v882_v41 = vpop.f32.mrb[18].mxu0  ;;  %v1982_v27 = vld [vmem:[%s3553_s6] ss:$0 sm:$0xff] }
 0x223   :  { %v796_v43 = vsel %vm795_vm3, %v788_v34, 0.0  ;;  %v887_v44 = vsel %vm795_vm3, %v880_v35, 0.0  ;;  %v2158_v45 = vpop.f32.mrb[15].mxu1  ;;  %v2166_v46 = vpop.f32.mrb[19].mxu0  ;;  %v1986_v32 = vld [vmem:[%s3557_s10] ss:$0 sm:$0xff] }
 0x224   :  { %v797_v47 = vrot.slane %v796_v43, 4  ;;  %v888_v38 = vrot.slane %v887_v44, 4 }
 0x226   :  { %v798_v48 = vadd.f32 %v797_v47, %v796_v43  ;;  %v889_v49 = vadd.f32 %v888_v38, %v887_v44 }
 0x228   :  { %v799_v50 = vrot.slane %v798_v48, 2  ;;  %v890_v51 = vrot.slane %v889_v49, 2 }
 0x22a   :  { %v800_v53 = vadd.f32 %v799_v50, %v798_v48  ;;  %v891_v54 = vadd.f32 %v890_v51, %v889_v49 }
 0x22c   :  { %v801_v55 = vrot.slane %v800_v53, 1  ;;  %v892_v56 = vrot.slane %v891_v54, 1 }
 0x22e   :  { %v802_v57 = vadd.f32 %v801_v55, %v800_v53  ;;  %v893_v58 = vadd.f32 %v892_v56, %v891_v54  ;;  %v945_v56 = vld [vmem:[%s3558_s11] sm:$0x3] }
 0x230   :  { %v804_v59 = vmul.f32 0.5, %v802_v57  ;;  %v894_v61 = vmul.f32 0.5, %v893_v58  ;;  %v953_v57 = vld [vmem:[%s3559_s12 + $0x20] sm:$0xff]  ;;  %v954_v58 = vld [vmem:[%s3559_s12 + $0x28] sm:$0xff] }
 0x232   :  { %v805_v62 = vsub.f32 %v788_v34, %v804_v59  ;;  %v895_v63 = vsub.f32 %v880_v35, %v894_v61 }
 0x234   :  { %v806_v1 = vmul.f32 %v805_v62, %v805_v62  ;;  %v896_v2 = vmul.f32 %v895_v63, %v895_v63 }
 0x236   :  { %v807_v3 = vsel %vm795_vm3, %v806_v1, 0.0  ;;  %v897_v4 = vsel %vm795_vm3, %v896_v2, 0.0  ;;  %v966_v1 = vcombine.high %v953_v57, %v953_v57  ;;  %v967_v2 = vcombine.high %v954_v58, %v954_v58 }
 0x237   :  { %v808_v5 = vrot.slane %v807_v3, 4  ;;  %v898_v6 = vrot.slane %v897_v4, 4 }
 0x239   :  { %v809_v7 = vadd.f32 %v808_v5, %v807_v3  ;;  %v899_v8 = vadd.f32 %v898_v6, %v897_v4 }
 0x23b   :  { %v810_v9 = vrot.slane %v809_v7, 2  ;;  %v900_v10 = vrot.slane %v899_v8, 2 }
 0x23d   :  { %v811_v11 = vadd.f32 %v810_v9, %v809_v7  ;;  %v901_v12 = vadd.f32 %v900_v10, %v899_v8  ;;  %v983_v7 = vpack.c.bf16 %v966_v1, %v966_v1  ;;  %v985_v8 = vpack.c.bf16 %v967_v2, %v967_v2 }
 0x23f   :  { %v812_v14 = vrot.slane %v811_v11, 1  ;;  %v902_v15 = vrot.slane %v901_v12, 1 }
 0x241   :  { %v813_v16 = vadd.f32 %v812_v14, %v811_v11  ;;  %v903_v18 = vadd.f32 %v902_v15, %v901_v12  ;;  %v955_v11 = vld [vmem:[%s3559_s12 + $0x30] sm:$0xf]  ;;  %v3142_v15 = vsub.s32 0, %v2501_v0 }
 0x242   :  { %v986_v12 = vpack.c.bf16 %v955_v11, %v955_v11 }
 0x243   :  { %v814_v19 = vmul.f32 0.5, %v813_v16  ;;  %v904_v52 = vmul.f32 0.5, %v903_v18  ;;  %v3150_v16 = vld [vmem:[%s3560_s13] sm:$0xff]  ;;  %v3153_v18 = vsub.s32 1, %v2501_v0 }
 0x244   :  { %v1098_v14 = vsel %vm1060_vm2, %v986_v12, 0 }
 0x245   :  { %v815_v60 = vadd.f32 1e-05, %v814_v19  ;;  %v905_v20 = vadd.f32 1e-05, %v904_v52  ;;  %v3156_v19 = vsub.s32 3, %v2501_v0  ;;  %v3162_v52 = vsub.s32 6, %v2501_v0 }
 0x247   :  { %2188 = vrsqrt.f32 %v815_v60  ;;  %v3165_v60 = vsub.s32 5, %v2501_v0 }
 0x248   :  { %2190 = vrsqrt.f32 %v905_v20  ;;  %v3168_v20 = vsub.s32 7, %v2501_v0 }
 0x251   :  { %v2189_v22 = vpop.eup %2188 }
 0x252   :  { %v2191_v24 = vpop.eup %2190  ;;  %v817_v25 = vmul.f32 %v2189_v22, %v805_v62  ;;  %v978_v62 = vpack.c.bf16 %v3073_v28, %v3073_v28  ;;  %v982_v28 = vpack.c.bf16 %v953_v57, %v953_v57  ;;  %v3173_v22 = vld [vmem:[%s3560_s13 + $0x8] sm:$0x1f]  ;;  %s2278_s13 = smov [#allocation2]  }
 0x253   :  { %v907_v30 = vmul.f32 %v2191_v24, %v895_v63  ;;  %v980_v63 = vpack.c.bf16 %v3078_v29, %v3078_v29  ;;  %v984_v29 = vpack.c.bf16 %v954_v58, %v954_v58  ;;  %v3180_v24 = vld [vmem:[%s3561_s14] sm:$0xff]  ;;  %s1950_s28 = sshll.u32 %s2278_s13, 4  ;;  %s1951_s28 = int_to_ptr.vmem [resolvable:$true] %s1950_s28 }
 0x254   :  { %v824_v31 = vmul.f32 %v1981_v23, %v817_v25  ;;  %v1074_v5 = vsel %vm1060_vm2, %v978_v62, 0  ;;  %v1086_v9 = vsel %vm1060_vm2, %v982_v28, 0  ;;  %v994_v23 = vrot.slane %v3150_v16, %v3142_v15  ;;  %s2226_s30 = scalar_lea.vmem %s1951_s28, 32  ;;  %p2231_p1 = scmp.lt.s32.totalorder %s1951_s28, %s1951_s28 }
 0x255   :  { %v914_v33 = vmul.f32 %v1985_v26, %v907_v30  ;;  %v1080_v6 = vsel %vm1060_vm2, %v980_v63, 0  ;;  %v1092_v10 = vsel %vm1060_vm2, %v984_v29, 0  ;;  %v998_v26 = vrot.slane %v3150_v16, %v3153_v18  ;;  %p2227_p0 = scmp.ne.s32.totalorder %s1951_s28, %s2226_s30  ;;  %p2232_p2 = scmp.lt.s32.totalorder %s2226_s30, %s2226_s30 }
 0x256   :  { %v831_v34 = vadd.f32 %v1982_v27, %v824_v31  ;;  %v1006_v27 = vrot.slane %v3150_v16, %v3156_v19  ;;  %v1018_v31 = vrot.slane %v3150_v16, %v3162_v52 }
 0x257   :  { %v921_v35 = vadd.f32 %v1986_v32, %v914_v33  ;;  %v1014_v32 = vrot.slane %v3150_v16, %v3165_v60  ;;  %v1022_v33 = vrot.slane %v3150_v16, %v3168_v20  ;;  %p2233_p3 = por %p2232_p2, %p2231_p1 }
 0x258   :  { %1863 = vst.msk [vmem:[#allocation2] sm:$0x3] %vm795_vm3, %v831_v34 }
 0x259   :  { %v925_v36 = vand.u32 2147483647, %v921_v35  ;;  %v922_v38 = vmax.f32 %v921_v35, 0.0  ;;  %vm923_vm5 = vcmp.ne.f32.partialorder %v921_v35, %v921_v35  ;;  %p2234_p4 = pnand %p2233_p3, %p2227_p0 }
 0x25b   :  { %v926_v37 = vsub.f32 0.0, %v925_v36 }
 0x25d   :  { %v927_v39 = vmul.f32 1.442695, %v926_v37  ;;  %v1669_v37 = vrot.slane %v3180_v24, %v3142_v15 }
 0x25f   :  { %2192 = vpow2.f32 %v927_v39 }
 0x269   :  { %v2193_v40 = vpop.eup %2192 }
 0x26a   :  { %v929_v41 = vadd.f32 1.0, %v2193_v40  ;;  %v932_v42 = vmul.f32 -0.5, %v2193_v40  ;;  %v935_v44 = vand.u32 2147483647, %v2193_v40 }
 0x26c   :  { %2194 = vlog2.f32 %v929_v41  ;;  %v933_v43 = vadd.f32 1.0, %v932_v42  ;;  %vm936_vm4 = vcmp.lt.f32.partialorder %v935_v44, 0.0004427343  ;;  %v1030_v41 = vrot.slane %v3173_v22, %v3153_v18 }
 0x26d   :  { %v1038_v42 = vrot.slane %v3173_v22, %v3156_v19 }
 0x26e   :  { %v934_v47 = vmul.f32 %v2193_v40, %v933_v43 }
 0x276   :  { %v2195_v45 = vpop.eup %2194 }
 0x277   :  { %v931_v46 = vmul.f32 0.6931472, %v2195_v45 }
 0x279   :  { %v937_v48 = vsel %vm936_vm4, %v934_v47, %v931_v46 }
 0x27a   :  { %v938_v49 = vadd.f32 %v937_v48, %v922_v38 }
 0x27c   :  { %v939_v50 = vsel %vm923_vm5, %v921_v35, %v938_v49 }
 0x27d   :  { %2196 = vlog2.f32 %v939_v50 }
 0x287   :  { %v2197_v51 = vpop.eup %2196 }
 0x288   :  { %v941_v53 = vmul.f32 0.6931472, %v2197_v51 }
 0x28a   :  { %v942_v54 = vmul.f32 0.5, %v941_v53  ;;  %1864 = vst.msk [vmem:[#allocation4] sm:$0x3] %vm795_vm3, %v941_v53 }
 0x28c   :  { %v943_v55 = vmul.f32 1.442695, %v942_v54 }
 0x28e   :  { %2198 = vpow2.f32 %v943_v55 }
 0x298   :  { %v2199_v59 = vpop.eup %2198 }
 0x299   :  { %v946_v61 = vmul.f32 %v2199_v59, %v945_v56 }
 0x29b   :  { %v947_v3 = vadd.f32 %v946_v61, %v831_v34  ;;  %v1026_v34 = vrot.slane %v3173_v22, %v3142_v15 }
 0x29d   :  { %v948_v4 = vpack.c.bf16 %v947_v3, %v947_v3 }
 0x29f   :  { %1988 = vmatmul.mubr.msk.bf16.vlgmr.msra.gmra.mrb[16].mxu1 %vm1056_vm6, %v948_v4  ;;  %1990 = vmatmul.mubr.msk.bf16.vlgmr.msra.gmra.mrb[20].mxu0 %vm1056_vm6, %v948_v4 }
 0x2a0   :  { %1183 = vmatpush1.bf16.msra.mxu1 %v1074_v5  ;;  %1224 = vmatpush1.bf16.msra.mxu0 %v1080_v6 }
 0x2a1   :  { %1214 = vmatprep.mubr.bf16.mxu1 %v2277_v21  ;;  %1255 = vmatprep.mubr.bf16.mxu0 %v2277_v21 }
 0x2a2   :  { %1995 = vmatprep.subr.msk.bf16.mxu1 %vm1060_vm2, %v983_v7  ;;  %1997 = vmatprep.subr.msk.bf16.mxu0 %vm1060_vm2, %v985_v8 }
 0x2a7   :  { %1992 = vmatmul.mubr.msk.bf16.vlgmr.msra.gmra.mrb[20].mxu1 %vm1056_vm6, %v948_v4  ;;  %1994 = vmatmul.mubr.msk.bf16.vlgmr.msra.gmra.mrb[24].mxu0 %vm1056_vm6, %v948_v4 }
 0x2a8   :  { %1265 = vmatpush1.bf16.msra.mxu1 %v1086_v9  ;;  %1306 = vmatpush1.bf16.msra.mxu0 %v1092_v10 }
 0x2a9   :  { %1296 = vmatprep.mubr.bf16.mxu1 %v2277_v21  ;;  %1337 = vmatprep.mubr.bf16.mxu0 %v2277_v21  ;;  %v3145_v21 = vsub.s32 2, %v2501_v0 }
 0x2aa   :  { %2167 = vmatprep.subr.bf16.mxu1 %v2275_v17 }
 0x2ab   :  { %v1002_v25 = vrot.slane %v3150_v16, %v3145_v21  ;;  %v1034_v35 = vrot.slane %v3173_v22, %v3145_v21  ;;  %v1677_v40 = vrot.slane %v3180_v24, %v3145_v21 }
 0x2af   :  { %1996 = vmatmul.mubr.msk.bf16.vlgmr.msra.gmra.mrb[24].mxu1 %vm1056_vm6, %v948_v4  ;;  %1998 = vmatmul.mubr.msk.bf16.vlgmr.msra.gmra.mrb[28].mxu0 %vm1056_vm6, %v948_v4 }
 0x2b0   :  { %2168 = vmatpush3.bf16.msra.mxu1 %v1098_v14  ;;  %2169 = vmatprep.mubr.msk.bf16.mxu1 %vm2276_vm0, %v2275_v17  ;;  %v3159_v17 = vsub.s32 4, %v2501_v0  ;;  %v3187_v0 = vld [vmem:[%s3562_s15] sm:$0xff] }
 0x2b2   :  { %v1010_v30 = vrot.slane %v3150_v16, %v3159_v17 }
 0x2b7   :  { %2170 = vmatmul.mubr.msk.bf16.vlgmr.msra.gmra.mrb[28].mxu1 %vm1056_vm6, %v948_v4 }
 0x372   :  { %v1134_v36 = vpop.f32.mrb[16].mxu1  ;;  %v1175_v39 = vpop.f32.mrb[20].mxu0 }
 0x373   :  { %2237 = shalt.err (!%p2234_p4)
}
 0x374   :  { %s2238_s0 = scalar_lea.hbm %s3563_s16, 32 }
 0x375   :  { %p2239_p5 = scmp.ne.s32.totalorder %s3563_s16, %s2238_s0  ;;  %p2242_p6 = scmp.lt.u32.totalorder %s2238_s0, %s3563_s16 }
 0x377   :  { %p2244_p7 = pnand %p2242_p6, %p2239_p5 }
 0x379   :  { %2247 = shalt.err (!%p2244_p7)
}
 0x37a   :  { %1953 = dma.vmem_to_hbm [thread:$0]  %s1951_s28, 32, %s3563_s16, [#allocation3]   ;;  %v3227_v43 = vadd.f32 %v1134_v36, %v994_v23  ;;  %v1749_v44 = vrot.slane %v3187_v0, %v3142_v15  ;;  %v3231_v45 = vadd.f32 %v1175_v39, %v1002_v25  ;;  %v1136_v46 = vpop.f32.mrb[17].mxu1  ;;  %v1673_v47 = vrot.slane %v3180_v24, %v3153_v18  ;;  %v1177_v38 = vpop.f32.mrb[21].mxu0 }
 0x37b   :  { %s2248_s7 = scalar_lea.vmem %s3205_s8, 32  ;;  %p2253_p9 = scmp.lt.s32.totalorder %s3205_s8, %s3205_s8 }
 0x37c   :  { %p2249_p8 = scmp.ne.s32.totalorder %s3205_s8, %s2248_s7  ;;  %p2254_p10 = scmp.lt.s32.totalorder %s2248_s7, %s2248_s7 }
 0x37e   :  { %p2255_p11 = por %p2254_p10, %p2253_p9 }
 0x380   :  { %p2256_p12 = pnand %p2255_p11, %p2249_p8 }
 0x382   :  { %2259 = shalt.err (!%p2256_p12)
}
 0x383   :  { %s2260_s11 = scalar_lea.hbm %s3564_s17, 32 }
 0x384   :  { %p2261_p13 = scmp.ne.s32.totalorder %s3564_s17, %s2260_s11  ;;  %p2264_p0 = scmp.lt.u32.totalorder %s2260_s11, %s3564_s17 }
 0x386   :  { %p2266_p1 = pnand %p2264_p0, %p2261_p13 }
 0x388   :  { %2269 = shalt.err (!%p2266_p1)
}
 0x389   :  { %1963 = dma.vmem_to_hbm [thread:$0]  %s3205_s8, 32, %s3564_s17, [#allocation5]   ;;  %v1757_v48 = vrot.slane %v3187_v0, %v3145_v21  ;;  %v3254_v49 = vadd.f32 %v1136_v46, %v998_v26  ;;  %v3256_v50 = vadd.f32 %v1177_v38, %v1006_v27  ;;  %v1681_v51 = vrot.slane %v3180_v24, %v3156_v19  ;;  %v1138_v53 = vpop.f32.mrb[18].mxu1  ;;  %v1179_v54 = vpop.f32.mrb[22].mxu0 }
 0x38a   :  { %v1390_v55 = vsel %vm1060_vm2, %v3227_v43, 0.0  ;;  %v1404_v56 = vsel %vm1060_vm2, %v3231_v45, 0.0  ;;  %v1139_v59 = vpop.f32.mrb[19].mxu1  ;;  %v1180_v61 = vpop.f32.mrb[23].mxu0  ;;  %v1042_v36 = vrot.slane %v3173_v22, %v3159_v17  ;;  %vm1474_vm7 = vcmask 254976  }
 0x38b   :  { %v1391_v62 = vrot.slane %v1390_v55, 4  ;;  %v1405_v63 = vrot.slane %v1404_v56, 4  ;;  %v1397_v1 = vsel %vm1060_vm2, %v3254_v49, 0.0  ;;  %v1411_v2 = vsel %vm1060_vm2, %v3256_v50, 0.0  ;;  %v1216_v25 = vpop.f32.mrb[20].mxu1  ;;  %v1257_v26 = vpop.f32.mrb[24].mxu0 }
 0x38c   :  { %v1398_v3 = vrot.slane %v1397_v1, 4  ;;  %v1412_v4 = vrot.slane %v1411_v2, 4  ;;  %v3291_v38 = vadd.f32 %v1216_v25, %v1010_v30  ;;  %v3296_v53 = vadd.f32 %v1257_v26, %v1018_v31  ;;  %v1218_v54 = vpop.f32.mrb[21].mxu1 }
 0x38d   :  { %v1392_v7 = vadd.f32 %v1391_v62, %v1390_v55  ;;  %v1406_v8 = vadd.f32 %v1405_v63, %v1404_v56  ;;  %v1259_v55 = vpop.f32.mrb[25].mxu0  ;;  %v3301_v61 = vadd.f32 %v1218_v54, %v1014_v32  ;;  %v1220_v30 = vpop.f32.mrb[22].mxu1 }
 0x38e   :  { %v1399_v9 = vadd.f32 %v1398_v3, %v1397_v1  ;;  %v1413_v10 = vadd.f32 %v1412_v4, %v1411_v2  ;;  %v3306_v62 = vadd.f32 %v1259_v55, %v1022_v33  ;;  %v1261_v63 = vpop.f32.mrb[26].mxu0  ;;  %v1418_v31 = vsel %vm1060_vm2, %v3291_v38, 0.0  ;;  %v1221_v4 = vpop.f32.mrb[23].mxu1 }
 0x38f   :  { %v1393_v14 = vrot.slane %v1392_v7, 2  ;;  %v1407_v23 = vrot.slane %v1406_v8, 2  ;;  %v1432_v3 = vsel %vm1060_vm2, %v3296_v53, 0.0  ;;  %v1425_v33 = vsel %vm1060_vm2, %v3301_v61, 0.0  ;;  %v3316_v11 = vpop.f32.mrb[24].mxu1 }
 0x390   :  { %v1400_v39 = vrot.slane %v1399_v9, 2  ;;  %v1414_v46 = vrot.slane %v1413_v10, 2  ;;  %v1426_v30 = vrot.slane %v1425_v33, 4 }
 0x391   :  { %v1394_v56 = vadd.f32 %v1393_v14, %v1392_v7  ;;  %v1408_v59 = vadd.f32 %v1407_v23, %v1406_v8  ;;  %v1262_v7 = vpop.f32.mrb[27].mxu0  ;;  %v1419_v14 = vrot.slane %v1418_v31, 4  ;;  %v1433_v23 = vrot.slane %v1432_v3, 4 }
 0x392   :  { %v1401_v1 = vadd.f32 %v1400_v39, %v1399_v9  ;;  %v1415_v2 = vadd.f32 %v1414_v46, %v1413_v10  ;;  %v1439_v9 = vsel %vm1060_vm2, %v3306_v62, 0.0  ;;  %v3318_v29 = vpop.f32.mrb[28].mxu0  ;;  %v1427_v5 = vadd.f32 %v1426_v30, %v1425_v33 }
 0x393   :  { %v1395_v8 = vrot.slane %v1394_v56, 1  ;;  %v1409_v32 = vrot.slane %v1408_v59, 1  ;;  %v1420_v39 = vadd.f32 %v1419_v14, %v1418_v31  ;;  %v1434_v46 = vadd.f32 %v1433_v23, %v1432_v3 }
 0x394   :  { %v1402_v25 = vrot.slane %v1401_v1, 1  ;;  %v1416_v16 = vrot.slane %v1415_v2, 1  ;;  %v1440_v63 = vrot.slane %v1439_v9, 4 }
 0x395   :  { %v1396_v10 = vadd.f32 %v1395_v8, %v1394_v56  ;;  %v1410_v26 = vadd.f32 %v1409_v32, %v1408_v59  ;;  %v1421_v27 = vrot.slane %v1420_v39, 2  ;;  %v1435_v12 = vrot.slane %v1434_v46, 2  ;;  %v3320_v56 = vpop.f32.mrb[25].mxu1  ;;  %v3322_v59 = vpop.f32.mrb[29].mxu0 }
 0x396   :  { %v1403_v54 = vadd.f32 %v1402_v25, %v1401_v1  ;;  %v1417_v55 = vadd.f32 %v1416_v16, %v1415_v2  ;;  %v1441_v58 = vadd.f32 %v1440_v63, %v1439_v9  ;;  %v1302_v8 = vpop.f32.mrb[26].mxu1  ;;  %v1343_v32 = vpop.f32.mrb[30].mxu0  ;;  %v1428_v25 = vrot.slane %v1427_v5, 2 }
 0x397   :  { %v1482_v4 = vmul.f32 0.5, %v1396_v10  ;;  %v1484_v7 = vmul.f32 0.5, %v1410_v26  ;;  %v1422_v31 = vadd.f32 %v1421_v27, %v1420_v39  ;;  %v1436_v3 = vadd.f32 %v1435_v12, %v1434_v46  ;;  %v1303_v33 = vpop.f32.mrb[27].mxu1  ;;  %v1344_v9 = vpop.f32.mrb[31].mxu0 }
 0x398   :  { %v1483_v28 = vmul.f32 0.5, %v1403_v54  ;;  %v1485_v6 = vmul.f32 0.5, %v1417_v55  ;;  %v1442_v16 = vrot.slane %v1441_v58, 2  ;;  %v3348_v33 = vpop.f32.mrb[28].mxu1 }
 0x399   :  { %v3325_v1 = vsub.f32 %v3227_v43, %v1482_v4  ;;  %v3328_v2 = vsub.f32 %v3231_v45, %v1484_v7  ;;  %v1423_v27 = vrot.slane %v1422_v31, 1  ;;  %v1437_v12 = vrot.slane %v1436_v3, 1  ;;  %v2171_v9 = vpop.f32.mrb[29].mxu1 }
 0x39a   :  { %v3331_v14 = vsub.f32 %v3254_v49, %v1483_v28  ;;  %v3334_v23 = vsub.f32 %v3256_v50, %v1485_v6  ;;  %v1429_v50 = vadd.f32 %v1428_v25, %v1427_v5  ;;  %v1443_v6 = vadd.f32 %v1442_v16, %v1441_v58 }
 0x39b   :  { %v1508_v43 = vmul.f32 %v3325_v1, %v3325_v1  ;;  %v1510_v45 = vmul.f32 %v3328_v2, %v3328_v2  ;;  %v1424_v39 = vadd.f32 %v1423_v27, %v1422_v31  ;;  %v1438_v46 = vadd.f32 %v1437_v12, %v1436_v3  ;;  %v1383_v27 = vpop.f32.mrb[30].mxu1 }
 0x39c   :  { %v1509_v10 = vmul.f32 %v3331_v14, %v3331_v14  ;;  %v1511_v49 = vmul.f32 %v3334_v23, %v3334_v23  ;;  %v1430_v25 = vrot.slane %v1429_v50, 1  ;;  %v1444_v16 = vrot.slane %v1443_v6, 1 }
 0x39d   :  { %v1521_v28 = vsel %vm1060_vm2, %v1508_v43, 0.0  ;;  %v1535_v26 = vsel %vm1060_vm2, %v1510_v45, 0.0  ;;  %v1486_v8 = vmul.f32 0.5, %v1424_v39  ;;  %v1488_v32 = vmul.f32 0.5, %v1438_v46  ;;  %v2172_v46 = vpop.f32.mrb[31].mxu1 }
 0x39e   :  { %v1522_v54 = vrot.slane %v1521_v28, 4  ;;  %v1536_v55 = vrot.slane %v1535_v26, 4  ;;  %v1528_v30 = vsel %vm1060_vm2, %v1509_v10, 0.0  ;;  %v1542_v63 = vsel %vm1060_vm2, %v1511_v49, 0.0 }
 0x39f   :  { %v1529_v4 = vrot.slane %v1528_v30, 4  ;;  %v1543_v7 = vrot.slane %v1542_v63, 4  ;;  %v3351_v3 = vsub.f32 %v3291_v38, %v1486_v8  ;;  %v3354_v45 = vsub.f32 %v3296_v53, %v1488_v32 }
 0x3a0   :  { %v1523_v5 = vadd.f32 %v1522_v54, %v1521_v28  ;;  %v1537_v58 = vadd.f32 %v1536_v55, %v1535_v26  ;;  %v1431_v49 = vadd.f32 %v1430_v25, %v1429_v50  ;;  %v1445_v39 = vadd.f32 %v1444_v16, %v1443_v6 }
 0x3a1   :  { %v1530_v43 = vadd.f32 %v1529_v4, %v1528_v30  ;;  %v1544_v31 = vadd.f32 %v1543_v7, %v1542_v63  ;;  %v1512_v26 = vmul.f32 %v3351_v3, %v3351_v3  ;;  %v1514_v54 = vmul.f32 %v3354_v45, %v3354_v45 }
 0x3a2   :  { %v1524_v12 = vrot.slane %v1523_v5, 2  ;;  %v1538_v10 = vrot.slane %v1537_v58, 2  ;;  %v1487_v30 = vmul.f32 0.5, %v1431_v49  ;;  %v1489_v63 = vmul.f32 0.5, %v1445_v39 }
 0x3a3   :  { %v1531_v57 = vrot.slane %v1530_v43, 2  ;;  %v1545_v28 = vrot.slane %v1544_v31, 2  ;;  %v1549_v7 = vsel %vm1060_vm2, %v1512_v26, 0.0  ;;  %v1563_v50 = vsel %vm1060_vm2, %v1514_v54, 0.0 }
 0x3a4   :  { %v1525_v55 = vadd.f32 %v1524_v12, %v1523_v5  ;;  %v1539_v38 = vadd.f32 %v1538_v10, %v1537_v58  ;;  %v1550_v32 = vrot.slane %v1549_v7, 4  ;;  %v1564_v25 = vrot.slane %v1563_v50, 4 }
 0x3a5   :  { %v1532_v53 = vadd.f32 %v1531_v57, %v1530_v43  ;;  %v1546_v4 = vadd.f32 %v1545_v28, %v1544_v31  ;;  %v3363_v27 = vsub.f32 %v3301_v61, %v1487_v30  ;;  %v3366_v5 = vsub.f32 %v3306_v62, %v1489_v63 }
 0x3a6   :  { %v1526_v6 = vrot.slane %v1525_v55, 1  ;;  %v1540_v8 = vrot.slane %v1539_v38, 1  ;;  %v1551_v57 = vadd.f32 %v1550_v32, %v1549_v7  ;;  %v1565_v43 = vadd.f32 %v1564_v25, %v1563_v50 }
 0x3a7   :  { %v1533_v16 = vrot.slane %v1532_v53, 1  ;;  %v1547_v9 = vrot.slane %v1546_v4, 1  ;;  %v1513_v49 = vmul.f32 %v3363_v27, %v3363_v27  ;;  %v1515_v39 = vmul.f32 %v3366_v5, %v3366_v5 }
 0x3a8   :  { %v1527_v58 = vadd.f32 %v1526_v6, %v1525_v55  ;;  %v1541_v12 = vadd.f32 %v1540_v8, %v1539_v38  ;;  %v1552_v26 = vrot.slane %v1551_v57, 2  ;;  %v1566_v61 = vrot.slane %v1565_v43, 2 }
 0x3a9   :  { %v1534_v31 = vadd.f32 %v1533_v16, %v1532_v53  ;;  %v1548_v10 = vadd.f32 %v1547_v9, %v1546_v4  ;;  %v1556_v62 = vsel %vm1060_vm2, %v1513_v49, 0.0  ;;  %v1570_v55 = vsel %vm1060_vm2, %v1515_v39, 0.0 }
 0x3aa   :  { %v1612_v46 = vmul.f32 0.5, %v1527_v58  ;;  %v1614_v28 = vmul.f32 0.5, %v1541_v12  ;;  %v1553_v53 = vadd.f32 %v1552_v26, %v1551_v57  ;;  %v1567_v4 = vadd.f32 %v1566_v61, %v1565_v43 }
 0x3ab   :  { %v1613_v54 = vmul.f32 0.5, %v1534_v31  ;;  %v1615_v30 = vmul.f32 0.5, %v1548_v10  ;;  %v1557_v6 = vrot.slane %v1556_v62, 4  ;;  %v1571_v8 = vrot.slane %v1570_v55, 4 }
 0x3ac   :  { %v1625_v38 = vadd.f32 1e-05, %v1612_v46  ;;  %v1627_v63 = vadd.f32 1e-05, %v1614_v28  ;;  %v1554_v32 = vrot.slane %v1553_v53, 1  ;;  %v1568_v25 = vrot.slane %v1567_v4, 1 }
 0x3ad   :  { %v1626_v7 = vadd.f32 1e-05, %v1613_v54  ;;  %v1628_v50 = vadd.f32 1e-05, %v1615_v30  ;;  %v3378_v16 = vadd.f32 %v3316_v11, %v1026_v34  ;;  %v1558_v9 = vadd.f32 %v1557_v6, %v1556_v62 }
 0x3ae   :  { %2200 = vrsqrt.f32 %v1625_v38  ;;  %v1572_v58 = vadd.f32 %v1571_v8, %v1570_v55  ;;  %v3384_v12 = vadd.f32 %v3318_v29, %v1034_v35  ;;  %v1555_v57 = vadd.f32 %v1554_v32, %v1553_v53 }
 0x3af   :  { %2202 = vrsqrt.f32 %v1627_v63  ;;  %v1569_v43 = vadd.f32 %v1568_v25, %v1567_v4  ;;  %v1446_v31 = vsel %vm1060_vm2, %v3378_v16, 0.0  ;;  %v1559_v10 = vrot.slane %v1558_v9, 2 }
 0x3b0   :  { %2204 = vrsqrt.f32 %v1626_v7  ;;  %v1573_v49 = vrot.slane %v1572_v58, 2  ;;  %v1447_v34 = vrot.slane %v1446_v31, 4  ;;  %v1616_v11 = vmul.f32 0.5, %v1555_v57 }
 0x3b1   :  { %2206 = vrsqrt.f32 %v1628_v50  ;;  %v1618_v39 = vmul.f32 0.5, %v1569_v43  ;;  %v1460_v46 = vsel %vm1060_vm2, %v3384_v12, 0.0  ;;  %v3394_v35 = vadd.f32 %v3320_v56, %v1030_v41 }
 0x3b2   :  { %v1560_v29 = vadd.f32 %v1559_v10, %v1558_v9  ;;  %v1574_v28 = vadd.f32 %v1573_v49, %v1572_v58  ;;  %v1448_v26 = vadd.f32 %v1447_v34, %v1446_v31  ;;  %v1461_v61 = vrot.slane %v1460_v46, 4 }
 0x3b3   :  { %v1629_v54 = vadd.f32 1e-05, %v1616_v11  ;;  %v1631_v30 = vadd.f32 1e-05, %v1618_v39  ;;  %v1453_v62 = vsel %vm1060_vm2, %v3394_v35, 0.0  ;;  %v3402_v55 = vadd.f32 %v3322_v59, %v1038_v42 }
 0x3b4   :  { %v1561_v38 = vrot.slane %v1560_v29, 1  ;;  %v1575_v63 = vrot.slane %v1574_v28, 1  ;;  %v1449_v53 = vrot.slane %v1448_v26, 2  ;;  %v1462_v41 = vadd.f32 %v1461_v61, %v1460_v46 }
 0x3b5   :  { %2208 = vrsqrt.f32 %v1629_v54  ;;  %v1777_v56 = vrot.slane %v3187_v0, %v3168_v20  ;;  %v1454_v4 = vrot.slane %v1453_v62, 4  ;;  %v1467_v7 = vsel %vm1060_vm2, %v3402_v55, 0.0 }
 0x3b6   :  { %2210 = vrsqrt.f32 %v1631_v30  ;;  %v1562_v50 = vadd.f32 %v1561_v38, %v1560_v29  ;;  %v1576_v6 = vadd.f32 %v1575_v63, %v1574_v28  ;;  %v1450_v8 = vadd.f32 %v1449_v53, %v1448_v26 }
 0x3b7   :  { %v1463_v25 = vrot.slane %v1462_v41, 2  ;;  %v1455_v42 = vadd.f32 %v1454_v4, %v1453_v62  ;;  %v1468_v59 = vrot.slane %v1467_v7, 4  ;;  %v3412_v9 = vadd.f32 %v3348_v33, %v1042_v36 }
 0x3b8   :  { %v2201_v32 = vpop.eup %2200  ;;  %v1617_v43 = vmul.f32 0.5, %v1562_v50  ;;  %v1619_v31 = vmul.f32 0.5, %v1576_v6  ;;  %v1451_v10 = vrot.slane %v1450_v8, 1 }
 0x3b9   :  { %v2203_v58 = vpop.eup %2202  ;;  %v1651_v57 = vmul.f32 %v2201_v32, %v3325_v1  ;;  %v1464_v11 = vadd.f32 %v1463_v25, %v1462_v41  ;;  %v1456_v39 = vrot.slane %v1455_v42, 2  ;;  %v3416_v46 = vadd.f32 %v1468_v59, %v1467_v7 }
 0x3ba   :  { %v2205_v49 = vpop.eup %2204  ;;  %v1653_v34 = vmul.f32 %v2203_v58, %v3328_v2  ;;  %v1630_v33 = vadd.f32 1e-05, %v1617_v43  ;;  %v1632_v28 = vadd.f32 1e-05, %v1619_v31  ;;  %v1452_v2 = vadd.f32 %v1451_v10, %v1450_v8 }
 0x3bb   :  { %v2207_v29 = vpop.eup %2206  ;;  %v1731_v22 = vmul.f32 %v1669_v37, %v1651_v57  ;;  %v1652_v36 = vmul.f32 %v2205_v49, %v3331_v14  ;;  %v1465_v61 = vrot.slane %v1464_v11, 1  ;;  %v1457_v14 = vadd.f32 %v1456_v39, %v1455_v42 }
 0x3bc   :  { %v1733_v1 = vmul.f32 %v1677_v40, %v1653_v34  ;;  %v1654_v26 = vmul.f32 %v2207_v29, %v3334_v23  ;;  %2212 = vrsqrt.f32 %v1630_v33  ;;  %v1490_v23 = vmul.f32 0.5, %v1452_v2 }
 0x3bd   :  { %v1811_v54 = vadd.f32 %v1749_v44, %v1731_v22  ;;  %v1732_v37 = vmul.f32 %v1673_v47, %v1652_v36  ;;  %2214 = vrsqrt.f32 %v1632_v28  ;;  %v3574_v44 = vrot.slane %v3187_v0, %v3153_v18 }
 0x3be   :  { %v1813_v30 = vadd.f32 %v1757_v48, %v1733_v1  ;;  %v1734_v40 = vmul.f32 %v1681_v51, %v1654_v26  ;;  %v1466_v47 = vadd.f32 %v1465_v61, %v1464_v11  ;;  %v3575_v41 = vrot.slane %v3187_v0, %v3156_v19 }
 0x3bf   :  { %vm1824_vm8 = vcmp.ge.f32.partialorder %v1811_v54, 0.0  ;;  %v1837_v62 = vmul.f32 0.01, %v1811_v54  ;;  %v1812_v38 = vadd.f32 %v3574_v44, %v1732_v37  ;;  %v2209_v63 = vpop.eup %2208  ;;  %v3445_v4 = vsub.f32 %v3378_v16, %v1490_v23 }
 0x3c0   :  { %vm1826_vm9 = vcmp.ge.f32.partialorder %v1813_v30, 0.0  ;;  %v1839_v53 = vmul.f32 0.01, %v1813_v30  ;;  %v1814_v48 = vadd.f32 %v3575_v41, %v1734_v40  ;;  %v2211_v51 = vpop.eup %2210  ;;  %v1655_v6 = vmul.f32 %v2209_v63, %v3351_v3 }
 0x3c1   :  { %v1850_v7 = vsel %vm1824_vm8, %v1811_v54, %v1837_v62  ;;  %vm1825_vm10 = vcmp.ge.f32.partialorder %v1812_v38, 0.0  ;;  %v1838_v50 = vmul.f32 0.01, %v1812_v38  ;;  %v1657_v25 = vmul.f32 %v2211_v51, %v3354_v45 }
 0x3c2   :  { %v1852_v8 = vsel %vm1826_vm9, %v1813_v30, %v1839_v53  ;;  %vm1827_vm11 = vcmp.ge.f32.partialorder %v1814_v48, 0.0  ;;  %v1840_v32 = vmul.f32 0.01, %v1814_v48  ;;  %v3576_v59 = vrot.slane %v3180_v24, %v3159_v17 }
 0x3c3   :  { %v1851_v42 = vsel %vm1825_vm10, %v1812_v38, %v1838_v50  ;;  %v1516_v16 = vmul.f32 %v3445_v4, %v3445_v4  ;;  %v1492_v57 = vmul.f32 0.5, %v1466_v47  ;;  %v3577_v10 = vrot.slane %v3180_v24, %v3162_v52 }
 0x3c4   :  { %v1735_v58 = vmul.f32 %v3576_v59, %v1655_v6  ;;  %v1878_v43 = vcombine.low %v1850_v7, %v1851_v42  ;;  %v1853_v31 = vsel %vm1827_vm11, %v1814_v48, %v1840_v32  ;;  %v1458_v49 = vrot.slane %v1457_v14, 1 }
 0x3c5   :  { %v1737_v3 = vmul.f32 %v3577_v10, %v1657_v25  ;;  %v1879_v34 = vcombine.low %v1852_v8, %v1853_v31  ;;  %v3578_v45 = vrot.slane %v3187_v0, %v3159_v17  ;;  %v1577_v39 = vsel %vm1060_vm2, %v1516_v16, 0.0 }
 0x3c6   :  { %v3462_v29 = vsub.f32 %v3384_v12, %v1492_v57  ;;  %v1886_v22 = vrot.slane %v1878_v43, %v2528_v13  ;;  %v3579_v36 = vrot.slane %v3187_v0, %v3162_v52  ;;  %v1578_v28 = vrot.slane %v1577_v39, 4  ;;  %v2213_v26 = vpop.eup %2212 }
 0x3c7   :  { %v1815_v11 = vadd.f32 %v3578_v45, %v1735_v58  ;;  %v1459_v1 = vadd.f32 %v1458_v49, %v1457_v14  ;;  %v1893_v2 = vrot.slane %v1879_v34, %v2528_v13  ;;  %v2215_v37 = vpop.eup %2214  ;;  %v1656_v12 = vmul.f32 %v2213_v26, %v3363_v27 }
 0x3c8   :  { %v1817_v33 = vadd.f32 %v3579_v36, %v1737_v3  ;;  %v1518_v54 = vmul.f32 %v3462_v29, %v3462_v29  ;;  %v1579_v40 = vadd.f32 %v1578_v28, %v1577_v39  ;;  %v1475_v23 = vsel %vm1474_vm7, %v3412_v9, 0.0 }
 0x3c9   :  { %vm1828_vm12 = vcmp.ge.f32.partialorder %v1815_v11, 0.0  ;;  %v1841_v61 = vmul.f32 0.01, %v1815_v11  ;;  %v1894_v52 = vcombine.low %v1886_v22, %v1893_v2  ;;  %v1658_v14 = vmul.f32 %v2215_v37, %v3366_v5 }
 0x3ca   :  { %v1843_v30 = vmul.f32 0.01, %v1817_v33  ;;  %vm1830_vm13 = vcmp.ge.f32.partialorder %v1817_v33, 0.0  ;;  %v1591_v62 = vsel %vm1060_vm2, %v1518_v54, 0.0  ;;  %v3580_v38 = vrot.slane %v3180_v24, %v3165_v60 }
 0x3cb   :  { %v1854_v44 = vsel %vm1828_vm12, %v1815_v11, %v1841_v61  ;;  %v1580_v63 = vrot.slane %v1579_v40, 2  ;;  %v1592_v53 = vrot.slane %v1591_v62, 4  ;;  %1940 = vst [vmem:[%s3565_s18] sm:$0xff] %v1894_v52  ;;  %v3581_v27 = vrot.slane %v3180_v24, %v3168_v20 }
 0x3cc   :  { %v1736_v47 = vmul.f32 %v3580_v38, %v1656_v12  ;;  %v1491_v48 = vmul.f32 0.5, %v1459_v1  ;;  %v1470_v5 = vrot.slane %v3416_v46, 2  ;;  %v1476_v51 = vrot.slane %v1475_v23, 4 }
 0x3cd   :  { %v1738_v41 = vmul.f32 %v3581_v27, %v1658_v14  ;;  %v1856_v7 = vsel %vm1830_vm13, %v1817_v33, %v1843_v30  ;;  %v3582_v50 = vrot.slane %v3187_v0, %v3165_v60  ;;  %v1581_v8 = vadd.f32 %v1580_v63, %v1579_v40 }
 0x3ce   :  { %v1593_v32 = vadd.f32 %v1592_v53, %v1591_v62  ;;  %v3493_v42 = vsub.f32 %v3394_v35, %v1491_v48  ;;  %v1471_v24 = vadd.f32 %v1470_v5, %v3416_v46  ;;  %v1477_v59 = vadd.f32 %v1476_v51, %v1475_v23 }
 0x3cf   :  { %v1816_v6 = vadd.f32 %v3582_v50, %v1736_v47  ;;  %v1818_v25 = vadd.f32 %v1777_v56, %v1738_v41  ;;  %v1582_v16 = vrot.slane %v1581_v8, 1 }
 0x3d0   :  { %v1594_v57 = vrot.slane %v1593_v32, 2  ;;  %v1517_v60 = vmul.f32 %v3493_v42, %v3493_v42  ;;  %v1472_v31 = vrot.slane %v1471_v24, 1  ;;  %v1478_v0 = vrot.slane %v1477_v59, 2 }
 0x3d1   :  { %vm1829_vm14 = vcmp.ge.f32.partialorder %v1816_v6, 0.0  ;;  %v1842_v58 = vmul.f32 0.01, %v1816_v6  ;;  %vm1831_vm15 = vcmp.ge.f32.partialorder %v1818_v25, 0.0  ;;  %v1844_v43 = vmul.f32 0.01, %v1818_v25 }
 0x3d2   :  { %v1583_v3 = vadd.f32 %v1582_v16, %v1581_v8  ;;  %v1595_v20 = vadd.f32 %v1594_v57, %v1593_v32  ;;  %v1584_v49 = vsel %vm1060_vm2, %v1517_v60, 0.0  ;;  %v1473_v46 = vadd.f32 %v1472_v31, %v1471_v24 }
 0x3d3   :  { %v1855_v10 = vsel %vm1829_vm14, %v1816_v6, %v1842_v58  ;;  %v1857_v35 = vsel %vm1831_vm15, %v1818_v25, %v1844_v43  ;;  %v1585_v39 = vrot.slane %v1584_v49, 4  ;;  %v1479_v33 = vadd.f32 %v1478_v0, %v1477_v59  ;;  %v1389_v59 = vld [vmem:[%s3562_s15 + $0x8] sm:$0x1f] }
 0x3d4   :  { %v1895_v56 = vcombine.low %v1854_v44, %v1855_v10  ;;  %v1896_v34 = vcombine.low %v1856_v7, %v1857_v35  ;;  %v1620_v45 = vmul.f32 0.5, %v1583_v3  ;;  %v1596_v11 = vrot.slane %v1595_v20, 1  ;;  %v1387_v7 = vld [vmem:[%s3561_s14 + $0x8] sm:$0x1f] }
 0x3d5   :  { %v1493_v36 = vmul.f32 0.5, %v1473_v46  ;;  %v1586_v2 = vadd.f32 %v1585_v39, %v1584_v49  ;;  %v1480_v54 = vrot.slane %v1479_v33, 1  ;;  %v1701_v24 = vrot.slane %v1387_v7, %v3142_v15 }
 0x3d6   :  { %v1903_v22 = vrot.slane %v1895_v56, %v2528_v13  ;;  %v1910_v28 = vrot.slane %v1896_v34, %v2528_v13  ;;  %v1633_v1 = vadd.f32 1e-05, %v1620_v45  ;;  %v1597_v26 = vadd.f32 %v1596_v11, %v1595_v20 }
 0x3d7   :  { %v3502_v61 = vsub.f32 %v3402_v55, %v1493_v36  ;;  %v1587_v12 = vrot.slane %v1586_v2, 2  ;;  %v1481_v23 = vadd.f32 %v1480_v54, %v1479_v33  ;;  %v1781_v31 = vrot.slane %v1389_v59, %v3142_v15 }
 0x3d8   :  { %v1911_v37 = vcombine.low %v1903_v22, %v1910_v28  ;;  %2216 = vrsqrt.f32 %v1633_v1  ;;  %v1622_v30 = vmul.f32 0.5, %v1597_v26  ;;  %v1709_v35 = vrot.slane %v1387_v7, %v3145_v21 }
 0x3d9   :  { %v1519_v40 = vmul.f32 %v3502_v61, %v3502_v61  ;;  %v1588_v52 = vadd.f32 %v1587_v12, %v1586_v2  ;;  %v1494_v62 = vmul.f32 0.5, %v1481_v23  ;;  %v1705_v49 = vrot.slane %v1387_v7, %v3153_v18 }
 0x3da   :  { %1941 = vst [vmem:[%s3565_s18 + $0x8] sm:$0xff] %v1911_v37  ;;  %v1635_v44 = vadd.f32 1e-05, %v1622_v30  ;;  %v1785_v11 = vrot.slane %v1389_v59, %v3153_v18  ;;  %v1789_v36 = vrot.slane %v1389_v59, %v3145_v21  ;;  %v1793_v18 = vrot.slane %v1389_v59, %v3156_v19 }
 0x3db   :  { %v1598_v14 = vsel %vm1060_vm2, %v1519_v40, 0.0  ;;  %v1589_v55 = vrot.slane %v1588_v52, 1  ;;  %v3511_v47 = vsub.f32 %v3412_v9, %v1494_v62  ;;  %v1717_v23 = vrot.slane %v1387_v7, %v3159_v17 }
 0x3dc   :  { %v1599_v38 = vrot.slane %v1598_v14, 4  ;;  %2218 = vrsqrt.f32 %v1635_v44 }
 0x3dd   :  { %v1590_v63 = vadd.f32 %v1589_v55, %v1588_v52  ;;  %v1520_v27 = vmul.f32 %v3511_v47, %v3511_v47 }
 0x3de   :  { %v1600_v53 = vadd.f32 %v1599_v38, %v1598_v14  ;;  %v1797_v14 = vrot.slane %v1389_v59, %v3159_v17 }
 0x3df   :  { %v1621_v41 = vmul.f32 0.5, %v1590_v63  ;;  %v1605_v5 = vsel %vm1474_vm7, %v1520_v27, 0.0 }
 0x3e0   :  { %v1601_v48 = vrot.slane %v1600_v53, 2  ;;  %v1606_v8 = vrot.slane %v1605_v5, 4 }
 0x3e1   :  { %v1634_v50 = vadd.f32 1e-05, %v1621_v41 }
 0x3e2   :  { %v2217_v51 = vpop.eup %2216  ;;  %v1602_v6 = vadd.f32 %v1601_v48, %v1600_v53  ;;  %v1607_v32 = vadd.f32 %v1606_v8, %v1605_v5 }
 0x3e3   :  { %2220 = vrsqrt.f32 %v1634_v50  ;;  %v1659_v25 = vmul.f32 %v2217_v51, %v3445_v4 }
 0x3e4   :  { %v1603_v9 = vrot.slane %v1602_v6, 1  ;;  %v1608_v16 = vrot.slane %v1607_v32, 2 }
 0x3e5   :  { %v1739_v60 = vmul.f32 %v1701_v24, %v1659_v25 }
 0x3e6   :  { %v1604_v58 = vadd.f32 %v1603_v9, %v1602_v6  ;;  %v1609_v43 = vadd.f32 %v1608_v16, %v1607_v32  ;;  %v2219_v10 = vpop.eup %2218 }
 0x3e7   :  { %v1819_v56 = vadd.f32 %v1781_v31, %v1739_v60  ;;  %v1661_v4 = vmul.f32 %v2219_v10, %v3462_v29  ;;  %v1713_v29 = vrot.slane %v1387_v7, %v3156_v19 }
 0x3e8   :  { %v1623_v57 = vmul.f32 0.5, %v1604_v58  ;;  %v1610_v20 = vrot.slane %v1609_v43, 1 }
 0x3e9   :  { %v1845_v15 = vmul.f32 0.01, %v1819_v56  ;;  %v1741_v22 = vmul.f32 %v1709_v35, %v1661_v4  ;;  %vm1832_vm0 = vcmp.ge.f32.partialorder %v1819_v56, 0.0 }
 0x3ea   :  { %v1636_v3 = vadd.f32 1e-05, %v1623_v57  ;;  %v1611_v0 = vadd.f32 %v1610_v20, %v1609_v43 }
 0x3eb   :  { %v1858_v1 = vsel %vm1832_vm0, %v1819_v56, %v1845_v15  ;;  %v1821_v26 = vadd.f32 %v1789_v36, %v1741_v22 }
 0x3ec   :  { %2222 = vrsqrt.f32 %v1636_v3  ;;  %v1624_v34 = vmul.f32 0.5, %v1611_v0 }
 0x3ed   :  { %v2221_v46 = vpop.eup %2220  ;;  %v1847_v12 = vmul.f32 0.01, %v1821_v26  ;;  %vm1834_vm2 = vcmp.ge.f32.partialorder %v1821_v26, 0.0 }
 0x3ee   :  { %v1660_v45 = vmul.f32 %v2221_v46, %v3493_v42  ;;  %v1637_v39 = vadd.f32 1e-05, %v1624_v34 }
 0x3ef   :  { %v1860_v62 = vsel %vm1834_vm2, %v1821_v26, %v1847_v12 }
 0x3f0   :  { %v1740_v33 = vmul.f32 %v1705_v49, %v1660_v45  ;;  %2224 = vrsqrt.f32 %v1637_v39 }
 0x3f2   :  { %v1820_v28 = vadd.f32 %v1785_v11, %v1740_v33 }
 0x3f4   :  { %vm1833_vm1 = vcmp.ge.f32.partialorder %v1820_v28, 0.0  ;;  %v1846_v2 = vmul.f32 0.01, %v1820_v28 }
 0x3f6   :  { %v2223_v54 = vpop.eup %2222  ;;  %v1859_v37 = vsel %vm1833_vm1, %v1820_v28, %v1846_v2 }
 0x3f7   :  { %v1662_v42 = vmul.f32 %v2223_v54, %v3502_v61  ;;  %v1912_v30 = vcombine.low %v1858_v1, %v1859_v37 }
 0x3f9   :  { %v1742_v40 = vmul.f32 %v1713_v29, %v1662_v42  ;;  %v1920_v61 = vrot.slane %v1912_v30, %v2528_v13 }
 0x3fa   :  { %v2225_v52 = vpop.eup %2224 }
 0x3fb   :  { %v1822_v21 = vadd.f32 %v1793_v18, %v1742_v40  ;;  %v1663_v55 = vmul.f32 %v2225_v52, %v3511_v47 }
 0x3fd   :  { %vm1835_vm3 = vcmp.ge.f32.partialorder %v1822_v21, 0.0  ;;  %v1848_v44 = vmul.f32 0.01, %v1822_v21  ;;  %v1743_v63 = vmul.f32 %v1717_v23, %v1663_v55 }
 0x3ff   :  { %v1861_v38 = vsel %vm1835_vm3, %v1822_v21, %v1848_v44  ;;  %v1823_v53 = vadd.f32 %v1797_v14, %v1743_v63 }
 0x400   :  { %v1913_v19 = vcombine.low %v1860_v62, %v1861_v38 }
 0x401   :  { %vm1836_vm4 = vcmp.ge.f32.partialorder %v1823_v53, 0.0  ;;  %v1849_v41 = vmul.f32 0.01, %v1823_v53 }
 0x402   :  { %v1927_v27 = vrot.slane %v1913_v19, %v2528_v13 }
 0x403   :  { %v1862_v5 = vsel %vm1836_vm4, %v1823_v53, %v1849_v41 }
 0x404   :  { %v1928_v48 = vcombine.low %v1920_v61, %v1927_v27  ;;  %v1935_v17 = vrot.slane %v1862_v5, %v2528_v13 }
 0x406   :  { %1942 = vst [vmem:[%s3565_s18 + $0x10] sm:$0xff] %v1928_v48  ;;  %1943 = vst.msk [vmem:[%s3565_s18 + $0x18] sm:$0x3] %vm1474_vm7, %v1935_v17 }
 0x407   :  { %2270 = dma.done.wait [#allocation3], 32  }
 0x408   :  { %2271 = vsyncadd [#allocation3], 4294967264 }
 0x409   :  { %2272 = dma.done.wait [#allocation5], 32  }
 0x40a   :  { %2273 = vsyncadd [#allocation5], 4294967264 }
 0x40b   :  { %1974 = vsyncpa [#allocation3], 1 }
 0x40c   :  { %1975 = vsyncpa [#allocation5], 1 }

// kernel: convae_forward.11
= control target key start
LH: loop header
LB: loop body
LE: loop exit
PB: predicated region body
PF: predicated region fallthrough
CT: control target
= control target key end

     0   :  { %v593_v3 = vmov 0   ;;  %vm258_vm0 = vcmask 261120   ;;  %vm436_vm1 = vcmask 64512   ;;  %s1126_s1 = inlined_call_operand.vmem [shape: f32[288,392], index: 1, kind: input, shape index: {}]   ;;  %s1127_s0 = inlined_call_operand.vmem [shape: f32[16,288], index: 0, kind: input, shape index: {}]   ;;  %s1128_s2 = inlined_call_operand.vmem [shape: f32[16,1], index: 2, kind: input, shape index: {}]   ;;  %s1129_s3 = inlined_call_operand.vmem [shape: f32[16,1], index: 3, kind: input, shape index: {}]   ;;  %s1130_s4 = inlined_call_operand.vmem [shape: f32[16,1], index: 4, kind: input, shape index: {}]   ;;  %s1131_s5 = inlined_call_operand.vmem [shape: f32[16,392], index: 5, kind: output, shape index: {}]  }
   0x1   :  { %v31_v0 = vld [vmem:[%s1126_s1 + $0x8] sm:$0xff]  ;;  %v33_v2 = vld [vmem:[%s1126_s1 + $0x18] sm:$0xff]  ;;  %587 = vset.pattern.permute.xlu0 %v593_v3  ;;  %588 = vset.pattern.permute.xlu1 %v593_v3  ;;  %v30_v6 = vld [vmem:[%s1126_s1] sm:$0xff] }
   0x2   :  { %v35_v1 = vld [vmem:[%s1126_s1 + $0x28] sm:$0xff]  ;;  %v37_v5 = vld [vmem:[%s1126_s1 + $0x38] sm:$0xff]  ;;  %v34_v7 = vld [vmem:[%s1126_s1 + $0x20] sm:$0xff] }
   0x3   :  { %v175_v4 = vpack.c.bf16 %v35_v1, %v31_v0  ;;  %v177_v8 = vpack.c.bf16 %v37_v5, %v33_v2  ;;  %v174_v9 = vpack.c.bf16 %v34_v7, %v30_v6  ;;  %v32_v10 = vld [vmem:[%s1126_s1 + $0x10] sm:$0xff]  ;;  %v39_v12 = vld [vmem:[%s1126_s1 + $0x48] sm:$0xff]  ;;  %v41_v15 = vld [vmem:[%s1126_s1 + $0x58] sm:$0xff] }
   0x4   :  { %v36_v11 = vld [vmem:[%s1126_s1 + $0x30] sm:$0xff]  ;;  %v43_v14 = vld [vmem:[%s1126_s1 + $0x68] sm:$0xff]  ;;  %v45_v16 = vld [vmem:[%s1126_s1 + $0x78] sm:$0xff] }
   0x5   :  { %262 = vmatprep.subr.bf16.mxu0 %v175_v4  ;;  %v176_v13 = vpack.c.bf16 %v36_v11, %v32_v10  ;;  %348 = vmatprep.subr.bf16.mxu1 %v177_v8  ;;  %v179_v17 = vpack.c.bf16 %v43_v14, %v39_v12  ;;  %v181_v18 = vpack.c.bf16 %v45_v16, %v41_v15  ;;  %v38_v19 = vld [vmem:[%s1126_s1 + $0x40] sm:$0xff]  ;;  %v40_v21 = vld [vmem:[%s1126_s1 + $0x50] sm:$0xff]  ;;  %v47_v24 = vld [vmem:[%s1126_s1 + $0x88] sm:$0xff] }
   0x6   :  { %263 = vmatpush1.bf16.msra.mxu0 %v174_v9  ;;  %v42_v20 = vld [vmem:[%s1126_s1 + $0x60] sm:$0xff]  ;;  %v44_v23 = vld [vmem:[%s1126_s1 + $0x70] sm:$0xff]  ;;  %v51_v25 = vld [vmem:[%s1126_s1 + $0xa8] sm:$0xff] }
   0x7   :  { %349 = vmatpush1.bf16.msra.mxu1 %v176_v13  ;;  %v178_v22 = vpack.c.bf16 %v42_v20, %v38_v19  ;;  %264 = vmatprep.subr.bf16.mxu0 %v179_v17  ;;  %v180_v26 = vpack.c.bf16 %v44_v23, %v40_v21  ;;  %v183_v27 = vpack.c.bf16 %v51_v25, %v47_v24  ;;  %v49_v28 = vld [vmem:[%s1126_s1 + $0x98] sm:$0xff]  ;;  %v46_v30 = vld [vmem:[%s1126_s1 + $0x80] sm:$0xff]  ;;  %v48_v33 = vld [vmem:[%s1126_s1 + $0x90] sm:$0xff] }
   0x8   :  { %350 = vmatprep.subr.bf16.mxu1 %v181_v18  ;;  %v53_v29 = vld [vmem:[%s1126_s1 + $0xb8] sm:$0xff]  ;;  %v50_v32 = vld [vmem:[%s1126_s1 + $0xa0] sm:$0xff]  ;;  %v52_v34 = vld [vmem:[%s1126_s1 + $0xb0] sm:$0xff] }
   0x9   :  { %v185_v31 = vpack.c.bf16 %v53_v29, %v49_v28  ;;  %v182_v35 = vpack.c.bf16 %v50_v32, %v46_v30  ;;  %v55_v36 = vld [vmem:[%s1126_s1 + $0xc8] sm:$0xff]  ;;  %v57_v38 = vld [vmem:[%s1126_s1 + $0xd8] sm:$0xff]  ;;  %v184_v39 = vpack.c.bf16 %v52_v34, %v48_v33  ;;  %v54_v42 = vld [vmem:[%s1126_s1 + $0xc0] sm:$0xff] }
   0xa   :  { %265 = vmatpush1.bf16.msra.mxu0 %v178_v22  ;;  %v59_v37 = vld [vmem:[%s1126_s1 + $0xe8] sm:$0xff]  ;;  %v61_v41 = vld [vmem:[%s1126_s1 + $0xf8] sm:$0xff]  ;;  %v58_v43 = vld [vmem:[%s1126_s1 + $0xe0] sm:$0xff] }
   0xb   :  { %351 = vmatpush1.bf16.msra.mxu1 %v180_v26  ;;  %266 = vmatprep.subr.bf16.mxu0 %v183_v27  ;;  %v187_v40 = vpack.c.bf16 %v59_v37, %v55_v36  ;;  %v189_v44 = vpack.c.bf16 %v61_v41, %v57_v38  ;;  %v56_v45 = vld [vmem:[%s1126_s1 + $0xd0] sm:$0xff]  ;;  %v63_v47 = vld [vmem:[%s1126_s1 + $0x108] sm:$0xff]  ;;  %v65_v49 = vld [vmem:[%s1126_s1 + $0x118] sm:$0xff]  ;;  %v186_v51 = vpack.c.bf16 %v58_v43, %v54_v42 }
   0xc   :  { %352 = vmatprep.subr.bf16.mxu1 %v185_v31  ;;  %v60_v46 = vld [vmem:[%s1126_s1 + $0xf0] sm:$0xff]  ;;  %v67_v48 = vld [vmem:[%s1126_s1 + $0x128] sm:$0xff]  ;;  %v69_v50 = vld [vmem:[%s1126_s1 + $0x138] sm:$0xff] }
   0xd   :  { %v188_v52 = vpack.c.bf16 %v60_v46, %v56_v45  ;;  %v191_v53 = vpack.c.bf16 %v67_v48, %v63_v47  ;;  %v62_v54 = vld [vmem:[%s1126_s1 + $0x100] sm:$0xff]  ;;  %v64_v56 = vld [vmem:[%s1126_s1 + $0x110] sm:$0xff]  ;;  %v193_v57 = vpack.c.bf16 %v69_v50, %v65_v49  ;;  %v71_v59 = vld [vmem:[%s1126_s1 + $0x148] sm:$0xff] }
   0xe   :  { %267 = vmatpush1.bf16.msra.mxu0 %v182_v35  ;;  %v66_v55 = vld [vmem:[%s1126_s1 + $0x120] sm:$0xff]  ;;  %v68_v58 = vld [vmem:[%s1126_s1 + $0x130] sm:$0xff]  ;;  %v75_v60 = vld [vmem:[%s1126_s1 + $0x168] sm:$0xff] }
   0xf   :  { %353 = vmatpush1.bf16.msra.mxu1 %v184_v39  ;;  %268 = vmatprep.subr.bf16.mxu0 %v187_v40  ;;  %v73_v61 = vld [vmem:[%s1126_s1 + $0x158] sm:$0xff]  ;;  %v190_v63 = vpack.c.bf16 %v66_v55, %v62_v54  ;;  %v192_v0 = vpack.c.bf16 %v68_v58, %v64_v56  ;;  %v195_v1 = vpack.c.bf16 %v75_v60, %v71_v59  ;;  %v70_v2 = vld [vmem:[%s1126_s1 + $0x140] sm:$0xff]  ;;  %v72_v5 = vld [vmem:[%s1126_s1 + $0x150] sm:$0xff] }
  0x10   :  { %354 = vmatprep.subr.bf16.mxu1 %v189_v44  ;;  %v77_v62 = vld [vmem:[%s1126_s1 + $0x178] sm:$0xff]  ;;  %v74_v4 = vld [vmem:[%s1126_s1 + $0x160] sm:$0xff]  ;;  %v76_v7 = vld [vmem:[%s1126_s1 + $0x170] sm:$0xff] }
  0x11   :  { %v197_v6 = vpack.c.bf16 %v77_v62, %v73_v61  ;;  %v79_v8 = vld [vmem:[%s1126_s1 + $0x188] sm:$0xff]  ;;  %v81_v10 = vld [vmem:[%s1126_s1 + $0x198] sm:$0xff]  ;;  %v194_v12 = vpack.c.bf16 %v74_v4, %v70_v2  ;;  %v196_v13 = vpack.c.bf16 %v76_v7, %v72_v5  ;;  %v78_v15 = vld [vmem:[%s1126_s1 + $0x180] sm:$0xff] }
  0x12   :  { %269 = vmatpush1.bf16.msra.mxu0 %v186_v51  ;;  %v83_v9 = vld [vmem:[%s1126_s1 + $0x1a8] sm:$0xff]  ;;  %v85_v11 = vld [vmem:[%s1126_s1 + $0x1b8] sm:$0xff]  ;;  %v82_v16 = vld [vmem:[%s1126_s1 + $0x1a0] sm:$0xff] }
  0x13   :  { %355 = vmatpush1.bf16.msra.mxu1 %v188_v52  ;;  %270 = vmatprep.subr.bf16.mxu0 %v191_v53  ;;  %v199_v14 = vpack.c.bf16 %v83_v9, %v79_v8  ;;  %v80_v17 = vld [vmem:[%s1126_s1 + $0x190] sm:$0xff]  ;;  %v201_v18 = vpack.c.bf16 %v85_v11, %v81_v10  ;;  %v87_v20 = vld [vmem:[%s1126_s1 + $0x1c8] sm:$0xff]  ;;  %v89_v22 = vld [vmem:[%s1126_s1 + $0x1d8] sm:$0xff]  ;;  %v198_v24 = vpack.c.bf16 %v82_v16, %v78_v15 }
  0x14   :  { %356 = vmatprep.subr.bf16.mxu1 %v193_v57  ;;  %v84_v19 = vld [vmem:[%s1126_s1 + $0x1b0] sm:$0xff]  ;;  %v91_v21 = vld [vmem:[%s1126_s1 + $0x1e8] sm:$0xff]  ;;  %v93_v23 = vld [vmem:[%s1126_s1 + $0x1f8] sm:$0xff] }
  0x15   :  { %v200_v25 = vpack.c.bf16 %v84_v19, %v80_v17  ;;  %v203_v26 = vpack.c.bf16 %v91_v21, %v87_v20  ;;  %v86_v27 = vld [vmem:[%s1126_s1 + $0x1c0] sm:$0xff]  ;;  %v88_v29 = vld [vmem:[%s1126_s1 + $0x1d0] sm:$0xff]  ;;  %v205_v30 = vpack.c.bf16 %v93_v23, %v89_v22  ;;  %v95_v32 = vld [vmem:[%s1126_s1 + $0x208] sm:$0xff] }
  0x16   :  { %271 = vmatpush1.bf16.msra.mxu0 %v190_v63  ;;  %v90_v28 = vld [vmem:[%s1126_s1 + $0x1e0] sm:$0xff]  ;;  %v92_v31 = vld [vmem:[%s1126_s1 + $0x1f0] sm:$0xff]  ;;  %v99_v33 = vld [vmem:[%s1126_s1 + $0x228] sm:$0xff] }
  0x17   :  { %357 = vmatpush1.bf16.msra.mxu1 %v192_v0  ;;  %272 = vmatprep.subr.bf16.mxu0 %v195_v1  ;;  %v97_v34 = vld [vmem:[%s1126_s1 + $0x218] sm:$0xff]  ;;  %v202_v36 = vpack.c.bf16 %v90_v28, %v86_v27  ;;  %v204_v37 = vpack.c.bf16 %v92_v31, %v88_v29  ;;  %v207_v38 = vpack.c.bf16 %v99_v33, %v95_v32  ;;  %v94_v39 = vld [vmem:[%s1126_s1 + $0x200] sm:$0xff]  ;;  %v96_v41 = vld [vmem:[%s1126_s1 + $0x210] sm:$0xff] }
  0x18   :  { %358 = vmatprep.subr.bf16.mxu1 %v197_v6  ;;  %v101_v35 = vld [vmem:[%s1126_s1 + $0x238] sm:$0xff]  ;;  %v98_v40 = vld [vmem:[%s1126_s1 + $0x220] sm:$0xff]  ;;  %v100_v43 = vld [vmem:[%s1126_s1 + $0x230] sm:$0xff] }
  0x19   :  { %v209_v42 = vpack.c.bf16 %v101_v35, %v97_v34  ;;  %v103_v44 = vld [vmem:[%s1126_s1 + $0x248] sm:$0xff]  ;;  %v105_v46 = vld [vmem:[%s1126_s1 + $0x258] sm:$0xff]  ;;  %v206_v48 = vpack.c.bf16 %v98_v40, %v94_v39  ;;  %v208_v49 = vpack.c.bf16 %v100_v43, %v96_v41  ;;  %v102_v51 = vld [vmem:[%s1126_s1 + $0x240] sm:$0xff] }
  0x1a   :  { %273 = vmatpush1.bf16.msra.mxu0 %v194_v12  ;;  %v107_v45 = vld [vmem:[%s1126_s1 + $0x268] sm:$0xff]  ;;  %v109_v47 = vld [vmem:[%s1126_s1 + $0x278] sm:$0xff]  ;;  %v106_v52 = vld [vmem:[%s1126_s1 + $0x260] sm:$0xff] }
  0x1b   :  { %359 = vmatpush1.bf16.msra.mxu1 %v196_v13  ;;  %274 = vmatprep.subr.bf16.mxu0 %v199_v14  ;;  %v211_v50 = vpack.c.bf16 %v107_v45, %v103_v44  ;;  %v104_v53 = vld [vmem:[%s1126_s1 + $0x250] sm:$0xff]  ;;  %v213_v54 = vpack.c.bf16 %v109_v47, %v105_v46  ;;  %v111_v56 = vld [vmem:[%s1126_s1 + $0x288] sm:$0xff]  ;;  %v113_v58 = vld [vmem:[%s1126_s1 + $0x298] sm:$0xff]  ;;  %v210_v60 = vpack.c.bf16 %v106_v52, %v102_v51 }
  0x1c   :  { %360 = vmatprep.subr.bf16.mxu1 %v201_v18  ;;  %v108_v55 = vld [vmem:[%s1126_s1 + $0x270] sm:$0xff]  ;;  %v115_v57 = vld [vmem:[%s1126_s1 + $0x2a8] sm:$0xff]  ;;  %v117_v59 = vld [vmem:[%s1126_s1 + $0x2b8] sm:$0xff] }
  0x1d   :  { %v212_v61 = vpack.c.bf16 %v108_v55, %v104_v53  ;;  %v215_v62 = vpack.c.bf16 %v115_v57, %v111_v56  ;;  %v110_v63 = vld [vmem:[%s1126_s1 + $0x280] sm:$0xff]  ;;  %v112_v1 = vld [vmem:[%s1126_s1 + $0x290] sm:$0xff]  ;;  %v217_v2 = vpack.c.bf16 %v117_v59, %v113_v58  ;;  %v119_v5 = vld [vmem:[%s1126_s1 + $0x2c8] sm:$0xff] }
  0x1e   :  { %275 = vmatpush1.bf16.msra.mxu0 %v198_v24  ;;  %v114_v0 = vld [vmem:[%s1126_s1 + $0x2a0] sm:$0xff]  ;;  %v116_v4 = vld [vmem:[%s1126_s1 + $0x2b0] sm:$0xff]  ;;  %v123_v6 = vld [vmem:[%s1126_s1 + $0x2e8] sm:$0xff] }
  0x1f   :  { %361 = vmatpush1.bf16.msra.mxu1 %v200_v25  ;;  %276 = vmatprep.subr.bf16.mxu0 %v203_v26  ;;  %v121_v7 = vld [vmem:[%s1126_s1 + $0x2d8] sm:$0xff]  ;;  %v214_v9 = vpack.c.bf16 %v114_v0, %v110_v63  ;;  %v118_v10 = vld [vmem:[%s1126_s1 + $0x2c0] sm:$0xff]  ;;  %v216_v11 = vpack.c.bf16 %v116_v4, %v112_v1  ;;  %v219_v12 = vpack.c.bf16 %v123_v6, %v119_v5  ;;  %v120_v14 = vld [vmem:[%s1126_s1 + $0x2d0] sm:$0xff] }
  0x20   :  { %362 = vmatprep.subr.bf16.mxu1 %v205_v30  ;;  %v125_v8 = vld [vmem:[%s1126_s1 + $0x2f8] sm:$0xff]  ;;  %v122_v13 = vld [vmem:[%s1126_s1 + $0x2e0] sm:$0xff]  ;;  %v124_v15 = vld [vmem:[%s1126_s1 + $0x2f0] sm:$0xff] }
  0x21   :  { %v221_v16 = vpack.c.bf16 %v125_v8, %v121_v7  ;;  %v127_v17 = vld [vmem:[%s1126_s1 + $0x308] sm:$0xff]  ;;  %v129_v20 = vld [vmem:[%s1126_s1 + $0x318] sm:$0xff]  ;;  %v25_v22 = vld [vmem:[%s1127_s0 + $0x20] sm:$0xff]  ;;  %v218_v23 = vpack.c.bf16 %v122_v13, %v118_v10  ;;  %v220_v25 = vpack.c.bf16 %v124_v15, %v120_v14 }
  0x22   :  { %277 = vmatpush1.bf16.msra.mxu0 %v202_v36  ;;  %v131_v18 = vld [vmem:[%s1126_s1 + $0x328] sm:$0xff]  ;;  %v133_v21 = vld [vmem:[%s1126_s1 + $0x338] sm:$0xff]  ;;  %v126_v27 = vld [vmem:[%s1126_s1 + $0x300] sm:$0xff] }
  0x23   :  { %363 = vmatpush1.bf16.msra.mxu1 %v204_v37  ;;  %278 = vmatprep.subr.bf16.mxu0 %v207_v38  ;;  %v22_v19 = vld [vmem:[%s1127_s0 + $0x8] sm:$0xff]  ;;  %v223_v26 = vpack.c.bf16 %v131_v18, %v127_v17  ;;  %v130_v28 = vld [vmem:[%s1126_s1 + $0x320] sm:$0xff]  ;;  %v128_v29 = vld [vmem:[%s1126_s1 + $0x310] sm:$0xff]  ;;  %v225_v30 = vpack.c.bf16 %v133_v21, %v129_v20 }
  0x24   :  { %364 = vmatprep.subr.bf16.mxu1 %v209_v42  ;;  %v28_v24 = vpack.c.bf16 %v25_v22, %v22_v19  ;;  %v132_v31 = vld [vmem:[%s1126_s1 + $0x330] sm:$0xff]  ;;  %v135_v32 = vld [vmem:[%s1126_s1 + $0x348] sm:$0xff]  ;;  %v137_v34 = vld [vmem:[%s1126_s1 + $0x358] sm:$0xff]  ;;  %v222_v36 = vpack.c.bf16 %v130_v28, %v126_v27 }
  0x25   :  { %v139_v33 = vld [vmem:[%s1126_s1 + $0x368] sm:$0xff]  ;;  %v141_v35 = vld [vmem:[%s1126_s1 + $0x378] sm:$0xff]  ;;  %v134_v37 = vld [vmem:[%s1126_s1 + $0x340] sm:$0xff]  ;;  %v224_v38 = vpack.c.bf16 %v132_v31, %v128_v29 }
  0x26   :  { %279 = vmatpush1.bf16.msra.mxu0 %v206_v48  ;;  %294 = vmatprep.mubr.bf16.mxu0 %v28_v24  ;;  %v227_v39 = vpack.c.bf16 %v139_v33, %v135_v32  ;;  %v138_v40 = vld [vmem:[%s1126_s1 + $0x360] sm:$0xff]  ;;  %v136_v41 = vld [vmem:[%s1126_s1 + $0x350] sm:$0xff]  ;;  %v229_v43 = vpack.c.bf16 %v141_v35, %v137_v34  ;;  %v143_v44 = vld [vmem:[%s1126_s1 + $0x388] sm:$0xff] }
  0x27   :  { %365 = vmatpush1.bf16.msra.mxu1 %v208_v49  ;;  %280 = vmatprep.subr.bf16.mxu0 %v211_v50  ;;  %v140_v42 = vld [vmem:[%s1126_s1 + $0x370] sm:$0xff]  ;;  %v147_v45 = vld [vmem:[%s1126_s1 + $0x3a8] sm:$0xff]  ;;  %v246_v46 = vld [vmem:[%s1128_s2] sm:$0xff]  ;;  %v226_v49 = vpack.c.bf16 %v138_v40, %v134_v37 }
  0x28   :  { %366 = vmatprep.subr.bf16.mxu1 %v213_v54  ;;  %380 = vmatprep.mubr.bf16.mxu1 %v28_v24  ;;  %v145_v47 = vld [vmem:[%s1126_s1 + $0x398] sm:$0xff]  ;;  %v247_v50 = vld [vmem:[%s1128_s2 + $0x8] sm:$0xff]  ;;  %v228_v51 = vpack.c.bf16 %v140_v42, %v136_v41  ;;  %v231_v52 = vpack.c.bf16 %v147_v45, %v143_v44  ;;  %v142_v53 = vld [vmem:[%s1126_s1 + $0x380] sm:$0xff] }
  0x29   :  { %v149_v48 = vld [vmem:[%s1126_s1 + $0x3b8] sm:$0xff]  ;;  %250 = vperm.xlu0 %587, %v246_v46   ;;  %v146_v54 = vld [vmem:[%s1126_s1 + $0x3a0] sm:$0xff]  ;;  %v144_v55 = vld [vmem:[%s1126_s1 + $0x390] sm:$0xff] }
  0x2a   :  { %281 = vmatpush1.bf16.msra.mxu0 %v210_v60  ;;  %v233_v56 = vpack.c.bf16 %v149_v48, %v145_v47  ;;  %v148_v57 = vld [vmem:[%s1126_s1 + $0x3b0] sm:$0xff]  ;;  %v151_v58 = vld [vmem:[%s1126_s1 + $0x3c8] sm:$0xff]  ;;  %v153_v60 = vld [vmem:[%s1126_s1 + $0x3d8] sm:$0xff] }
  0x2b   :  { %367 = vmatpush1.bf16.msra.mxu1 %v212_v61  ;;  %282 = vmatprep.subr.bf16.mxu0 %v215_v62  ;;  %v155_v59 = vld [vmem:[%s1126_s1 + $0x3e8] sm:$0xff]  ;;  %v157_v61 = vld [vmem:[%s1126_s1 + $0x3f8] sm:$0xff]  ;;  %v230_v62 = vpack.c.bf16 %v146_v54, %v142_v53  ;;  %v232_v63 = vpack.c.bf16 %v148_v57, %v144_v55  ;;  %v150_v1 = vld [vmem:[%s1126_s1 + $0x3c0] sm:$0xff] }
  0x2c   :  { %368 = vmatprep.subr.bf16.mxu1 %v217_v2  ;;  %v235_v0 = vpack.c.bf16 %v155_v59, %v151_v58  ;;  %v154_v2 = vld [vmem:[%s1126_s1 + $0x3e0] sm:$0xff]  ;;  %v152_v4 = vld [vmem:[%s1126_s1 + $0x3d0] sm:$0xff]  ;;  %v237_v5 = vpack.c.bf16 %v157_v61, %v153_v60  ;;  %v159_v7 = vld [vmem:[%s1126_s1 + $0x408] sm:$0xff] }
  0x2d   :  { %255 = vperm.xlu0 %587, %v247_v50   ;;  %v156_v6 = vld [vmem:[%s1126_s1 + $0x3f0] sm:$0xff]  ;;  %v163_v8 = vld [vmem:[%s1126_s1 + $0x428] sm:$0xff]  ;;  %v165_v10 = vld [vmem:[%s1126_s1 + $0x438] sm:$0xff] }
  0x2e   :  { %283 = vmatpush1.bf16.msra.mxu0 %v214_v9  ;;  %v161_v9 = vld [vmem:[%s1126_s1 + $0x418] sm:$0xff]  ;;  %v236_v14 = vpack.c.bf16 %v156_v6, %v152_v4  ;;  %v239_v15 = vpack.c.bf16 %v163_v8, %v159_v7  ;;  %v162_v17 = vld [vmem:[%s1126_s1 + $0x420] sm:$0xff]  ;;  %v160_v18 = vld [vmem:[%s1126_s1 + $0x410] sm:$0xff] }
  0x2f   :  { %369 = vmatpush1.bf16.msra.mxu1 %v216_v11  ;;  %284 = vmatprep.subr.bf16.mxu0 %v219_v12  ;;  %v234_v11 = vpack.c.bf16 %v154_v2, %v150_v1  ;;  %v21_v12 = vld [vmem:[%s1127_s0] sm:$0xff]  ;;  %v24_v13 = vld [vmem:[%s1127_s0 + $0x18] sm:$0xff]  ;;  %v241_v19 = vpack.c.bf16 %v165_v10, %v161_v9  ;;  %v164_v20 = vld [vmem:[%s1126_s1 + $0x430] sm:$0xff] }
  0x30   :  { %370 = vmatprep.subr.bf16.mxu1 %v221_v16  ;;  %v158_v16 = vld [vmem:[%s1126_s1 + $0x400] sm:$0xff]  ;;  %v167_v21 = vld [vmem:[%s1126_s1 + $0x448] sm:$0xff]  ;;  %v169_v24 = vld [vmem:[%s1126_s1 + $0x458] sm:$0xff]  ;;  %v240_v27 = vpack.c.bf16 %v164_v20, %v160_v18 }
  0x31   :  { %v171_v22 = vld [vmem:[%s1126_s1 + $0x468] sm:$0xff]  ;;  %v166_v29 = vld [vmem:[%s1126_s1 + $0x440] sm:$0xff]  ;;  %v168_v32 = vld [vmem:[%s1126_s1 + $0x450] sm:$0xff] }
  0x32   :  { %285 = vmatpush1.bf16.msra.mxu0 %v218_v23  ;;  %v27_v23 = vpack.c.bf16 %v24_v13, %v21_v12  ;;  %v243_v28 = vpack.c.bf16 %v171_v22, %v167_v21  ;;  %v172_v33 = vld [vmem:[%s1126_s1 + $0x470] sm:$0xff]  ;;  %v26_v37 = vld [vmem:[%s1127_s0 + $0x28] sm:$0xff]  ;;  %v512_v2 = vld [vmem:[%s1130_s4] sm:$0xff] }
  0x33   :  { %371 = vmatpush1.bf16.msra.mxu1 %v220_v25  ;;  %286 = vmatprep.subr.bf16.mxu0 %v223_v26  ;;  %v173_v25 = vld [vmem:[%s1126_s1 + $0x478] sm:$0xff]  ;;  %v238_v26 = vpack.c.bf16 %v162_v17, %v158_v16  ;;  %v244_v35 = vpack.c.bf16 %v172_v33, %v168_v32  ;;  %v493_v1 = vld [vmem:[%s1129_s3 + $0x8] sm:$0xff] }
  0x34   :  { %372 = vmatprep.subr.bf16.mxu1 %v225_v30  ;;  %v170_v30 = vld [vmem:[%s1126_s1 + $0x460] sm:$0xff]  ;;  %v245_v31 = vpack.c.bf16 %v173_v25, %v169_v24  ;;  %v513_v32 = vld [vmem:[%s1130_s4 + $0x8] sm:$0xff] }
  0x35   :  { %v242_v34 = vpack.c.bf16 %v170_v30, %v166_v29 }
  0x36   :  { %287 = vmatpush1.bf16.msra.mxu0 %v222_v36  ;;  %v23_v36 = vld [vmem:[%s1127_s0 + $0x10] sm:$0xff] }
  0x37   :  { %373 = vmatpush1.bf16.msra.mxu1 %v224_v38  ;;  %288 = vmatprep.subr.bf16.mxu0 %v227_v39  ;;  %v29_v38 = vpack.c.bf16 %v26_v37, %v23_v36 }
  0x38   :  { %374 = vmatprep.subr.bf16.mxu1 %v229_v43 }
  0x3a   :  { %289 = vmatpush1.bf16.msra.mxu0 %v226_v49 }
  0x3b   :  { %375 = vmatpush1.bf16.msra.mxu1 %v228_v51  ;;  %290 = vmatprep.subr.bf16.mxu0 %v231_v52 }
  0x3c   :  { %376 = vmatprep.subr.bf16.mxu1 %v233_v56 }
  0x3e   :  { %291 = vmatpush1.bf16.msra.mxu0 %v230_v62 }
  0x3f   :  { %377 = vmatpush1.bf16.msra.mxu1 %v232_v63  ;;  %292 = vmatprep.subr.bf16.mxu0 %v235_v0  ;;  %v492_v0 = vld [vmem:[%s1129_s3] sm:$0xff] }
  0x40   :  { %378 = vmatprep.subr.bf16.mxu1 %v237_v5 }
  0x42   :  { %293 = vmatpush1.bf16.msra.mxu0 %v234_v11 }
  0x43   :  { %379 = vmatpush1.bf16.msra.mxu1 %v236_v14  ;;  %305 = vmatprep.subr.bf16.mxu0 %v239_v15 }
  0x44   :  { %391 = vmatprep.subr.bf16.mxu1 %v241_v19 }
  0x45   :  { %295 = vmatmul.mubr.bf16.vlgmr.msra.gmra.mrb[0].mxu0 %v27_v23 }
  0x46   :  { %381 = vmatmul.mubr.bf16.vlgmr.msra.gmra.mrb[0].mxu1 %v27_v23  ;;  %306 = vmatpush1.bf16.msra.mxu0 %v238_v26 }
  0x47   :  { %392 = vmatpush1.bf16.msra.mxu1 %v240_v27  ;;  %307 = vmatprep.subr.bf16.mxu0 %v243_v28 }
  0x48   :  { %393 = vmatprep.subr.bf16.mxu1 %v245_v31  ;;  %337 = vmatprep.mubr.bf16.mxu0 %v593_v3 }
  0x49   :  { %423 = vmatprep.mubr.bf16.mxu1 %v593_v3 }
  0x4a   :  { %308 = vmatpush1.bf16.msra.mxu0 %v242_v34 }
  0x4b   :  { %394 = vmatpush1.bf16.msra.mxu1 %v244_v35 }
  0x51   :  { %568 = vmatmul.mubr.msk.bf16.vlgmr.msra.gmra.mrb[0].mxu0 %vm258_vm0, %v29_v38 }
  0x52   :  { %569 = vmatmul.mubr.msk.bf16.vlgmr.msra.gmra.mrb[0].mxu1 %vm258_vm0, %v29_v38 }
  0xa8   :  { %v251_v39 = vpop.permute.xlu0 %250 }
  0xac   :  { %v256_v41 = vpop.permute.xlu0 %255 }
 0x124   :  { %v339_v40 = vpop.f32.mrb[0].mxu0 }
 0x125   :  { %v570_v42 = vadd.f32 %v339_v40, %v251_v39  ;;  %v425_v43 = vpop.f32.mrb[0].mxu1  ;;  %v341_v3 = vpop.f32.mrb[1].mxu0 }
 0x126   :  { %v571_v44 = vadd.f32 %v341_v3, %v251_v39  ;;  %v427_v45 = vpop.f32.mrb[1].mxu1  ;;  %v343_v46 = vpop.f32.mrb[2].mxu0  ;;  %v574_v51 = vadd.f32 %v425_v43, %v251_v39 }
 0x127   :  { %v575_v47 = vadd.f32 %v427_v45, %v251_v39  ;;  %v572_v48 = vadd.f32 %v343_v46, %v256_v41  ;;  %v429_v49 = vpop.f32.mrb[2].mxu1  ;;  %v345_v50 = vpop.f32.mrb[3].mxu0 }
 0x128   :  { %v434_v52 = vadd.f32 %v571_v44, %v570_v42  ;;  %v573_v53 = vadd.f32 %v345_v50, %v256_v41  ;;  %v431_v54 = vpop.f32.mrb[3].mxu1  ;;  %v576_v55 = vadd.f32 %v429_v49, %v256_v41 }
 0x129   :  { %v577_v58 = vadd.f32 %v431_v54, %v256_v41  ;;  %v437_v59 = vsel %vm436_vm1, %v575_v47, 0.0 }
 0x12a   :  { %v441_v56 = vadd.f32 %v573_v53, %v572_v48  ;;  %v435_v57 = vadd.f32 %v574_v51, %v434_v52 }
 0x12b   :  { %v443_v62 = vsel %vm436_vm1, %v577_v58, 0.0 }
 0x12c   :  { %v438_v60 = vadd.f32 %v437_v59, %v435_v57  ;;  %v442_v61 = vadd.f32 %v576_v55, %v441_v56 }
 0x12e   :  { %439 = vadd.xlane.f32.xlu1 %v438_v60  ;;  %v444_v63 = vadd.f32 %v443_v62, %v442_v61 }
 0x132   :  { %445 = vadd.xlane.f32.xlu1 %v444_v63 }
 0x143   :  { %496 = vperm.xlu1 %588, %v492_v0  }
 0x147   :  { %501 = vperm.xlu1 %588, %v493_v1  }
 0x14b   :  { %516 = vperm.xlu1 %588, %v512_v2  }
 0x1bb   :  { %v440_v4 = vpop.xlane.xlu1 %439 }
 0x1bc   :  { %v448_v5 = vmul.f32 0.0025510204, %v440_v4 }
 0x1be   :  { %v450_v6 = vsub.f32 %v570_v42, %v448_v5  ;;  %v451_v7 = vsub.f32 %v571_v44, %v448_v5  ;;  %v452_v8 = vsub.f32 %v574_v51, %v448_v5  ;;  %v453_v9 = vsub.f32 %v575_v47, %v448_v5 }
 0x1bf   :  { %v446_v10 = vpop.xlane.xlu1 %445 }
 0x1c0   :  { %v449_v11 = vmul.f32 0.0025510204, %v446_v10  ;;  %v458_v12 = vmul.f32 %v450_v6, %v450_v6  ;;  %v459_v13 = vmul.f32 %v451_v7, %v451_v7  ;;  %v460_v14 = vmul.f32 %v452_v8, %v452_v8 }
 0x1c1   :  { %v461_v15 = vmul.f32 %v453_v9, %v453_v9 }
 0x1c2   :  { %v454_v16 = vsub.f32 %v572_v48, %v449_v11  ;;  %v455_v17 = vsub.f32 %v573_v53, %v449_v11  ;;  %v466_v18 = vadd.f32 %v459_v13, %v458_v12  ;;  %v456_v19 = vsub.f32 %v576_v55, %v449_v11 }
 0x1c3   :  { %v457_v20 = vsub.f32 %v577_v58, %v449_v11  ;;  %v468_v24 = vsel %vm436_vm1, %v461_v15, 0.0  ;;  %v497_v33 = vpop.permute.xlu1 %496 }
 0x1c4   :  { %v467_v21 = vadd.f32 %v466_v18, %v460_v14  ;;  %v462_v22 = vmul.f32 %v454_v16, %v454_v16  ;;  %v463_v23 = vmul.f32 %v455_v17, %v455_v17  ;;  %v464_v27 = vmul.f32 %v456_v19, %v456_v19 }
 0x1c5   :  { %v465_v25 = vmul.f32 %v457_v20, %v457_v20 }
 0x1c6   :  { %v469_v26 = vadd.f32 %v468_v24, %v467_v21  ;;  %v472_v28 = vadd.f32 %v463_v23, %v462_v22 }
 0x1c7   :  { %v474_v30 = vsel %vm436_vm1, %v465_v25, 0.0  ;;  %v502_v34 = vpop.permute.xlu1 %501 }
 0x1c8   :  { %470 = vadd.xlane.f32.xlu0 %v469_v26  ;;  %v473_v29 = vadd.f32 %v472_v28, %v464_v27 }
 0x1ca   :  { %v475_v31 = vadd.f32 %v474_v30, %v473_v29 }
 0x1cb   :  { %v517_v35 = vpop.permute.xlu1 %516 }
 0x1cc   :  { %476 = vadd.xlane.f32.xlu1 %v475_v31 }
 0x1dd   :  { %521 = vperm.xlu1 %588, %v513_v32  }
 0x255   :  { %v471_v36 = vpop.xlane.xlu0 %470 }
 0x256   :  { %v478_v37 = vmul.f32 0.0025510204, %v471_v36 }
 0x258   :  { %v480_v38 = vadd.f32 1e-05, %v478_v37 }
 0x259   :  { %v477_v39 = vpop.xlane.xlu1 %476 }
 0x25a   :  { %589 = vrsqrt.f32 %v480_v38  ;;  %v479_v40 = vmul.f32 0.0025510204, %v477_v39 }
 0x25c   :  { %v481_v41 = vadd.f32 1e-05, %v479_v40 }
 0x25d   :  { %v522_v63 = vpop.permute.xlu1 %521 }
 0x25e   :  { %591 = vrsqrt.f32 %v481_v41 }
 0x264   :  { %v590_v42 = vpop.eup %589 }
 0x265   :  { %v484_v43 = vmul.f32 %v590_v42, %v450_v6  ;;  %v485_v3 = vmul.f32 %v590_v42, %v451_v7  ;;  %v486_v44 = vmul.f32 %v590_v42, %v452_v8  ;;  %v487_v45 = vmul.f32 %v590_v42, %v453_v9 }
 0x267   :  { %v504_v46 = vmul.f32 %v497_v33, %v484_v43  ;;  %v505_v47 = vmul.f32 %v497_v33, %v485_v3  ;;  %v506_v48 = vmul.f32 %v497_v33, %v486_v44  ;;  %v507_v49 = vmul.f32 %v497_v33, %v487_v45 }
 0x268   :  { %v592_v50 = vpop.eup %591 }
 0x269   :  { %v488_v51 = vmul.f32 %v592_v50, %v454_v16  ;;  %v489_v52 = vmul.f32 %v592_v50, %v455_v17  ;;  %v490_v53 = vmul.f32 %v592_v50, %v456_v19  ;;  %v491_v54 = vmul.f32 %v592_v50, %v457_v20 }
 0x26a   :  { %v524_v55 = vadd.f32 %v517_v35, %v504_v46  ;;  %v525_v56 = vadd.f32 %v517_v35, %v505_v47  ;;  %v526_v57 = vadd.f32 %v517_v35, %v506_v48  ;;  %v527_v58 = vadd.f32 %v517_v35, %v507_v49 }
 0x26b   :  { %v508_v59 = vmul.f32 %v502_v34, %v488_v51  ;;  %v509_v60 = vmul.f32 %v502_v34, %v489_v52  ;;  %v510_v61 = vmul.f32 %v502_v34, %v490_v53  ;;  %v511_v62 = vmul.f32 %v502_v34, %v491_v54 }
 0x26c   :  { %vm532_vm2 = vcmp.ge.f32.partialorder %v524_v55, 0.0  ;;  %vm533_vm3 = vcmp.ge.f32.partialorder %v525_v56, 0.0  ;;  %vm534_vm4 = vcmp.ge.f32.partialorder %v526_v57, 0.0  ;;  %vm535_vm5 = vcmp.ge.f32.partialorder %v527_v58, 0.0 }
 0x26d   :  { %v540_v0 = vmul.f32 0.01, %v524_v55  ;;  %v541_v1 = vmul.f32 0.01, %v525_v56  ;;  %v542_v2 = vmul.f32 0.01, %v526_v57  ;;  %v528_v4 = vadd.f32 %v522_v63, %v508_v59 }
 0x26e   :  { %v543_v5 = vmul.f32 0.01, %v527_v58  ;;  %v529_v6 = vadd.f32 %v522_v63, %v509_v60  ;;  %v530_v7 = vadd.f32 %v522_v63, %v510_v61  ;;  %v531_v8 = vadd.f32 %v522_v63, %v511_v62 }
 0x26f   :  { %v548_v9 = vsel %vm532_vm2, %v524_v55, %v540_v0  ;;  %v549_v10 = vsel %vm533_vm3, %v525_v56, %v541_v1  ;;  %v550_v11 = vsel %vm534_vm4, %v526_v57, %v542_v2  ;;  %vm536_vm6 = vcmp.ge.f32.partialorder %v528_v4, 0.0 }
 0x270   :  { %v551_v12 = vsel %vm535_vm5, %v527_v58, %v543_v5  ;;  %556 = vst [vmem:[%s1131_s5] sm:$0xff] %v548_v9  ;;  %557 = vst [vmem:[%s1131_s5 + $0x8] sm:$0xff] %v549_v10  ;;  %vm537_vm7 = vcmp.ge.f32.partialorder %v529_v6, 0.0  ;;  %vm538_vm8 = vcmp.ge.f32.partialorder %v530_v7, 0.0  ;;  %vm539_vm9 = vcmp.ge.f32.partialorder %v531_v8, 0.0 }
 0x271   :  { %558 = vst [vmem:[%s1131_s5 + $0x10] sm:$0xff] %v550_v11  ;;  %559 = vst.msk [vmem:[%s1131_s5 + $0x18] sm:$0xff] %vm436_vm1, %v551_v12  ;;  %v544_v13 = vmul.f32 0.01, %v528_v4  ;;  %v545_v14 = vmul.f32 0.01, %v529_v6 }
 0x272   :  { %v546_v15 = vmul.f32 0.01, %v530_v7  ;;  %v547_v16 = vmul.f32 0.01, %v531_v8 }
 0x273   :  { %v552_v17 = vsel %vm536_vm6, %v528_v4, %v544_v13  ;;  %v553_v18 = vsel %vm537_vm7, %v529_v6, %v545_v14 }
 0x274   :  { %v554_v19 = vsel %vm538_vm8, %v530_v7, %v546_v15  ;;  %v555_v20 = vsel %vm539_vm9, %v531_v8, %v547_v16  ;;  %560 = vst [vmem:[%s1131_s5 + $0x20] sm:$0xff] %v552_v17  ;;  %561 = vst [vmem:[%s1131_s5 + $0x28] sm:$0xff] %v553_v18 }
 0x275   :  { %562 = vst [vmem:[%s1131_s5 + $0x30] sm:$0xff] %v554_v19  ;;  %563 = vst.msk [vmem:[%s1131_s5 + $0x38] sm:$0xff] %vm436_vm1, %v555_v20 }

// kernel: convae_forward.12
= control target key start
LH: loop header
LB: loop body
LE: loop exit
PB: predicated region body
PF: predicated region fallthrough
CT: control target
= control target key end

     0   :  { %v853_v3 = vmov 0   ;;  %vm382_vm0 = vcmask 130048   ;;  %vm683_vm1 = vcmask 261120   ;;  %s1692_s1 = inlined_call_operand.vmem [shape: f32[144,1568], index: 1, kind: input, shape index: {}]   ;;  %s1693_s0 = inlined_call_operand.vmem [shape: f32[8,144], index: 0, kind: input, shape index: {}]   ;;  %s1694_s2 = inlined_call_operand.vmem [shape: f32[8,1], index: 2, kind: input, shape index: {}]   ;;  %s1695_s3 = inlined_call_operand.vmem [shape: f32[8,1], index: 3, kind: input, shape index: {}]   ;;  %s1696_s4 = inlined_call_operand.vmem [shape: f32[8,1], index: 4, kind: input, shape index: {}]   ;;  %s1697_s5 = inlined_call_operand.vmem [shape: f32[8,1568], index: 5, kind: output, shape index: {}]  }
   0x1   :  { %v26_v0 = vld [vmem:[%s1692_s1 + $0x8] sm:$0xff]  ;;  %v39_v1 = vld [vmem:[%s1692_s1 + $0x70] sm:$0xff]  ;;  %v25_v2 = vld [vmem:[%s1692_s1] sm:$0xff]  ;;  %849 = vset.pattern.permute.xlu0 %v853_v3  ;;  %850 = vset.pattern.permute.xlu1 %v853_v3 }
   0x2   :  { %v260_v4 = vpack.c.bf16 %v39_v1, %v26_v0  ;;  %v38_v5 = vld [vmem:[%s1692_s1 + $0x68] sm:$0xff]  ;;  %v28_v6 = vld [vmem:[%s1692_s1 + $0x18] sm:$0xff]  ;;  %v41_v7 = vld [vmem:[%s1692_s1 + $0x80] sm:$0xff] }
   0x3   :  { %v259_v8 = vpack.c.bf16 %v38_v5, %v25_v2  ;;  %v262_v9 = vpack.c.bf16 %v41_v7, %v28_v6  ;;  %v52_v10 = vld [vmem:[%s1692_s1 + $0xd8] sm:$0xff]  ;;  %v65_v11 = vld [vmem:[%s1692_s1 + $0x140] sm:$0xff]  ;;  %v27_v12 = vld [vmem:[%s1692_s1 + $0x10] sm:$0xff] }
   0x4   :  { %386 = vmatprep.subr.bf16.mxu0 %v260_v4  ;;  %v273_v13 = vpack.c.bf16 %v65_v11, %v52_v10  ;;  %v40_v14 = vld [vmem:[%s1692_s1 + $0x78] sm:$0xff]  ;;  %v51_v15 = vld [vmem:[%s1692_s1 + $0xd0] sm:$0xff]  ;;  %v54_v19 = vld [vmem:[%s1692_s1 + $0xe8] sm:$0xff] }
   0x5   :  { %v64_v16 = vld [vmem:[%s1692_s1 + $0x138] sm:$0xff]  ;;  %387 = vmatpush1.bf16.msra.mxu0 %v259_v8  ;;  %427 = vmatprep.subr.bf16.mxu1 %v262_v9  ;;  %v261_v17 = vpack.c.bf16 %v40_v14, %v27_v12  ;;  %v67_v20 = vld [vmem:[%s1692_s1 + $0x150] sm:$0xff]  ;;  %v78_v21 = vld [vmem:[%s1692_s1 + $0x1a8] sm:$0xff] }
   0x6   :  { %v272_v18 = vpack.c.bf16 %v64_v16, %v51_v15  ;;  %388 = vmatprep.subr.bf16.mxu0 %v273_v13  ;;  %v275_v22 = vpack.c.bf16 %v67_v20, %v54_v19  ;;  %v91_v23 = vld [vmem:[%s1692_s1 + $0x210] sm:$0xff]  ;;  %v53_v24 = vld [vmem:[%s1692_s1 + $0xe0] sm:$0xff]  ;;  %v66_v25 = vld [vmem:[%s1692_s1 + $0x148] sm:$0xff] }
   0x7   :  { %428 = vmatpush1.bf16.msra.mxu1 %v261_v17  ;;  %v286_v26 = vpack.c.bf16 %v91_v23, %v78_v21  ;;  %v274_v27 = vpack.c.bf16 %v66_v25, %v53_v24  ;;  %v77_v28 = vld [vmem:[%s1692_s1 + $0x1a0] sm:$0xff]  ;;  %v90_v29 = vld [vmem:[%s1692_s1 + $0x208] sm:$0xff]  ;;  %v80_v30 = vld [vmem:[%s1692_s1 + $0x1b8] sm:$0xff] }
   0x8   :  { %429 = vmatprep.subr.bf16.mxu1 %v275_v22  ;;  %v93_v31 = vld [vmem:[%s1692_s1 + $0x220] sm:$0xff]  ;;  %v104_v32 = vld [vmem:[%s1692_s1 + $0x278] sm:$0xff]  ;;  %v285_v34 = vpack.c.bf16 %v90_v29, %v77_v28  ;;  %v79_v36 = vld [vmem:[%s1692_s1 + $0x1b0] sm:$0xff] }
   0x9   :  { %v117_v33 = vld [vmem:[%s1692_s1 + $0x2e0] sm:$0xff]  ;;  %389 = vmatpush1.bf16.msra.mxu0 %v272_v18  ;;  %v288_v35 = vpack.c.bf16 %v93_v31, %v80_v30  ;;  %v92_v37 = vld [vmem:[%s1692_s1 + $0x218] sm:$0xff]  ;;  %v103_v38 = vld [vmem:[%s1692_s1 + $0x270] sm:$0xff] }
   0xa   :  { %390 = vmatprep.subr.bf16.mxu0 %v286_v26  ;;  %v299_v39 = vpack.c.bf16 %v117_v33, %v104_v32  ;;  %v116_v40 = vld [vmem:[%s1692_s1 + $0x2d8] sm:$0xff]  ;;  %v106_v41 = vld [vmem:[%s1692_s1 + $0x288] sm:$0xff]  ;;  %v119_v42 = vld [vmem:[%s1692_s1 + $0x2f0] sm:$0xff]  ;;  %v287_v43 = vpack.c.bf16 %v92_v37, %v79_v36 }
   0xb   :  { %430 = vmatpush1.bf16.msra.mxu1 %v274_v27  ;;  %v130_v44 = vld [vmem:[%s1692_s1 + $0x348] sm:$0xff]  ;;  %v143_v45 = vld [vmem:[%s1692_s1 + $0x3b0] sm:$0xff]  ;;  %v301_v46 = vpack.c.bf16 %v119_v42, %v106_v41  ;;  %v105_v47 = vld [vmem:[%s1692_s1 + $0x280] sm:$0xff]  ;;  %v298_v49 = vpack.c.bf16 %v116_v40, %v103_v38 }
   0xc   :  { %431 = vmatprep.subr.bf16.mxu1 %v288_v35  ;;  %v118_v48 = vld [vmem:[%s1692_s1 + $0x2e8] sm:$0xff]  ;;  %v132_v50 = vld [vmem:[%s1692_s1 + $0x358] sm:$0xff]  ;;  %v145_v51 = vld [vmem:[%s1692_s1 + $0x3c0] sm:$0xff]  ;;  %v312_v52 = vpack.c.bf16 %v143_v45, %v130_v44 }
   0xd   :  { %391 = vmatpush1.bf16.msra.mxu0 %v285_v34  ;;  %v129_v53 = vld [vmem:[%s1692_s1 + $0x340] sm:$0xff]  ;;  %v142_v54 = vld [vmem:[%s1692_s1 + $0x3a8] sm:$0xff]  ;;  %v300_v55 = vpack.c.bf16 %v118_v48, %v105_v47  ;;  %v156_v56 = vld [vmem:[%s1692_s1 + $0x418] sm:$0xff]  ;;  %v314_v58 = vpack.c.bf16 %v145_v51, %v132_v50 }
   0xe   :  { %392 = vmatprep.subr.bf16.mxu0 %v299_v39  ;;  %v169_v57 = vld [vmem:[%s1692_s1 + $0x480] sm:$0xff]  ;;  %v131_v59 = vld [vmem:[%s1692_s1 + $0x350] sm:$0xff]  ;;  %v144_v60 = vld [vmem:[%s1692_s1 + $0x3b8] sm:$0xff]  ;;  %v311_v61 = vpack.c.bf16 %v142_v54, %v129_v53 }
   0xf   :  { %432 = vmatpush1.bf16.msra.mxu1 %v287_v43  ;;  %v158_v62 = vld [vmem:[%s1692_s1 + $0x428] sm:$0xff]  ;;  %v171_v63 = vld [vmem:[%s1692_s1 + $0x490] sm:$0xff]  ;;  %v325_v0 = vpack.c.bf16 %v169_v57, %v156_v56  ;;  %v168_v2 = vld [vmem:[%s1692_s1 + $0x478] sm:$0xff]  ;;  %v313_v4 = vpack.c.bf16 %v144_v60, %v131_v59 }
  0x10   :  { %433 = vmatprep.subr.bf16.mxu1 %v301_v46  ;;  %v155_v1 = vld [vmem:[%s1692_s1 + $0x410] sm:$0xff]  ;;  %v182_v5 = vld [vmem:[%s1692_s1 + $0x4e8] sm:$0xff]  ;;  %v327_v7 = vpack.c.bf16 %v171_v63, %v158_v62  ;;  %v157_v8 = vld [vmem:[%s1692_s1 + $0x420] sm:$0xff] }
  0x11   :  { %393 = vmatpush1.bf16.msra.mxu0 %v298_v49  ;;  %v195_v6 = vld [vmem:[%s1692_s1 + $0x550] sm:$0xff]  ;;  %v170_v9 = vld [vmem:[%s1692_s1 + $0x488] sm:$0xff]  ;;  %v324_v10 = vpack.c.bf16 %v168_v2, %v155_v1  ;;  %v184_v11 = vld [vmem:[%s1692_s1 + $0x4f8] sm:$0xff] }
  0x12   :  { %394 = vmatprep.subr.bf16.mxu0 %v312_v52  ;;  %v197_v12 = vld [vmem:[%s1692_s1 + $0x560] sm:$0xff]  ;;  %v338_v13 = vpack.c.bf16 %v195_v6, %v182_v5  ;;  %v194_v15 = vld [vmem:[%s1692_s1 + $0x548] sm:$0xff]  ;;  %v326_v16 = vpack.c.bf16 %v170_v9, %v157_v8  ;;  %v208_v17 = vld [vmem:[%s1692_s1 + $0x5b8] sm:$0xff] }
  0x13   :  { %434 = vmatpush1.bf16.msra.mxu1 %v300_v55  ;;  %v181_v14 = vld [vmem:[%s1692_s1 + $0x4e0] sm:$0xff]  ;;  %v22_v19 = vld [vmem:[%s1693_s0 + $0x8] sm:$0xff]  ;;  %v340_v20 = vpack.c.bf16 %v197_v12, %v184_v11  ;;  %v183_v21 = vld [vmem:[%s1692_s1 + $0x4f0] sm:$0xff] }
  0x14   :  { %435 = vmatprep.subr.bf16.mxu1 %v314_v58  ;;  %v221_v18 = vld [vmem:[%s1692_s1 + $0x620] sm:$0xff]  ;;  %v196_v22 = vld [vmem:[%s1692_s1 + $0x558] sm:$0xff]  ;;  %v1063_v23 = vpack.c.bf16 %v22_v19, %v22_v19  ;;  %v337_v24 = vpack.c.bf16 %v194_v15, %v181_v14  ;;  %v210_v25 = vld [vmem:[%s1692_s1 + $0x5c8] sm:$0xff] }
  0x15   :  { %395 = vmatpush1.bf16.msra.mxu0 %v311_v61  ;;  %v223_v26 = vld [vmem:[%s1692_s1 + $0x630] sm:$0xff]  ;;  %v351_v27 = vpack.c.bf16 %v221_v18, %v208_v17  ;;  %v220_v29 = vld [vmem:[%s1692_s1 + $0x618] sm:$0xff]  ;;  %v339_v30 = vpack.c.bf16 %v196_v22, %v183_v21  ;;  %v234_v31 = vld [vmem:[%s1692_s1 + $0x688] sm:$0xff] }
  0x16   :  { %396 = vmatprep.subr.bf16.mxu0 %v325_v0  ;;  %v207_v28 = vld [vmem:[%s1692_s1 + $0x5b0] sm:$0xff]  ;;  %841 = vmatprep.mubr.msk.bf16.mxu0 %vm382_vm0, %v1063_v23  ;;  %v353_v33 = vpack.c.bf16 %v223_v26, %v210_v25  ;;  %v209_v34 = vld [vmem:[%s1692_s1 + $0x5c0] sm:$0xff]  ;;  %v222_v35 = vld [vmem:[%s1692_s1 + $0x628] sm:$0xff] }
  0x17   :  { %436 = vmatpush1.bf16.msra.mxu1 %v313_v4  ;;  %v247_v32 = vld [vmem:[%s1692_s1 + $0x6f0] sm:$0xff]  ;;  %842 = vmatprep.mubr.msk.bf16.mxu1 %vm382_vm0, %v1063_v23  ;;  %v350_v36 = vpack.c.bf16 %v220_v29, %v207_v28  ;;  %v236_v37 = vld [vmem:[%s1692_s1 + $0x698] sm:$0xff]  ;;  %v249_v38 = vld [vmem:[%s1692_s1 + $0x700] sm:$0xff]  ;;  %v352_v42 = vpack.c.bf16 %v222_v35, %v209_v34 }
  0x18   :  { %437 = vmatprep.subr.bf16.mxu1 %v327_v7  ;;  %v364_v39 = vpack.c.bf16 %v247_v32, %v234_v31  ;;  %v233_v40 = vld [vmem:[%s1692_s1 + $0x680] sm:$0xff]  ;;  %v246_v41 = vld [vmem:[%s1692_s1 + $0x6e8] sm:$0xff]  ;;  %v43_v44 = vld [vmem:[%s1692_s1 + $0x90] sm:$0xff]  ;;  %v366_v45 = vpack.c.bf16 %v249_v38, %v236_v37 }
  0x19   :  { %397 = vmatpush1.bf16.msra.mxu0 %v324_v10  ;;  %v30_v43 = vld [vmem:[%s1692_s1 + $0x28] sm:$0xff]  ;;  %v235_v46 = vld [vmem:[%s1692_s1 + $0x690] sm:$0xff]  ;;  %v248_v47 = vld [vmem:[%s1692_s1 + $0x6f8] sm:$0xff]  ;;  %v363_v48 = vpack.c.bf16 %v246_v41, %v233_v40 }
  0x1a   :  { %398 = vmatprep.subr.bf16.mxu0 %v338_v13  ;;  %v21_v49 = vld [vmem:[%s1693_s0] sm:$0xff]  ;;  %v32_v50 = vld [vmem:[%s1692_s1 + $0x38] sm:$0xff]  ;;  %v264_v52 = vpack.c.bf16 %v43_v44, %v30_v43  ;;  %v42_v54 = vld [vmem:[%s1692_s1 + $0x88] sm:$0xff]  ;;  %v365_v55 = vpack.c.bf16 %v248_v47, %v235_v46 }
  0x1b   :  { %438 = vmatpush1.bf16.msra.mxu1 %v326_v16  ;;  %v45_v51 = vld [vmem:[%s1692_s1 + $0xa0] sm:$0xff]  ;;  %v56_v56 = vld [vmem:[%s1692_s1 + $0xf8] sm:$0xff]  ;;  %v1138_v58 = vpack.c.bf16 %v21_v49, %v21_v49  ;;  %v31_v60 = vld [vmem:[%s1692_s1 + $0x30] sm:$0xff] }
  0x1c   :  { %439 = vmatprep.subr.bf16.mxu1 %v340_v20  ;;  %v29_v53 = vld [vmem:[%s1692_s1 + $0x20] sm:$0xff]  ;;  %v266_v59 = vpack.c.bf16 %v45_v51, %v32_v50  ;;  %v44_v61 = vld [vmem:[%s1692_s1 + $0x98] sm:$0xff]  ;;  %v58_v63 = vld [vmem:[%s1692_s1 + $0x108] sm:$0xff] }
  0x1d   :  { %399 = vmatpush1.bf16.msra.mxu0 %v337_v24  ;;  %v69_v57 = vld [vmem:[%s1692_s1 + $0x160] sm:$0xff]  ;;  %v263_v62 = vpack.c.bf16 %v42_v54, %v29_v53  ;;  %v71_v0 = vld [vmem:[%s1692_s1 + $0x170] sm:$0xff]  ;;  %v68_v4 = vld [vmem:[%s1692_s1 + $0x158] sm:$0xff]  ;;  %v265_v5 = vpack.c.bf16 %v44_v61, %v31_v60 }
  0x1e   :  { %400 = vmatprep.subr.bf16.mxu0 %v351_v27  ;;  %v277_v1 = vpack.c.bf16 %v69_v57, %v56_v56  ;;  %v55_v2 = vld [vmem:[%s1692_s1 + $0xf0] sm:$0xff]  ;;  %v82_v6 = vld [vmem:[%s1692_s1 + $0x1c8] sm:$0xff]  ;;  %v279_v8 = vpack.c.bf16 %v71_v0, %v58_v63  ;;  %v57_v9 = vld [vmem:[%s1692_s1 + $0x100] sm:$0xff] }
  0x1f   :  { %440 = vmatpush1.bf16.msra.mxu1 %v339_v30  ;;  %v95_v7 = vld [vmem:[%s1692_s1 + $0x230] sm:$0xff]  ;;  %v70_v10 = vld [vmem:[%s1692_s1 + $0x168] sm:$0xff]  ;;  %v276_v11 = vpack.c.bf16 %v68_v4, %v55_v2  ;;  %v84_v12 = vld [vmem:[%s1692_s1 + $0x1d8] sm:$0xff] }
  0x20   :  { %441 = vmatprep.subr.bf16.mxu1 %v353_v33  ;;  %v97_v13 = vld [vmem:[%s1692_s1 + $0x240] sm:$0xff]  ;;  %v290_v14 = vpack.c.bf16 %v95_v7, %v82_v6  ;;  %v94_v16 = vld [vmem:[%s1692_s1 + $0x228] sm:$0xff]  ;;  %v278_v17 = vpack.c.bf16 %v70_v10, %v57_v9  ;;  %v108_v18 = vld [vmem:[%s1692_s1 + $0x298] sm:$0xff] }
  0x21   :  { %401 = vmatpush1.bf16.msra.mxu0 %v350_v36  ;;  %v81_v15 = vld [vmem:[%s1692_s1 + $0x1c0] sm:$0xff]  ;;  %v292_v20 = vpack.c.bf16 %v97_v13, %v84_v12  ;;  %v83_v21 = vld [vmem:[%s1692_s1 + $0x1d0] sm:$0xff]  ;;  %v96_v22 = vld [vmem:[%s1692_s1 + $0x238] sm:$0xff] }
  0x22   :  { %402 = vmatprep.subr.bf16.mxu0 %v364_v39  ;;  %v121_v19 = vld [vmem:[%s1692_s1 + $0x300] sm:$0xff]  ;;  %v289_v24 = vpack.c.bf16 %v94_v16, %v81_v15  ;;  %v110_v25 = vld [vmem:[%s1692_s1 + $0x2a8] sm:$0xff]  ;;  %v123_v26 = vld [vmem:[%s1692_s1 + $0x310] sm:$0xff]  ;;  %v291_v30 = vpack.c.bf16 %v96_v22, %v83_v21 }
  0x23   :  { %442 = vmatpush1.bf16.msra.mxu1 %v352_v42  ;;  %v303_v27 = vpack.c.bf16 %v121_v19, %v108_v18  ;;  %v107_v28 = vld [vmem:[%s1692_s1 + $0x290] sm:$0xff]  ;;  %v120_v29 = vld [vmem:[%s1692_s1 + $0x2f8] sm:$0xff]  ;;  %v134_v31 = vld [vmem:[%s1692_s1 + $0x368] sm:$0xff]  ;;  %v305_v33 = vpack.c.bf16 %v123_v26, %v110_v25 }
  0x24   :  { %443 = vmatprep.subr.bf16.mxu1 %v366_v45  ;;  %v147_v32 = vld [vmem:[%s1692_s1 + $0x3d0] sm:$0xff]  ;;  %v109_v34 = vld [vmem:[%s1692_s1 + $0x2a0] sm:$0xff]  ;;  %v122_v35 = vld [vmem:[%s1692_s1 + $0x308] sm:$0xff]  ;;  %v302_v36 = vpack.c.bf16 %v120_v29, %v107_v28 }
  0x25   :  { %403 = vmatpush1.bf16.msra.mxu0 %v363_v48  ;;  %v136_v37 = vld [vmem:[%s1692_s1 + $0x378] sm:$0xff]  ;;  %v149_v38 = vld [vmem:[%s1692_s1 + $0x3e0] sm:$0xff]  ;;  %v316_v39 = vpack.c.bf16 %v147_v32, %v134_v31  ;;  %v146_v41 = vld [vmem:[%s1692_s1 + $0x3c8] sm:$0xff]  ;;  %v304_v42 = vpack.c.bf16 %v122_v35, %v109_v34 }
  0x26   :  { %468 = vmatprep.subr.bf16.mxu0 %v264_v52  ;;  %v133_v40 = vld [vmem:[%s1692_s1 + $0x360] sm:$0xff]  ;;  %v160_v43 = vld [vmem:[%s1692_s1 + $0x438] sm:$0xff]  ;;  %v318_v45 = vpack.c.bf16 %v149_v38, %v136_v37  ;;  %v135_v46 = vld [vmem:[%s1692_s1 + $0x370] sm:$0xff] }
  0x27   :  { %444 = vmatpush1.bf16.msra.mxu1 %v365_v55  ;;  %v173_v44 = vld [vmem:[%s1692_s1 + $0x4a0] sm:$0xff]  ;;  %v148_v47 = vld [vmem:[%s1692_s1 + $0x3d8] sm:$0xff]  ;;  %v315_v48 = vpack.c.bf16 %v146_v41, %v133_v40  ;;  %v162_v49 = vld [vmem:[%s1692_s1 + $0x448] sm:$0xff] }
  0x28   :  { %419 = vmatmul.mubr.bf16.vlgmr.msra.gmra.mrb[0].mxu0 %v1138_v58  ;;  %509 = vmatprep.subr.bf16.mxu1 %v266_v59  ;;  %v175_v50 = vld [vmem:[%s1692_s1 + $0x4b0] sm:$0xff]  ;;  %v329_v51 = vpack.c.bf16 %v173_v44, %v160_v43  ;;  %v172_v53 = vld [vmem:[%s1692_s1 + $0x498] sm:$0xff]  ;;  %v317_v54 = vpack.c.bf16 %v148_v47, %v135_v46  ;;  %v186_v55 = vld [vmem:[%s1692_s1 + $0x508] sm:$0xff] }
  0x29   :  { %469 = vmatpush1.bf16.msra.mxu0 %v263_v62  ;;  %843 = vmatprep.mubr.msk.bf16.mxu0 %vm382_vm0, %v1063_v23  ;;  %v159_v52 = vld [vmem:[%s1692_s1 + $0x430] sm:$0xff]  ;;  %v331_v57 = vpack.c.bf16 %v175_v50, %v162_v49  ;;  %v161_v59 = vld [vmem:[%s1692_s1 + $0x440] sm:$0xff]  ;;  %v174_v60 = vld [vmem:[%s1692_s1 + $0x4a8] sm:$0xff] }
  0x2a   :  { %460 = vmatmul.mubr.bf16.vlgmr.msra.gmra.mrb[0].mxu1 %v1138_v58  ;;  %470 = vmatprep.subr.bf16.mxu0 %v277_v1  ;;  %v199_v56 = vld [vmem:[%s1692_s1 + $0x570] sm:$0xff]  ;;  %v328_v61 = vpack.c.bf16 %v172_v53, %v159_v52  ;;  %v188_v62 = vld [vmem:[%s1692_s1 + $0x518] sm:$0xff]  ;;  %v201_v63 = vld [vmem:[%s1692_s1 + $0x580] sm:$0xff]  ;;  %v330_v4 = vpack.c.bf16 %v174_v60, %v161_v59 }
  0x2b   :  { %510 = vmatpush1.bf16.msra.mxu1 %v265_v5  ;;  %844 = vmatprep.mubr.msk.bf16.mxu1 %vm382_vm0, %v1063_v23  ;;  %v342_v0 = vpack.c.bf16 %v199_v56, %v186_v55  ;;  %v185_v1 = vld [vmem:[%s1692_s1 + $0x500] sm:$0xff]  ;;  %v198_v2 = vld [vmem:[%s1692_s1 + $0x568] sm:$0xff]  ;;  %v212_v5 = vld [vmem:[%s1692_s1 + $0x5d8] sm:$0xff]  ;;  %v344_v7 = vpack.c.bf16 %v201_v63, %v188_v62 }
  0x2c   :  { %511 = vmatprep.subr.bf16.mxu1 %v279_v8  ;;  %v225_v6 = vld [vmem:[%s1692_s1 + $0x640] sm:$0xff]  ;;  %v187_v8 = vld [vmem:[%s1692_s1 + $0x510] sm:$0xff]  ;;  %v200_v9 = vld [vmem:[%s1692_s1 + $0x578] sm:$0xff]  ;;  %v341_v10 = vpack.c.bf16 %v198_v2, %v185_v1 }
  0x2d   :  { %471 = vmatpush1.bf16.msra.mxu0 %v276_v11  ;;  %v214_v11 = vld [vmem:[%s1692_s1 + $0x5e8] sm:$0xff]  ;;  %v227_v12 = vld [vmem:[%s1692_s1 + $0x650] sm:$0xff]  ;;  %v355_v13 = vpack.c.bf16 %v225_v6, %v212_v5  ;;  %v224_v15 = vld [vmem:[%s1692_s1 + $0x638] sm:$0xff]  ;;  %v343_v16 = vpack.c.bf16 %v200_v9, %v187_v8 }
  0x2e   :  { %472 = vmatprep.subr.bf16.mxu0 %v290_v14  ;;  %v211_v14 = vld [vmem:[%s1692_s1 + $0x5d0] sm:$0xff]  ;;  %v357_v19 = vpack.c.bf16 %v227_v12, %v214_v11  ;;  %v226_v21 = vld [vmem:[%s1692_s1 + $0x648] sm:$0xff]  ;;  %v253_v25 = vld [vmem:[%s1692_s1 + $0x720] sm:$0xff] }
  0x2f   :  { %512 = vmatpush1.bf16.msra.mxu1 %v278_v17  ;;  %v238_v17 = vld [vmem:[%s1692_s1 + $0x6a8] sm:$0xff]  ;;  %v251_v18 = vld [vmem:[%s1692_s1 + $0x710] sm:$0xff]  ;;  %v354_v22 = vpack.c.bf16 %v224_v15, %v211_v14  ;;  %v252_v34 = vld [vmem:[%s1692_s1 + $0x718] sm:$0xff] }
  0x30   :  { %513 = vmatprep.subr.bf16.mxu1 %v292_v20  ;;  %v213_v20 = vld [vmem:[%s1692_s1 + $0x5e0] sm:$0xff]  ;;  %v368_v26 = vpack.c.bf16 %v251_v18, %v238_v17  ;;  %v250_v28 = vld [vmem:[%s1692_s1 + $0x708] sm:$0xff]  ;;  %v47_v31 = vld [vmem:[%s1692_s1 + $0xb0] sm:$0xff] }
  0x31   :  { %473 = vmatpush1.bf16.msra.mxu0 %v289_v24  ;;  %v240_v24 = vld [vmem:[%s1692_s1 + $0x6b8] sm:$0xff]  ;;  %v356_v29 = vpack.c.bf16 %v226_v21, %v213_v20  ;;  %v49_v37 = vld [vmem:[%s1692_s1 + $0xc0] sm:$0xff]  ;;  %v46_v40 = vld [vmem:[%s1692_s1 + $0xa8] sm:$0xff] }
  0x32   :  { %474 = vmatprep.subr.bf16.mxu0 %v303_v27  ;;  %v237_v27 = vld [vmem:[%s1692_s1 + $0x6a0] sm:$0xff]  ;;  %v370_v32 = vpack.c.bf16 %v253_v25, %v240_v24  ;;  %v48_v46 = vld [vmem:[%s1692_s1 + $0xb8] sm:$0xff]  ;;  %v75_v49 = vld [vmem:[%s1692_s1 + $0x190] sm:$0xff] }
  0x33   :  { %514 = vmatpush1.bf16.msra.mxu1 %v291_v30  ;;  %v34_v30 = vld [vmem:[%s1692_s1 + $0x48] sm:$0xff]  ;;  %v367_v35 = vpack.c.bf16 %v250_v28, %v237_v27  ;;  %v73_v43 = vld [vmem:[%s1692_s1 + $0x180] sm:$0xff]  ;;  %v72_v52 = vld [vmem:[%s1692_s1 + $0x178] sm:$0xff] }
  0x34   :  { %515 = vmatprep.subr.bf16.mxu1 %v305_v33  ;;  %v239_v33 = vld [vmem:[%s1692_s1 + $0x6b0] sm:$0xff]  ;;  %v268_v38 = vpack.c.bf16 %v47_v31, %v34_v30  ;;  %v74_v59 = vld [vmem:[%s1692_s1 + $0x188] sm:$0xff]  ;;  %v101_v62 = vld [vmem:[%s1692_s1 + $0x260] sm:$0xff] }
  0x35   :  { %475 = vmatpush1.bf16.msra.mxu0 %v302_v36  ;;  %v36_v36 = vld [vmem:[%s1692_s1 + $0x58] sm:$0xff]  ;;  %v369_v41 = vpack.c.bf16 %v252_v34, %v239_v33  ;;  %v99_v55 = vld [vmem:[%s1692_s1 + $0x250] sm:$0xff]  ;;  %v376_v63 = vld [vmem:[%s1694_s2] sm:$0xff] }
  0x36   :  { %476 = vmatprep.subr.bf16.mxu0 %v316_v39  ;;  %v33_v39 = vld [vmem:[%s1692_s1 + $0x40] sm:$0xff]  ;;  %v270_v44 = vpack.c.bf16 %v49_v37, %v36_v36  ;;  %v98_v2 = vld [vmem:[%s1692_s1 + $0x248] sm:$0xff]  ;;  %v112_v5 = vld [vmem:[%s1692_s1 + $0x2b8] sm:$0xff]  ;;  %379 = vperm.xlu0 %849, %v376_v63  }
  0x37   :  { %516 = vmatpush1.bf16.msra.mxu1 %v304_v42  ;;  %v60_v42 = vld [vmem:[%s1692_s1 + $0x118] sm:$0xff]  ;;  %v267_v47 = vpack.c.bf16 %v46_v40, %v33_v39  ;;  %v85_v1 = vld [vmem:[%s1692_s1 + $0x1e0] sm:$0xff]  ;;  %v87_v8 = vld [vmem:[%s1692_s1 + $0x1f0] sm:$0xff] }
  0x38   :  { %517 = vmatprep.subr.bf16.mxu1 %v318_v45  ;;  %v35_v45 = vld [vmem:[%s1692_s1 + $0x50] sm:$0xff]  ;;  %v281_v50 = vpack.c.bf16 %v73_v43, %v60_v42  ;;  %v125_v6 = vld [vmem:[%s1692_s1 + $0x320] sm:$0xff]  ;;  %v100_v9 = vld [vmem:[%s1692_s1 + $0x258] sm:$0xff] }
  0x39   :  { %477 = vmatpush1.bf16.msra.mxu0 %v315_v48  ;;  %v62_v48 = vld [vmem:[%s1692_s1 + $0x128] sm:$0xff]  ;;  %v269_v53 = vpack.c.bf16 %v48_v46, %v35_v45  ;;  %v127_v12 = vld [vmem:[%s1692_s1 + $0x330] sm:$0xff]  ;;  %v124_v15 = vld [vmem:[%s1692_s1 + $0x318] sm:$0xff] }
  0x3a   :  { %478 = vmatprep.subr.bf16.mxu0 %v329_v51  ;;  %v59_v51 = vld [vmem:[%s1692_s1 + $0x110] sm:$0xff]  ;;  %v283_v56 = vpack.c.bf16 %v75_v49, %v62_v48  ;;  %v114_v11 = vld [vmem:[%s1692_s1 + $0x2c8] sm:$0xff]  ;;  %v113_v20 = vld [vmem:[%s1692_s1 + $0x2c0] sm:$0xff] }
  0x3b   :  { %518 = vmatpush1.bf16.msra.mxu1 %v317_v54  ;;  %v86_v54 = vld [vmem:[%s1692_s1 + $0x1e8] sm:$0xff]  ;;  %v280_v60 = vpack.c.bf16 %v72_v52, %v59_v51  ;;  %v111_v14 = vld [vmem:[%s1692_s1 + $0x2b0] sm:$0xff]  ;;  %v140_v24 = vld [vmem:[%s1692_s1 + $0x398] sm:$0xff] }
  0x3c   :  { %519 = vmatprep.subr.bf16.mxu1 %v331_v57  ;;  %v61_v57 = vld [vmem:[%s1692_s1 + $0x120] sm:$0xff]  ;;  %v138_v17 = vld [vmem:[%s1692_s1 + $0x388] sm:$0xff]  ;;  %v151_v18 = vld [vmem:[%s1692_s1 + $0x3f0] sm:$0xff] }
  0x3d   :  { %479 = vmatpush1.bf16.msra.mxu0 %v328_v61  ;;  %v88_v61 = vld [vmem:[%s1692_s1 + $0x1f8] sm:$0xff]  ;;  %v126_v21 = vld [vmem:[%s1692_s1 + $0x328] sm:$0xff]  ;;  %v153_v25 = vld [vmem:[%s1692_s1 + $0x400] sm:$0xff] }
  0x3e   :  { %480 = vmatprep.subr.bf16.mxu0 %v342_v0  ;;  %v294_v0 = vpack.c.bf16 %v99_v55, %v86_v54  ;;  %v137_v27 = vld [vmem:[%s1692_s1 + $0x380] sm:$0xff]  ;;  %v150_v28 = vld [vmem:[%s1692_s1 + $0x3e8] sm:$0xff]  ;;  %v164_v30 = vld [vmem:[%s1692_s1 + $0x458] sm:$0xff] }
  0x3f   :  { %520 = vmatpush1.bf16.msra.mxu1 %v330_v4  ;;  %v282_v4 = vpack.c.bf16 %v74_v59, %v61_v57  ;;  %v177_v31 = vld [vmem:[%s1692_s1 + $0x4c0] sm:$0xff]  ;;  %v139_v33 = vld [vmem:[%s1692_s1 + $0x390] sm:$0xff]  ;;  %v152_v34 = vld [vmem:[%s1692_s1 + $0x3f8] sm:$0xff] }
  0x40   :  { %521 = vmatprep.subr.bf16.mxu1 %v344_v7  ;;  %v296_v7 = vpack.c.bf16 %v101_v62, %v88_v61  ;;  %v166_v36 = vld [vmem:[%s1692_s1 + $0x468] sm:$0xff]  ;;  %v179_v37 = vld [vmem:[%s1692_s1 + $0x4d0] sm:$0xff]  ;;  %v176_v40 = vld [vmem:[%s1692_s1 + $0x4b8] sm:$0xff] }
  0x41   :  { %481 = vmatpush1.bf16.msra.mxu0 %v341_v10  ;;  %v293_v10 = vpack.c.bf16 %v98_v2, %v85_v1  ;;  %v163_v39 = vld [vmem:[%s1692_s1 + $0x450] sm:$0xff]  ;;  %v190_v42 = vld [vmem:[%s1692_s1 + $0x528] sm:$0xff]  ;;  %v165_v45 = vld [vmem:[%s1692_s1 + $0x460] sm:$0xff] }
  0x42   :  { %482 = vmatprep.subr.bf16.mxu0 %v355_v13  ;;  %v307_v13 = vpack.c.bf16 %v125_v6, %v112_v5  ;;  %v203_v43 = vld [vmem:[%s1692_s1 + $0x590] sm:$0xff]  ;;  %v178_v46 = vld [vmem:[%s1692_s1 + $0x4c8] sm:$0xff]  ;;  %v192_v48 = vld [vmem:[%s1692_s1 + $0x538] sm:$0xff] }
  0x43   :  { %522 = vmatpush1.bf16.msra.mxu1 %v343_v16  ;;  %v295_v16 = vpack.c.bf16 %v100_v9, %v87_v8  ;;  %v205_v49 = vld [vmem:[%s1692_s1 + $0x5a0] sm:$0xff]  ;;  %v202_v52 = vld [vmem:[%s1692_s1 + $0x588] sm:$0xff]  ;;  %v216_v54 = vld [vmem:[%s1692_s1 + $0x5f8] sm:$0xff] }
  0x44   :  { %523 = vmatprep.subr.bf16.mxu1 %v357_v19  ;;  %v309_v19 = vpack.c.bf16 %v127_v12, %v114_v11  ;;  %v189_v51 = vld [vmem:[%s1692_s1 + $0x520] sm:$0xff]  ;;  %v191_v57 = vld [vmem:[%s1692_s1 + $0x530] sm:$0xff]  ;;  %v204_v59 = vld [vmem:[%s1692_s1 + $0x598] sm:$0xff] }
  0x45   :  { %483 = vmatpush1.bf16.msra.mxu0 %v354_v22  ;;  %v306_v22 = vpack.c.bf16 %v124_v15, %v111_v14  ;;  %v229_v55 = vld [vmem:[%s1692_s1 + $0x660] sm:$0xff]  ;;  %v218_v61 = vld [vmem:[%s1692_s1 + $0x608] sm:$0xff]  ;;  %v231_v62 = vld [vmem:[%s1692_s1 + $0x670] sm:$0xff]  ;;  %v347_v2 = vpack.c.bf16 %v204_v59, %v191_v57 }
  0x46   :  { %484 = vmatprep.subr.bf16.mxu0 %v368_v26  ;;  %v320_v26 = vpack.c.bf16 %v151_v18, %v138_v17  ;;  %v359_v63 = vpack.c.bf16 %v229_v55, %v216_v54  ;;  %v228_v1 = vld [vmem:[%s1692_s1 + $0x658] sm:$0xff]  ;;  %v255_v5 = vld [vmem:[%s1692_s1 + $0x730] sm:$0xff]  ;;  %v361_v6 = vpack.c.bf16 %v231_v62, %v218_v61  ;;  %v230_v8 = vld [vmem:[%s1692_s1 + $0x668] sm:$0xff] }
  0x47   :  { %524 = vmatpush1.bf16.msra.mxu1 %v356_v29  ;;  %v308_v29 = vpack.c.bf16 %v126_v21, %v113_v20  ;;  %v257_v11 = vld [vmem:[%s1692_s1 + $0x740] sm:$0xff]  ;;  %v254_v14 = vld [vmem:[%s1692_s1 + $0x728] sm:$0xff]  ;;  %v243_v17 = vld [vmem:[%s1692_s1 + $0x6d0] sm:$0xff] }
  0x48   :  { %525 = vmatprep.subr.bf16.mxu1 %v370_v32  ;;  %v322_v32 = vpack.c.bf16 %v153_v25, %v140_v24  ;;  %v256_v18 = vld [vmem:[%s1692_s1 + $0x738] sm:$0xff]  ;;  %v37_v20 = vld [vmem:[%s1692_s1 + $0x60] sm:$0xff]  ;;  %v50_v21 = vld [vmem:[%s1692_s1 + $0xc8] sm:$0xff] }
  0x49   :  { %485 = vmatpush1.bf16.msra.mxu0 %v367_v35  ;;  %v319_v35 = vpack.c.bf16 %v150_v28, %v137_v27  ;;  %v271_v24 = vpack.c.bf16 %v50_v21, %v37_v20  ;;  %v63_v25 = vld [vmem:[%s1692_s1 + $0x130] sm:$0xff]  ;;  %v89_v28 = vld [vmem:[%s1692_s1 + $0x200] sm:$0xff] }
  0x4a   :  { %550 = vmatprep.subr.bf16.mxu0 %v268_v38  ;;  %v333_v38 = vpack.c.bf16 %v177_v31, %v164_v30  ;;  %v128_v31 = vld [vmem:[%s1692_s1 + $0x338] sm:$0xff] }
  0x4b   :  { %526 = vmatpush1.bf16.msra.mxu1 %v369_v41  ;;  %v321_v41 = vpack.c.bf16 %v152_v34, %v139_v33  ;;  %v141_v33 = vld [vmem:[%s1692_s1 + $0x3a0] sm:$0xff]  ;;  %v154_v34 = vld [vmem:[%s1692_s1 + $0x408] sm:$0xff] }
  0x4c   :  { %501 = vmatmul.mubr.bf16.vlgmr.msra.gmra.mrb[4].mxu0 %v1138_v58  ;;  %591 = vmatprep.subr.bf16.mxu1 %v270_v44  ;;  %v335_v44 = vpack.c.bf16 %v179_v37, %v166_v36  ;;  %v167_v36 = vld [vmem:[%s1692_s1 + $0x470] sm:$0xff]  ;;  %v180_v37 = vld [vmem:[%s1692_s1 + $0x4d8] sm:$0xff] }
  0x4d   :  { %551 = vmatpush1.bf16.msra.mxu0 %v267_v47  ;;  %845 = vmatprep.mubr.msk.bf16.mxu0 %vm382_vm0, %v1063_v23  ;;  %v332_v47 = vpack.c.bf16 %v176_v40, %v163_v39  ;;  %v193_v39 = vld [vmem:[%s1692_s1 + $0x540] sm:$0xff]  ;;  %v206_v40 = vld [vmem:[%s1692_s1 + $0x5a8] sm:$0xff] }
  0x4e   :  { %542 = vmatmul.mubr.bf16.vlgmr.msra.gmra.mrb[4].mxu1 %v1138_v58  ;;  %552 = vmatprep.subr.bf16.mxu0 %v281_v50  ;;  %v346_v50 = vpack.c.bf16 %v203_v43, %v190_v42  ;;  %v219_v42 = vld [vmem:[%s1692_s1 + $0x610] sm:$0xff]  ;;  %v232_v43 = vld [vmem:[%s1692_s1 + $0x678] sm:$0xff] }
  0x4f   :  { %592 = vmatpush1.bf16.msra.mxu1 %v269_v53  ;;  %846 = vmatprep.mubr.msk.bf16.mxu1 %vm382_vm0, %v1063_v23  ;;  %v334_v53 = vpack.c.bf16 %v178_v46, %v165_v45  ;;  %v245_v45 = vld [vmem:[%s1692_s1 + $0x6e0] sm:$0xff]  ;;  %v258_v46 = vld [vmem:[%s1692_s1 + $0x748] sm:$0xff] }
  0x50   :  { %593 = vmatprep.subr.bf16.mxu1 %v283_v56  ;;  %v348_v56 = vpack.c.bf16 %v205_v49, %v192_v48  ;;  %v747_v48 = vld [vmem:[%s1695_s3] sm:$0xff] }
  0x51   :  { %553 = vmatpush1.bf16.msra.mxu0 %v280_v60  ;;  %v345_v60 = vpack.c.bf16 %v202_v52, %v189_v51  ;;  %750 = vperm.xlu1 %850, %v747_v48  }
  0x52   :  { %554 = vmatprep.subr.bf16.mxu0 %v294_v0  ;;  %v215_v0 = vld [vmem:[%s1692_s1 + $0x5f0] sm:$0xff] }
  0x53   :  { %594 = vmatpush1.bf16.msra.mxu1 %v282_v4  ;;  %v242_v4 = vld [vmem:[%s1692_s1 + $0x6c8] sm:$0xff]  ;;  %v358_v9 = vpack.c.bf16 %v228_v1, %v215_v0 }
  0x54   :  { %595 = vmatprep.subr.bf16.mxu1 %v296_v7  ;;  %v217_v7 = vld [vmem:[%s1692_s1 + $0x600] sm:$0xff]  ;;  %v372_v12 = vpack.c.bf16 %v255_v5, %v242_v4 }
  0x55   :  { %555 = vmatpush1.bf16.msra.mxu0 %v293_v10  ;;  %v244_v10 = vld [vmem:[%s1692_s1 + $0x6d8] sm:$0xff]  ;;  %v360_v15 = vpack.c.bf16 %v230_v8, %v217_v7 }
  0x56   :  { %556 = vmatprep.subr.bf16.mxu0 %v307_v13  ;;  %v241_v13 = vld [vmem:[%s1692_s1 + $0x6c0] sm:$0xff] }
  0x57   :  { %596 = vmatpush1.bf16.msra.mxu1 %v295_v16  ;;  %v374_v16 = vpack.c.bf16 %v257_v11, %v244_v10 }
  0x58   :  { %597 = vmatprep.subr.bf16.mxu1 %v309_v19  ;;  %v371_v19 = vpack.c.bf16 %v254_v14, %v241_v13 }
  0x59   :  { %557 = vmatpush1.bf16.msra.mxu0 %v306_v22  ;;  %v373_v22 = vpack.c.bf16 %v256_v18, %v243_v17 }
  0x5a   :  { %558 = vmatprep.subr.bf16.mxu0 %v320_v26  ;;  %v76_v26 = vld [vmem:[%s1692_s1 + $0x198] sm:$0xff] }
  0x5b   :  { %598 = vmatpush1.bf16.msra.mxu1 %v308_v29  ;;  %v284_v27 = vpack.c.bf16 %v76_v26, %v63_v25  ;;  %v102_v29 = vld [vmem:[%s1692_s1 + $0x268] sm:$0xff] }
  0x5c   :  { %599 = vmatprep.subr.bf16.mxu1 %v322_v32  ;;  %v297_v30 = vpack.c.bf16 %v102_v29, %v89_v28 }
  0x5d   :  { %559 = vmatpush1.bf16.msra.mxu0 %v319_v35  ;;  %v323_v35 = vpack.c.bf16 %v154_v34, %v141_v33 }
  0x5e   :  { %560 = vmatprep.subr.bf16.mxu0 %v333_v38  ;;  %v336_v38 = vpack.c.bf16 %v180_v37, %v167_v36 }
  0x5f   :  { %600 = vmatpush1.bf16.msra.mxu1 %v321_v41  ;;  %v349_v41 = vpack.c.bf16 %v206_v40, %v193_v39 }
  0x60   :  { %601 = vmatprep.subr.bf16.mxu1 %v335_v44  ;;  %v362_v44 = vpack.c.bf16 %v232_v43, %v219_v42 }
  0x61   :  { %561 = vmatpush1.bf16.msra.mxu0 %v332_v47  ;;  %v375_v47 = vpack.c.bf16 %v258_v46, %v245_v45 }
  0x62   :  { %562 = vmatprep.subr.bf16.mxu0 %v346_v50 }
  0x63   :  { %602 = vmatpush1.bf16.msra.mxu1 %v334_v53 }
  0x64   :  { %603 = vmatprep.subr.bf16.mxu1 %v348_v56 }
  0x65   :  { %563 = vmatpush1.bf16.msra.mxu0 %v345_v60 }
  0x66   :  { %564 = vmatprep.subr.bf16.mxu0 %v359_v63 }
  0x67   :  { %604 = vmatpush1.bf16.msra.mxu1 %v347_v2 }
  0x68   :  { %605 = vmatprep.subr.bf16.mxu1 %v361_v6 }
  0x69   :  { %565 = vmatpush1.bf16.msra.mxu0 %v358_v9 }
  0x6a   :  { %566 = vmatprep.subr.bf16.mxu0 %v372_v12 }
  0x6b   :  { %606 = vmatpush1.bf16.msra.mxu1 %v360_v15 }
  0x6c   :  { %607 = vmatprep.subr.bf16.mxu1 %v374_v16 }
  0x6d   :  { %567 = vmatpush1.bf16.msra.mxu0 %v371_v19 }
  0x6e   :  { %632 = vmatprep.subr.bf16.mxu0 %v853_v3 }
  0x6f   :  { %608 = vmatpush1.bf16.msra.mxu1 %v373_v22 }
  0x70   :  { %583 = vmatmul.mubr.bf16.vlgmr.msra.gmra.mrb[8].mxu0 %v1138_v58 }
  0x71   :  { %633 = vmatpush1.bf16.msra.mxu0 %v271_v24  ;;  %847 = vmatprep.mubr.msk.bf16.mxu0 %vm382_vm0, %v1063_v23  ;;  %v115_v23 = vld [vmem:[%s1692_s1 + $0x2d0] sm:$0xff] }
  0x72   :  { %624 = vmatmul.mubr.bf16.vlgmr.msra.gmra.mrb[8].mxu1 %v1138_v58  ;;  %634 = vmatprep.subr.bf16.mxu0 %v853_v3  ;;  %v310_v32 = vpack.c.bf16 %v128_v31, %v115_v23 }
  0x75   :  { %635 = vmatpush1.bf16.msra.mxu0 %v284_v27 }
  0x76   :  { %636 = vmatprep.subr.bf16.mxu0 %v853_v3 }
  0x79   :  { %637 = vmatpush1.bf16.msra.mxu0 %v297_v30 }
  0x7a   :  { %638 = vmatprep.subr.bf16.mxu0 %v853_v3 }
  0x7d   :  { %639 = vmatpush1.bf16.msra.mxu0 %v310_v32 }
  0x7e   :  { %640 = vmatprep.subr.bf16.mxu0 %v853_v3 }
  0x81   :  { %641 = vmatpush1.bf16.msra.mxu0 %v323_v35 }
  0x82   :  { %642 = vmatprep.subr.bf16.mxu0 %v853_v3 }
  0x85   :  { %643 = vmatpush1.bf16.msra.mxu0 %v336_v38 }
  0x86   :  { %644 = vmatprep.subr.bf16.mxu0 %v853_v3 }
  0x89   :  { %645 = vmatpush1.bf16.msra.mxu0 %v349_v41 }
  0x8a   :  { %646 = vmatprep.subr.bf16.mxu0 %v853_v3 }
  0x8d   :  { %647 = vmatpush1.bf16.msra.mxu0 %v362_v44 }
  0x8e   :  { %648 = vmatprep.subr.bf16.mxu0 %v853_v3 }
  0x91   :  { %649 = vmatpush1.bf16.msra.mxu0 %v375_v47 }
  0x94   :  { %665 = vmatmul.mubr.bf16.vlgmr.msra.gmra.mrb[12].mxu0 %v1138_v58 }
  0xb5   :  { %v380_v0 = vpop.permute.xlu0 %379 }
  0xfb   :  { %v420_v49 = vpop.f32.mrb[0].mxu0 }
  0xfc   :  { %v422_v50 = vpop.f32.mrb[1].mxu0  ;;  %v421_v1 = vadd.f32 %v420_v49, %v380_v0 }
  0xfd   :  { %v424_v51 = vpop.f32.mrb[2].mxu0  ;;  %v461_v52 = vpop.f32.mrb[0].mxu1  ;;  %v423_v2 = vadd.f32 %v422_v50, %v380_v0 }
  0xfe   :  { %v425_v53 = vpop.f32.mrb[3].mxu0  ;;  %v463_v54 = vpop.f32.mrb[1].mxu1  ;;  %v462_v7 = vadd.f32 %v461_v52, %v380_v0 }
  0xff   :  { %v465_v55 = vpop.f32.mrb[2].mxu1  ;;  %v672_v6 = vadd.f32 %v423_v2, %v421_v1  ;;  %v464_v15 = vadd.f32 %v463_v54, %v380_v0 }
 0x100   :  { %v466_v56 = vpop.f32.mrb[3].mxu1 }
 0x101   :  { %v673_v14 = vadd.f32 %v672_v6, %v462_v7 }
 0x103   :  { %v674_v17 = vadd.f32 %v673_v14, %v464_v15 }
 0x11f   :  { %v502_v57 = vpop.f32.mrb[4].mxu0 }
 0x120   :  { %v504_v59 = vpop.f32.mrb[5].mxu0  ;;  %v503_v16 = vadd.f32 %v502_v57, %v380_v0 }
 0x121   :  { %v506_v60 = vpop.f32.mrb[6].mxu0  ;;  %v543_v3 = vpop.f32.mrb[4].mxu1  ;;  %v505_v19 = vadd.f32 %v504_v59, %v380_v0 }
 0x122   :  { %v507_v61 = vpop.f32.mrb[7].mxu0  ;;  %v545_v62 = vpop.f32.mrb[5].mxu1  ;;  %v675_v18 = vadd.f32 %v674_v17, %v503_v16  ;;  %v544_v21 = vadd.f32 %v543_v3, %v380_v0  ;;  %v766_v17 = vld [vmem:[%s1696_s4] sm:$0xff] }
 0x123   :  { %v547_v58 = vpop.f32.mrb[6].mxu1  ;;  %v546_v24 = vadd.f32 %v545_v62, %v380_v0 }
 0x124   :  { %v548_v63 = vpop.f32.mrb[7].mxu1  ;;  %v676_v20 = vadd.f32 %v675_v18, %v505_v19  ;;  %v751_v18 = vpop.permute.xlu1 %750 }
 0x126   :  { %v677_v22 = vadd.f32 %v676_v20, %v544_v21 }
 0x128   :  { %v678_v26 = vadd.f32 %v677_v22, %v546_v24 }
 0x143   :  { %v584_v4 = vpop.f32.mrb[8].mxu0 }
 0x144   :  { %v586_v5 = vpop.f32.mrb[9].mxu0  ;;  %v585_v25 = vadd.f32 %v584_v4, %v380_v0 }
 0x145   :  { %v588_v8 = vpop.f32.mrb[10].mxu0  ;;  %v625_v9 = vpop.f32.mrb[8].mxu1  ;;  %v587_v28 = vadd.f32 %v586_v5, %v380_v0 }
 0x146   :  { %v589_v10 = vpop.f32.mrb[11].mxu0  ;;  %v627_v11 = vpop.f32.mrb[9].mxu1  ;;  %v679_v27 = vadd.f32 %v678_v26, %v585_v25  ;;  %v626_v30 = vadd.f32 %v625_v9, %v380_v0 }
 0x147   :  { %v629_v12 = vpop.f32.mrb[10].mxu1  ;;  %v628_v31 = vadd.f32 %v627_v11, %v380_v0 }
 0x148   :  { %v630_v13 = vpop.f32.mrb[11].mxu1  ;;  %v680_v29 = vadd.f32 %v679_v27, %v587_v28 }
 0x14a   :  { %v681_v23 = vadd.f32 %v680_v29, %v626_v30 }
 0x14c   :  { %v682_v35 = vadd.f32 %v681_v23, %v628_v31 }
 0x167   :  { %v666_v32 = vpop.f32.mrb[12].mxu0 }
 0x168   :  { %v667_v33 = vadd.f32 %v666_v32, %v380_v0  ;;  %v668_v34 = vpop.f32.mrb[13].mxu0 }
 0x169   :  { %v669_v36 = vpop.f32.mrb[14].mxu0 }
 0x16a   :  { %v670_v37 = vpop.f32.mrb[15].mxu0  ;;  %v684_v38 = vsel %vm683_vm1, %v667_v33, 0.0 }
 0x16b   :  { %v685_v39 = vadd.f32 %v684_v38, %v682_v35 }
 0x16d   :  { %686 = vadd.xlane.f32.xlu0 %v685_v39 }
 0x1fa   :  { %v687_v40 = vpop.xlane.xlu0 %686 }
 0x1fb   :  { %v689_v41 = vmul.f32 0.0006377551, %v687_v40 }
 0x1fd   :  { %v690_v42 = vsub.f32 %v421_v1, %v689_v41  ;;  %v691_v43 = vsub.f32 %v423_v2, %v689_v41  ;;  %v692_v44 = vsub.f32 %v462_v7, %v689_v41  ;;  %v693_v47 = vsub.f32 %v464_v15, %v689_v41 }
 0x1fe   :  { %v694_v48 = vsub.f32 %v503_v16, %v689_v41  ;;  %v695_v51 = vsub.f32 %v505_v19, %v689_v41  ;;  %v696_v54 = vsub.f32 %v544_v21, %v689_v41  ;;  %v697_v57 = vsub.f32 %v546_v24, %v689_v41 }
 0x1ff   :  { %v703_v45 = vmul.f32 %v690_v42, %v690_v42  ;;  %v704_v46 = vmul.f32 %v691_v43, %v691_v43  ;;  %v705_v49 = vmul.f32 %v692_v44, %v692_v44  ;;  %v706_v52 = vmul.f32 %v693_v47, %v693_v47 }
 0x200   :  { %v707_v55 = vmul.f32 %v694_v48, %v694_v48  ;;  %v708_v59 = vmul.f32 %v695_v51, %v695_v51  ;;  %v698_v3 = vsub.f32 %v585_v25, %v689_v41  ;;  %v709_v61 = vmul.f32 %v696_v54, %v696_v54 }
 0x201   :  { %v716_v50 = vadd.f32 %v704_v46, %v703_v45  ;;  %v699_v58 = vsub.f32 %v587_v28, %v689_v41  ;;  %v710_v63 = vmul.f32 %v697_v57, %v697_v57  ;;  %v700_v1 = vsub.f32 %v626_v30, %v689_v41 }
 0x202   :  { %v711_v2 = vmul.f32 %v698_v3, %v698_v3  ;;  %v702_v5 = vsub.f32 %v667_v33, %v689_v41  ;;  %v701_v6 = vsub.f32 %v628_v31, %v689_v41 }
 0x203   :  { %v717_v53 = vadd.f32 %v716_v50, %v705_v49  ;;  %v712_v7 = vmul.f32 %v699_v58, %v699_v58  ;;  %v713_v9 = vmul.f32 %v700_v1, %v700_v1 }
 0x204   :  { %v715_v11 = vmul.f32 %v702_v5, %v702_v5  ;;  %v714_v12 = vmul.f32 %v701_v6, %v701_v6 }
 0x205   :  { %v718_v56 = vadd.f32 %v717_v53, %v706_v52 }
 0x206   :  { %v727_v15 = vsel %vm683_vm1, %v715_v11, 0.0 }
 0x207   :  { %v719_v60 = vadd.f32 %v718_v56, %v707_v55 }
 0x209   :  { %v720_v62 = vadd.f32 %v719_v60, %v708_v59 }
 0x20b   :  { %v721_v0 = vadd.f32 %v720_v62, %v709_v61 }
 0x20d   :  { %v722_v4 = vadd.f32 %v721_v0, %v710_v63 }
 0x20f   :  { %v723_v8 = vadd.f32 %v722_v4, %v711_v2 }
 0x211   :  { %v724_v10 = vadd.f32 %v723_v8, %v712_v7 }
 0x213   :  { %v725_v13 = vadd.f32 %v724_v10, %v713_v9 }
 0x215   :  { %v726_v14 = vadd.f32 %v725_v13, %v714_v12 }
 0x217   :  { %v728_v16 = vadd.f32 %v727_v15, %v726_v14 }
 0x219   :  { %729 = vadd.xlane.f32.xlu1 %v728_v16 }
 0x22a   :  { %769 = vperm.xlu1 %850, %v766_v17  }
 0x2a6   :  { %v730_v19 = vpop.xlane.xlu1 %729 }
 0x2a7   :  { %v731_v20 = vmul.f32 0.0006377551, %v730_v19 }
 0x2a9   :  { %v732_v21 = vadd.f32 1e-05, %v731_v20 }
 0x2ab   :  { %851 = vrsqrt.f32 %v732_v21 }
 0x2b5   :  { %v852_v22 = vpop.eup %851 }
 0x2b6   :  { %v734_v24 = vmul.f32 %v852_v22, %v690_v42  ;;  %v735_v25 = vmul.f32 %v852_v22, %v691_v43  ;;  %v736_v26 = vmul.f32 %v852_v22, %v692_v44  ;;  %v737_v27 = vmul.f32 %v852_v22, %v693_v47  ;;  %v770_v47 = vpop.permute.xlu1 %769 }
 0x2b7   :  { %v738_v28 = vmul.f32 %v852_v22, %v694_v48  ;;  %v739_v29 = vmul.f32 %v852_v22, %v695_v51  ;;  %v740_v30 = vmul.f32 %v852_v22, %v696_v54  ;;  %v741_v23 = vmul.f32 %v852_v22, %v697_v57 }
 0x2b8   :  { %v742_v31 = vmul.f32 %v852_v22, %v698_v3  ;;  %v743_v32 = vmul.f32 %v852_v22, %v699_v58  ;;  %v744_v33 = vmul.f32 %v852_v22, %v700_v1  ;;  %v745_v34 = vmul.f32 %v852_v22, %v701_v6 }
 0x2b9   :  { %v746_v35 = vmul.f32 %v852_v22, %v702_v5  ;;  %v753_v36 = vmul.f32 %v751_v18, %v734_v24  ;;  %v754_v37 = vmul.f32 %v751_v18, %v735_v25  ;;  %v755_v38 = vmul.f32 %v751_v18, %v736_v26 }
 0x2ba   :  { %v756_v39 = vmul.f32 %v751_v18, %v737_v27  ;;  %v757_v40 = vmul.f32 %v751_v18, %v738_v28  ;;  %v758_v41 = vmul.f32 %v751_v18, %v739_v29  ;;  %v759_v45 = vmul.f32 %v751_v18, %v740_v30 }
 0x2bb   :  { %v760_v42 = vmul.f32 %v751_v18, %v741_v23  ;;  %v761_v43 = vmul.f32 %v751_v18, %v742_v31  ;;  %v762_v44 = vmul.f32 %v751_v18, %v743_v32  ;;  %v763_v46 = vmul.f32 %v751_v18, %v744_v33 }
 0x2bc   :  { %v764_v48 = vmul.f32 %v751_v18, %v745_v34  ;;  %v765_v49 = vmul.f32 %v751_v18, %v746_v35  ;;  %v772_v50 = vadd.f32 %v770_v47, %v753_v36  ;;  %v773_v51 = vadd.f32 %v770_v47, %v754_v37 }
 0x2bd   :  { %v774_v52 = vadd.f32 %v770_v47, %v755_v38  ;;  %v775_v53 = vadd.f32 %v770_v47, %v756_v39  ;;  %v776_v54 = vadd.f32 %v770_v47, %v757_v40  ;;  %v777_v55 = vadd.f32 %v770_v47, %v758_v41 }
 0x2be   :  { %v778_v56 = vadd.f32 %v770_v47, %v759_v45  ;;  %v779_v57 = vadd.f32 %v770_v47, %v760_v42  ;;  %v780_v59 = vadd.f32 %v770_v47, %v761_v43  ;;  %v781_v60 = vadd.f32 %v770_v47, %v762_v44 }
 0x2bf   :  { %v782_v3 = vadd.f32 %v770_v47, %v763_v46  ;;  %v783_v61 = vadd.f32 %v770_v47, %v764_v48  ;;  %v784_v62 = vadd.f32 %v770_v47, %v765_v49  ;;  %vm785_vm2 = vcmp.ge.f32.partialorder %v772_v50, 0.0 }
 0x2c0   :  { %vm786_vm3 = vcmp.ge.f32.partialorder %v773_v51, 0.0  ;;  %vm787_vm4 = vcmp.ge.f32.partialorder %v774_v52, 0.0  ;;  %vm788_vm5 = vcmp.ge.f32.partialorder %v775_v53, 0.0  ;;  %vm789_vm6 = vcmp.ge.f32.partialorder %v776_v54, 0.0 }
 0x2c1   :  { %vm790_vm7 = vcmp.ge.f32.partialorder %v777_v55, 0.0  ;;  %vm791_vm8 = vcmp.ge.f32.partialorder %v778_v56, 0.0  ;;  %vm792_vm9 = vcmp.ge.f32.partialorder %v779_v57, 0.0  ;;  %vm793_vm10 = vcmp.ge.f32.partialorder %v780_v59, 0.0 }
 0x2c2   :  { %vm794_vm11 = vcmp.ge.f32.partialorder %v781_v60, 0.0  ;;  %vm795_vm12 = vcmp.ge.f32.partialorder %v782_v3, 0.0  ;;  %vm796_vm13 = vcmp.ge.f32.partialorder %v783_v61, 0.0  ;;  %vm797_vm14 = vcmp.ge.f32.partialorder %v784_v62, 0.0 }
 0x2c3   :  { %v798_v58 = vmul.f32 0.01, %v772_v50  ;;  %v799_v63 = vmul.f32 0.01, %v773_v51  ;;  %v800_v0 = vmul.f32 0.01, %v774_v52 }
 0x2c4   :  { %v801_v1 = vmul.f32 0.01, %v775_v53  ;;  %v802_v2 = vmul.f32 0.01, %v776_v54  ;;  %v803_v4 = vmul.f32 0.01, %v777_v55 }
 0x2c5   :  { %v804_v5 = vmul.f32 0.01, %v778_v56  ;;  %v805_v6 = vmul.f32 0.01, %v779_v57  ;;  %v806_v7 = vmul.f32 0.01, %v780_v59  ;;  %v811_v8 = vsel %vm785_vm2, %v772_v50, %v798_v58 }
 0x2c6   :  { %v807_v9 = vmul.f32 0.01, %v781_v60  ;;  %v808_v10 = vmul.f32 0.01, %v782_v3  ;;  %v809_v11 = vmul.f32 0.01, %v783_v61  ;;  %v812_v12 = vsel %vm786_vm3, %v773_v51, %v799_v63  ;;  %824 = vst [vmem:[%s1697_s5] sm:$0xff] %v811_v8 }
 0x2c7   :  { %v810_v13 = vmul.f32 0.01, %v784_v62  ;;  %v813_v14 = vsel %vm787_vm4, %v774_v52, %v800_v0  ;;  %v814_v15 = vsel %vm788_vm5, %v775_v53, %v801_v1  ;;  %v815_v16 = vsel %vm789_vm6, %v776_v54, %v802_v2  ;;  %825 = vst [vmem:[%s1697_s5 + $0x8] sm:$0xff] %v812_v12 }
 0x2c8   :  { %v816_v17 = vsel %vm790_vm7, %v777_v55, %v803_v4  ;;  %v817_v18 = vsel %vm791_vm8, %v778_v56, %v804_v5  ;;  %v818_v19 = vsel %vm792_vm9, %v779_v57, %v805_v6  ;;  %v819_v20 = vsel %vm793_vm10, %v780_v59, %v806_v7  ;;  %826 = vst [vmem:[%s1697_s5 + $0x10] sm:$0xff] %v813_v14 }
 0x2c9   :  { %827 = vst [vmem:[%s1697_s5 + $0x18] sm:$0xff] %v814_v15  ;;  %828 = vst [vmem:[%s1697_s5 + $0x20] sm:$0xff] %v815_v16  ;;  %v820_v21 = vsel %vm794_vm11, %v781_v60, %v807_v9  ;;  %v821_v22 = vsel %vm795_vm12, %v782_v3, %v808_v10  ;;  %v822_v24 = vsel %vm796_vm13, %v783_v61, %v809_v11 }
 0x2ca   :  { %v823_v25 = vsel %vm797_vm14, %v784_v62, %v810_v13  ;;  %829 = vst [vmem:[%s1697_s5 + $0x28] sm:$0xff] %v816_v17  ;;  %830 = vst [vmem:[%s1697_s5 + $0x30] sm:$0xff] %v817_v18 }
 0x2cb   :  { %831 = vst [vmem:[%s1697_s5 + $0x38] sm:$0xff] %v818_v19  ;;  %832 = vst [vmem:[%s1697_s5 + $0x40] sm:$0xff] %v819_v20 }
 0x2cc   :  { %833 = vst [vmem:[%s1697_s5 + $0x48] sm:$0xff] %v820_v21  ;;  %834 = vst [vmem:[%s1697_s5 + $0x50] sm:$0xff] %v821_v22 }
 0x2cd   :  { %835 = vst [vmem:[%s1697_s5 + $0x58] sm:$0xff] %v822_v24  ;;  %836 = vst.msk [vmem:[%s1697_s5 + $0x60] sm:$0xff] %vm683_vm1, %v823_v25 }

// kernel: convae_forward.13
= control target key start
LH: loop header
LB: loop body
LE: loop exit
PB: predicated region body
PF: predicated region fallthrough
CT: control target
= control target key end

     0   :  { %v851_v3 = vmov 0   ;;  %vm225_vm0 = vcmask 1043456   ;;  %vm221_vm1 = vcmask 588800   ;;  %vm853_vm2 = vmmov 0   ;;  %s1366_s1 = inlined_call_operand.vmem [shape: f32[72,1568], index: 1, kind: input, shape index: {}]   ;;  %s1367_s2 = inlined_call_operand.<no memory space> [shape: f32[1,1], index: 2, kind: input, shape index: {}]   ;;  %s1368_s0 = inlined_call_operand.vmem [shape: f32[1,72], index: 0, kind: input, shape index: {}]   ;;  %s1369_s3 = inlined_call_operand.<no memory space> [shape: f32[1,1], index: 3, kind: input, shape index: {}]   ;;  %s1370_s4 = inlined_call_operand.<no memory space> [shape: f32[1,1], index: 4, kind: input, shape index: {}]   ;;  %s1371_s5 = inlined_call_operand.vmem [shape: f32[1,1568], index: 5, kind: output, shape index: {}]  }
   0x1   :  { %v30_v0 = vld [vmem:[%s1366_s1 + $0x8] sm:$0xff]  ;;  %v43_v1 = vld [vmem:[%s1366_s1 + $0x70] sm:$0xff]  ;;  %v32_v2 = vld [vmem:[%s1366_s1 + $0x18] sm:$0xff]  ;;  %297 = vmatprep.mubr.bf16.mxu0 %v851_v3  ;;  %338 = vmatprep.mubr.bf16.mxu1 %v851_v3  ;;  %v10_v4 = vstv %s1367_s2  ;;  %vm551_vm3 = vcmask 1040384   ;;  %vm575_vm4 = vcmask 253952  }
   0x2   :  { %v147_v5 = vpack.c.bf16 %v43_v1, %v30_v0  ;;  %v45_v6 = vld [vmem:[%s1366_s1 + $0x80] sm:$0xff]  ;;  %v42_v8 = vld [vmem:[%s1366_s1 + $0x68] sm:$0xff]  ;;  %847 = vset.pattern.permute.xlu0 %v851_v3  ;;  %11 = vst [vmem:[#allocation2] sm:$0x1] %v10_v4  ;;  %848 = vset.pattern.permute.xlu1 %v851_v3  ;;  %v31_v11 = vld [vmem:[%s1366_s1 + $0x10] sm:$0xff] }
   0x3   :  { %v29_v7 = vld [vmem:[%s1366_s1] sm:$0xff]  ;;  %v149_v9 = vpack.c.bf16 %v45_v6, %v32_v2  ;;  %v44_v12 = vld [vmem:[%s1366_s1 + $0x78] sm:$0xff]  ;;  %v58_v16 = vld [vmem:[%s1366_s1 + $0xe8] sm:$0xff] }
   0x4   :  { %v146_v10 = vpack.c.bf16 %v42_v8, %v29_v7  ;;  %v56_v13 = vld [vmem:[%s1366_s1 + $0xd8] sm:$0xff]  ;;  %265 = vmatprep.subr.bf16.mxu0 %v147_v5  ;;  %v148_v14 = vpack.c.bf16 %v44_v12, %v31_v11  ;;  %v69_v15 = vld [vmem:[%s1366_s1 + $0x140] sm:$0xff]  ;;  %v71_v17 = vld [vmem:[%s1366_s1 + $0x150] sm:$0xff] }
   0x5   :  { %306 = vmatprep.subr.bf16.mxu1 %v149_v9  ;;  %v160_v18 = vpack.c.bf16 %v69_v15, %v56_v13  ;;  %v162_v19 = vpack.c.bf16 %v71_v17, %v58_v16  ;;  %v55_v20 = vld [vmem:[%s1366_s1 + $0xd0] sm:$0xff]  ;;  %v68_v21 = vld [vmem:[%s1366_s1 + $0x138] sm:$0xff]  ;;  %v57_v22 = vld [vmem:[%s1366_s1 + $0xe0] sm:$0xff] }
   0x6   :  { %266 = vmatpush1.bf16.msra.mxu0 %v146_v10  ;;  %307 = vmatpush1.bf16.msra.mxu1 %v148_v14  ;;  %v159_v23 = vpack.c.bf16 %v68_v21, %v55_v20  ;;  %v70_v24 = vld [vmem:[%s1366_s1 + $0x148] sm:$0xff]  ;;  %v95_v26 = vld [vmem:[%s1366_s1 + $0x210] sm:$0xff]  ;;  %v84_v29 = vld [vmem:[%s1366_s1 + $0x1b8] sm:$0xff] }
   0x7   :  { %v82_v25 = vld [vmem:[%s1366_s1 + $0x1a8] sm:$0xff]  ;;  %267 = vmatprep.subr.bf16.mxu0 %v160_v18  ;;  %308 = vmatprep.subr.bf16.mxu1 %v162_v19  ;;  %v161_v27 = vpack.c.bf16 %v70_v24, %v57_v22  ;;  %v97_v30 = vld [vmem:[%s1366_s1 + $0x220] sm:$0xff]  ;;  %v83_v34 = vld [vmem:[%s1366_s1 + $0x1b0] sm:$0xff] }
   0x8   :  { %v173_v28 = vpack.c.bf16 %v95_v26, %v82_v25  ;;  %v81_v31 = vld [vmem:[%s1366_s1 + $0x1a0] sm:$0xff]  ;;  %v175_v32 = vpack.c.bf16 %v97_v30, %v84_v29  ;;  %v94_v33 = vld [vmem:[%s1366_s1 + $0x208] sm:$0xff]  ;;  %v96_v35 = vld [vmem:[%s1366_s1 + $0x218] sm:$0xff] }
   0x9   :  { %v172_v36 = vpack.c.bf16 %v94_v33, %v81_v31  ;;  %v108_v37 = vld [vmem:[%s1366_s1 + $0x278] sm:$0xff]  ;;  %v121_v38 = vld [vmem:[%s1366_s1 + $0x2e0] sm:$0xff]  ;;  %v110_v39 = vld [vmem:[%s1366_s1 + $0x288] sm:$0xff]  ;;  %v174_v40 = vpack.c.bf16 %v96_v35, %v83_v34 }
   0xa   :  { %268 = vmatpush1.bf16.msra.mxu0 %v159_v23  ;;  %309 = vmatpush1.bf16.msra.mxu1 %v161_v27  ;;  %v186_v41 = vpack.c.bf16 %v121_v38, %v108_v37  ;;  %v123_v42 = vld [vmem:[%s1366_s1 + $0x2f0] sm:$0xff]  ;;  %v120_v44 = vld [vmem:[%s1366_s1 + $0x2d8] sm:$0xff]  ;;  %v109_v46 = vld [vmem:[%s1366_s1 + $0x280] sm:$0xff] }
   0xb   :  { %269 = vmatprep.subr.bf16.mxu0 %v173_v28  ;;  %v107_v43 = vld [vmem:[%s1366_s1 + $0x270] sm:$0xff]  ;;  %310 = vmatprep.subr.bf16.mxu1 %v175_v32  ;;  %v188_v45 = vpack.c.bf16 %v123_v42, %v110_v39  ;;  %v122_v47 = vld [vmem:[%s1366_s1 + $0x2e8] sm:$0xff]  ;;  %v136_v49 = vld [vmem:[%s1366_s1 + $0x358] sm:$0xff] }
   0xc   :  { %v134_v48 = vld [vmem:[%s1366_s1 + $0x348] sm:$0xff]  ;;  %v133_v50 = vld [vmem:[%s1366_s1 + $0x340] sm:$0xff]  ;;  %v135_v51 = vld [vmem:[%s1366_s1 + $0x350] sm:$0xff]  ;;  %v185_v52 = vpack.c.bf16 %v120_v44, %v107_v43  ;;  %v187_v53 = vpack.c.bf16 %v122_v47, %v109_v46  ;;  %v201_v56 = vpack.c.bf16 %v136_v49, %v136_v49 }
   0xd   :  { %v199_v54 = vpack.c.bf16 %v134_v48, %v134_v48  ;;  %v198_v55 = vpack.c.bf16 %v133_v50, %v133_v50  ;;  %v200_v57 = vpack.c.bf16 %v135_v51, %v135_v51  ;;  %v34_v58 = vld [vmem:[%s1366_s1 + $0x28] sm:$0xff]  ;;  %v47_v59 = vld [vmem:[%s1366_s1 + $0x90] sm:$0xff]  ;;  %v36_v60 = vld [vmem:[%s1366_s1 + $0x38] sm:$0xff] }
   0xe   :  { %270 = vmatpush1.bf16.msra.mxu0 %v172_v36  ;;  %311 = vmatpush1.bf16.msra.mxu1 %v174_v40  ;;  %v49_v61 = vld [vmem:[%s1366_s1 + $0xa0] sm:$0xff]  ;;  %v151_v0 = vpack.c.bf16 %v47_v59, %v34_v58  ;;  %v46_v2 = vld [vmem:[%s1366_s1 + $0x88] sm:$0xff]  ;;  %v35_v4 = vld [vmem:[%s1366_s1 + $0x30] sm:$0xff] }
   0xf   :  { %271 = vmatprep.subr.bf16.mxu0 %v186_v41  ;;  %312 = vmatprep.subr.bf16.mxu1 %v188_v45  ;;  %v27_v62 = vld [vmem:[%s1368_s0] sm:$0x1]  ;;  %v227_v63 = vsel %vm225_vm0, %v198_v55, 0  ;;  %v233_v5 = vsel %vm225_vm0, %v200_v57, 0  ;;  %v153_v6 = vpack.c.bf16 %v49_v61, %v36_v60  ;;  %v48_v7 = vld [vmem:[%s1366_s1 + $0x98] sm:$0xff]  ;;  %v62_v11 = vld [vmem:[%s1366_s1 + $0x108] sm:$0xff] }
  0x10   :  { %v33_v1 = vld [vmem:[%s1366_s1 + $0x20] sm:$0xff]  ;;  %v60_v8 = vld [vmem:[%s1366_s1 + $0xf8] sm:$0xff]  ;;  %v1037_v10 = vpack.c.bf16 %v27_v62, %v27_v62  ;;  %v75_v12 = vld [vmem:[%s1366_s1 + $0x170] sm:$0xff]  ;;  %v152_v14 = vpack.c.bf16 %v48_v7, %v35_v4 }
  0x11   :  { %v73_v9 = vld [vmem:[%s1366_s1 + $0x160] sm:$0xff]  ;;  %v150_v13 = vpack.c.bf16 %v46_v2, %v33_v1  ;;  %v59_v16 = vld [vmem:[%s1366_s1 + $0xf0] sm:$0xff]  ;;  %v72_v17 = vld [vmem:[%s1366_s1 + $0x158] sm:$0xff]  ;;  %v166_v19 = vpack.c.bf16 %v75_v12, %v62_v11 }
  0x12   :  { %272 = vmatpush1.bf16.msra.mxu0 %v185_v52  ;;  %313 = vmatpush1.bf16.msra.mxu1 %v187_v53  ;;  %v164_v15 = vpack.c.bf16 %v73_v9, %v60_v8  ;;  %v61_v18 = vld [vmem:[%s1366_s1 + $0x100] sm:$0xff]  ;;  %v74_v20 = vld [vmem:[%s1366_s1 + $0x168] sm:$0xff]  ;;  %v99_v22 = vld [vmem:[%s1366_s1 + $0x230] sm:$0xff]  ;;  %v163_v25 = vpack.c.bf16 %v72_v17, %v59_v16 }
  0x13   :  { %810 = vmatprep.subr.msk.bf16.mxu0 %vm225_vm0, %v199_v54  ;;  %812 = vmatprep.subr.msk.bf16.mxu1 %vm225_vm0, %v201_v56  ;;  %v86_v21 = vld [vmem:[%s1366_s1 + $0x1c8] sm:$0xff]  ;;  %v88_v23 = vld [vmem:[%s1366_s1 + $0x1d8] sm:$0xff]  ;;  %v101_v24 = vld [vmem:[%s1366_s1 + $0x240] sm:$0xff]  ;;  %v165_v26 = vpack.c.bf16 %v74_v20, %v61_v18 }
  0x14   :  { %v177_v27 = vpack.c.bf16 %v99_v22, %v86_v21  ;;  %v85_v28 = vld [vmem:[%s1366_s1 + $0x1c0] sm:$0xff]  ;;  %v98_v29 = vld [vmem:[%s1366_s1 + $0x228] sm:$0xff]  ;;  %v87_v30 = vld [vmem:[%s1366_s1 + $0x1d0] sm:$0xff]  ;;  %v179_v31 = vpack.c.bf16 %v101_v24, %v88_v23 }
  0x15   :  { %v100_v32 = vld [vmem:[%s1366_s1 + $0x238] sm:$0xff]  ;;  %v125_v34 = vld [vmem:[%s1366_s1 + $0x300] sm:$0xff]  ;;  %v114_v35 = vld [vmem:[%s1366_s1 + $0x2a8] sm:$0xff]  ;;  %v176_v37 = vpack.c.bf16 %v98_v29, %v85_v28 }
  0x16   :  { %274 = vmatpush1.bf16.msra.mxu0 %v227_v63  ;;  %315 = vmatpush1.bf16.msra.mxu1 %v233_v5  ;;  %v112_v33 = vld [vmem:[%s1366_s1 + $0x298] sm:$0xff]  ;;  %v127_v36 = vld [vmem:[%s1366_s1 + $0x310] sm:$0xff]  ;;  %v178_v38 = vpack.c.bf16 %v100_v32, %v87_v30  ;;  %v113_v42 = vld [vmem:[%s1366_s1 + $0x2a0] sm:$0xff] }
  0x17   :  { %347 = vmatprep.subr.bf16.mxu0 %v151_v0  ;;  %388 = vmatprep.subr.bf16.mxu1 %v153_v6  ;;  %v190_v39 = vpack.c.bf16 %v125_v34, %v112_v33  ;;  %v111_v40 = vld [vmem:[%s1366_s1 + $0x290] sm:$0xff]  ;;  %v124_v41 = vld [vmem:[%s1366_s1 + $0x2f8] sm:$0xff]  ;;  %v192_v43 = vpack.c.bf16 %v127_v36, %v114_v35  ;;  %v126_v44 = vld [vmem:[%s1366_s1 + $0x308] sm:$0xff] }
  0x18   :  { %v138_v45 = vld [vmem:[%s1366_s1 + $0x368] sm:$0xff]  ;;  %v137_v46 = vld [vmem:[%s1366_s1 + $0x360] sm:$0xff]  ;;  %v140_v47 = vld [vmem:[%s1366_s1 + $0x378] sm:$0xff]  ;;  %v189_v49 = vpack.c.bf16 %v124_v41, %v111_v40  ;;  %v191_v50 = vpack.c.bf16 %v126_v44, %v113_v42 }
  0x19   :  { %811 = vmatmul.mubr.msk.bf16.vlgmr.msra.gmra.mrb[0].mxu0 %vm221_vm1, %v1037_v10  ;;  %813 = vmatmul.mubr.msk.bf16.vlgmr.msra.gmra.mrb[0].mxu1 %vm221_vm1, %v1037_v10  ;;  %v139_v48 = vld [vmem:[%s1366_s1 + $0x370] sm:$0xff]  ;;  %v203_v51 = vpack.c.bf16 %v138_v45, %v138_v45  ;;  %v202_v52 = vpack.c.bf16 %v137_v46, %v137_v46  ;;  %v205_v53 = vpack.c.bf16 %v140_v47, %v140_v47  ;;  %v38_v55 = vld [vmem:[%s1366_s1 + $0x48] sm:$0xff]  ;;  %v40_v57 = vld [vmem:[%s1366_s1 + $0x58] sm:$0xff] }
  0x1a   :  { %348 = vmatpush1.bf16.msra.mxu0 %v150_v13  ;;  %389 = vmatpush1.bf16.msra.mxu1 %v152_v14  ;;  %v204_v54 = vpack.c.bf16 %v139_v48, %v139_v48  ;;  %v51_v56 = vld [vmem:[%s1366_s1 + $0xb0] sm:$0xff]  ;;  %v53_v58 = vld [vmem:[%s1366_s1 + $0xc0] sm:$0xff]  ;;  %v50_v62 = vld [vmem:[%s1366_s1 + $0xa8] sm:$0xff] }
  0x1b   :  { %349 = vmatprep.subr.bf16.mxu0 %v164_v15  ;;  %390 = vmatprep.subr.bf16.mxu1 %v166_v19  ;;  %v239_v59 = vsel %vm225_vm0, %v202_v52, 0  ;;  %v155_v60 = vpack.c.bf16 %v51_v56, %v38_v55  ;;  %v37_v61 = vld [vmem:[%s1366_s1 + $0x40] sm:$0xff]  ;;  %v39_v63 = vld [vmem:[%s1366_s1 + $0x50] sm:$0xff]  ;;  %v157_v1 = vpack.c.bf16 %v53_v58, %v40_v57  ;;  %v52_v2 = vld [vmem:[%s1366_s1 + $0xb8] sm:$0xff]  ;;  %v852_v56 = vmov 0.0  }
  0x1c   :  { %379 = vmatprep.mubr.bf16.mxu0 %v851_v3  ;;  %420 = vmatprep.mubr.bf16.mxu1 %v851_v3  ;;  %v245_v0 = vsel %vm225_vm0, %v204_v54, 0  ;;  %v64_v4 = vld [vmem:[%s1366_s1 + $0x118] sm:$0xff]  ;;  %v77_v5 = vld [vmem:[%s1366_s1 + $0x180] sm:$0xff]  ;;  %v66_v6 = vld [vmem:[%s1366_s1 + $0x128] sm:$0xff]  ;;  %v154_v9 = vpack.c.bf16 %v50_v62, %v37_v61  ;;  %v156_v11 = vpack.c.bf16 %v52_v2, %v39_v63 }
  0x1d   :  { %v79_v7 = vld [vmem:[%s1366_s1 + $0x190] sm:$0xff]  ;;  %v211_v8 = vld [vmem:[#allocation2] sm:$0x1]  ;;  %v168_v12 = vpack.c.bf16 %v77_v5, %v64_v4  ;;  %v76_v14 = vld [vmem:[%s1366_s1 + $0x178] sm:$0xff] }
  0x1e   :  { %350 = vmatpush1.bf16.msra.mxu0 %v163_v25  ;;  %391 = vmatpush1.bf16.msra.mxu1 %v165_v26  ;;  %v63_v13 = vld [vmem:[%s1366_s1 + $0x110] sm:$0xff]  ;;  %v65_v15 = vld [vmem:[%s1366_s1 + $0x120] sm:$0xff]  ;;  %v170_v16 = vpack.c.bf16 %v79_v7, %v66_v6  ;;  %v78_v17 = vld [vmem:[%s1366_s1 + $0x188] sm:$0xff]  ;;  %v12_v6 = vstv %s1369_s3 }
  0x1f   :  { %351 = vmatprep.subr.bf16.mxu0 %v177_v27  ;;  %392 = vmatprep.subr.bf16.mxu1 %v179_v31  ;;  %v90_v18 = vld [vmem:[%s1366_s1 + $0x1e8] sm:$0xff]  ;;  %v103_v19 = vld [vmem:[%s1366_s1 + $0x250] sm:$0xff]  ;;  %v92_v20 = vld [vmem:[%s1366_s1 + $0x1f8] sm:$0xff]  ;;  %v167_v22 = vpack.c.bf16 %v76_v14, %v63_v13  ;;  %v169_v23 = vpack.c.bf16 %v78_v17, %v65_v15  ;;  %13 = vst [vmem:[#allocation3] sm:$0x1] %v12_v6  ;;  %v217_v14 = vlaneseq }
  0x20   :  { %214 = vperm.xlu0 %847, %v211_v8   ;;  %v105_v21 = vld [vmem:[%s1366_s1 + $0x260] sm:$0xff]  ;;  %v181_v24 = vpack.c.bf16 %v103_v19, %v90_v18  ;;  %v102_v26 = vld [vmem:[%s1366_s1 + $0x248] sm:$0xff]  ;;  %v91_v27 = vld [vmem:[%s1366_s1 + $0x1f0] sm:$0xff] }
  0x21   :  { %v89_v25 = vld [vmem:[%s1366_s1 + $0x1e0] sm:$0xff]  ;;  %v183_v28 = vpack.c.bf16 %v105_v21, %v92_v20  ;;  %v104_v29 = vld [vmem:[%s1366_s1 + $0x258] sm:$0xff]  ;;  %v118_v32 = vld [vmem:[%s1366_s1 + $0x2c8] sm:$0xff]  ;;  %v1283_v18 = vshrl.u32 %v217_v14, 7  ;;  %vm803_vm5 = vcmp.lt.s32.totalorder %v217_v14, 544 }
  0x22   :  { %352 = vmatpush1.bf16.msra.mxu0 %v176_v37  ;;  %393 = vmatpush1.bf16.msra.mxu1 %v178_v38  ;;  %v116_v30 = vld [vmem:[%s1366_s1 + $0x2b8] sm:$0xff]  ;;  %v129_v31 = vld [vmem:[%s1366_s1 + $0x320] sm:$0xff]  ;;  %v131_v33 = vld [vmem:[%s1366_s1 + $0x330] sm:$0xff]  ;;  %v180_v34 = vpack.c.bf16 %v102_v26, %v89_v25  ;;  %v182_v35 = vpack.c.bf16 %v104_v29, %v91_v27 }
  0x23   :  { %353 = vmatprep.subr.bf16.mxu0 %v190_v39  ;;  %394 = vmatprep.subr.bf16.mxu1 %v192_v43  ;;  %v194_v36 = vpack.c.bf16 %v129_v31, %v116_v30  ;;  %v115_v37 = vld [vmem:[%s1366_s1 + $0x2b0] sm:$0xff]  ;;  %v128_v38 = vld [vmem:[%s1366_s1 + $0x318] sm:$0xff]  ;;  %v117_v39 = vld [vmem:[%s1366_s1 + $0x2c0] sm:$0xff] }
  0x24   :  { %v130_v40 = vld [vmem:[%s1366_s1 + $0x328] sm:$0xff]  ;;  %v141_v42 = vld [vmem:[%s1366_s1 + $0x380] sm:$0xff]  ;;  %v144_v43 = vld [vmem:[%s1366_s1 + $0x398] sm:$0xff]  ;;  %v193_v45 = vpack.c.bf16 %v128_v38, %v115_v37 }
  0x25   :  { %v142_v41 = vld [vmem:[%s1366_s1 + $0x388] sm:$0xff]  ;;  %v143_v44 = vld [vmem:[%s1366_s1 + $0x390] sm:$0xff]  ;;  %v195_v46 = vpack.c.bf16 %v130_v40, %v117_v39  ;;  %v206_v48 = vpack.c.bf16 %v141_v42, %v141_v42  ;;  %v41_v52 = vld [vmem:[%s1366_s1 + $0x60] sm:$0xff] }
  0x26   :  { %354 = vmatpush1.bf16.msra.mxu0 %v189_v49  ;;  %395 = vmatpush1.bf16.msra.mxu1 %v191_v50  ;;  %v207_v47 = vpack.c.bf16 %v142_v41, %v142_v41  ;;  %v209_v49 = vpack.c.bf16 %v144_v43, %v144_v43  ;;  %v208_v50 = vpack.c.bf16 %v143_v44, %v143_v44  ;;  %v67_v57 = vld [vmem:[%s1366_s1 + $0x130] sm:$0xff]  ;;  %v80_v58 = vld [vmem:[%s1366_s1 + $0x198] sm:$0xff]  ;;  %v106_v61 = vld [vmem:[%s1366_s1 + $0x268] sm:$0xff] }
  0x27   :  { %814 = vmatprep.subr.msk.bf16.mxu0 %vm225_vm0, %v203_v51  ;;  %816 = vmatprep.subr.msk.bf16.mxu1 %vm225_vm0, %v205_v53  ;;  %v251_v51 = vsel %vm225_vm0, %v206_v48, 0  ;;  %v54_v53 = vld [vmem:[%s1366_s1 + $0xc8] sm:$0xff]  ;;  %v119_v63 = vld [vmem:[%s1366_s1 + $0x2d0] sm:$0xff]  ;;  %v651_v7 = vld [vmem:[#allocation3] sm:$0x1] }
  0x28   :  { %v257_v54 = vsel %vm225_vm0, %v208_v50, 0  ;;  %v158_v55 = vpack.c.bf16 %v54_v53, %v41_v52  ;;  %654 = vperm.xlu1 %848, %v651_v7  }
  0x2a   :  { %356 = vmatpush1.bf16.msra.mxu0 %v239_v59  ;;  %397 = vmatpush1.bf16.msra.mxu1 %v245_v0  ;;  %v171_v59 = vpack.c.bf16 %v80_v58, %v67_v57  ;;  %v132_v0 = vld [vmem:[%s1366_s1 + $0x338] sm:$0xff] }
  0x2b   :  { %429 = vmatprep.subr.bf16.mxu0 %v155_v60  ;;  %470 = vmatprep.subr.bf16.mxu1 %v157_v1  ;;  %v93_v60 = vld [vmem:[%s1366_s1 + $0x200] sm:$0xff]  ;;  %v197_v2 = vpack.c.bf16 %v132_v0, %v119_v63 }
  0x2c   :  { %v184_v62 = vpack.c.bf16 %v106_v61, %v93_v60  ;;  %v145_v1 = vld [vmem:[%s1366_s1 + $0x3a0] sm:$0xff] }
  0x2d   :  { %815 = vmatmul.mubr.msk.bf16.vlgmr.msra.gmra.mrb[4].mxu0 %vm221_vm1, %v1037_v10  ;;  %817 = vmatmul.mubr.msk.bf16.vlgmr.msra.gmra.mrb[4].mxu1 %vm221_vm1, %v1037_v10  ;;  %v210_v4 = vpack.c.bf16 %v145_v1, %v145_v1 }
  0x2e   :  { %430 = vmatpush1.bf16.msra.mxu0 %v154_v9  ;;  %471 = vmatpush1.bf16.msra.mxu1 %v156_v11 }
  0x2f   :  { %431 = vmatprep.subr.bf16.mxu0 %v168_v12  ;;  %472 = vmatprep.subr.bf16.mxu1 %v170_v16  ;;  %v263_v5 = vsel %vm225_vm0, %v210_v4, 0 }
  0x30   :  { %461 = vmatprep.mubr.bf16.mxu0 %v851_v3  ;;  %502 = vmatprep.mubr.bf16.mxu1 %v851_v3  ;;  %v196_v3 = vpack.c.bf16 %v131_v33, %v118_v32 }
  0x32   :  { %432 = vmatpush1.bf16.msra.mxu0 %v167_v22  ;;  %473 = vmatpush1.bf16.msra.mxu1 %v169_v23 }
  0x33   :  { %433 = vmatprep.subr.bf16.mxu0 %v181_v24  ;;  %474 = vmatprep.subr.bf16.mxu1 %v183_v28 }
  0x36   :  { %434 = vmatpush1.bf16.msra.mxu0 %v180_v34  ;;  %475 = vmatpush1.bf16.msra.mxu1 %v182_v35 }
  0x37   :  { %435 = vmatprep.subr.bf16.mxu0 %v194_v36  ;;  %476 = vmatprep.subr.bf16.mxu1 %v196_v3 }
  0x3a   :  { %436 = vmatpush1.bf16.msra.mxu0 %v193_v45  ;;  %477 = vmatpush1.bf16.msra.mxu1 %v195_v46 }
  0x3b   :  { %818 = vmatprep.subr.msk.bf16.mxu0 %vm225_vm0, %v207_v47  ;;  %820 = vmatprep.subr.msk.bf16.mxu1 %vm225_vm0, %v209_v49 }
  0x3e   :  { %438 = vmatpush1.bf16.msra.mxu0 %v251_v51  ;;  %479 = vmatpush1.bf16.msra.mxu1 %v257_v54 }
  0x3f   :  { %829 = vmatprep.subr.bf16.mxu0 %v852_v56 }
  0x41   :  { %819 = vmatmul.mubr.msk.bf16.vlgmr.msra.gmra.mrb[8].mxu0 %vm221_vm1, %v1037_v10  ;;  %821 = vmatmul.mubr.msk.bf16.vlgmr.msra.gmra.mrb[8].mxu1 %vm221_vm1, %v1037_v10 }
  0x42   :  { %830 = vmatpush3.bf16.msra.mxu0 %v158_v55  ;;  %839 = vmatprep.mubr.msk.bf16.mxu0 %vm853_vm2, %v852_v56 }
  0x43   :  { %831 = vmatprep.subr.bf16.mxu0 %v852_v56 }
  0x46   :  { %832 = vmatpush3.bf16.msra.mxu0 %v171_v59 }
  0x47   :  { %833 = vmatprep.subr.bf16.mxu0 %v852_v56 }
  0x4a   :  { %834 = vmatpush3.bf16.msra.mxu0 %v184_v62 }
  0x4b   :  { %835 = vmatprep.subr.bf16.mxu0 %v852_v56 }
  0x4e   :  { %836 = vmatpush3.bf16.msra.mxu0 %v197_v2 }
  0x4f   :  { %837 = vmatprep.subr.bf16.mxu0 %v852_v56 }
  0x52   :  { %838 = vmatpush3.bf16.msra.mxu0 %v263_v5 }
  0x55   :  { %840 = vmatmul.mubr.msk.bf16.vlgmr.msra.gmra.mrb[12].mxu0 %vm221_vm1, %v1037_v10  ;;  %v1286_v10 = vsub.s32 0, %v1283_v18 }
  0x9f   :  { %v215_v19 = vpop.permute.xlu0 %214 }
  0xa0   :  { %v220_v20 = vrot.slane %v215_v19, %v1286_v10 }
  0xec   :  { %v299_v8 = vpop.f32.mrb[0].mxu0  ;;  %v340_v11 = vpop.f32.mrb[0].mxu1 }
  0xed   :  { %v301_v9 = vpop.f32.mrb[1].mxu0  ;;  %v342_v13 = vpop.f32.mrb[1].mxu1  ;;  %v1289_v21 = vadd.f32 %v299_v8, %v220_v20  ;;  %v341_v30 = vadd.f32 %v340_v11, %v220_v20 }
  0xee   :  { %v303_v12 = vpop.f32.mrb[2].mxu0  ;;  %v344_v16 = vpop.f32.mrb[2].mxu1  ;;  %v1291_v22 = vadd.f32 %v301_v9, %v220_v20  ;;  %v343_v36 = vadd.f32 %v342_v13, %v220_v20 }
  0xef   :  { %v304_v15 = vpop.f32.mrb[3].mxu0  ;;  %v345_v17 = vpop.f32.mrb[3].mxu1  ;;  %v552_v28 = vsel %vm551_vm3, %v1289_v21, 0.0  ;;  %v555_v35 = vsel %vm551_vm3, %v341_v30, 0.0 }
  0xf0   :  { %v553_v29 = vsel %vm551_vm3, %v1291_v22, 0.0  ;;  %v557_v39 = vsel %vm551_vm3, %v343_v36, 0.0  ;;  %v14_v17 = vstv %s1370_s4 }
  0xf1   :  { %v554_v34 = vadd.f32 %v553_v29, %v552_v28  ;;  %15 = vst [vmem:[#allocation4] sm:$0x1] %v14_v17 }
  0xf3   :  { %v556_v38 = vadd.f32 %v555_v35, %v554_v34 }
  0xf5   :  { %v558_v41 = vadd.f32 %v557_v39, %v556_v38 }
 0x100   :  { %v381_v23 = vpop.f32.mrb[4].mxu0  ;;  %v422_v25 = vpop.f32.mrb[4].mxu1 }
 0x101   :  { %v383_v24 = vpop.f32.mrb[5].mxu0  ;;  %v424_v27 = vpop.f32.mrb[5].mxu1  ;;  %v382_v37 = vadd.f32 %v381_v23, %v220_v20  ;;  %v423_v44 = vadd.f32 %v422_v25, %v220_v20 }
 0x102   :  { %v385_v26 = vpop.f32.mrb[6].mxu0  ;;  %v426_v32 = vpop.f32.mrb[6].mxu1  ;;  %v384_v40 = vadd.f32 %v383_v24, %v220_v20  ;;  %v425_v48 = vadd.f32 %v424_v27, %v220_v20 }
 0x103   :  { %v386_v31 = vpop.f32.mrb[7].mxu0  ;;  %v427_v33 = vpop.f32.mrb[7].mxu1  ;;  %v559_v3 = vsel %vm551_vm3, %v382_v37, 0.0  ;;  %v563_v47 = vsel %vm551_vm3, %v423_v44, 0.0 }
 0x104   :  { %v560_v42 = vadd.f32 %v559_v3, %v558_v41  ;;  %v561_v43 = vsel %vm551_vm3, %v384_v40, 0.0  ;;  %v565_v58 = vsel %vm551_vm3, %v425_v48, 0.0 }
 0x106   :  { %v562_v45 = vadd.f32 %v561_v43, %v560_v42 }
 0x108   :  { %v564_v56 = vadd.f32 %v563_v47, %v562_v45 }
 0x10a   :  { %v566_v61 = vadd.f32 %v565_v58, %v564_v56 }
 0x114   :  { %v463_v46 = vpop.f32.mrb[8].mxu0  ;;  %v504_v49 = vpop.f32.mrb[8].mxu1 }
 0x115   :  { %v465_v50 = vpop.f32.mrb[9].mxu0  ;;  %v506_v51 = vpop.f32.mrb[9].mxu1  ;;  %v464_v53 = vadd.f32 %v463_v46, %v220_v20  ;;  %v505_v0 = vadd.f32 %v504_v49, %v220_v20 }
 0x116   :  { %v467_v52 = vpop.f32.mrb[10].mxu0  ;;  %v508_v55 = vpop.f32.mrb[10].mxu1  ;;  %v466_v60 = vadd.f32 %v465_v50, %v220_v20  ;;  %v507_v4 = vadd.f32 %v506_v51, %v220_v20 }
 0x117   :  { %v468_v54 = vpop.f32.mrb[11].mxu0  ;;  %v509_v57 = vpop.f32.mrb[11].mxu1  ;;  %v567_v59 = vsel %vm551_vm3, %v464_v53, 0.0  ;;  %v571_v2 = vsel %vm551_vm3, %v505_v0, 0.0 }
 0x118   :  { %v568_v62 = vadd.f32 %v567_v59, %v566_v61  ;;  %v569_v63 = vsel %vm551_vm3, %v466_v60, 0.0  ;;  %v573_v7 = vsel %vm551_vm3, %v507_v4, 0.0 }
 0x11a   :  { %v570_v1 = vadd.f32 %v569_v63, %v568_v62 }
 0x11c   :  { %v572_v5 = vadd.f32 %v571_v2, %v570_v1 }
 0x11e   :  { %v574_v12 = vadd.f32 %v573_v7, %v572_v5 }
 0x128   :  { %v545_v6 = vpop.f32.mrb[12].mxu0 }
 0x129   :  { %v546_v8 = vadd.f32 %v545_v6, %v220_v20  ;;  %v841_v9 = vpop.f32.mrb[13].mxu0 }
 0x12a   :  { %v548_v11 = vpop.f32.mrb[14].mxu0  ;;  %v655_v9 = vpop.permute.xlu1 %654 }
 0x12b   :  { %v842_v13 = vpop.f32.mrb[15].mxu0  ;;  %v576_v15 = vsel %vm575_vm4, %v546_v8, 0.0 }
 0x12c   :  { %v577_v16 = vadd.f32 %v576_v15, %v574_v12  ;;  %v854_v15 = vmov 1966171168  }
 0x12e   :  { %578 = vadd.xlane.f32.xlu0 %v577_v16  ;;  %v715_v16 = vunpack.c.l.s4 %v854_v15 }
 0x130   :  { %v716_v17 = vunpack.c.0.s8 %v715_v16 }
 0x1bb   :  { %v579_v19 = vpop.xlane.xlu0 %578 }
 0x1bc   :  { %v581_v23 = vmul.f32 0.0006377551, %v579_v19 }
 0x1be   :  { %v1312_v24 = vsub.f32 %v1289_v21, %v581_v23  ;;  %v1315_v20 = vsub.f32 %v1291_v22, %v581_v23  ;;  %v1317_v25 = vsub.f32 %v341_v30, %v581_v23  ;;  %v1319_v26 = vsub.f32 %v343_v36, %v581_v23 }
 0x1bf   :  { %v1325_v29 = vsub.f32 %v382_v37, %v581_v23  ;;  %v1329_v21 = vsub.f32 %v384_v40, %v581_v23  ;;  %v588_v34 = vsub.f32 %v423_v44, %v581_v23  ;;  %v589_v38 = vsub.f32 %v425_v48, %v581_v23 }
 0x1c0   :  { %v595_v27 = vmul.f32 %v1312_v24, %v1312_v24  ;;  %v596_v28 = vmul.f32 %v1315_v20, %v1315_v20  ;;  %v597_v31 = vmul.f32 %v1317_v25, %v1317_v25  ;;  %v598_v22 = vmul.f32 %v1319_v26, %v1319_v26 }
 0x1c1   :  { %v599_v35 = vmul.f32 %v1325_v29, %v1325_v29  ;;  %v600_v39 = vmul.f32 %v1329_v21, %v1329_v21  ;;  %v590_v41 = vsub.f32 %v464_v53, %v581_v23  ;;  %v601_v42 = vmul.f32 %v588_v34, %v588_v34 }
 0x1c2   :  { %v608_v30 = vsel %vm551_vm3, %v595_v27, 0.0  ;;  %v609_v32 = vsel %vm551_vm3, %v596_v28, 0.0  ;;  %v611_v36 = vsel %vm551_vm3, %v597_v31, 0.0  ;;  %v613_v3 = vsel %vm551_vm3, %v598_v22, 0.0 }
 0x1c3   :  { %v610_v33 = vadd.f32 %v609_v32, %v608_v30  ;;  %v615_v43 = vsel %vm551_vm3, %v599_v35, 0.0  ;;  %v591_v46 = vsub.f32 %v466_v60, %v581_v23  ;;  %v602_v44 = vmul.f32 %v589_v38, %v589_v38 }
 0x1c4   :  { %v617_v47 = vsel %vm551_vm3, %v600_v39, 0.0  ;;  %v592_v50 = vsub.f32 %v505_v0, %v581_v23  ;;  %v603_v51 = vmul.f32 %v590_v41, %v590_v41  ;;  %v619_v48 = vsel %vm551_vm3, %v601_v42, 0.0 }
 0x1c5   :  { %v612_v37 = vadd.f32 %v611_v36, %v610_v33  ;;  %v593_v54 = vsub.f32 %v507_v4, %v581_v23  ;;  %v604_v55 = vmul.f32 %v591_v46, %v591_v46  ;;  %v621_v56 = vsel %vm551_vm3, %v602_v44, 0.0 }
 0x1c6   :  { %v594_v53 = vsub.f32 %v546_v8, %v581_v23  ;;  %v605_v58 = vmul.f32 %v592_v50, %v592_v50  ;;  %v623_v59 = vsel %vm551_vm3, %v603_v51, 0.0  ;;  %v674_v8 = vld [vmem:[#allocation4] sm:$0x1]  ;;  %v719_v27 = vsub.s32 %v716_v17, %v1283_v18 }
 0x1c7   :  { %v614_v40 = vadd.f32 %v613_v3, %v612_v37  ;;  %v606_v60 = vmul.f32 %v593_v54, %v593_v54  ;;  %v625_v62 = vsel %vm551_vm3, %v604_v55, 0.0  ;;  %v660_v28 = vrot.slane %v655_v9, %v1286_v10 }
 0x1c8   :  { %v607_v1 = vmul.f32 %v594_v53, %v594_v53  ;;  %v627_v0 = vsel %vm551_vm3, %v605_v58, 0.0 }
 0x1c9   :  { %v616_v45 = vadd.f32 %v615_v43, %v614_v40  ;;  %v629_v5 = vsel %vm551_vm3, %v606_v60, 0.0 }
 0x1ca   :  { %v631_v6 = vsel %vm575_vm4, %v607_v1, 0.0 }
 0x1cb   :  { %v618_v49 = vadd.f32 %v617_v47, %v616_v45 }
 0x1cd   :  { %v620_v52 = vadd.f32 %v619_v48, %v618_v49 }
 0x1cf   :  { %v622_v57 = vadd.f32 %v621_v56, %v620_v52 }
 0x1d1   :  { %v624_v61 = vadd.f32 %v623_v59, %v622_v57 }
 0x1d3   :  { %v626_v63 = vadd.f32 %v625_v62, %v624_v61 }
 0x1d5   :  { %v628_v2 = vadd.f32 %v627_v0, %v626_v63 }
 0x1d7   :  { %v630_v4 = vadd.f32 %v629_v5, %v628_v2 }
 0x1d9   :  { %v632_v7 = vadd.f32 %v631_v6, %v630_v4 }
 0x1db   :  { %633 = vadd.xlane.f32.xlu1 %v632_v7 }
 0x1ec   :  { %677 = vperm.xlu1 %848, %v674_v8  }
 0x268   :  { %v634_v11 = vpop.xlane.xlu1 %633 }
 0x269   :  { %v635_v12 = vmul.f32 0.0006377551, %v634_v11 }
 0x26b   :  { %v636_v13 = vadd.f32 1e-05, %v635_v12 }
 0x26c   :  { %v678_v19 = vpop.permute.xlu1 %677 }
 0x26d   :  { %849 = vrsqrt.f32 %v636_v13  ;;  %v683_v31 = vrot.slane %v678_v19, %v1286_v10 }
 0x277   :  { %v850_v23 = vpop.eup %849 }
 0x278   :  { %v638_v22 = vmul.f32 %v850_v23, %v1312_v24  ;;  %v639_v30 = vmul.f32 %v850_v23, %v1315_v20  ;;  %v640_v32 = vmul.f32 %v850_v23, %v1317_v25  ;;  %v641_v33 = vmul.f32 %v850_v23, %v1319_v26 }
 0x279   :  { %v642_v35 = vmul.f32 %v850_v23, %v1325_v29  ;;  %v643_v36 = vmul.f32 %v850_v23, %v1329_v21  ;;  %v644_v37 = vmul.f32 %v850_v23, %v588_v34  ;;  %v645_v39 = vmul.f32 %v850_v23, %v589_v38 }
 0x27a   :  { %v646_v3 = vmul.f32 %v850_v23, %v590_v41  ;;  %v647_v18 = vmul.f32 %v850_v23, %v591_v46  ;;  %v648_v40 = vmul.f32 %v850_v23, %v592_v50  ;;  %v649_v42 = vmul.f32 %v850_v23, %v593_v54 }
 0x27b   :  { %v650_v43 = vmul.f32 %v850_v23, %v594_v53  ;;  %v661_v10 = vmul.f32 %v660_v28, %v638_v22  ;;  %v662_v45 = vmul.f32 %v660_v28, %v639_v30  ;;  %v663_v24 = vmul.f32 %v660_v28, %v640_v32 }
 0x27c   :  { %v664_v44 = vmul.f32 %v660_v28, %v641_v33  ;;  %v665_v20 = vmul.f32 %v660_v28, %v642_v35  ;;  %v666_v47 = vmul.f32 %v660_v28, %v643_v36  ;;  %v667_v25 = vmul.f32 %v660_v28, %v644_v37 }
 0x27d   :  { %v668_v49 = vmul.f32 %v660_v28, %v645_v39  ;;  %v669_v26 = vmul.f32 %v660_v28, %v646_v3  ;;  %v670_v51 = vmul.f32 %v660_v28, %v647_v18  ;;  %v671_v29 = vmul.f32 %v660_v28, %v648_v40 }
 0x27e   :  { %v672_v48 = vmul.f32 %v660_v28, %v649_v42  ;;  %v673_v21 = vmul.f32 %v660_v28, %v650_v43  ;;  %v684_v34 = vadd.f32 %v683_v31, %v661_v10  ;;  %v685_v38 = vadd.f32 %v683_v31, %v662_v45 }
 0x27f   :  { %v686_v41 = vadd.f32 %v683_v31, %v663_v24  ;;  %v687_v46 = vadd.f32 %v683_v31, %v664_v44  ;;  %v688_v50 = vadd.f32 %v683_v31, %v665_v20  ;;  %v689_v52 = vadd.f32 %v683_v31, %v666_v47 }
 0x280   :  { %v690_v54 = vadd.f32 %v683_v31, %v667_v25  ;;  %v691_v55 = vadd.f32 %v683_v31, %v668_v49  ;;  %v692_v56 = vadd.f32 %v683_v31, %v669_v26  ;;  %v693_v57 = vadd.f32 %v683_v31, %v670_v51 }
 0x281   :  { %v694_v53 = vadd.f32 %v683_v31, %v671_v29  ;;  %v695_v58 = vadd.f32 %v683_v31, %v672_v48  ;;  %v696_v59 = vadd.f32 %v683_v31, %v673_v21  ;;  %v710_v61 = vcombine.low %v684_v34, %v685_v38 }
 0x282   :  { %v711_v60 = vcombine.low %v686_v41, %v687_v46  ;;  %v712_v62 = vcombine.low %v688_v50, %v689_v52  ;;  %v713_v63 = vcombine.low %v690_v54, %v691_v55  ;;  %v759_v1 = vcombine.low %v692_v56, %v693_v57 }
 0x283   :  { %v720_v0 = vrot.slane %v710_v61, %v719_v27  ;;  %v760_v2 = vcombine.low %v694_v53, %v695_v58  ;;  %v781_v9 = vrot.slane %v696_v59, %v719_v27 }
 0x284   :  { %v727_v5 = vrot.slane %v711_v60, %v719_v27  ;;  %v734_v4 = vrot.slane %v712_v62, %v719_v27  ;;  %v741_v6 = vrot.slane %v713_v63, %v719_v27  ;;  %v767_v7 = vrot.slane %v759_v1, %v719_v27 }
 0x285   :  { %v774_v8 = vrot.slane %v760_v2, %v719_v27  ;;  %v796_v19 = vrot.slane %v781_v9, %v719_v27 }
 0x286   :  { %v742_v11 = vcombine.low %v720_v0, %v727_v5  ;;  %v743_v12 = vcombine.low %v734_v4, %v741_v6 }
 0x287   :  { %v782_v13 = vcombine.low %v767_v7, %v774_v8 }
 0x288   :  { %v750_v15 = vrot.slane %v742_v11, %v719_v27  ;;  %v757_v16 = vrot.slane %v743_v12, %v719_v27 }
 0x289   :  { %v789_v17 = vrot.slane %v782_v13, %v719_v27 }
 0x28a   :  { %v758_v23 = vcombine.low %v750_v15, %v757_v16 }
 0x28b   :  { %v797_v28 = vcombine.low %v789_v17, %v796_v19 }
 0x28c   :  { %800 = vst [vmem:[%s1371_s5] sm:$0xff] %v758_v23 }
 0x28d   :  { %805 = vst.msk [vmem:[%s1371_s5 + $0x8] sm:$0x1f] %vm803_vm5, %v797_v28 }

</bundles_post_ra>
